<compile_context>
chip_gen: v5e
topology: v5e:2x2
jax: 0.10.0
libtpu: 0.0.40
codegen_flags: <defaults>
</compile_context>

<pallas_src>
import functools
import numpy as np

import jax
import jax.numpy as jnp
from jax.experimental import pallas as pl
from jax.experimental.pallas import tpu as pltpu

WIN_SIZE = 11
WIN_SIGMA = 1.5
DATA_RANGE = 255.0
K1, K2 = 0.01, 0.03
C1 = (K1 * DATA_RANGE) ** 2
C2 = (K2 * DATA_RANGE) ** 2
LEVELS = 5
# Standard MS-SSIM level weights (pytorch_msssim defaults).
MS_WEIGHTS = np.array([0.0448, 0.2856, 0.3001, 0.2363, 0.1333], dtype=np.float32)


def _gauss_1d(size, sigma):
    # Matches pytorch_msssim._fspecial_gauss_1d: arange - size//2, exp, norm.
    coords = np.arange(size, dtype=np.float32) - (size // 2)
    g = np.exp(-(coords ** 2) / (2.0 * sigma ** 2))
    return (g / g.sum()).astype(np.float32)


def _round_up(v, m):
    return (v + m - 1) // m * m


def _band_matrices(h, w, win):
    # Valid (no padding) separable correlation as banded matmuls:
    #   filtered = BH @ x_pad @ BW,  BH: (Hc, Hp),  BW: (W, Wc)
    # Hp = ceil8(h): the extra zero columns of BH line up with the zero rows we
    # pad in-kernel so all row-group offsets stay sublane-aligned (exact math).
    ws = win.shape[0]
    hc, wc = h - ws + 1, w - ws + 1
    hp = _round_up(h, 8)
    bh = np.zeros((hc, hp), dtype=np.float32)
    for i in range(hc):
        bh[i, i:i + ws] = win
    bw = np.zeros((w, wc), dtype=np.float32)
    for j in range(wc):
        bw[j:j + ws, j] = win
    return bh, bw


def _pool_matrices(h, w):
    # 2x2 stride-2 average pool as matmuls: pooled = DH @ x @ DW.
    # Entries are exactly 0.5 -> exactly representable in bf16.
    h2, w2 = h // 2, w // 2
    dh = np.zeros((h2, h), dtype=np.float32)
    for i in range(h2):
        dh[i, 2 * i] = 0.5
        dh[i, 2 * i + 1] = 0.5
    dw = np.zeros((w, w2), dtype=np.float32)
    for j in range(w2):
        dw[2 * j, j] = 0.5
        dw[2 * j + 1, j] = 0.5
    return dh, dw


def _pad_rows(t, hp):
    h = t.shape[0]
    if h == hp:
        return t
    return jnp.concatenate(
        [t, jnp.zeros((hp - h, t.shape[1]), t.dtype)], axis=0)


def _pool(t, dh_bf, dw_bf):
    # 2x2 average pool via two single-pass bf16 matmuls (f32 accumulate).
    th = jnp.dot(dh_bf, t.astype(jnp.bfloat16),
                 preferred_element_type=jnp.float32)
    return jnp.dot(th.astype(jnp.bfloat16), dw_bf,
                   preferred_element_type=jnp.float32)


def _msssim_kernel(levels, group, x_ref, y_ref, *rest):
    """All MS-SSIM levels for `group` images (grid axis = image-group index)."""
    mat_refs, out_ref = rest[:-1], rest[-1]
    bh_refs = mat_refs[:levels]
    bw_refs = mat_refs[levels:2 * levels]
    dh_refs = mat_refs[2 * levels:3 * levels - 1]
    dw_refs = mat_refs[3 * levels - 1:]

    xs = [x_ref[g] for g in range(group)]          # (H, W) f32 each
    ys = [y_ref[g] for g in range(group)]
    per_img_vals = [[] for _ in range(group)]      # cs_0..3, ssim_4 per image

    for lvl in range(levels):                      # static 5-level unroll
        last = lvl == levels - 1
        bh = bh_refs[lvl][...]                     # (Hc, Hp) f32
        bw = bw_refs[lvl][...]                     # (W, Wc)  f32
        bh_bf = bh.astype(jnp.bfloat16)
        bw_bf = bw.astype(jnp.bfloat16)
        hp = bh.shape[1]

        # ---- W-direction Gaussian filter, batched over images & quantities.
        # mu path in bf16 (single MXU pass), second-moment path in f32.
        q_mu = jnp.concatenate(
            [_pad_rows(t, hp) for g in range(group) for t in (xs[g], ys[g])],
            axis=0).astype(jnp.bfloat16)                        # (2G*Hp, W)
        s_mu = jnp.dot(q_mu, bw_bf, preferred_element_type=jnp.float32)
        q_sec = jnp.concatenate(
            [_pad_rows(t, hp)
             for g in range(group)
             for t in (xs[g] * xs[g], ys[g] * ys[g], xs[g] * ys[g])],
            axis=0)                                             # (3G*Hp, W) f32
        s_sec = jnp.dot(q_sec, bw, preferred_element_type=jnp.float32)

        # ---- H-direction filter + per-image statistics.
        for g in range(group):
            mu1 = jnp.dot(
                bh_bf, s_mu[(2 * g) * hp:(2 * g + 1) * hp].astype(jnp.bfloat16),
                preferred_element_type=jnp.float32)
            mu2 = jnp.dot(
                bh_bf, s_mu[(2 * g + 1) * hp:(2 * g + 2) * hp].astype(jnp.bfloat16),
                preferred_element_type=jnp.float32)
            e_xx = jnp.dot(bh, s_sec[(3 * g) * hp:(3 * g + 1) * hp],
                           preferred_element_type=jnp.float32)
            e_yy = jnp.dot(bh, s_sec[(3 * g + 1) * hp:(3 * g + 2) * hp],
                           preferred_element_type=jnp.float32)
            e_xy = jnp.dot(bh, s_sec[(3 * g + 2) * hp:(3 * g + 3) * hp],
                           preferred_element_type=jnp.float32)

            mu1_sq = mu1 * mu1
            mu2_sq = mu2 * mu2
            mu1_mu2 = mu1 * mu2
            sigma1_sq = e_xx - mu1_sq
            sigma2_sq = e_yy - mu2_sq
            sigma12 = e_xy - mu1_mu2

            # Division via approx reciprocal (EUP slot); ~1e-3 rel. error.
            cs_map = (2.0 * sigma12 + C2) * pl.reciprocal(
                sigma1_sq + sigma2_sq + C2, approx=True)
            if last:
                # Luminance term only needed at the final level.
                ssim_map = (2.0 * mu1_mu2 + C1) * pl.reciprocal(
                    mu1_sq + mu2_sq + C1, approx=True) * cs_map
                per_img_vals[g].append(jnp.mean(ssim_map, keepdims=True))
            else:
                per_img_vals[g].append(jnp.mean(cs_map, keepdims=True))

        if not last:
            # Downsample stays in VMEM for the next level (no HBM round-trip).
            dh_bf = dh_refs[lvl][...]              # bf16
            dw_bf = dw_refs[lvl][...]              # bf16
            for g in range(group):
                xs[g] = _pool(xs[g], dh_bf, dw_bf)
                ys[g] = _pool(ys[g], dh_bf, dw_bf)

    for g in range(group):                         # one (1, levels) store/image
        out_ref[g, 0:1, 0:levels] = jnp.concatenate(per_img_vals[g], axis=1)


def _pick_group(n):
    # Amortize per-grid-step overhead, but keep >= 2 grid steps so both
    # TensorCores stay busy under dimension_semantics=("parallel",).
    for g in (4, 2):
        if n % g == 0 and n // g >= 2:
            return g
    return 1


def ssim_loss_forward(img1, img2):
    """Equivalent of ssim_loss(if_MS=True, win_size=11)(img1, img2) = -MS_SSIM."""
    b, c, h, w = img1.shape
    levels = LEVELS
    # MS-SSIM requirement: smaller spatial side > (win_size - 1) * 2**4 = 160.
    assert min(h, w) > (WIN_SIZE - 1) * (2 ** (levels - 1))
    # TODO(synk): odd intermediate sizes would need pytorch_msssim's zero-padded
    # avg_pool; we require sizes divisible by 16 so no padding ever occurs.
    assert h % (2 ** (levels - 1)) == 0 and w % (2 ** (levels - 1)) == 0

    n = b * c
    group = _pick_group(n)
    x = img1.reshape(n, h, w).astype(jnp.float32)
    y = img2.reshape(n, h, w).astype(jnp.float32)

    win = _gauss_1d(WIN_SIZE, WIN_SIGMA)
    bh_l, bw_l, dh_l, dw_l = [], [], [], []
    hh, ww = h, w
    for lvl in range(levels):
        bh, bw = _band_matrices(hh, ww, win)
        bh_l.append(jnp.asarray(bh))                            # f32
        bw_l.append(jnp.asarray(bw))                            # f32
        if lvl < levels - 1:
            dh, dw = _pool_matrices(hh, ww)
            dh_l.append(jnp.asarray(dh, dtype=jnp.bfloat16))    # bf16 (exact)
            dw_l.append(jnp.asarray(dw, dtype=jnp.bfloat16))
            hh //= 2
            ww //= 2
    mats = bh_l + bw_l + dh_l + dw_l

    img_spec = pl.BlockSpec((group, h, w), lambda i: (i, 0, 0))
    mat_specs = [pl.BlockSpec(m.shape, lambda i: (0, 0)) for m in mats]
    out_spec = pl.BlockSpec((group, 1, levels), lambda i: (i, 0, 0))

    kern = functools.partial(_msssim_kernel, levels, group)
    vals_pl = pl.pallas_call(
        kern,
        grid=(n // group,),
        in_specs=[img_spec, img_spec] + mat_specs,
        out_specs=out_spec,
        out_shape=jax.ShapeDtypeStruct((n, 1, levels), jnp.float32),
        compiler_params=pltpu.CompilerParams(
            dimension_semantics=("parallel",),
            vmem_limit_bytes=32 * 1024 * 1024),
    )(x, y, *mats)

    # vals[:, l] = cs mean for l < 4, ssim mean for l = 4 (pytorch_msssim).
    vals = jnp.maximum(vals_pl[:, 0, :], 0.0)          # relu
    wts = jnp.asarray(MS_WEIGHTS).reshape(1, levels)
    ms_ssim_val = jnp.prod(vals ** wts, axis=1)        # (n,)
    return -jnp.mean(ms_ssim_val)                      # size_average, negated


if __name__ == "__main__":
    key = jax.random.PRNGKey(0)
    k1, k2 = jax.random.split(key)
    # Smallest clean shape satisfying the MS-SSIM size constraint (>160): 176.
    B, C, H, W = 2, 1, 176, 176
    img1 = jax.random.uniform(k1, (B, C, H, W), jnp.float32, 0.0, 255.0)
    img2 = jax.random.uniform(k2, (B, C, H, W), jnp.float32, 0.0, 255.0)

    loss = jax.jit(ssim_loss_forward)(img1, img2)
    jax.block_until_ready(loss)
    print("KERNEL_OK")
</pallas_src>

<mosaic_0001>
module attributes {stable_mosaic.version = 11 : i64} {
  func.func @_msssim_kernel(%arg0: i32, %arg1: memref<1x176x176xf32, #tpu.memory_space<vmem>>, %arg2: memref<1x176x176xf32, #tpu.memory_space<vmem>>, %arg3: memref<166x176xf32, #tpu.memory_space<vmem>>, %arg4: memref<78x88xf32, #tpu.memory_space<vmem>>, %arg5: memref<34x48xf32, #tpu.memory_space<vmem>>, %arg6: memref<12x24xf32, #tpu.memory_space<vmem>>, %arg7: memref<1x16xf32, #tpu.memory_space<vmem>>, %arg8: memref<176x166xf32, #tpu.memory_space<vmem>>, %arg9: memref<88x78xf32, #tpu.memory_space<vmem>>, %arg10: memref<44x34xf32, #tpu.memory_space<vmem>>, %arg11: memref<22x12xf32, #tpu.memory_space<vmem>>, %arg12: memref<11x1xf32, #tpu.memory_space<vmem>>, %arg13: memref<88x176xbf16, #tpu.memory_space<vmem>>, %arg14: memref<44x88xbf16, #tpu.memory_space<vmem>>, %arg15: memref<22x44xbf16, #tpu.memory_space<vmem>>, %arg16: memref<11x22xbf16, #tpu.memory_space<vmem>>, %arg17: memref<176x88xbf16, #tpu.memory_space<vmem>>, %arg18: memref<88x44xbf16, #tpu.memory_space<vmem>>, %arg19: memref<44x22xbf16, #tpu.memory_space<vmem>>, %arg20: memref<22x11xbf16, #tpu.memory_space<vmem>>, %arg21: memref<1x1x5xf32, #tpu.memory_space<vmem>>) attributes {dimension_semantics = [#tpu.dimension_semantics<parallel>], iteration_bounds = array<i64: 2>, scalar_prefetch = 0 : i64, scratch_operands = 0 : i64, tpu.core_type = #tpu.core_type<tc>, window_params = [{transform_indices = @transform_0, window_bounds = array<i64: 1, 176, 176>}, {transform_indices = @transform_1, window_bounds = array<i64: 1, 176, 176>}, {pipeline_mode = #tpu.pipeline_mode<synchronous>, transform_indices = @transform_2, window_bounds = array<i64: 166, 176>}, {pipeline_mode = #tpu.pipeline_mode<synchronous>, transform_indices = @transform_3, window_bounds = array<i64: 78, 88>}, {pipeline_mode = #tpu.pipeline_mode<synchronous>, transform_indices = @transform_4, window_bounds = array<i64: 34, 48>}, {pipeline_mode = #tpu.pipeline_mode<synchronous>, transform_indices = @transform_5, window_bounds = array<i64: 12, 24>}, {pipeline_mode = #tpu.pipeline_mode<synchronous>, transform_indices = @transform_6, window_bounds = array<i64: 1, 16>}, {pipeline_mode = #tpu.pipeline_mode<synchronous>, transform_indices = @transform_7, window_bounds = array<i64: 176, 166>}, {pipeline_mode = #tpu.pipeline_mode<synchronous>, transform_indices = @transform_8, window_bounds = array<i64: 88, 78>}, {pipeline_mode = #tpu.pipeline_mode<synchronous>, transform_indices = @transform_9, window_bounds = array<i64: 44, 34>}, {pipeline_mode = #tpu.pipeline_mode<synchronous>, transform_indices = @transform_10, window_bounds = array<i64: 22, 12>}, {pipeline_mode = #tpu.pipeline_mode<synchronous>, transform_indices = @transform_11, window_bounds = array<i64: 11, 1>}, {pipeline_mode = #tpu.pipeline_mode<synchronous>, transform_indices = @transform_12, window_bounds = array<i64: 88, 176>}, {pipeline_mode = #tpu.pipeline_mode<synchronous>, transform_indices = @transform_13, window_bounds = array<i64: 44, 88>}, {pipeline_mode = #tpu.pipeline_mode<synchronous>, transform_indices = @transform_14, window_bounds = array<i64: 22, 44>}, {pipeline_mode = #tpu.pipeline_mode<synchronous>, transform_indices = @transform_15, window_bounds = array<i64: 11, 22>}, {pipeline_mode = #tpu.pipeline_mode<synchronous>, transform_indices = @transform_16, window_bounds = array<i64: 176, 88>}, {pipeline_mode = #tpu.pipeline_mode<synchronous>, transform_indices = @transform_17, window_bounds = array<i64: 88, 44>}, {pipeline_mode = #tpu.pipeline_mode<synchronous>, transform_indices = @transform_18, window_bounds = array<i64: 44, 22>}, {pipeline_mode = #tpu.pipeline_mode<synchronous>, transform_indices = @transform_19, window_bounds = array<i64: 22, 11>}, {transform_indices = @transform_20, window_bounds = array<i64: 1, 1, 5>}]} {
    %c0 = arith.constant 0 : index
    %c0_0 = arith.constant 0 : index
    %c0_1 = arith.constant 0 : index
    %0 = vector.load %arg1[%c0, %c0_0, %c0_1] : memref<1x176x176xf32, #tpu.memory_space<vmem>>, vector<1x176x176xf32>
    %1 = vector.shape_cast %0 : vector<1x176x176xf32> to vector<176x176xf32>
    %c0_2 = arith.constant 0 : index
    %c0_3 = arith.constant 0 : index
    %c0_4 = arith.constant 0 : index
    %2 = vector.load %arg2[%c0_2, %c0_3, %c0_4] : memref<1x176x176xf32, #tpu.memory_space<vmem>>, vector<1x176x176xf32>
    %3 = vector.shape_cast %2 : vector<1x176x176xf32> to vector<176x176xf32>
    %c0_5 = arith.constant 0 : index
    %c0_6 = arith.constant 0 : index
    %4 = vector.load %arg3[%c0_5, %c0_6] : memref<166x176xf32, #tpu.memory_space<vmem>>, vector<166x176xf32>
    %c0_7 = arith.constant 0 : index
    %c0_8 = arith.constant 0 : index
    %5 = vector.load %arg8[%c0_7, %c0_8] : memref<176x166xf32, #tpu.memory_space<vmem>>, vector<176x166xf32>
    %6 = arith.truncf %4 : vector<166x176xf32> to vector<166x176xbf16>
    %7 = arith.truncf %5 : vector<176x166xf32> to vector<176x166xbf16>
    %8 = tpu.concatenate %1, %3 in 0 : vector<176x176xf32>, vector<176x176xf32> -> vector<352x176xf32>
    %9 = arith.truncf %8 : vector<352x176xf32> to vector<352x176xbf16>
    %cst = arith.constant dense<0.000000e+00> : vector<352x166xf32>
    %10 = tpu.matmul %9, %7, %cst {dimension_numbers = #tpu.dot_dimension_numbers<[1], [0], [0], [1], [0, 0, 1, 1], [], []>} : vector<352x176xbf16>, vector<176x166xbf16>, vector<352x166xf32> -> vector<352x166xf32>
    %11 = arith.mulf %1, %1 : vector<176x176xf32>
    %12 = arith.mulf %3, %3 : vector<176x176xf32>
    %13 = arith.mulf %1, %3 : vector<176x176xf32>
    %14 = tpu.concatenate %11, %12, %13 in 0 : vector<176x176xf32>, vector<176x176xf32>, vector<176x176xf32> -> vector<528x176xf32>
    %cst_9 = arith.constant dense<0.000000e+00> : vector<528x166xf32>
    %15 = tpu.matmul %14, %5, %cst_9 {dimension_numbers = #tpu.dot_dimension_numbers<[1], [0], [0], [1], [0, 0, 1, 1], [], []>} : vector<528x176xf32>, vector<176x166xf32>, vector<528x166xf32> -> vector<528x166xf32>
    %16 = vector.extract_strided_slice %10 {offsets = [0, 0], sizes = [176, 166], strides = [1, 1]} : vector<352x166xf32> to vector<176x166xf32>
    %17 = arith.truncf %16 : vector<176x166xf32> to vector<176x166xbf16>
    %cst_10 = arith.constant dense<0.000000e+00> : vector<166x166xf32>
    %18 = tpu.matmul %6, %17, %cst_10 {dimension_numbers = #tpu.dot_dimension_numbers<[1], [0], [0], [1], [0, 0, 1, 1], [], []>} : vector<166x176xbf16>, vector<176x166xbf16>, vector<166x166xf32> -> vector<166x166xf32>
    %19 = vector.extract_strided_slice %10 {offsets = [176, 0], sizes = [176, 166], strides = [1, 1]} : vector<352x166xf32> to vector<176x166xf32>
    %20 = arith.truncf %19 : vector<176x166xf32> to vector<176x166xbf16>
    %cst_11 = arith.constant dense<0.000000e+00> : vector<166x166xf32>
    %21 = tpu.matmul %6, %20, %cst_11 {dimension_numbers = #tpu.dot_dimension_numbers<[1], [0], [0], [1], [0, 0, 1, 1], [], []>} : vector<166x176xbf16>, vector<176x166xbf16>, vector<166x166xf32> -> vector<166x166xf32>
    %22 = vector.extract_strided_slice %15 {offsets = [0, 0], sizes = [176, 166], strides = [1, 1]} : vector<528x166xf32> to vector<176x166xf32>
    %cst_12 = arith.constant dense<0.000000e+00> : vector<166x166xf32>
    %23 = tpu.matmul %4, %22, %cst_12 {dimension_numbers = #tpu.dot_dimension_numbers<[1], [0], [0], [1], [0, 0, 1, 1], [], []>} : vector<166x176xf32>, vector<176x166xf32>, vector<166x166xf32> -> vector<166x166xf32>
    %24 = vector.extract_strided_slice %15 {offsets = [176, 0], sizes = [176, 166], strides = [1, 1]} : vector<528x166xf32> to vector<176x166xf32>
    %cst_13 = arith.constant dense<0.000000e+00> : vector<166x166xf32>
    %25 = tpu.matmul %4, %24, %cst_13 {dimension_numbers = #tpu.dot_dimension_numbers<[1], [0], [0], [1], [0, 0, 1, 1], [], []>} : vector<166x176xf32>, vector<176x166xf32>, vector<166x166xf32> -> vector<166x166xf32>
    %26 = vector.extract_strided_slice %15 {offsets = [352, 0], sizes = [176, 166], strides = [1, 1]} : vector<528x166xf32> to vector<176x166xf32>
    %cst_14 = arith.constant dense<0.000000e+00> : vector<166x166xf32>
    %27 = tpu.matmul %4, %26, %cst_14 {dimension_numbers = #tpu.dot_dimension_numbers<[1], [0], [0], [1], [0, 0, 1, 1], [], []>} : vector<166x176xf32>, vector<176x166xf32>, vector<166x166xf32> -> vector<166x166xf32>
    %28 = arith.mulf %18, %18 : vector<166x166xf32>
    %29 = arith.mulf %21, %21 : vector<166x166xf32>
    %30 = arith.mulf %18, %21 : vector<166x166xf32>
    %31 = arith.subf %23, %28 : vector<166x166xf32>
    %32 = arith.subf %25, %29 : vector<166x166xf32>
    %33 = arith.subf %27, %30 : vector<166x166xf32>
    %cst_15 = arith.constant 2.000000e+00 : f32
    %34 = vector.broadcast %cst_15 : f32 to vector<166x166xf32>
    %35 = arith.mulf %34, %33 : vector<166x166xf32>
    %cst_16 = arith.constant 5.852250e+01 : f32
    %36 = vector.broadcast %cst_16 : f32 to vector<166x166xf32>
    %37 = arith.addf %35, %36 : vector<166x166xf32>
    %38 = arith.addf %31, %32 : vector<166x166xf32>
    %cst_17 = arith.constant 5.852250e+01 : f32
    %39 = vector.broadcast %cst_17 : f32 to vector<166x166xf32>
    %40 = arith.addf %38, %39 : vector<166x166xf32>
    %41 = tpu.reciprocal %40 {approx = true} : vector<166x166xf32> -> vector<166x166xf32>
    %42 = arith.mulf %37, %41 : vector<166x166xf32>
    %43 = vector.shape_cast %42 : vector<166x166xf32> to vector<1x166x166xf32>
    %cst_18 = arith.constant dense<0.000000e+00> : vector<1xf32>
    %44 = vector.multi_reduction <add>, %43, %cst_18 [1, 2] : vector<1x166x166xf32> to vector<1xf32>
    %45 = vector.shape_cast %44 : vector<1xf32> to vector<1x1x1xf32>
    %46 = vector.extract %45[0, 0, 0] : f32 from vector<1x1x1xf32>
    %47 = vector.broadcast %46 : f32 to vector<1x1xf32>
    %cst_19 = arith.constant 2.755600e+04 : f32
    %48 = vector.broadcast %cst_19 : f32 to vector<1x1xf32>
    %49 = arith.divf %47, %48 : vector<1x1xf32>
    %c0_20 = arith.constant 0 : index
    %c0_21 = arith.constant 0 : index
    %50 = vector.load %arg13[%c0_20, %c0_21] : memref<88x176xbf16, #tpu.memory_space<vmem>>, vector<88x176xbf16>
    %c0_22 = arith.constant 0 : index
    %c0_23 = arith.constant 0 : index
    %51 = vector.load %arg17[%c0_22, %c0_23] : memref<176x88xbf16, #tpu.memory_space<vmem>>, vector<176x88xbf16>
    %52 = arith.truncf %1 : vector<176x176xf32> to vector<176x176xbf16>
    %cst_24 = arith.constant dense<0.000000e+00> : vector<88x176xf32>
    %53 = tpu.matmul %50, %52, %cst_24 {dimension_numbers = #tpu.dot_dimension_numbers<[1], [0], [0], [1], [0, 0, 1, 1], [], []>} : vector<88x176xbf16>, vector<176x176xbf16>, vector<88x176xf32> -> vector<88x176xf32>
    %54 = arith.truncf %53 : vector<88x176xf32> to vector<88x176xbf16>
    %cst_25 = arith.constant dense<0.000000e+00> : vector<88x88xf32>
    %55 = tpu.matmul %54, %51, %cst_25 {dimension_numbers = #tpu.dot_dimension_numbers<[1], [0], [0], [1], [0, 0, 1, 1], [], []>} : vector<88x176xbf16>, vector<176x88xbf16>, vector<88x88xf32> -> vector<88x88xf32>
    %56 = arith.truncf %3 : vector<176x176xf32> to vector<176x176xbf16>
    %cst_26 = arith.constant dense<0.000000e+00> : vector<88x176xf32>
    %57 = tpu.matmul %50, %56, %cst_26 {dimension_numbers = #tpu.dot_dimension_numbers<[1], [0], [0], [1], [0, 0, 1, 1], [], []>} : vector<88x176xbf16>, vector<176x176xbf16>, vector<88x176xf32> -> vector<88x176xf32>
    %58 = arith.truncf %57 : vector<88x176xf32> to vector<88x176xbf16>
    %cst_27 = arith.constant dense<0.000000e+00> : vector<88x88xf32>
    %59 = tpu.matmul %58, %51, %cst_27 {dimension_numbers = #tpu.dot_dimension_numbers<[1], [0], [0], [1], [0, 0, 1, 1], [], []>} : vector<88x176xbf16>, vector<176x88xbf16>, vector<88x88xf32> -> vector<88x88xf32>
    %c0_28 = arith.constant 0 : index
    %c0_29 = arith.constant 0 : index
    %60 = vector.load %arg4[%c0_28, %c0_29] : memref<78x88xf32, #tpu.memory_space<vmem>>, vector<78x88xf32>
    %c0_30 = arith.constant 0 : index
    %c0_31 = arith.constant 0 : index
    %61 = vector.load %arg9[%c0_30, %c0_31] : memref<88x78xf32, #tpu.memory_space<vmem>>, vector<88x78xf32>
    %62 = arith.truncf %60 : vector<78x88xf32> to vector<78x88xbf16>
    %63 = arith.truncf %61 : vector<88x78xf32> to vector<88x78xbf16>
    %64 = tpu.concatenate %55, %59 in 0 : vector<88x88xf32>, vector<88x88xf32> -> vector<176x88xf32>
    %65 = arith.truncf %64 : vector<176x88xf32> to vector<176x88xbf16>
    %cst_32 = arith.constant dense<0.000000e+00> : vector<176x78xf32>
    %66 = tpu.matmul %65, %63, %cst_32 {dimension_numbers = #tpu.dot_dimension_numbers<[1], [0], [0], [1], [0, 0, 1, 1], [], []>} : vector<176x88xbf16>, vector<88x78xbf16>, vector<176x78xf32> -> vector<176x78xf32>
    %67 = arith.mulf %55, %55 : vector<88x88xf32>
    %68 = arith.mulf %59, %59 : vector<88x88xf32>
    %69 = arith.mulf %55, %59 : vector<88x88xf32>
    %70 = tpu.concatenate %67, %68, %69 in 0 : vector<88x88xf32>, vector<88x88xf32>, vector<88x88xf32> -> vector<264x88xf32>
    %cst_33 = arith.constant dense<0.000000e+00> : vector<264x78xf32>
    %71 = tpu.matmul %70, %61, %cst_33 {dimension_numbers = #tpu.dot_dimension_numbers<[1], [0], [0], [1], [0, 0, 1, 1], [], []>} : vector<264x88xf32>, vector<88x78xf32>, vector<264x78xf32> -> vector<264x78xf32>
    %72 = vector.extract_strided_slice %66 {offsets = [0, 0], sizes = [88, 78], strides = [1, 1]} : vector<176x78xf32> to vector<88x78xf32>
    %73 = arith.truncf %72 : vector<88x78xf32> to vector<88x78xbf16>
    %cst_34 = arith.constant dense<0.000000e+00> : vector<78x78xf32>
    %74 = tpu.matmul %62, %73, %cst_34 {dimension_numbers = #tpu.dot_dimension_numbers<[1], [0], [0], [1], [0, 0, 1, 1], [], []>} : vector<78x88xbf16>, vector<88x78xbf16>, vector<78x78xf32> -> vector<78x78xf32>
    %75 = vector.extract_strided_slice %66 {offsets = [88, 0], sizes = [88, 78], strides = [1, 1]} : vector<176x78xf32> to vector<88x78xf32>
    %76 = arith.truncf %75 : vector<88x78xf32> to vector<88x78xbf16>
    %cst_35 = arith.constant dense<0.000000e+00> : vector<78x78xf32>
    %77 = tpu.matmul %62, %76, %cst_35 {dimension_numbers = #tpu.dot_dimension_numbers<[1], [0], [0], [1], [0, 0, 1, 1], [], []>} : vector<78x88xbf16>, vector<88x78xbf16>, vector<78x78xf32> -> vector<78x78xf32>
    %78 = vector.extract_strided_slice %71 {offsets = [0, 0], sizes = [88, 78], strides = [1, 1]} : vector<264x78xf32> to vector<88x78xf32>
    %cst_36 = arith.constant dense<0.000000e+00> : vector<78x78xf32>
    %79 = tpu.matmul %60, %78, %cst_36 {dimension_numbers = #tpu.dot_dimension_numbers<[1], [0], [0], [1], [0, 0, 1, 1], [], []>} : vector<78x88xf32>, vector<88x78xf32>, vector<78x78xf32> -> vector<78x78xf32>
    %80 = vector.extract_strided_slice %71 {offsets = [88, 0], sizes = [88, 78], strides = [1, 1]} : vector<264x78xf32> to vector<88x78xf32>
    %cst_37 = arith.constant dense<0.000000e+00> : vector<78x78xf32>
    %81 = tpu.matmul %60, %80, %cst_37 {dimension_numbers = #tpu.dot_dimension_numbers<[1], [0], [0], [1], [0, 0, 1, 1], [], []>} : vector<78x88xf32>, vector<88x78xf32>, vector<78x78xf32> -> vector<78x78xf32>
    %82 = vector.extract_strided_slice %71 {offsets = [176, 0], sizes = [88, 78], strides = [1, 1]} : vector<264x78xf32> to vector<88x78xf32>
    %cst_38 = arith.constant dense<0.000000e+00> : vector<78x78xf32>
    %83 = tpu.matmul %60, %82, %cst_38 {dimension_numbers = #tpu.dot_dimension_numbers<[1], [0], [0], [1], [0, 0, 1, 1], [], []>} : vector<78x88xf32>, vector<88x78xf32>, vector<78x78xf32> -> vector<78x78xf32>
    %84 = arith.mulf %74, %74 : vector<78x78xf32>
    %85 = arith.mulf %77, %77 : vector<78x78xf32>
    %86 = arith.mulf %74, %77 : vector<78x78xf32>
    %87 = arith.subf %79, %84 : vector<78x78xf32>
    %88 = arith.subf %81, %85 : vector<78x78xf32>
    %89 = arith.subf %83, %86 : vector<78x78xf32>
    %cst_39 = arith.constant 2.000000e+00 : f32
    %90 = vector.broadcast %cst_39 : f32 to vector<78x78xf32>
    %91 = arith.mulf %90, %89 : vector<78x78xf32>
    %cst_40 = arith.constant 5.852250e+01 : f32
    %92 = vector.broadcast %cst_40 : f32 to vector<78x78xf32>
    %93 = arith.addf %91, %92 : vector<78x78xf32>
    %94 = arith.addf %87, %88 : vector<78x78xf32>
    %cst_41 = arith.constant 5.852250e+01 : f32
    %95 = vector.broadcast %cst_41 : f32 to vector<78x78xf32>
    %96 = arith.addf %94, %95 : vector<78x78xf32>
    %97 = tpu.reciprocal %96 {approx = true} : vector<78x78xf32> -> vector<78x78xf32>
    %98 = arith.mulf %93, %97 : vector<78x78xf32>
    %99 = vector.shape_cast %98 : vector<78x78xf32> to vector<1x78x78xf32>
    %cst_42 = arith.constant dense<0.000000e+00> : vector<1xf32>
    %100 = vector.multi_reduction <add>, %99, %cst_42 [1, 2] : vector<1x78x78xf32> to vector<1xf32>
    %101 = vector.shape_cast %100 : vector<1xf32> to vector<1x1x1xf32>
    %102 = vector.extract %101[0, 0, 0] : f32 from vector<1x1x1xf32>
    %103 = vector.broadcast %102 : f32 to vector<1x1xf32>
    %cst_43 = arith.constant 6.084000e+03 : f32
    %104 = vector.broadcast %cst_43 : f32 to vector<1x1xf32>
    %105 = arith.divf %103, %104 : vector<1x1xf32>
    %c0_44 = arith.constant 0 : index
    %c0_45 = arith.constant 0 : index
    %106 = vector.load %arg14[%c0_44, %c0_45] : memref<44x88xbf16, #tpu.memory_space<vmem>>, vector<44x88xbf16>
    %c0_46 = arith.constant 0 : index
    %c0_47 = arith.constant 0 : index
    %107 = vector.load %arg18[%c0_46, %c0_47] : memref<88x44xbf16, #tpu.memory_space<vmem>>, vector<88x44xbf16>
    %108 = arith.truncf %55 : vector<88x88xf32> to vector<88x88xbf16>
    %cst_48 = arith.constant dense<0.000000e+00> : vector<44x88xf32>
    %109 = tpu.matmul %106, %108, %cst_48 {dimension_numbers = #tpu.dot_dimension_numbers<[1], [0], [0], [1], [0, 0, 1, 1], [], []>} : vector<44x88xbf16>, vector<88x88xbf16>, vector<44x88xf32> -> vector<44x88xf32>
    %110 = arith.truncf %109 : vector<44x88xf32> to vector<44x88xbf16>
    %cst_49 = arith.constant dense<0.000000e+00> : vector<44x44xf32>
    %111 = tpu.matmul %110, %107, %cst_49 {dimension_numbers = #tpu.dot_dimension_numbers<[1], [0], [0], [1], [0, 0, 1, 1], [], []>} : vector<44x88xbf16>, vector<88x44xbf16>, vector<44x44xf32> -> vector<44x44xf32>
    %112 = arith.truncf %59 : vector<88x88xf32> to vector<88x88xbf16>
    %cst_50 = arith.constant dense<0.000000e+00> : vector<44x88xf32>
    %113 = tpu.matmul %106, %112, %cst_50 {dimension_numbers = #tpu.dot_dimension_numbers<[1], [0], [0], [1], [0, 0, 1, 1], [], []>} : vector<44x88xbf16>, vector<88x88xbf16>, vector<44x88xf32> -> vector<44x88xf32>
    %114 = arith.truncf %113 : vector<44x88xf32> to vector<44x88xbf16>
    %cst_51 = arith.constant dense<0.000000e+00> : vector<44x44xf32>
    %115 = tpu.matmul %114, %107, %cst_51 {dimension_numbers = #tpu.dot_dimension_numbers<[1], [0], [0], [1], [0, 0, 1, 1], [], []>} : vector<44x88xbf16>, vector<88x44xbf16>, vector<44x44xf32> -> vector<44x44xf32>
    %c0_52 = arith.constant 0 : index
    %c0_53 = arith.constant 0 : index
    %116 = vector.load %arg5[%c0_52, %c0_53] : memref<34x48xf32, #tpu.memory_space<vmem>>, vector<34x48xf32>
    %c0_54 = arith.constant 0 : index
    %c0_55 = arith.constant 0 : index
    %117 = vector.load %arg10[%c0_54, %c0_55] : memref<44x34xf32, #tpu.memory_space<vmem>>, vector<44x34xf32>
    %118 = arith.truncf %116 : vector<34x48xf32> to vector<34x48xbf16>
    %119 = arith.truncf %117 : vector<44x34xf32> to vector<44x34xbf16>
    %cst_56 = arith.constant 0.000000e+00 : f32
    %120 = vector.broadcast %cst_56 : f32 to vector<4x44xf32>
    %121 = tpu.concatenate %111, %120 in 0 : vector<44x44xf32>, vector<4x44xf32> -> vector<48x44xf32>
    %cst_57 = arith.constant 0.000000e+00 : f32
    %122 = vector.broadcast %cst_57 : f32 to vector<4x44xf32>
    %123 = tpu.concatenate %115, %122 in 0 : vector<44x44xf32>, vector<4x44xf32> -> vector<48x44xf32>
    %124 = tpu.concatenate %121, %123 in 0 : vector<48x44xf32>, vector<48x44xf32> -> vector<96x44xf32>
    %125 = arith.truncf %124 : vector<96x44xf32> to vector<96x44xbf16>
    %cst_58 = arith.constant dense<0.000000e+00> : vector<96x34xf32>
    %126 = tpu.matmul %125, %119, %cst_58 {dimension_numbers = #tpu.dot_dimension_numbers<[1], [0], [0], [1], [0, 0, 1, 1], [], []>} : vector<96x44xbf16>, vector<44x34xbf16>, vector<96x34xf32> -> vector<96x34xf32>
    %127 = arith.mulf %111, %111 : vector<44x44xf32>
    %128 = arith.mulf %115, %115 : vector<44x44xf32>
    %129 = arith.mulf %111, %115 : vector<44x44xf32>
    %cst_59 = arith.constant 0.000000e+00 : f32
    %130 = vector.broadcast %cst_59 : f32 to vector<4x44xf32>
    %131 = tpu.concatenate %127, %130 in 0 : vector<44x44xf32>, vector<4x44xf32> -> vector<48x44xf32>
    %cst_60 = arith.constant 0.000000e+00 : f32
    %132 = vector.broadcast %cst_60 : f32 to vector<4x44xf32>
    %133 = tpu.concatenate %128, %132 in 0 : vector<44x44xf32>, vector<4x44xf32> -> vector<48x44xf32>
    %cst_61 = arith.constant 0.000000e+00 : f32
    %134 = vector.broadcast %cst_61 : f32 to vector<4x44xf32>
    %135 = tpu.concatenate %129, %134 in 0 : vector<44x44xf32>, vector<4x44xf32> -> vector<48x44xf32>
    %136 = tpu.concatenate %131, %133, %135 in 0 : vector<48x44xf32>, vector<48x44xf32>, vector<48x44xf32> -> vector<144x44xf32>
    %cst_62 = arith.constant dense<0.000000e+00> : vector<144x34xf32>
    %137 = tpu.matmul %136, %117, %cst_62 {dimension_numbers = #tpu.dot_dimension_numbers<[1], [0], [0], [1], [0, 0, 1, 1], [], []>} : vector<144x44xf32>, vector<44x34xf32>, vector<144x34xf32> -> vector<144x34xf32>
    %138 = vector.extract_strided_slice %126 {offsets = [0, 0], sizes = [48, 34], strides = [1, 1]} : vector<96x34xf32> to vector<48x34xf32>
    %139 = arith.truncf %138 : vector<48x34xf32> to vector<48x34xbf16>
    %cst_63 = arith.constant dense<0.000000e+00> : vector<34x34xf32>
    %140 = tpu.matmul %118, %139, %cst_63 {dimension_numbers = #tpu.dot_dimension_numbers<[1], [0], [0], [1], [0, 0, 1, 1], [], []>} : vector<34x48xbf16>, vector<48x34xbf16>, vector<34x34xf32> -> vector<34x34xf32>
    %141 = vector.extract_strided_slice %126 {offsets = [48, 0], sizes = [48, 34], strides = [1, 1]} : vector<96x34xf32> to vector<48x34xf32>
    %142 = arith.truncf %141 : vector<48x34xf32> to vector<48x34xbf16>
    %cst_64 = arith.constant dense<0.000000e+00> : vector<34x34xf32>
    %143 = tpu.matmul %118, %142, %cst_64 {dimension_numbers = #tpu.dot_dimension_numbers<[1], [0], [0], [1], [0, 0, 1, 1], [], []>} : vector<34x48xbf16>, vector<48x34xbf16>, vector<34x34xf32> -> vector<34x34xf32>
    %144 = vector.extract_strided_slice %137 {offsets = [0, 0], sizes = [48, 34], strides = [1, 1]} : vector<144x34xf32> to vector<48x34xf32>
    %cst_65 = arith.constant dense<0.000000e+00> : vector<34x34xf32>
    %145 = tpu.matmul %116, %144, %cst_65 {dimension_numbers = #tpu.dot_dimension_numbers<[1], [0], [0], [1], [0, 0, 1, 1], [], []>} : vector<34x48xf32>, vector<48x34xf32>, vector<34x34xf32> -> vector<34x34xf32>
    %146 = vector.extract_strided_slice %137 {offsets = [48, 0], sizes = [48, 34], strides = [1, 1]} : vector<144x34xf32> to vector<48x34xf32>
    %cst_66 = arith.constant dense<0.000000e+00> : vector<34x34xf32>
    %147 = tpu.matmul %116, %146, %cst_66 {dimension_numbers = #tpu.dot_dimension_numbers<[1], [0], [0], [1], [0, 0, 1, 1], [], []>} : vector<34x48xf32>, vector<48x34xf32>, vector<34x34xf32> -> vector<34x34xf32>
    %148 = vector.extract_strided_slice %137 {offsets = [96, 0], sizes = [48, 34], strides = [1, 1]} : vector<144x34xf32> to vector<48x34xf32>
    %cst_67 = arith.constant dense<0.000000e+00> : vector<34x34xf32>
    %149 = tpu.matmul %116, %148, %cst_67 {dimension_numbers = #tpu.dot_dimension_numbers<[1], [0], [0], [1], [0, 0, 1, 1], [], []>} : vector<34x48xf32>, vector<48x34xf32>, vector<34x34xf32> -> vector<34x34xf32>
    %150 = arith.mulf %140, %140 : vector<34x34xf32>
    %151 = arith.mulf %143, %143 : vector<34x34xf32>
    %152 = arith.mulf %140, %143 : vector<34x34xf32>
    %153 = arith.subf %145, %150 : vector<34x34xf32>
    %154 = arith.subf %147, %151 : vector<34x34xf32>
    %155 = arith.subf %149, %152 : vector<34x34xf32>
    %cst_68 = arith.constant 2.000000e+00 : f32
    %156 = vector.broadcast %cst_68 : f32 to vector<34x34xf32>
    %157 = arith.mulf %156, %155 : vector<34x34xf32>
    %cst_69 = arith.constant 5.852250e+01 : f32
    %158 = vector.broadcast %cst_69 : f32 to vector<34x34xf32>
    %159 = arith.addf %157, %158 : vector<34x34xf32>
    %160 = arith.addf %153, %154 : vector<34x34xf32>
    %cst_70 = arith.constant 5.852250e+01 : f32
    %161 = vector.broadcast %cst_70 : f32 to vector<34x34xf32>
    %162 = arith.addf %160, %161 : vector<34x34xf32>
    %163 = tpu.reciprocal %162 {approx = true} : vector<34x34xf32> -> vector<34x34xf32>
    %164 = arith.mulf %159, %163 : vector<34x34xf32>
    %165 = vector.shape_cast %164 : vector<34x34xf32> to vector<1x34x34xf32>
    %cst_71 = arith.constant dense<0.000000e+00> : vector<1xf32>
    %166 = vector.multi_reduction <add>, %165, %cst_71 [1, 2] : vector<1x34x34xf32> to vector<1xf32>
    %167 = vector.shape_cast %166 : vector<1xf32> to vector<1x1x1xf32>
    %168 = vector.extract %167[0, 0, 0] : f32 from vector<1x1x1xf32>
    %169 = vector.broadcast %168 : f32 to vector<1x1xf32>
    %cst_72 = arith.constant 1.156000e+03 : f32
    %170 = vector.broadcast %cst_72 : f32 to vector<1x1xf32>
    %171 = arith.divf %169, %170 : vector<1x1xf32>
    %c0_73 = arith.constant 0 : index
    %c0_74 = arith.constant 0 : index
    %172 = vector.load %arg15[%c0_73, %c0_74] : memref<22x44xbf16, #tpu.memory_space<vmem>>, vector<22x44xbf16>
    %c0_75 = arith.constant 0 : index
    %c0_76 = arith.constant 0 : index
    %173 = vector.load %arg19[%c0_75, %c0_76] : memref<44x22xbf16, #tpu.memory_space<vmem>>, vector<44x22xbf16>
    %174 = arith.truncf %111 : vector<44x44xf32> to vector<44x44xbf16>
    %cst_77 = arith.constant dense<0.000000e+00> : vector<22x44xf32>
    %175 = tpu.matmul %172, %174, %cst_77 {dimension_numbers = #tpu.dot_dimension_numbers<[1], [0], [0], [1], [0, 0, 1, 1], [], []>} : vector<22x44xbf16>, vector<44x44xbf16>, vector<22x44xf32> -> vector<22x44xf32>
    %176 = arith.truncf %175 : vector<22x44xf32> to vector<22x44xbf16>
    %cst_78 = arith.constant dense<0.000000e+00> : vector<22x22xf32>
    %177 = tpu.matmul %176, %173, %cst_78 {dimension_numbers = #tpu.dot_dimension_numbers<[1], [0], [0], [1], [0, 0, 1, 1], [], []>} : vector<22x44xbf16>, vector<44x22xbf16>, vector<22x22xf32> -> vector<22x22xf32>
    %178 = arith.truncf %115 : vector<44x44xf32> to vector<44x44xbf16>
    %cst_79 = arith.constant dense<0.000000e+00> : vector<22x44xf32>
    %179 = tpu.matmul %172, %178, %cst_79 {dimension_numbers = #tpu.dot_dimension_numbers<[1], [0], [0], [1], [0, 0, 1, 1], [], []>} : vector<22x44xbf16>, vector<44x44xbf16>, vector<22x44xf32> -> vector<22x44xf32>
    %180 = arith.truncf %179 : vector<22x44xf32> to vector<22x44xbf16>
    %cst_80 = arith.constant dense<0.000000e+00> : vector<22x22xf32>
    %181 = tpu.matmul %180, %173, %cst_80 {dimension_numbers = #tpu.dot_dimension_numbers<[1], [0], [0], [1], [0, 0, 1, 1], [], []>} : vector<22x44xbf16>, vector<44x22xbf16>, vector<22x22xf32> -> vector<22x22xf32>
    %c0_81 = arith.constant 0 : index
    %c0_82 = arith.constant 0 : index
    %182 = vector.load %arg6[%c0_81, %c0_82] : memref<12x24xf32, #tpu.memory_space<vmem>>, vector<12x24xf32>
    %c0_83 = arith.constant 0 : index
    %c0_84 = arith.constant 0 : index
    %183 = vector.load %arg11[%c0_83, %c0_84] : memref<22x12xf32, #tpu.memory_space<vmem>>, vector<22x12xf32>
    %184 = arith.truncf %182 : vector<12x24xf32> to vector<12x24xbf16>
    %185 = arith.truncf %183 : vector<22x12xf32> to vector<22x12xbf16>
    %cst_85 = arith.constant 0.000000e+00 : f32
    %186 = vector.broadcast %cst_85 : f32 to vector<2x22xf32>
    %187 = tpu.concatenate %177, %186 in 0 : vector<22x22xf32>, vector<2x22xf32> -> vector<24x22xf32>
    %cst_86 = arith.constant 0.000000e+00 : f32
    %188 = vector.broadcast %cst_86 : f32 to vector<2x22xf32>
    %189 = tpu.concatenate %181, %188 in 0 : vector<22x22xf32>, vector<2x22xf32> -> vector<24x22xf32>
    %190 = tpu.concatenate %187, %189 in 0 : vector<24x22xf32>, vector<24x22xf32> -> vector<48x22xf32>
    %191 = arith.truncf %190 : vector<48x22xf32> to vector<48x22xbf16>
    %cst_87 = arith.constant dense<0.000000e+00> : vector<48x12xf32>
    %192 = tpu.matmul %191, %185, %cst_87 {dimension_numbers = #tpu.dot_dimension_numbers<[1], [0], [0], [1], [0, 0, 1, 1], [], []>} : vector<48x22xbf16>, vector<22x12xbf16>, vector<48x12xf32> -> vector<48x12xf32>
    %193 = arith.mulf %177, %177 : vector<22x22xf32>
    %194 = arith.mulf %181, %181 : vector<22x22xf32>
    %195 = arith.mulf %177, %181 : vector<22x22xf32>
    %cst_88 = arith.constant 0.000000e+00 : f32
    %196 = vector.broadcast %cst_88 : f32 to vector<2x22xf32>
    %197 = tpu.concatenate %193, %196 in 0 : vector<22x22xf32>, vector<2x22xf32> -> vector<24x22xf32>
    %cst_89 = arith.constant 0.000000e+00 : f32
    %198 = vector.broadcast %cst_89 : f32 to vector<2x22xf32>
    %199 = tpu.concatenate %194, %198 in 0 : vector<22x22xf32>, vector<2x22xf32> -> vector<24x22xf32>
    %cst_90 = arith.constant 0.000000e+00 : f32
    %200 = vector.broadcast %cst_90 : f32 to vector<2x22xf32>
    %201 = tpu.concatenate %195, %200 in 0 : vector<22x22xf32>, vector<2x22xf32> -> vector<24x22xf32>
    %202 = tpu.concatenate %197, %199, %201 in 0 : vector<24x22xf32>, vector<24x22xf32>, vector<24x22xf32> -> vector<72x22xf32>
    %cst_91 = arith.constant dense<0.000000e+00> : vector<72x12xf32>
    %203 = tpu.matmul %202, %183, %cst_91 {dimension_numbers = #tpu.dot_dimension_numbers<[1], [0], [0], [1], [0, 0, 1, 1], [], []>} : vector<72x22xf32>, vector<22x12xf32>, vector<72x12xf32> -> vector<72x12xf32>
    %204 = vector.extract_strided_slice %192 {offsets = [0, 0], sizes = [24, 12], strides = [1, 1]} : vector<48x12xf32> to vector<24x12xf32>
    %205 = arith.truncf %204 : vector<24x12xf32> to vector<24x12xbf16>
    %cst_92 = arith.constant dense<0.000000e+00> : vector<12x12xf32>
    %206 = tpu.matmul %184, %205, %cst_92 {dimension_numbers = #tpu.dot_dimension_numbers<[1], [0], [0], [1], [0, 0, 1, 1], [], []>} : vector<12x24xbf16>, vector<24x12xbf16>, vector<12x12xf32> -> vector<12x12xf32>
    %207 = vector.extract_strided_slice %192 {offsets = [24, 0], sizes = [24, 12], strides = [1, 1]} : vector<48x12xf32> to vector<24x12xf32>
    %208 = arith.truncf %207 : vector<24x12xf32> to vector<24x12xbf16>
    %cst_93 = arith.constant dense<0.000000e+00> : vector<12x12xf32>
    %209 = tpu.matmul %184, %208, %cst_93 {dimension_numbers = #tpu.dot_dimension_numbers<[1], [0], [0], [1], [0, 0, 1, 1], [], []>} : vector<12x24xbf16>, vector<24x12xbf16>, vector<12x12xf32> -> vector<12x12xf32>
    %210 = vector.extract_strided_slice %203 {offsets = [0, 0], sizes = [24, 12], strides = [1, 1]} : vector<72x12xf32> to vector<24x12xf32>
    %cst_94 = arith.constant dense<0.000000e+00> : vector<12x12xf32>
    %211 = tpu.matmul %182, %210, %cst_94 {dimension_numbers = #tpu.dot_dimension_numbers<[1], [0], [0], [1], [0, 0, 1, 1], [], []>} : vector<12x24xf32>, vector<24x12xf32>, vector<12x12xf32> -> vector<12x12xf32>
    %212 = vector.extract_strided_slice %203 {offsets = [24, 0], sizes = [24, 12], strides = [1, 1]} : vector<72x12xf32> to vector<24x12xf32>
    %cst_95 = arith.constant dense<0.000000e+00> : vector<12x12xf32>
    %213 = tpu.matmul %182, %212, %cst_95 {dimension_numbers = #tpu.dot_dimension_numbers<[1], [0], [0], [1], [0, 0, 1, 1], [], []>} : vector<12x24xf32>, vector<24x12xf32>, vector<12x12xf32> -> vector<12x12xf32>
    %214 = vector.extract_strided_slice %203 {offsets = [48, 0], sizes = [24, 12], strides = [1, 1]} : vector<72x12xf32> to vector<24x12xf32>
    %cst_96 = arith.constant dense<0.000000e+00> : vector<12x12xf32>
    %215 = tpu.matmul %182, %214, %cst_96 {dimension_numbers = #tpu.dot_dimension_numbers<[1], [0], [0], [1], [0, 0, 1, 1], [], []>} : vector<12x24xf32>, vector<24x12xf32>, vector<12x12xf32> -> vector<12x12xf32>
    %216 = arith.mulf %206, %206 : vector<12x12xf32>
    %217 = arith.mulf %209, %209 : vector<12x12xf32>
    %218 = arith.mulf %206, %209 : vector<12x12xf32>
    %219 = arith.subf %211, %216 : vector<12x12xf32>
    %220 = arith.subf %213, %217 : vector<12x12xf32>
    %221 = arith.subf %215, %218 : vector<12x12xf32>
    %cst_97 = arith.constant 2.000000e+00 : f32
    %222 = vector.broadcast %cst_97 : f32 to vector<12x12xf32>
    %223 = arith.mulf %222, %221 : vector<12x12xf32>
    %cst_98 = arith.constant 5.852250e+01 : f32
    %224 = vector.broadcast %cst_98 : f32 to vector<12x12xf32>
    %225 = arith.addf %223, %224 : vector<12x12xf32>
    %226 = arith.addf %219, %220 : vector<12x12xf32>
    %cst_99 = arith.constant 5.852250e+01 : f32
    %227 = vector.broadcast %cst_99 : f32 to vector<12x12xf32>
    %228 = arith.addf %226, %227 : vector<12x12xf32>
    %229 = tpu.reciprocal %228 {approx = true} : vector<12x12xf32> -> vector<12x12xf32>
    %230 = arith.mulf %225, %229 : vector<12x12xf32>
    %231 = vector.shape_cast %230 : vector<12x12xf32> to vector<1x12x12xf32>
    %cst_100 = arith.constant dense<0.000000e+00> : vector<1xf32>
    %232 = vector.multi_reduction <add>, %231, %cst_100 [1, 2] : vector<1x12x12xf32> to vector<1xf32>
    %233 = vector.shape_cast %232 : vector<1xf32> to vector<1x1x1xf32>
    %234 = vector.extract %233[0, 0, 0] : f32 from vector<1x1x1xf32>
    %235 = vector.broadcast %234 : f32 to vector<1x1xf32>
    %cst_101 = arith.constant 1.440000e+02 : f32
    %236 = vector.broadcast %cst_101 : f32 to vector<1x1xf32>
    %237 = arith.divf %235, %236 : vector<1x1xf32>
    %c0_102 = arith.constant 0 : index
    %c0_103 = arith.constant 0 : index
    %238 = vector.load %arg16[%c0_102, %c0_103] : memref<11x22xbf16, #tpu.memory_space<vmem>>, vector<11x22xbf16>
    %c0_104 = arith.constant 0 : index
    %c0_105 = arith.constant 0 : index
    %239 = vector.load %arg20[%c0_104, %c0_105] : memref<22x11xbf16, #tpu.memory_space<vmem>>, vector<22x11xbf16>
    %240 = arith.truncf %177 : vector<22x22xf32> to vector<22x22xbf16>
    %cst_106 = arith.constant dense<0.000000e+00> : vector<11x22xf32>
    %241 = tpu.matmul %238, %240, %cst_106 {dimension_numbers = #tpu.dot_dimension_numbers<[1], [0], [0], [1], [0, 0, 1, 1], [], []>} : vector<11x22xbf16>, vector<22x22xbf16>, vector<11x22xf32> -> vector<11x22xf32>
    %242 = arith.truncf %241 : vector<11x22xf32> to vector<11x22xbf16>
    %cst_107 = arith.constant dense<0.000000e+00> : vector<11x11xf32>
    %243 = tpu.matmul %242, %239, %cst_107 {dimension_numbers = #tpu.dot_dimension_numbers<[1], [0], [0], [1], [0, 0, 1, 1], [], []>} : vector<11x22xbf16>, vector<22x11xbf16>, vector<11x11xf32> -> vector<11x11xf32>
    %244 = arith.truncf %181 : vector<22x22xf32> to vector<22x22xbf16>
    %cst_108 = arith.constant dense<0.000000e+00> : vector<11x22xf32>
    %245 = tpu.matmul %238, %244, %cst_108 {dimension_numbers = #tpu.dot_dimension_numbers<[1], [0], [0], [1], [0, 0, 1, 1], [], []>} : vector<11x22xbf16>, vector<22x22xbf16>, vector<11x22xf32> -> vector<11x22xf32>
    %246 = arith.truncf %245 : vector<11x22xf32> to vector<11x22xbf16>
    %cst_109 = arith.constant dense<0.000000e+00> : vector<11x11xf32>
    %247 = tpu.matmul %246, %239, %cst_109 {dimension_numbers = #tpu.dot_dimension_numbers<[1], [0], [0], [1], [0, 0, 1, 1], [], []>} : vector<11x22xbf16>, vector<22x11xbf16>, vector<11x11xf32> -> vector<11x11xf32>
    %c0_110 = arith.constant 0 : index
    %c0_111 = arith.constant 0 : index
    %248 = vector.load %arg7[%c0_110, %c0_111] : memref<1x16xf32, #tpu.memory_space<vmem>>, vector<1x16xf32>
    %c0_112 = arith.constant 0 : index
    %c0_113 = arith.constant 0 : index
    %249 = vector.load %arg12[%c0_112, %c0_113] : memref<11x1xf32, #tpu.memory_space<vmem>>, vector<11x1xf32>
    %250 = arith.truncf %248 : vector<1x16xf32> to vector<1x16xbf16>
    %251 = arith.truncf %249 : vector<11x1xf32> to vector<11x1xbf16>
    %cst_114 = arith.constant 0.000000e+00 : f32
    %252 = vector.broadcast %cst_114 : f32 to vector<5x11xf32>
    %253 = tpu.concatenate %243, %252 in 0 : vector<11x11xf32>, vector<5x11xf32> -> vector<16x11xf32>
    %cst_115 = arith.constant 0.000000e+00 : f32
    %254 = vector.broadcast %cst_115 : f32 to vector<5x11xf32>
    %255 = tpu.concatenate %247, %254 in 0 : vector<11x11xf32>, vector<5x11xf32> -> vector<16x11xf32>
    %256 = tpu.concatenate %253, %255 in 0 : vector<16x11xf32>, vector<16x11xf32> -> vector<32x11xf32>
    %257 = arith.truncf %256 : vector<32x11xf32> to vector<32x11xbf16>
    %cst_116 = arith.constant dense<0.000000e+00> : vector<32x1xf32>
    %258 = tpu.matmul %257, %251, %cst_116 {dimension_numbers = #tpu.dot_dimension_numbers<[1], [0], [0], [1], [0, 0, 1, 1], [], []>} : vector<32x11xbf16>, vector<11x1xbf16>, vector<32x1xf32> -> vector<32x1xf32>
    %259 = arith.mulf %243, %243 : vector<11x11xf32>
    %260 = arith.mulf %247, %247 : vector<11x11xf32>
    %261 = arith.mulf %243, %247 : vector<11x11xf32>
    %cst_117 = arith.constant 0.000000e+00 : f32
    %262 = vector.broadcast %cst_117 : f32 to vector<5x11xf32>
    %263 = tpu.concatenate %259, %262 in 0 : vector<11x11xf32>, vector<5x11xf32> -> vector<16x11xf32>
    %cst_118 = arith.constant 0.000000e+00 : f32
    %264 = vector.broadcast %cst_118 : f32 to vector<5x11xf32>
    %265 = tpu.concatenate %260, %264 in 0 : vector<11x11xf32>, vector<5x11xf32> -> vector<16x11xf32>
    %cst_119 = arith.constant 0.000000e+00 : f32
    %266 = vector.broadcast %cst_119 : f32 to vector<5x11xf32>
    %267 = tpu.concatenate %261, %266 in 0 : vector<11x11xf32>, vector<5x11xf32> -> vector<16x11xf32>
    %268 = tpu.concatenate %263, %265, %267 in 0 : vector<16x11xf32>, vector<16x11xf32>, vector<16x11xf32> -> vector<48x11xf32>
    %cst_120 = arith.constant dense<0.000000e+00> : vector<48x1xf32>
    %269 = tpu.matmul %268, %249, %cst_120 {dimension_numbers = #tpu.dot_dimension_numbers<[1], [0], [0], [1], [0, 0, 1, 1], [], []>} : vector<48x11xf32>, vector<11x1xf32>, vector<48x1xf32> -> vector<48x1xf32>
    %270 = vector.extract_strided_slice %258 {offsets = [0, 0], sizes = [16, 1], strides = [1, 1]} : vector<32x1xf32> to vector<16x1xf32>
    %271 = arith.truncf %270 : vector<16x1xf32> to vector<16x1xbf16>
    %cst_121 = arith.constant dense<0.000000e+00> : vector<1x1xf32>
    %272 = tpu.matmul %250, %271, %cst_121 {dimension_numbers = #tpu.dot_dimension_numbers<[1], [0], [0], [1], [0, 0, 1, 1], [], []>} : vector<1x16xbf16>, vector<16x1xbf16>, vector<1x1xf32> -> vector<1x1xf32>
    %273 = vector.extract_strided_slice %258 {offsets = [16, 0], sizes = [16, 1], strides = [1, 1]} : vector<32x1xf32> to vector<16x1xf32>
    %274 = arith.truncf %273 : vector<16x1xf32> to vector<16x1xbf16>
    %cst_122 = arith.constant dense<0.000000e+00> : vector<1x1xf32>
    %275 = tpu.matmul %250, %274, %cst_122 {dimension_numbers = #tpu.dot_dimension_numbers<[1], [0], [0], [1], [0, 0, 1, 1], [], []>} : vector<1x16xbf16>, vector<16x1xbf16>, vector<1x1xf32> -> vector<1x1xf32>
    %276 = vector.extract_strided_slice %269 {offsets = [0, 0], sizes = [16, 1], strides = [1, 1]} : vector<48x1xf32> to vector<16x1xf32>
    %cst_123 = arith.constant dense<0.000000e+00> : vector<1x1xf32>
    %277 = tpu.matmul %248, %276, %cst_123 {dimension_numbers = #tpu.dot_dimension_numbers<[1], [0], [0], [1], [0, 0, 1, 1], [], []>} : vector<1x16xf32>, vector<16x1xf32>, vector<1x1xf32> -> vector<1x1xf32>
    %278 = vector.extract_strided_slice %269 {offsets = [16, 0], sizes = [16, 1], strides = [1, 1]} : vector<48x1xf32> to vector<16x1xf32>
    %cst_124 = arith.constant dense<0.000000e+00> : vector<1x1xf32>
    %279 = tpu.matmul %248, %278, %cst_124 {dimension_numbers = #tpu.dot_dimension_numbers<[1], [0], [0], [1], [0, 0, 1, 1], [], []>} : vector<1x16xf32>, vector<16x1xf32>, vector<1x1xf32> -> vector<1x1xf32>
    %280 = vector.extract_strided_slice %269 {offsets = [32, 0], sizes = [16, 1], strides = [1, 1]} : vector<48x1xf32> to vector<16x1xf32>
    %cst_125 = arith.constant dense<0.000000e+00> : vector<1x1xf32>
    %281 = tpu.matmul %248, %280, %cst_125 {dimension_numbers = #tpu.dot_dimension_numbers<[1], [0], [0], [1], [0, 0, 1, 1], [], []>} : vector<1x16xf32>, vector<16x1xf32>, vector<1x1xf32> -> vector<1x1xf32>
    %282 = arith.mulf %272, %272 : vector<1x1xf32>
    %283 = arith.mulf %275, %275 : vector<1x1xf32>
    %284 = arith.mulf %272, %275 : vector<1x1xf32>
    %285 = arith.subf %277, %282 : vector<1x1xf32>
    %286 = arith.subf %279, %283 : vector<1x1xf32>
    %287 = arith.subf %281, %284 : vector<1x1xf32>
    %cst_126 = arith.constant 2.000000e+00 : f32
    %288 = vector.broadcast %cst_126 : f32 to vector<1x1xf32>
    %289 = arith.mulf %288, %287 : vector<1x1xf32>
    %cst_127 = arith.constant 5.852250e+01 : f32
    %290 = vector.broadcast %cst_127 : f32 to vector<1x1xf32>
    %291 = arith.addf %289, %290 : vector<1x1xf32>
    %292 = arith.addf %285, %286 : vector<1x1xf32>
    %cst_128 = arith.constant 5.852250e+01 : f32
    %293 = vector.broadcast %cst_128 : f32 to vector<1x1xf32>
    %294 = arith.addf %292, %293 : vector<1x1xf32>
    %295 = tpu.reciprocal %294 {approx = true} : vector<1x1xf32> -> vector<1x1xf32>
    %296 = arith.mulf %291, %295 : vector<1x1xf32>
    %cst_129 = arith.constant 2.000000e+00 : f32
    %297 = vector.broadcast %cst_129 : f32 to vector<1x1xf32>
    %298 = arith.mulf %297, %284 : vector<1x1xf32>
    %cst_130 = arith.constant 6.502500e+00 : f32
    %299 = vector.broadcast %cst_130 : f32 to vector<1x1xf32>
    %300 = arith.addf %298, %299 : vector<1x1xf32>
    %301 = arith.addf %282, %283 : vector<1x1xf32>
    %cst_131 = arith.constant 6.502500e+00 : f32
    %302 = vector.broadcast %cst_131 : f32 to vector<1x1xf32>
    %303 = arith.addf %301, %302 : vector<1x1xf32>
    %304 = tpu.reciprocal %303 {approx = true} : vector<1x1xf32> -> vector<1x1xf32>
    %305 = arith.mulf %300, %304 : vector<1x1xf32>
    %306 = arith.mulf %305, %296 : vector<1x1xf32>
    %307 = vector.shape_cast %306 : vector<1x1xf32> to vector<1x1x1xf32>
    %cst_132 = arith.constant dense<0.000000e+00> : vector<1xf32>
    %308 = vector.multi_reduction <add>, %307, %cst_132 [1, 2] : vector<1x1x1xf32> to vector<1xf32>
    %309 = vector.shape_cast %308 : vector<1xf32> to vector<1x1x1xf32>
    %310 = vector.extract %309[0, 0, 0] : f32 from vector<1x1x1xf32>
    %311 = vector.broadcast %310 : f32 to vector<1x1xf32>
    %cst_133 = arith.constant 1.000000e+00 : f32
    %312 = vector.broadcast %cst_133 : f32 to vector<1x1xf32>
    %313 = arith.divf %311, %312 : vector<1x1xf32>
    %314 = tpu.concatenate %49, %105, %171, %237, %313 in 1 : vector<1x1xf32>, vector<1x1xf32>, vector<1x1xf32>, vector<1x1xf32>, vector<1x1xf32> -> vector<1x5xf32>
    %c0_134 = arith.constant 0 : index
    %c0_135 = arith.constant 0 : index
    %c0_136 = arith.constant 0 : index
    %315 = vector.load %arg21[%c0_134, %c0_135, %c0_136] : memref<1x1x5xf32, #tpu.memory_space<vmem>>, vector<1x1x5xf32>
    %316 = vector.shape_cast %315 : vector<1x1x5xf32> to vector<1x5xf32>
    %317 = vector.shape_cast %314 : vector<1x5xf32> to vector<1x1x5xf32>
    tpu.vector_store %arg21[%c0_134, %c0_135, %c0_136], %317 {strides = array<i32>} : memref<1x1x5xf32, #tpu.memory_space<vmem>>, vector<1x1x5xf32>,
    return
  }
  func.func @transform_0(%arg0: i32) -> (i32, i32, i32) {
    %c0_i32 = arith.constant 0 : i32
    %c0_i32_0 = arith.constant 0 : i32
    %c0_i32_1 = arith.constant 0 : i32
    return %arg0, %c0_i32, %c0_i32_0 : i32, i32, i32
  }
  func.func @transform_1(%arg0: i32) -> (i32, i32, i32) {
    %c0_i32 = arith.constant 0 : i32
    %c0_i32_0 = arith.constant 0 : i32
    %c0_i32_1 = arith.constant 0 : i32
    return %arg0, %c0_i32, %c0_i32_0 : i32, i32, i32
  }
  func.func @transform_2(%arg0: i32) -> (i32, i32) {
    %c0_i32 = arith.constant 0 : i32
    %c0_i32_0 = arith.constant 0 : i32
    %c0_i32_1 = arith.constant 0 : i32
    return %c0_i32, %c0_i32_0 : i32, i32
  }
  func.func @transform_3(%arg0: i32) -> (i32, i32) {
    %c0_i32 = arith.constant 0 : i32
    %c0_i32_0 = arith.constant 0 : i32
    %c0_i32_1 = arith.constant 0 : i32
    return %c0_i32, %c0_i32_0 : i32, i32
  }
  func.func @transform_4(%arg0: i32) -> (i32, i32) {
    %c0_i32 = arith.constant 0 : i32
    %c0_i32_0 = arith.constant 0 : i32
    %c0_i32_1 = arith.constant 0 : i32
    return %c0_i32, %c0_i32_0 : i32, i32
  }
  func.func @transform_5(%arg0: i32) -> (i32, i32) {
    %c0_i32 = arith.constant 0 : i32
    %c0_i32_0 = arith.constant 0 : i32
    %c0_i32_1 = arith.constant 0 : i32
    return %c0_i32, %c0_i32_0 : i32, i32
  }
  func.func @transform_6(%arg0: i32) -> (i32, i32) {
    %c0_i32 = arith.constant 0 : i32
    %c0_i32_0 = arith.constant 0 : i32
    %c0_i32_1 = arith.constant 0 : i32
    return %c0_i32, %c0_i32_0 : i32, i32
  }
  func.func @transform_7(%arg0: i32) -> (i32, i32) {
    %c0_i32 = arith.constant 0 : i32
    %c0_i32_0 = arith.constant 0 : i32
    %c0_i32_1 = arith.constant 0 : i32
    return %c0_i32, %c0_i32_0 : i32, i32
  }
  func.func @transform_8(%arg0: i32) -> (i32, i32) {
    %c0_i32 = arith.constant 0 : i32
    %c0_i32_0 = arith.constant 0 : i32
    %c0_i32_1 = arith.constant 0 : i32
    return %c0_i32, %c0_i32_0 : i32, i32
  }
  func.func @transform_9(%arg0: i32) -> (i32, i32) {
    %c0_i32 = arith.constant 0 : i32
    %c0_i32_0 = arith.constant 0 : i32
    %c0_i32_1 = arith.constant 0 : i32
    return %c0_i32, %c0_i32_0 : i32, i32
  }
  func.func @transform_10(%arg0: i32) -> (i32, i32) {
    %c0_i32 = arith.constant 0 : i32
    %c0_i32_0 = arith.constant 0 : i32
    %c0_i32_1 = arith.constant 0 : i32
    return %c0_i32, %c0_i32_0 : i32, i32
  }
  func.func @transform_11(%arg0: i32) -> (i32, i32) {
    %c0_i32 = arith.constant 0 : i32
    %c0_i32_0 = arith.constant 0 : i32
    %c0_i32_1 = arith.constant 0 : i32
    return %c0_i32, %c0_i32_0 : i32, i32
  }
  func.func @transform_12(%arg0: i32) -> (i32, i32) {
    %c0_i32 = arith.constant 0 : i32
    %c0_i32_0 = arith.constant 0 : i32
    %c0_i32_1 = arith.constant 0 : i32
    return %c0_i32, %c0_i32_0 : i32, i32
  }
  func.func @transform_13(%arg0: i32) -> (i32, i32) {
    %c0_i32 = arith.constant 0 : i32
    %c0_i32_0 = arith.constant 0 : i32
    %c0_i32_1 = arith.constant 0 : i32
    return %c0_i32, %c0_i32_0 : i32, i32
  }
  func.func @transform_14(%arg0: i32) -> (i32, i32) {
    %c0_i32 = arith.constant 0 : i32
    %c0_i32_0 = arith.constant 0 : i32
    %c0_i32_1 = arith.constant 0 : i32
    return %c0_i32, %c0_i32_0 : i32, i32
  }
  func.func @transform_15(%arg0: i32) -> (i32, i32) {
    %c0_i32 = arith.constant 0 : i32
    %c0_i32_0 = arith.constant 0 : i32
    %c0_i32_1 = arith.constant 0 : i32
    return %c0_i32, %c0_i32_0 : i32, i32
  }
  func.func @transform_16(%arg0: i32) -> (i32, i32) {
    %c0_i32 = arith.constant 0 : i32
    %c0_i32_0 = arith.constant 0 : i32
    %c0_i32_1 = arith.constant 0 : i32
    return %c0_i32, %c0_i32_0 : i32, i32
  }
  func.func @transform_17(%arg0: i32) -> (i32, i32) {
    %c0_i32 = arith.constant 0 : i32
    %c0_i32_0 = arith.constant 0 : i32
    %c0_i32_1 = arith.constant 0 : i32
    return %c0_i32, %c0_i32_0 : i32, i32
  }
  func.func @transform_18(%arg0: i32) -> (i32, i32) {
    %c0_i32 = arith.constant 0 : i32
    %c0_i32_0 = arith.constant 0 : i32
    %c0_i32_1 = arith.constant 0 : i32
    return %c0_i32, %c0_i32_0 : i32, i32
  }
  func.func @transform_19(%arg0: i32) -> (i32, i32) {
    %c0_i32 = arith.constant 0 : i32
    %c0_i32_0 = arith.constant 0 : i32
    %c0_i32_1 = arith.constant 0 : i32
    return %c0_i32, %c0_i32_0 : i32, i32
  }
  func.func @transform_20(%arg0: i32) -> (i32, i32, i32) {
    %c0_i32 = arith.constant 0 : i32
    %c0_i32_0 = arith.constant 0 : i32
    %c0_i32_1 = arith.constant 0 : i32
    return %arg0, %c0_i32, %c0_i32_0 : i32, i32, i32
  }
}

</mosaic_0001>

<bundles_post_ra>
// kernel: ssim_loss_forward.1
= control target key start
LH: loop header
LB: loop body
LE: loop exit
PB: predicated region body
PF: predicated region fallthrough
CT: control target
= control target key end

     0   :  { %s15153_s0 = inlined_call_operand.hbm [shape: f32[2,176,176], index: 0, kind: input, shape index: {}]   ;;  %s15154_s1 = inlined_call_operand.hbm [shape: f32[2,176,176], index: 1, kind: input, shape index: {}]   ;;  %s15155_s2 = inlined_call_operand.hbm [shape: f32[166,176], index: 2, kind: input, shape index: {}]   ;;  %s15156_s3 = inlined_call_operand.hbm [shape: f32[78,88], index: 3, kind: input, shape index: {}]   ;;  %s15157_s4 = inlined_call_operand.hbm [shape: f32[34,48], index: 4, kind: input, shape index: {}]   ;;  %s15158_s5 = inlined_call_operand.hbm [shape: f32[12,24], index: 5, kind: input, shape index: {}]   ;;  %s15159_s6 = inlined_call_operand.vmem [shape: f32[1,16], index: 6, kind: input, shape index: {}]   ;;  %s15160_s7 = inlined_call_operand.hbm [shape: f32[176,166], index: 7, kind: input, shape index: {}]   ;;  %s15161_s8 = inlined_call_operand.hbm [shape: f32[88,78], index: 8, kind: input, shape index: {}]   ;;  %s15162_s9 = inlined_call_operand.hbm [shape: f32[44,34], index: 9, kind: input, shape index: {}]   ;;  %s15163_s10 = inlined_call_operand.hbm [shape: f32[22,12], index: 10, kind: input, shape index: {}]   ;;  %s15164_s11 = inlined_call_operand.vmem [shape: f32[11,1], index: 11, kind: input, shape index: {}]   ;;  %s15165_s12 = inlined_call_operand.hbm [shape: bf16[88,176], index: 12, kind: input, shape index: {}]   ;;  %s15166_s13 = inlined_call_operand.hbm [shape: bf16[44,88], index: 13, kind: input, shape index: {}]   ;;  %s15167_s14 = inlined_call_operand.hbm [shape: bf16[22,44], index: 14, kind: input, shape index: {}]   ;;  %s15168_s15 = inlined_call_operand.hbm [shape: bf16[11,22], index: 15, kind: input, shape index: {}]   ;;  %s15169_s16 = inlined_call_operand.hbm [shape: bf16[176,88], index: 16, kind: input, shape index: {}]   ;;  %s15170_s17 = inlined_call_operand.hbm [shape: bf16[88,44], index: 17, kind: input, shape index: {}]   ;;  %s15171_s18 = inlined_call_operand.hbm [shape: bf16[44,22], index: 18, kind: input, shape index: {}]   ;;  %s15172_s19 = inlined_call_operand.hbm [shape: bf16[22,11], index: 19, kind: input, shape index: {}]   ;;  %s15173_s20 = inlined_call_operand.vmem [shape: f32[2,1,5], index: 20, kind: output, shape index: {}]  }
   0x1   :  { %15398 = sst [smem:[#allocation212_spill]] %s15153_s0 }
   0x2   :  { %15399 = sst [smem:[#allocation213_spill]] %s15154_s1 }
   0x3   :  { %15400 = sst [smem:[#allocation214_spill]] %s15155_s2 }
   0x4   :  { %15401 = sst [smem:[#allocation215_spill]] %s15156_s3 }
   0x5   :  { %15402 = sst [smem:[#allocation216_spill]] %s15157_s4 }
   0x6   :  { %15403 = sst [smem:[#allocation217_spill]] %s15158_s5 }
   0x7   :  { %15404 = sst [smem:[#allocation218_spill]] %s15159_s6 }
   0x8   :  { %15405 = sst [smem:[#allocation219_spill]] %s15160_s7 }
   0x9   :  { %15406 = sst [smem:[#allocation220_spill]] %s15161_s8 }
   0xa   :  { %15407 = sst [smem:[#allocation221_spill]] %s15162_s9 }
   0xb   :  { %15408 = sst [smem:[#allocation222_spill]] %s15163_s10 }
   0xc   :  { %15409 = sst [smem:[#allocation223_spill]] %s15164_s11 }
   0xd   :  { %15410 = sst [smem:[#allocation224_spill]] %s15165_s12 }
   0xe   :  { %15411 = sst [smem:[#allocation225_spill]] %s15166_s13 }
   0xf   :  { %15412 = sst [smem:[#allocation226_spill]] %s15167_s14 }
  0x10   :  { %15413 = sst [smem:[#allocation227_spill]] %s15173_s20 }
  0x11   :  { %25 = vsyncpa [#allocation3], 0 }
  0x12   :  { %27 = vsyncpa [#allocation3 + $0x1], 0 }
  0x13   :  { %28 = vsyncpa [#allocation5], 0 }
  0x14   :  { %30 = vsyncpa [#allocation5 + $0x1], 0 }
  0x15   :  { %31 = vsyncpa [#allocation8], 0 }
  0x16   :  { %32 = vsyncpa [#allocation11], 0 }
  0x17   :  { %33 = vsyncpa [#allocation14], 0 }
  0x18   :  { %34 = vsyncpa [#allocation17], 0 }
  0x19   :  { %35 = vsyncpa [#allocation20], 0 }
  0x1a   :  { %36 = vsyncpa [#allocation23], 0 }
  0x1b   :  { %37 = vsyncpa [#allocation26], 0 }
  0x1c   :  { %38 = vsyncpa [#allocation29], 0  ;;  %s10452_s1 = smov 0   ;;  %s10454_s22 = smov 0  }
  0x1d   :  { %s10456_s23 = smov 0   ;;  %s10458_s24 = smov 0  }
  0x1e LB: > { %15414 = sst [smem:[#allocation41_spill]] %s10306_s1  ;;  %s10476_s27 = sadd.s32 4294967295, %s10318_s24   ;;  %s10318_s24 = sphi %s10458_s24, %s16182_s24   ;;  %s10314_s23 = sphi %s10456_s23, %s16181_s23   ;;  %s10310_s22 = sphi %s10454_s22, %s16180_s22   ;;  %s10306_s1 = sphi %s10452_s1, %s16179_s1  }
  0x1f   : > { %s15415_s3 = sld [smem:[#allocation214_spill]]  ;;  %p8362_p0 = scmp.ge.s32.totalorder %s10318_s24, 1 }
  0x20   : > { %15416 = sst [smem:[#allocation42_spill]] %s10476_s27  ;;  %p65_p1 = scmp.eq.s32.totalorder %s10476_s27, 0 }
  0x21   : > { %p505_p2 = scmp.lt.s32.totalorder %s10318_s24, 3  ;;  %s10320_s4 = smov [#allocation6]  }
  0x22   : > { %s518_s29 = sshll.u32 %s10320_s4, 4  ;;  %s15419_s21 = sld [smem:[#allocation215_spill]]  ;;  %s519_s29 = int_to_ptr.vmem [resolvable:$true] %s518_s29 }
  0x23   : > { %p10481_p3 = pnand %p8362_p0, %p505_p2  ;;  %s15180_s6 = smov 256  }
  0x24   : > { %s15182_s4 = smov 16   ;;  %s15184_s30 = smov 128  }
  0x25   : > { %s516_s26 = sshll.u32 %s15415_s3, 4  ;;  %p9233_p4 = pneg %p10481_p3  ;;  %s517_s26 = int_to_ptr.hbm [resolvable:$true] %s516_s26 }
  0x26   : > { %s15417_s28 = scalar_select %p10481_p3, 1, 0 }
  0x27   : > { %p10492_p5 = pnand %p9233_p4, %p65_p1  ;;  %s10321_s3 = smov [#allocation7]  }
  0x28   : > { %15418 = sst [smem:[#allocation43_spill]] %s15417_s28  ;;  %s530_s2 = sshll.u32 %s15419_s21, 4  ;;  %s531_s2 = int_to_ptr.hbm [resolvable:$true] %s530_s2 }
  0x29   : > { %s532_s20 = sshll.u32 %s10321_s3, 4  ;;  %s15186_s0 = smov 8   ;;  %s533_s20 = int_to_ptr.vmem [resolvable:$true] %s532_s20 }
  0x2a   : > { %9236 = dma.hbm_to_vmem [thread:$0]  (!%p10492_p5), %s517_s26, 5376, %s519_s29, [#allocation5], %s15180_s6, %s15180_s6, %s15182_s4  }
  0x2b   : > { %9239 = dma.hbm_to_vmem [thread:$0]  (!%p10492_p5), %s531_s2, 1280, %s533_s20, [#allocation8], %s15184_s30, %s15184_s30, %s15186_s0  }
  0x2c   : > { %s15421_s5 = sld [smem:[#allocation217_spill]]  ;;  %s10326_s28 = smov [#allocation10]  }
  0x2d   : > { %s560_s27 = sshll.u32 %s10326_s28, 4  ;;  %s15422_s8 = sld [smem:[#allocation220_spill]]  ;;  %s561_s27 = int_to_ptr.vmem [resolvable:$true] %s560_s27 }
  0x2e   : > { %s10327_s20 = smov [#allocation13]   ;;  %s15423_s10 = sld [smem:[#allocation222_spill]] }
  0x2f   : > { %s591_s2 = sshll.u32 %s10327_s20, 4  ;;  %s15424_s13 = sld [smem:[#allocation225_spill]]  ;;  %s592_s2 = int_to_ptr.vmem [resolvable:$true] %s591_s2 }
  0x30   : > { %s10329_s6 = smov [#allocation19]   ;;  %s15188_s11 = smov 64  }
  0x31   : > { %s650_s20 = sshll.u32 %s10329_s6, 4  ;;  %s676_s28 = sshll.u32 %s15168_s15, 4  ;;  %s651_s20 = int_to_ptr.vmem [resolvable:$true] %s650_s20  ;;  %s677_s28 = int_to_ptr.hbm [resolvable:$true] %s676_s28 }
  0x32   : > { %s558_s3 = sshll.u32 %s15421_s5, 4  ;;  %s704_s6 = sshll.u32 %s15170_s17, 4  ;;  %s559_s3 = int_to_ptr.hbm [resolvable:$true] %s558_s3  ;;  %s705_s6 = int_to_ptr.hbm [resolvable:$true] %s704_s6 }
  0x33   : > { %s589_s29 = sshll.u32 %s15422_s8, 4  ;;  %s15425_s1 = sld [smem:[#allocation216_spill]]  ;;  %s590_s29 = int_to_ptr.hbm [resolvable:$true] %s589_s29 }
  0x34   : > { %9245 = dma.hbm_to_vmem [thread:$0]  (!%p10492_p5), %s559_s3, 256, %s561_s27, [#allocation11], %s15184_s30, %s15184_s30, %s15186_s0  }
  0x35   : > { %s617_s21 = sshll.u32 %s15423_s10, 4  ;;  %s648_s26 = sshll.u32 %s15424_s13, 4  ;;  %s618_s21 = int_to_ptr.hbm [resolvable:$true] %s617_s21  ;;  %s649_s26 = int_to_ptr.hbm [resolvable:$true] %s648_s26 }
  0x36   : > { %9251 = dma.hbm_to_vmem [thread:$0]  (!%p10492_p5), %s590_s29, 1408, %s592_s2, [#allocation14], %s15184_s30, %s15184_s30, %s15186_s0  }
  0x37   : > { %s10328_s27 = smov [#allocation16]   ;;  %s15190_s29 = smov 4  }
  0x38   : > { %s619_s3 = sshll.u32 %s10328_s27, 4  ;;  %s10332_s27 = smov [#allocation22]   ;;  %s620_s3 = int_to_ptr.vmem [resolvable:$true] %s619_s3 }
  0x39   : > { %9257 = dma.hbm_to_vmem [thread:$0]  (!%p10492_p5), %s618_s21, 384, %s620_s3, [#allocation17], %s15184_s30, %s15184_s30, %s15186_s0  }
  0x3a   : > { %9263 = dma.hbm_to_vmem [thread:$0]  (!%p10492_p5), %s649_s26, 384, %s651_s20, [#allocation20], %s15188_s11, %s15188_s11, %s15190_s29  }
  0x3b   : > { %s678_s4 = sshll.u32 %s10332_s27, 4  ;;  %s10333_s26 = smov [#allocation25]   ;;  %s679_s4 = int_to_ptr.vmem [resolvable:$true] %s678_s4 }
  0x3c   : > { %9269 = dma.hbm_to_vmem [thread:$0]  (!%p10492_p5), %s677_s28, 128, %s679_s4, [#allocation23], %s15188_s11, %s15188_s11, %s15190_s29  }
  0x3d   : > { %s706_s20 = sshll.u32 %s10333_s26, 4  ;;  %s544_s0 = sshll.u32 %s15425_s1, 4  ;;  %s707_s20 = int_to_ptr.vmem [resolvable:$true] %s706_s20  ;;  %s545_s0 = int_to_ptr.hbm [resolvable:$true] %s544_s0 }
  0x3e   : > { %9275 = dma.hbm_to_vmem [thread:$0]  (!%p10492_p5), %s705_s6, 704, %s707_s20, [#allocation26], %s15188_s11, %s15188_s11, %s15190_s29  }
  0x3f   : > { %s15426_s7 = sld [smem:[#allocation219_spill]]  ;;  %s10334_s4 = smov [#allocation9]  }
  0x40   : > { %s546_s28 = sshll.u32 %s10334_s4, 4  ;;  %s15427_s30 = smov 8   ;;  %s547_s28 = int_to_ptr.vmem [resolvable:$true] %s546_s28 }
  0x41   : > { %s15428_s26 = smov 128   ;;  %s10335_s2 = smov [#allocation12]  }
  0x42   : > { %9242 = dma.hbm_to_vmem [thread:$0]  (!%p10492_p5), %s545_s0, 640, %s547_s28, [#allocation8], %s15428_s26, %s15428_s26, %s15427_s30  }
  0x43   : > { %s577_s1 = sshll.u32 %s10335_s2, 4  ;;  %s15429_s9 = sld [smem:[#allocation221_spill]]  ;;  %s578_s1 = int_to_ptr.vmem [resolvable:$true] %s577_s1 }
  0x44   : > { %s15430_s20 = smov 16   ;;  %s15431_s27 = smov 256  }
  0x45   : > { %s575_s3 = sshll.u32 %s15426_s7, 4  ;;  %s15432_s12 = sld [smem:[#allocation224_spill]]  ;;  %s576_s3 = int_to_ptr.hbm [resolvable:$true] %s575_s3 }
  0x46   : > { %9248 = dma.hbm_to_vmem [thread:$0]  (!%p10492_p5), %s576_s3, 5632, %s578_s1, [#allocation11], %s15431_s27, %s15431_s27, %s15430_s20  }
  0x47   : > { %s10336_s29 = smov [#allocation15]   ;;  %s10337_s5 = smov [#allocation18]  }
  0x48   : > { %s605_s0 = sshll.u32 %s10336_s29, 4  ;;  %s636_s8 = sshll.u32 %s10337_s5, 4  ;;  %s606_s0 = int_to_ptr.vmem [resolvable:$true] %s605_s0  ;;  %s637_s8 = int_to_ptr.vmem [resolvable:$true] %s636_s8 }
  0x49   : > { %s603_s6 = sshll.u32 %s15429_s9, 4  ;;  %s15433_s14 = sld [smem:[#allocation226_spill]]  ;;  %s604_s6 = int_to_ptr.hbm [resolvable:$true] %s603_s6 }
  0x4a   : > { %9254 = dma.hbm_to_vmem [thread:$0]  (!%p10492_p5), %s604_s6, 768, %s606_s0, [#allocation14], %s15428_s26, %s15428_s26, %s15427_s30  }
  0x4b   : > { %s634_s11 = sshll.u32 %s15432_s12, 4  ;;  %s690_s21 = sshll.u32 %s15169_s16, 4  ;;  %s635_s11 = int_to_ptr.hbm [resolvable:$true] %s634_s11  ;;  %s691_s21 = int_to_ptr.hbm [resolvable:$true] %s690_s21 }
  0x4c   : > { %9260 = dma.hbm_to_vmem [thread:$0]  (!%p10492_p5), %s635_s11, 1408, %s637_s8, [#allocation17], %s15428_s26, %s15428_s26, %s15427_s30  }
  0x4d   : > { %s10338_s4 = smov [#allocation21]   ;;  %s15434_s0 = smov 4  }
  0x4e   : > { %s664_s6 = sshll.u32 %s10338_s4, 4  ;;  %s15435_s5 = smov 64   ;;  %s665_s6 = int_to_ptr.vmem [resolvable:$true] %s664_s6 }
  0x4f   : > { %s662_s3 = sshll.u32 %s15433_s14, 4  ;;  %s10339_s28 = smov [#allocation24]   ;;  %s663_s3 = int_to_ptr.hbm [resolvable:$true] %s662_s3 }
  0x50   : > { %9266 = dma.hbm_to_vmem [thread:$0]  (!%p10492_p5), %s663_s3, 192, %s665_s6, [#allocation20], %s15435_s5, %s15435_s5, %s15434_s0  }
  0x51   : > { %s692_s2 = sshll.u32 %s10339_s28, 4  ;;  %s718_s30 = sshll.u32 %s15171_s18, 4  ;;  %s693_s2 = int_to_ptr.vmem [resolvable:$true] %s692_s2  ;;  %s719_s30 = int_to_ptr.hbm [resolvable:$true] %s718_s30 }
  0x52   : > { %9272 = dma.hbm_to_vmem [thread:$0]  (!%p10492_p5), %s691_s21, 1408, %s693_s2, [#allocation23], %s15435_s5, %s15435_s5, %s15434_s0  }
  0x53   : > { %s732_s3 = sshll.u32 %s15172_s19, 4  ;;  %s15436_s29 = sld [smem:[#allocation41_spill]]  ;;  %s733_s3 = int_to_ptr.hbm [resolvable:$true] %s732_s3 }
  0x54   : > { %s10340_s7 = smov [#allocation27]   ;;  %s10341_s21 = smov [#allocation28]  }
  0x55   : > { %s720_s1 = sshll.u32 %s10340_s7, 4  ;;  %s734_s6 = sshll.u32 %s10341_s21, 4  ;;  %s721_s1 = int_to_ptr.vmem [resolvable:$true] %s720_s1  ;;  %s735_s6 = int_to_ptr.vmem [resolvable:$true] %s734_s6 }
  0x56   : > { %9278 = dma.hbm_to_vmem [thread:$0]  (!%p10492_p5), %s719_s30, 384, %s721_s1, [#allocation26], %s15435_s5, %s15435_s5, %s15434_s0  }
  0x57   : > { %9281 = dma.hbm_to_vmem [thread:$0]  (!%p10492_p5), %s733_s3, 192, %s735_s6, [#allocation29], %s15435_s5, %s15435_s5, %s15434_s0  }
  0x58   : > { %s10619_s28 = sadd.s32 1, %s10318_s24   ;;  %s51_s2 = sadd.s32 1, %s10314_s23 }
  0x59   : > { %s48_s11 = ssub.s32 %s10318_s24, %s10619_s28  ;;  %p58_p6 = scmp.ne.s32.totalorder %s10314_s23, %s10310_s22 }
  0x5a   : > { %p49_p7 = scmp.eq.s32.totalorder %s48_s11, 0  ;;  %p59_p8 = scmp.eq.s32.totalorder %s10318_s24, 0 }
  0x5b   : > { %p64_p9 = scmp.ne.s32.totalorder %s10310_s22, %s15436_s29  ;;  %p9305_p10 = scmp.lt.s32.totalorder %s10318_s24, 2 }
  0x5c   : > { %s10631_s30 = scalar_select %p49_p7, %s10314_s23, %s51_s2  }
  0x5d   : > { %p60_p11 = por %p59_p8, %p58_p6  ;;  %p10635_p12 = por %p65_p1, %p64_p9 }
  0x5e   : > { %s748_s26 = sand.u32 1, %s10314_s23   ;;  %s9151_s0 = smul.u32 352, %s10318_s24 }
  0x5f   : > { %s9150_s5 = smul.u32 352, %s748_s26  ;;  %s15439_s7 = sld [smem:[#allocation212_spill]] }
  0x60   : > { %p10644_p13 = pnand %p9305_p10, %p60_p11  ;;  %s749_s2 = scalar_lea.sflag [#allocation3], %s748_s26 }
  0x61   : > { %s752_s4 = scalar_lea.vmem [#allocation2], %s9150_s5 }
  0x62   : > { %s760_s6 = sshll.u32 %s752_s4, 4  ;;  %p10188_p2 = pneg %p10644_p13  ;;  %s761_s6 = int_to_ptr.vmem [resolvable:$true] %s760_s6 }
  0x65   : > { %s757_s1 = scalar_lea.hbm %s15439_s7, %s9151_s0  ;;  %s10191_s10 = scalar_lea.hbm %s15439_s7, 704 }
  0x66   : > { %s758_s29 = sshll.u32 %s757_s1, 4  ;;  %s759_s29 = int_to_ptr.hbm [resolvable:$true] %s758_s29 }
  0x67   : > { %s10184_s11 = sshra.s32 %s759_s29, 4  ;;  %s10185_s11 = int_to_ptr.hbm [resolvable:$true] %s10184_s11 }
  0x68   : > { %s10186_s9 = scalar_lea.hbm %s10185_s11, 352  ;;  %p10192_p6 = scmp.lt.s32.totalorder %s10185_s11, %s15439_s7 }
  0x69   : > { %p10187_p0 = scmp.ne.s32.totalorder %s10185_s11, %s10186_s9  ;;  %p10193_p7 = scmp.lt.s32.totalorder %s10191_s10, %s10186_s9 }
  0x6b   : > { %p10189_p4 = pnand %p10188_p2, %p10187_p0  ;;  %p10194_p8 = por %p10193_p7, %p10192_p6 }
  0x6d   : > { %p10190_p5 = pneg %p10189_p4 }
  0x6f   : > { %p10195_p9 = pnand %p10194_p8, %p10190_p5 }
  0x71   : > { %10198 = shalt.err (!%p10195_p9)
}
  0x72   : > { %9285 = dma.hbm_to_vmem [thread:$0]  (!%p10644_p13), %s759_s29, 5632, %s761_s6, %s749_s2, %s15431_s27, %s15431_s27, %s15430_s20  }
  0x73   : > { %s770_s26 = sand.u32 1, %s10318_s24   ;;  %s15441_s3 = sld [smem:[#allocation213_spill]] }
  0x74   : > { %s774_s12 = scalar_lea.vmem [#allocation4], %s9150_s5  ;;  %s771_s9 = scalar_lea.sflag [#allocation5], %s770_s26 }
  0x75   : > { %s782_s11 = sshll.u32 %s774_s12, 4  ;;  %s783_s11 = int_to_ptr.vmem [resolvable:$true] %s782_s11 }
  0x79   : > { %s779_s13 = scalar_lea.hbm %s15441_s3, %s9151_s0  ;;  %s10221_s6 = scalar_lea.hbm %s15441_s3, 704 }
  0x7a   : > { %s780_s14 = sshll.u32 %s779_s13, 4  ;;  %s781_s14 = int_to_ptr.hbm [resolvable:$true] %s780_s14 }
  0x7b   : > { %s10214_s10 = sshra.s32 %s781_s14, 4  ;;  %s10215_s10 = int_to_ptr.hbm [resolvable:$true] %s10214_s10 }
  0x7c   : > { %s10216_s1 = scalar_lea.hbm %s10215_s10, 352  ;;  %p10222_p4 = scmp.lt.s32.totalorder %s10215_s10, %s15441_s3 }
  0x7d   : > { %p10217_p10 = scmp.ne.s32.totalorder %s10215_s10, %s10216_s1  ;;  %p10223_p5 = scmp.lt.s32.totalorder %s10221_s6, %s10216_s1 }
  0x7f   : > { %p10219_p11 = pnand %p10217_p10, %p10188_p2  ;;  %p10224_p6 = por %p10223_p5, %p10222_p4 }
  0x81   : > { %p10220_p0 = pneg %p10219_p11 }
  0x83   : > { %p10225_p7 = pnand %p10224_p6, %p10220_p0 }
  0x85   : > { %10228 = shalt.err (!%p10225_p7)
}
  0x86   : > { %9288 = dma.hbm_to_vmem [thread:$0]  (!%p10644_p13), %s781_s14, 5632, %s783_s11, %s771_s9, %s15431_s27, %s15431_s27, %s15430_s20  }
  0x87   : > { %794 = sbr.rel (%p10481_p3) target bundleno = 4448 (0x1160), region = 100 }
  0x8c   : > { %s796_s5 = sand.u32 1, %s10310_s22  }
  0x8d   : > { %s9154_s26 = smul.u32 352, %s796_s5  ;;  %s797_s4 = scalar_lea.sflag [#allocation3], %s796_s5 }
  0x8f   : > { %s10685_s8 = scalar_lea.vmem [#allocation2], %s9154_s26 }
  0x90   : > { %10261 = dma.done.wait (%p10635_p12), %s797_s4, 5632  }
  0x91   : > { %10263 = vsyncadd (%p10635_p12), %s797_s4, 4294961664  ;;  %s15443_s21 = sld [smem:[#allocation42_spill]]  ;;  %s10692_s14 = scalar_lea.vmem [#allocation4], %s9154_s26 }
  0x97   : > { %s806_s12 = sand.u32 1, %s15443_s21  }
  0x98   : > { %s807_s10 = scalar_lea.sflag [#allocation5], %s806_s12 }
  0x99   : > { %10265 = dma.done.wait (%p10635_p12), %s807_s10, 5632  }
  0x9a   : > { %10267 = vsyncadd (%p10635_p12), %s807_s10, 4294961664 }
  0x9b   : > { %10269 = dma.done.wait (%p65_p1), [#allocation5], 5376  }
  0x9c   : > { %10271 = vsyncadd (%p65_p1), [#allocation5], 4294961920 }
  0x9d   : > { %10273 = dma.done.wait (%p65_p1), [#allocation8], 1920  }
  0x9e   : > { %10275 = vsyncadd (%p65_p1), [#allocation8], 4294965376 }
  0x9f   : > { %10277 = dma.done.wait (%p65_p1), [#allocation11], 5888  }
  0xa0   : > { %10279 = vsyncadd (%p65_p1), [#allocation11], 4294961408 }
  0xa1   : > { %10281 = dma.done.wait (%p65_p1), [#allocation14], 2176  }
  0xa2   : > { %10283 = vsyncadd (%p65_p1), [#allocation14], 4294965120 }
  0xa3   : > { %10285 = dma.done.wait (%p65_p1), [#allocation17], 1792  }
  0xa4   : > { %10287 = vsyncadd (%p65_p1), [#allocation17], 4294965504 }
  0xa5   : > { %10289 = dma.done.wait (%p65_p1), [#allocation20], 576  }
  0xa6   : > { %10291 = vsyncadd (%p65_p1), [#allocation20], 4294966720 }
  0xa7   : > { %10293 = dma.done.wait (%p65_p1), [#allocation23], 1536  }
  0xa8   : > { %10295 = vsyncadd (%p65_p1), [#allocation23], 4294965760 }
  0xa9   : > { %10297 = dma.done.wait (%p65_p1), [#allocation26], 1088  }
  0xaa   : > { %10299 = vsyncadd (%p65_p1), [#allocation26], 4294966208 }
  0xab   : > { %10301 = dma.done.wait (%p65_p1), [#allocation29], 192  }
  0xac   : > { %10303 = vsyncadd (%p65_p1), [#allocation29], 4294967104  ;;  %v10734_v0 = vld [vmem:[#allocation12 + $0xe0] sm:$0xff]  ;;  %v1115_v1 = vld [vmem:[#allocation12 + $0xf0] sm:$0xff]  ;;  %vm1217_vm0 = vcmask 392192   ;;  %vm5058_vm1 = vcmask 310272  }
  0xad   : > { %v10736_v2 = vld [vmem:[#allocation12 + $0x140] sm:$0xff]  ;;  %v1165_v3 = vpack.c.bf16 %v1115_v1, %v10734_v0  ;;  %v1127_v4 = vld [vmem:[#allocation12 + $0x150] sm:$0xff]  ;;  %v10739_v5 = vld [vmem:[#allocation12 + $0xe8] sm:$0xff]  ;;  %vm5118_vm2 = vcmask 1045504   ;;  %vm5121_vm3 = vcmask 308224   ;;  %vm5903_vm4 = vcmask 1043456  }
  0xae   : > { %v10741_v6 = vld [vmem:[#allocation12 + $0xf8] sm:$0xff]  ;;  %v1171_v7 = vpack.c.bf16 %v1127_v4, %v10736_v2  ;;  %v10746_v9 = vld [vmem:[#allocation12 + $0x148] sm:$0xff]  ;;  %v10750_v11 = vld [vmem:[#allocation12 + $0xc0] sm:$0xff]  ;;  %vm5869_vm5 = vcmask 719872   ;;  %vm6611_vm6 = vcmask 637952   ;;  %vm6629_vm7 = vcmask 635904  }
  0xaf   : > { %v1166_v8 = vpack.c.bf16 %v10741_v6, %v10739_v5  ;;  %v10748_v10 = vld [vmem:[#allocation12 + $0x158] sm:$0xff]  ;;  %1284 = vmatpush.bf16.msra.mxu0 %v1165_v3  ;;  %v10754_v13 = vld [vmem:[#allocation12 + $0xd0] sm:$0xff]  ;;  %v10756_v14 = vld [vmem:[#allocation12 + $0x120] sm:$0xff]  ;;  %vm6885_vm8 = vcmask 359424   ;;  %vm7327_vm9 = vcmask 277504   ;;  %vm7335_vm10 = vcmask 271360  }
  0xb0   : > { %v1172_v12 = vpack.c.bf16 %v10748_v10, %v10746_v9  ;;  %v10758_v15 = vld [vmem:[#allocation12 + $0x130] sm:$0xff]  ;;  %1408 = vmatpush.bf16.msra.mxu1 %v1171_v7  ;;  %v1163_v16 = vpack.c.bf16 %v10754_v13, %v10750_v11  ;;  %v10764_v18 = vld [vmem:[#allocation12 + $0xc8] sm:$0xff]  ;;  %v10766_v19 = vld [vmem:[#allocation12 + $0xd8] sm:$0xff]  ;;  %vm7518_vm11 = vcmask 1042432   ;;  %vm7508_vm12 = vcmask 179200   ;;  %s16176_s25 = sld [smem:[#allocation223_spill]] }
  0xb1   : > { %1522 = vmatpush.bf16.msra.mxu2 %v1166_v8  ;;  %v1169_v17 = vpack.c.bf16 %v10758_v15, %v10756_v14  ;;  %v10768_v20 = vld [vmem:[#allocation12 + $0x128] sm:$0xff]  ;;  %v1164_v21 = vpack.c.bf16 %v10766_v19, %v10764_v18  ;;  %v10772_v22 = vld [vmem:[#allocation12 + $0x138] sm:$0xff]  ;;  %v10774_v23 = vld [vmem:[#allocation12 + $0xa0] sm:$0xff]  ;;  %vm7634_vm13 = vcmask 195584   ;;  %vm7775_vm14 = vcmask 93184   ;;  %s16177_s24 = sld [smem:[#allocation218_spill]] }
  0xb2   : > { %1646 = vmatpush.bf16.msra.mxu3 %v1172_v12  ;;  %v1107_v24 = vld [vmem:[#allocation12 + $0xb0] sm:$0xff]  ;;  %v1170_v25 = vpack.c.bf16 %v10772_v22, %v10768_v20  ;;  %v10778_v26 = vld [vmem:[#allocation12 + $0x100] sm:$0xff]  ;;  %v10782_v28 = vld [vmem:[#allocation12 + $0xa8] sm:$0xff]  ;;  %vm7773_vm15 = vcmask 97280   ;;  %p951_p1 = scmp.lt.s32.totalorder %s15443_s21, 1  ;;  %s16178_s4 = sld [smem:[#allocation227_spill]] }
  0xb3   : > { %v10780_v27 = vld [vmem:[#allocation12 + $0x110] sm:$0xff]  ;;  %1285 = vmatpush.bf16.msra.mxu0 %v1163_v16  ;;  %v1161_v29 = vpack.c.bf16 %v1107_v24, %v10774_v23  ;;  %v10785_v30 = vld [vmem:[#allocation12 + $0xb8] sm:$0xff]  ;;  %v10787_v31 = vld [vmem:[#allocation12 + $0x108] sm:$0xff] }
  0xb4   : > { %v10789_v32 = vld [vmem:[#allocation12 + $0x118] sm:$0xff]  ;;  %1409 = vmatpush.bf16.msra.mxu1 %v1169_v17  ;;  %v1167_v33 = vpack.c.bf16 %v10780_v27, %v10778_v26  ;;  %v1162_v34 = vpack.c.bf16 %v10785_v30, %v10782_v28  ;;  %v956_v35 = vld [vmem:[%s10685_s8 + $0x8] sm:$0xff]  ;;  %v958_v36 = vld [vmem:[%s10685_s8 + $0x18] sm:$0xff]  ;;  %s16184_s21 = smov (!%p951_p1, %s15443_s21), 1 }
  0xb5   : > { %1523 = vmatpush.bf16.msra.mxu2 %v1164_v21  ;;  %v10797_v37 = vld [vmem:[#allocation12 + $0x80] sm:$0xff]  ;;  %v1168_v38 = vpack.c.bf16 %v10789_v32, %v10787_v31  ;;  %v1103_v39 = vld [vmem:[#allocation12 + $0x90] sm:$0xff]  ;;  %v10801_v40 = vld [vmem:[#allocation12 + $0x88] sm:$0xff]  ;;  %v10805_v42 = vpack.c.bf16 %v958_v36, %v956_v35 }
  0xb6   : > { %1647 = vmatpush.bf16.msra.mxu3 %v1170_v25  ;;  %v10803_v41 = vld [vmem:[#allocation12 + $0x98] sm:$0xff]  ;;  %v1159_v43 = vpack.c.bf16 %v1103_v39, %v10797_v37  ;;  %v10810_v45 = vld [vmem:[#allocation12 + $0x60] sm:$0xff]  ;;  %v1099_v46 = vld [vmem:[#allocation12 + $0x70] sm:$0xff] }
  0xb7   : > { %1286 = vmatpush.bf16.msra.mxu0 %v1161_v29  ;;  %15444 = vst [vmem:[#allocation44_spill] sm:$0xff] %v10805_v42  ;;  %v1160_v44 = vpack.c.bf16 %v10803_v41, %v10801_v40  ;;  %v10812_v47 = vld [vmem:[#allocation12 + $0x68] sm:$0xff]  ;;  %v10814_v48 = vld [vmem:[#allocation12 + $0x78] sm:$0xff]  ;;  %v1157_v49 = vpack.c.bf16 %v1099_v46, %v10810_v45  ;;  %v1093_v51 = vld [vmem:[#allocation12 + $0x40] sm:$0xff] }
  0xb8   : > { %1410 = vmatpush.bf16.msra.mxu1 %v1167_v33  ;;  %v1158_v50 = vpack.c.bf16 %v10814_v48, %v10812_v47  ;;  %v1095_v52 = vld [vmem:[#allocation12 + $0x50] sm:$0xff]  ;;  %v10823_v53 = vld [vmem:[#allocation12 + $0x48] sm:$0xff]  ;;  %v10825_v54 = vld [vmem:[#allocation12 + $0x58] sm:$0xff] }
  0xb9   : > { %1524 = vmatpush.bf16.msra.mxu2 %v1162_v34  ;;  %v1155_v55 = vpack.c.bf16 %v1095_v52, %v1093_v51  ;;  %v1156_v56 = vpack.c.bf16 %v10825_v54, %v10823_v53  ;;  %v1089_v57 = vld [vmem:[#allocation12 + $0x20] sm:$0xff]  ;;  %v1091_v58 = vld [vmem:[#allocation12 + $0x30] sm:$0xff]  ;;  %v10833_v59 = vld [vmem:[#allocation12 + $0x28] sm:$0xff] }
  0xba   : > { %1648 = vmatpush.bf16.msra.mxu3 %v1168_v38  ;;  %v10835_v60 = vld [vmem:[#allocation12 + $0x38] sm:$0xff]  ;;  %v1153_v61 = vpack.c.bf16 %v1091_v58, %v1089_v57  ;;  %v10840_v62 = vld [vmem:[%s10685_s8 + $0x28] sm:$0xff]  ;;  %v10848_v3 = vld [vmem:[#allocation12 + $0x8] sm:$0xff] }
  0xbb   : > { %8399 = vmatmul.msk.bf16.vlgmr.msra.gmra.mxu1 %vm1217_vm0, %v10805_v42  ;;  %1287 = vmatpush.bf16.msra.mxu0 %v1159_v43  ;;  %15445 = vst [vmem:[#allocation45_spill] sm:$0xff] %v10840_v62  ;;  %v1154_v63 = vpack.c.bf16 %v10835_v60, %v10833_v59  ;;  %v10860_v12 = vld [vmem:[%s10685_s8 + $0x10] sm:$0xff]  ;;  %v10920_v17 = vld [vmem:[%s10685_s8 + $0x68] sm:$0xff]  ;;  %v982_v36 = vld [vmem:[%s10685_s8 + $0xd8] sm:$0xff] }
  0xbc   : > { %2090 = vmatpush.msrb.mxu1 %v1115_v1  ;;  %v1085_v1 = vld [vmem:[#allocation12] sm:$0xff]  ;;  %15454 = vst [vmem:[#allocation54_spill] sm:$0xff] %v10920_v17  ;;  %v10934_v21 = vld [vmem:[%s10685_s8 + $0x50] sm:$0xff]  ;;  %v10975_v29 = vld [vmem:[%s10685_s8 + $0xa8] sm:$0xff] }
  0xbd   : > { %8421 = vmatmul.msk.bf16.vlgmr.msra.gmra.mxu3 %vm1217_vm0, %v10805_v42  ;;  %1525 = vmatpush.bf16.msra.mxu2 %v1160_v44  ;;  %15458 = vst [vmem:[#allocation58_spill] sm:$0xff] %v10934_v21  ;;  %v10988_v33 = vld [vmem:[%s10685_s8 + $0x90] sm:$0xff]  ;;  %v980_v35 = vld [vmem:[%s10685_s8 + $0xc8] sm:$0xff]  ;;  %v11005_v38 = vld [vmem:[%s10685_s8 + $0xa0] sm:$0xff] }
  0xbe   : > { %2315 = vmatpush.msrb.mxu3 %v1127_v4  ;;  %2091 = vmatpush.msrb.mxu1 %v10734_v0  ;;  %v10845_v0 = vld [vmem:[%s10685_s8 + $0x38] sm:$0xff]  ;;  %v1088_v4 = vld [vmem:[#allocation12 + $0x18] sm:$0xff]  ;;  %15466 = vst [vmem:[#allocation66_spill] sm:$0xff] %v10975_v29 }
  0xbf   : > { %1288 = vmatpush.bf16.msra.mxu0 %v1157_v49  ;;  %15446 = vst [vmem:[#allocation46_spill] sm:$0xff] %v10845_v0  ;;  %v10854_v7 = vpack.c.bf16 %v10845_v0, %v10840_v62  ;;  %v986_v43 = vld [vmem:[%s10685_s8 + $0xf8] sm:$0xff] }
  0xc0   : > { %2316 = vmatpush.msrb.mxu3 %v10736_v2  ;;  %2092 = vmatpush.msrb.mxu1 %v10754_v13  ;;  %v1087_v2 = vld [vmem:[#allocation12 + $0x10] sm:$0xff]  ;;  %v1152_v13 = vpack.c.bf16 %v1088_v4, %v10848_v3  ;;  %15470 = vst [vmem:[#allocation70_spill] sm:$0xff] %v10988_v33  ;;  %v990_v49 = vld [vmem:[%s10685_s8 + $0x118] sm:$0xff] }
  0xc1   : > { %1526 = vmatpush.bf16.msra.mxu2 %v1158_v50  ;;  %15447 = vst [vmem:[#allocation47_spill] sm:$0xff] %v10854_v7  ;;  %v1151_v8 = vpack.c.bf16 %v1087_v2, %v1085_v1 }
  0xc2   : > { %2317 = vmatpush.msrb.mxu3 %v10758_v15  ;;  %2093 = vmatpush.msrb.mxu1 %v10750_v11  ;;  %v10857_v11 = vld [vmem:[%s10685_s8] sm:$0xff]  ;;  %v10899_v15 = vld [vmem:[%s10685_s8 + $0x30] sm:$0xff]  ;;  %15473 = vst [vmem:[#allocation73_spill] sm:$0xff] %v11005_v38 }
  0xc3   : > { %1289 = vmatpush.bf16.msra.mxu0 %v1155_v55  ;;  %15452 = vst [vmem:[#allocation52_spill] sm:$0xff] %v10899_v15 }
  0xc4   : > { %2318 = vmatpush.msrb.mxu3 %v10756_v14  ;;  %2094 = vmatpush.msrb.mxu1 %v1107_v24  ;;  %v10866_v14 = vpack.c.bf16 %v10860_v12, %v10857_v11  ;;  %v10952_v24 = vld [vmem:[%s10685_s8 + $0x98] sm:$0xff] }
  0xc5   : > { %1527 = vmatpush.bf16.msra.mxu2 %v1156_v56  ;;  %15461 = vst [vmem:[#allocation61_spill] sm:$0xff] %v10952_v24 }
  0xc6   : > { %2319 = vmatpush.msrb.mxu3 %v10780_v27  ;;  %2095 = vmatpush.msrb.mxu1 %v10774_v23  ;;  %15448 = vst [vmem:[#allocation48_spill] sm:$0xff] %v10866_v14  ;;  %v10949_v23 = vld [vmem:[%s10685_s8 + $0x88] sm:$0xff]  ;;  %v10962_v27 = vld [vmem:[%s10685_s8 + $0x70] sm:$0xff] }
  0xc7   : > { %1290 = vmatpush.bf16.msra.mxu0 %v1153_v61  ;;  %15460 = vst [vmem:[#allocation60_spill] sm:$0xff] %v10949_v23  ;;  %v10956_v25 = vpack.c.bf16 %v10952_v24, %v10949_v23  ;;  %v987_v61 = vld [vmem:[%s10685_s8 + $0x100] sm:$0xff] }
  0xc8   : > { %2320 = vmatpush.msrb.mxu3 %v10778_v26  ;;  %2096 = vmatpush.msrb.mxu1 %v1103_v39  ;;  %v10959_v26 = vld [vmem:[%s10685_s8 + $0x60] sm:$0xff]  ;;  %15464 = vst [vmem:[#allocation64_spill] sm:$0xff] %v10962_v27  ;;  %v11008_v39 = vld [vmem:[%s10685_s8 + $0xb0] sm:$0xff] }
  0xc9   : > { %1528 = vmatpush.bf16.msra.mxu2 %v1154_v63  ;;  %15462 = vst [vmem:[#allocation62_spill] sm:$0xff] %v10956_v25  ;;  %v989_v63 = vld [vmem:[%s10685_s8 + $0x110] sm:$0xff] }
  0xca   : > { %2097 = vmatpush.msrb.mxu1 %v10797_v37  ;;  %15463 = vst [vmem:[#allocation63_spill] sm:$0xff] %v10959_v26  ;;  %v11002_v37 = vpack.c.bf16 %v982_v36, %v980_v35 }
  0xcb   : > { %8400 = vmatmul.msk.bf16.gmra.mxu1 %vm1217_vm0, %v10854_v7  ;;  %1291 = vmatpush.bf16.msra.mxu0 %v1151_v8  ;;  %15474 = vst [vmem:[#allocation74_spill] sm:$0xff] %v11008_v39 }
  0xcc   : > { %2098 = vmatpush.msrb.mxu1 %v1099_v46  ;;  %15472 = vst [vmem:[#allocation72_spill] sm:$0xff] %v11002_v37  ;;  %v981_v46 = vld [vmem:[%s10685_s8 + $0xd0] sm:$0xff] }
  0xcd   : > { %8422 = vmatmul.msk.bf16.gmra.mxu3 %vm1217_vm0, %v10854_v7  ;;  %1529 = vmatpush.bf16.msra.mxu2 %v1152_v13  ;;  %v997_v7 = vld [vmem:[%s10685_s8 + $0x150] sm:$0xff] }
  0xce   : > { %1292 = vmatmul.bf16.vlgmr.msra.gmra.mxu0 %v10866_v14  ;;  %2099 = vmatpush.msrb.mxu1 %v10810_v45  ;;  %v11025_v45 = vld [vmem:[%s10685_s8 + $0xc0] sm:$0xff] }
  0xcf   : > { %2520 = vmatpush.msrb.mxu0 %v10741_v6  ;;  %v10883_v6 = vld [vmem:[%s10685_s8 + $0x48] sm:$0xff]  ;;  %15477 = vst [vmem:[#allocation77_spill] sm:$0xff] %v11025_v45 }
  0xd0   : > { %1530 = vmatmul.bf16.vlgmr.msra.gmra.mxu2 %v10866_v14  ;;  %2100 = vmatpush.msrb.mxu1 %v1095_v52  ;;  %15449 = vst [vmem:[#allocation49_spill] sm:$0xff] %v10883_v6  ;;  %v985_v52 = vld [vmem:[%s10685_s8 + $0xf0] sm:$0xff] }
  0xd1   : > { %2745 = vmatpush.msrb.mxu2 %v10748_v10  ;;  %2521 = vmatpush.msrb.mxu0 %v10739_v5  ;;  %v10886_v10 = vld [vmem:[%s10685_s8 + $0x58] sm:$0xff]  ;;  %v1001_v14 = vld [vmem:[%s10692_s14 + $0x10] sm:$0xff] }
  0xd2   : > { %15450 = vst [vmem:[#allocation50_spill] sm:$0xff] %v10886_v10  ;;  %2101 = vmatpush.msrb.mxu1 %v1093_v51  ;;  %v10893_v5 = vpack.c.bf16 %v10886_v10, %v10883_v6  ;;  %v983_v51 = vld [vmem:[%s10685_s8 + $0xe0] sm:$0xff]  ;;  %v1021_v6 = vld [vmem:[%s10692_s14 + $0xb0] sm:$0xff] }
  0xd3   : > { %2746 = vmatpush.msrb.mxu2 %v10746_v9  ;;  %2522 = vmatpush.msrb.mxu0 %v10766_v19  ;;  %v10896_v9 = vld [vmem:[%s10685_s8 + $0x20] sm:$0xff] }
  0xd4   : > { %2102 = vmatpush.msrb.mxu1 %v1091_v58  ;;  %15451 = vst [vmem:[#allocation51_spill] sm:$0xff] %v10893_v5  ;;  %v10906_v16 = vpack.c.bf16 %v10899_v15, %v10896_v9  ;;  %v994_v58 = vld [vmem:[%s10685_s8 + $0x138] sm:$0xff] }
  0xd5   : > { %2747 = vmatpush.msrb.mxu2 %v10772_v22  ;;  %2523 = vmatpush.msrb.mxu0 %v10764_v18  ;;  %v10923_v18 = vld [vmem:[%s10685_s8 + $0x78] sm:$0xff] }
  0xd6   : > { %2103 = vmatpush.msrb.mxu1 %v1089_v57  ;;  %15453 = vst [vmem:[#allocation53_spill] sm:$0xff] %v10906_v16  ;;  %v10928_v19 = vpack.c.bf16 %v10923_v18, %v10920_v17  ;;  %v992_v57 = vld [vmem:[%s10685_s8 + $0x128] sm:$0xff] }
  0xd7   : > { %2748 = vmatpush.msrb.mxu2 %v10768_v20  ;;  %2524 = vmatpush.msrb.mxu0 %v10785_v30  ;;  %15455 = vst [vmem:[#allocation55_spill] sm:$0xff] %v10923_v18  ;;  %v10931_v20 = vld [vmem:[%s10685_s8 + $0x40] sm:$0xff]  ;;  %v10978_v30 = vld [vmem:[%s10685_s8 + $0xb8] sm:$0xff]  ;;  %v1024_v18 = vld [vmem:[%s10692_s14 + $0xc8] sm:$0xff] }
  0xd8   : > { %2104 = vmatpush.msrb.mxu1 %v1087_v2  ;;  %15456 = vst [vmem:[#allocation56_spill] sm:$0xff] %v10928_v19  ;;  %v10939_v22 = vpack.c.bf16 %v10934_v21, %v10931_v20  ;;  %v11057_v2 = vpack.c.bf16 %v989_v63, %v987_v61  ;;  %v1019_v21 = vld [vmem:[%s10692_s14 + $0xa0] sm:$0xff] }
  0xd9   : > { %2749 = vmatpush.msrb.mxu2 %v10789_v32  ;;  %2525 = vmatpush.msrb.mxu0 %v10782_v28  ;;  %15457 = vst [vmem:[#allocation57_spill] sm:$0xff] %v10931_v20  ;;  %v10966_v28 = vpack.c.bf16 %v10962_v27, %v10959_v26  ;;  %v10985_v32 = vld [vmem:[%s10685_s8 + $0x80] sm:$0xff]  ;;  %v1026_v27 = vld [vmem:[%s10692_s14 + $0xd8] sm:$0xff] }
  0xda   : > { %2105 = vmatpush.msrb.mxu1 %v1085_v1  ;;  %15459 = vst [vmem:[#allocation59_spill] sm:$0xff] %v10939_v22  ;;  %v10992_v34 = vpack.c.bf16 %v10988_v33, %v10985_v32 }
  0xdb   : > { %2750 = vmatpush.msrb.mxu2 %v10787_v31  ;;  %2526 = vmatpush.msrb.mxu0 %v10803_v41  ;;  %15465 = vst [vmem:[#allocation65_spill] sm:$0xff] %v10966_v28  ;;  %v10982_v31 = vpack.c.bf16 %v10978_v30, %v10975_v29  ;;  %v984_v41 = vld [vmem:[%s10685_s8 + $0xe8] sm:$0xff] }
  0xdc   : > { %8401 = vmatmul.msk.bf16.gmra.mxu1 %vm1217_vm0, %v10893_v5  ;;  %15467 = vst [vmem:[#allocation67_spill] sm:$0xff] %v10978_v30  ;;  %v11022_v44 = vpack.c.bf16 %v986_v43, %v984_v41  ;;  %v1020_v30 = vld [vmem:[%s10692_s14 + $0xa8] sm:$0xff] }
  0xdd   : > { %2527 = vmatpush.msrb.mxu0 %v10801_v40  ;;  %8423 = vmatmul.msk.bf16.gmra.mxu3 %vm1217_vm0, %v10893_v5  ;;  %15468 = vst [vmem:[#allocation68_spill] sm:$0xff] %v10982_v31  ;;  %v11012_v40 = vpack.c.bf16 %v11008_v39, %v11005_v38  ;;  %v1022_v39 = vld [vmem:[%s10692_s14 + $0xb8] sm:$0xff]  ;;  %v1017_v38 = vld [vmem:[%s10692_s14 + $0x90] sm:$0xff] }
  0xde   : > { %1297 = vmatmul.bf16.gmra.mxu0 %v10906_v16  ;;  %15469 = vst [vmem:[#allocation69_spill] sm:$0xff] %v10985_v32 }
  0xdf   : > { %2528 = vmatpush.msrb.mxu0 %v10814_v48  ;;  %15471 = vst [vmem:[#allocation71_spill] sm:$0xff] %v10992_v34  ;;  %v988_v48 = vld [vmem:[%s10685_s8 + $0x108] sm:$0xff] }
  0xe0   : > { %1535 = vmatmul.bf16.gmra.mxu2 %v10906_v16  ;;  %15475 = vst [vmem:[#allocation75_spill] sm:$0xff] %v11012_v40  ;;  %v11039_v50 = vpack.c.bf16 %v990_v49, %v988_v48  ;;  %v998_v48 = vld [vmem:[%s10685_s8 + $0x158] sm:$0xff] }
  0xe1   : > { %2529 = vmatpush.msrb.mxu0 %v10812_v47  ;;  %15476 = vst [vmem:[#allocation76_spill] sm:$0xff] %v11022_v44  ;;  %v11029_v47 = vpack.c.bf16 %v981_v46, %v11025_v45  ;;  %v996_v46 = vld [vmem:[%s10685_s8 + $0x148] sm:$0xff]  ;;  %v1002_v49 = vld [vmem:[%s10692_s14 + $0x18] sm:$0xff] }
  0xe2   : > { %15479 = vst [vmem:[#allocation79_spill] sm:$0xff] %v11039_v50 }
  0xe3   : > { %2530 = vmatpush.msrb.mxu0 %v10825_v54  ;;  %15478 = vst [vmem:[#allocation78_spill] sm:$0xff] %v11029_v47  ;;  %v11043_v54 = vpack.c.bf16 %v985_v52, %v983_v51  ;;  %v11075_v52 = vpack.c.bf16 %v998_v48, %v996_v46 }
  0xe4   : > { %15482 = vst [vmem:[#allocation82_spill] sm:$0xff] %v11057_v2 }
  0xe5   : > { %2531 = vmatpush.msrb.mxu0 %v10823_v53  ;;  %15480 = vst [vmem:[#allocation80_spill] sm:$0xff] %v11043_v54 }
  0xe6   : > { %15483 = vst [vmem:[#allocation83_spill] sm:$0xff] %v11075_v52 }
  0xe7   : > { %2532 = vmatpush.msrb.mxu0 %v10835_v60  ;;  %v11053_v60 = vpack.c.bf16 %v994_v58, %v992_v57  ;;  %v993_v57 = vld [vmem:[%s10685_s8 + $0x130] sm:$0xff] }
  0xe9   : > { %2533 = vmatpush.msrb.mxu0 %v10833_v59  ;;  %15481 = vst [vmem:[#allocation81_spill] sm:$0xff] %v11053_v60 }
  0xeb   : > { %2534 = vmatpush.msrb.mxu0 %v1088_v4 }
  0xec   : > { %8402 = vmatmul.msk.bf16.gmra.mxu1 %vm1217_vm0, %v10928_v19 }
  0xed   : > { %2535 = vmatpush.msrb.mxu0 %v10848_v3  ;;  %8424 = vmatmul.msk.bf16.gmra.mxu3 %vm1217_vm0, %v10928_v19 }
  0xee   : > { %1302 = vmatmul.bf16.gmra.mxu0 %v10939_v22 }
  0xf0   : > { %1540 = vmatmul.bf16.gmra.mxu2 %v10939_v22  ;;  %v1005_v22 = vld [vmem:[%s10692_s14 + $0x30] sm:$0xff] }
  0xfc   : > { %8403 = vmatmul.msk.bf16.gmra.mxu1 %vm1217_vm0, %v10956_v25 }
  0xfd   : > { %8425 = vmatmul.msk.bf16.gmra.mxu3 %vm1217_vm0, %v10956_v25 }
  0xfe   : > { %1307 = vmatmul.bf16.gmra.mxu0 %v10966_v28 }
 0x100   : > { %1545 = vmatmul.bf16.gmra.mxu2 %v10966_v28  ;;  %v1007_v28 = vld [vmem:[%s10692_s14 + $0x40] sm:$0xff] }
 0x10c   : > { %8404 = vmatmul.msk.bf16.gmra.mxu1 %vm1217_vm0, %v10982_v31 }
 0x10d   : > { %8426 = vmatmul.msk.bf16.gmra.mxu3 %vm1217_vm0, %v10982_v31 }
 0x10e   : > { %1312 = vmatmul.bf16.gmra.mxu0 %v10992_v34 }
 0x110   : > { %1550 = vmatmul.bf16.gmra.mxu2 %v10992_v34 }
 0x11c   : > { %8405 = vmatmul.msk.bf16.gmra.mxu1 %vm1217_vm0, %v11002_v37 }
 0x11d   : > { %8427 = vmatmul.msk.bf16.gmra.mxu3 %vm1217_vm0, %v11002_v37 }
 0x11e   : > { %1317 = vmatmul.bf16.gmra.mxu0 %v11012_v40 }
 0x120   : > { %1555 = vmatmul.bf16.gmra.mxu2 %v11012_v40 }
 0x12c   : > { %8406 = vmatmul.msk.bf16.gmra.mxu1 %vm1217_vm0, %v11022_v44 }
 0x12d   : > { %8428 = vmatmul.msk.bf16.gmra.mxu3 %vm1217_vm0, %v11022_v44 }
 0x12e   : > { %1322 = vmatmul.bf16.gmra.mxu0 %v11029_v47 }
 0x130   : > { %1560 = vmatmul.bf16.gmra.mxu2 %v11029_v47 }
 0x138   : > { %v1412_v53 = vpop.f32.mrf.mxu1 }
 0x13c   : > { %8407 = vmatmul.msk.bf16.gmra.mxu1 %vm1217_vm0, %v11039_v50 }
 0x13d   : > { %8429 = vmatmul.msk.bf16.gmra.mxu3 %vm1217_vm0, %v11039_v50 }
 0x13e   : > { %1327 = vmatmul.bf16.gmra.mxu0 %v11043_v54 }
 0x140   : > { %v1650_v55 = vpop.f32.mrf.mxu3  ;;  %1565 = vmatmul.bf16.gmra.mxu2 %v11043_v54  ;;  %v1414_v56 = vpop.f32.mrf.mxu1 }
 0x148   : > { %v1652_v59 = vpop.f32.mrf.mxu3  ;;  %v1417_v1 = vpop.f32.mrf.mxu1 }
 0x14b   : > { %v1293_v3 = vpop.f32.mrf.mxu0 }
 0x14c   : > { %8408 = vmatmul.msk.bf16.gmra.mxu1 %vm1217_vm0, %v11053_v60  ;;  %v11063_v4 = vadd.f32 %v1412_v53, %v1293_v3  ;;  %v991_v53 = vld [vmem:[%s10685_s8 + $0x120] sm:$0xff] }
 0x14d   : > { %8430 = vmatmul.msk.bf16.gmra.mxu3 %vm1217_vm0, %v11053_v60  ;;  %v11079_v63 = vpack.c.bf16 %v993_v57, %v991_v53 }
 0x14e   : > { %1332 = vmatmul.bf16.gmra.mxu0 %v11057_v2 }
 0x14f   : > { %15484 = vst [vmem:[#allocation84_spill] sm:$0xff] %v11079_v63 }
 0x150   : > { %v1655_v8 = vpop.f32.mrf.mxu3  ;;  %1570 = vmatmul.bf16.gmra.mxu2 %v11057_v2  ;;  %v1419_v13 = vpop.f32.mrf.mxu1 }
 0x153   : > { %v1531_v35 = vpop.f32.mrf.mxu2  ;;  %v1295_v41 = vpop.f32.mrf.mxu0 }
 0x154   : > { %v11067_v36 = vadd.f32 %v1650_v55, %v1531_v35  ;;  %v11069_v43 = vadd.f32 %v1414_v56, %v1295_v41  ;;  %v995_v35 = vld [vmem:[%s10685_s8 + $0x140] sm:$0xff] }
 0x155   : > { %v11105_v25 = vpack.c.bf16 %v997_v7, %v995_v35 }
 0x157   : > { %15486 = vst [vmem:[#allocation86_spill] sm:$0xff] %v11105_v25 }
 0x158   : > { %v1657_v51 = vpop.f32.mrf.mxu3 }
 0x159   : > { %v1422_v58 = vpop.f32.mrf.mxu1 }
 0x15b   : > { %v1533_v61 = vpop.f32.mrf.mxu2  ;;  %v1298_v56 = vpop.f32.mrf.mxu0 }
 0x15c   : > { %v11081_v55 = vadd.f32 %v1652_v59, %v1533_v61  ;;  %8409 = vmatmul.msk.bf16.gmra.mxu1 %vm1217_vm0, %v11075_v52  ;;  %v11087_v3 = vadd.f32 %v1417_v1, %v1298_v56  ;;  %v1000_v61 = vld [vmem:[%s10692_s14 + $0x8] sm:$0xff] }
 0x15d   : > { %8431 = vmatmul.msk.bf16.gmra.mxu3 %vm1217_vm0, %v11075_v52  ;;  %v11101_v42 = vpack.c.bf16 %v1002_v49, %v1000_v61  ;;  %v1004_v1 = vld [vmem:[%s10692_s14 + $0x28] sm:$0xff] }
 0x15e   : > { %1337 = vmatmul.bf16.gmra.mxu0 %v11079_v63 }
 0x15f   : > { %15485 = vst [vmem:[#allocation85_spill] sm:$0xff] %v11101_v42 }
 0x160   : > { %v1660_v41 = vpop.f32.mrf.mxu3  ;;  %1575 = vmatmul.bf16.gmra.mxu2 %v11079_v63  ;;  %v1013_v63 = vld [vmem:[%s10692_s14 + $0x70] sm:$0xff] }
 0x161   : > { %v1424_v59 = vpop.f32.mrf.mxu1 }
 0x163   : > { %v1536_v46 = vpop.f32.mrf.mxu2  ;;  %v1300_v53 = vpop.f32.mrf.mxu0 }
 0x164   : > { %v11093_v48 = vadd.f32 %v1655_v8, %v1536_v46  ;;  %v11095_v57 = vadd.f32 %v1419_v13, %v1300_v53  ;;  %v999_v46 = vld [vmem:[%s10692_s14] sm:$0xff] }
 0x165   : > { %v11131_v60 = vpack.c.bf16 %v1001_v14, %v999_v46 }
 0x167   : > { %15488 = vst [vmem:[#allocation88_spill] sm:$0xff] %v11131_v60 }
 0x168   : > { %v1662_v56 = vpop.f32.mrf.mxu3 }
 0x169   : > { %v1427_v5 = vpop.f32.mrf.mxu1 }
 0x16b   : > { %v1538_v19 = vpop.f32.mrf.mxu2  ;;  %v1303_v13 = vpop.f32.mrf.mxu0 }
 0x16c   : > { %v11107_v8 = vadd.f32 %v1657_v51, %v1538_v19  ;;  %8410 = vmatmul.msk.bf16.gmra.mxu1 %vm1217_vm0, %v11101_v42  ;;  %v11113_v49 = vadd.f32 %v1422_v58, %v1303_v13  ;;  %v1008_v58 = vld [vmem:[%s10692_s14 + $0x48] sm:$0xff] }
 0x16d   : > { %8432 = vmatmul.msk.bf16.gmra.mxu3 %vm1217_vm0, %v11101_v42  ;;  %v1006_v42 = vld [vmem:[%s10692_s14 + $0x38] sm:$0xff] }
 0x16e   : > { %1342 = vmatmul.bf16.gmra.mxu0 %v11105_v25  ;;  %v11127_v50 = vpack.c.bf16 %v1006_v42, %v1004_v1  ;;  %v1003_v1 = vld [vmem:[%s10692_s14 + $0x20] sm:$0xff] }
 0x16f   : > { %v11159_v44 = vpack.c.bf16 %v1005_v22, %v1003_v1 }
 0x170   : > { %v1665_v7 = vpop.f32.mrf.mxu3  ;;  %1580 = vmatmul.bf16.gmra.mxu2 %v11105_v25  ;;  %15487 = vst [vmem:[#allocation87_spill] sm:$0xff] %v11127_v50 }
 0x171   : > { %v1429_v19 = vpop.f32.mrf.mxu1  ;;  %15490 = vst [vmem:[#allocation90_spill] sm:$0xff] %v11159_v44 }
 0x173   : > { %v1541_v51 = vpop.f32.mrf.mxu2  ;;  %v1305_v53 = vpop.f32.mrf.mxu0 }
 0x174   : > { %v11119_v35 = vadd.f32 %v1660_v41, %v1541_v51  ;;  %v11121_v61 = vadd.f32 %v1424_v59, %v1305_v53 }
 0x178   : > { %v1667_v13 = vpop.f32.mrf.mxu3 }
 0x179   : > { %v1432_v31 = vpop.f32.mrf.mxu1 }
 0x17b   : > { %v1543_v16 = vpop.f32.mrf.mxu2  ;;  %v1308_v59 = vpop.f32.mrf.mxu0 }
 0x17c   : > { %v11133_v41 = vadd.f32 %v1662_v56, %v1543_v16  ;;  %8411 = vmatmul.msk.bf16.gmra.mxu1 %vm1217_vm0, %v11127_v50  ;;  %v11139_v42 = vadd.f32 %v1427_v5, %v1308_v59 }
 0x17d   : > { %8433 = vmatmul.msk.bf16.gmra.mxu3 %vm1217_vm0, %v11127_v50  ;;  %v1010_v50 = vld [vmem:[%s10692_s14 + $0x58] sm:$0xff] }
 0x17e   : > { %1347 = vmatmul.bf16.gmra.mxu0 %v11131_v60  ;;  %v11153_v37 = vpack.c.bf16 %v1010_v50, %v1008_v58 }
 0x180   : > { %v1670_v14 = vpop.f32.mrf.mxu3  ;;  %1585 = vmatmul.bf16.gmra.mxu2 %v11131_v60  ;;  %15489 = vst [vmem:[#allocation89_spill] sm:$0xff] %v11153_v37 }
 0x181   : > { %v1434_v16 = vpop.f32.mrf.mxu1 }
 0x183   : > { %v1546_v56 = vpop.f32.mrf.mxu2  ;;  %v1310_v51 = vpop.f32.mrf.mxu0 }
 0x184   : > { %v11145_v46 = vadd.f32 %v1665_v7, %v1546_v56  ;;  %v11147_v53 = vadd.f32 %v1429_v19, %v1310_v51 }
 0x188   : > { %v1672_v59 = vpop.f32.mrf.mxu3 }
 0x189   : > { %v11157_v52 = vpop.f32.mrf.mxu1 }
 0x18b   : > { %v1548_v60 = vpop.f32.mrf.mxu2  ;;  %v1313_v19 = vpop.f32.mrf.mxu0 }
 0x18c   : > { %v11161_v7 = vadd.f32 %v1667_v13, %v1548_v60  ;;  %8412 = vmatmul.msk.bf16.gmra.mxu1 %vm1217_vm0, %v11153_v37  ;;  %v11167_v50 = vadd.f32 %v1432_v31, %v1313_v19  ;;  %v1012_v31 = vld [vmem:[%s10692_s14 + $0x68] sm:$0xff]  ;;  %v1014_v19 = vld [vmem:[%s10692_s14 + $0x78] sm:$0xff] }
 0x18d   : > { %8434 = vmatmul.msk.bf16.gmra.mxu3 %vm1217_vm0, %v11153_v37  ;;  %v11187_v37 = vpack.c.bf16 %v1014_v19, %v1012_v31  ;;  %v1018_v19 = vld [vmem:[%s10692_s14 + $0x98] sm:$0xff] }
 0x18e   : > { %1352 = vmatmul.bf16.gmra.mxu0 %v11159_v44 }
 0x18f   : > { %15491 = vst [vmem:[#allocation91_spill] sm:$0xff] %v11187_v37 }
 0x190   : > { %v11172_v22 = vpop.f32.mrf.mxu3  ;;  %1590 = vmatmul.bf16.gmra.mxu2 %v11159_v44  ;;  %v1009_v44 = vld [vmem:[%s10692_s14 + $0x50] sm:$0xff] }
 0x191   : > { %v11175_v60 = vpop.f32.mrf.mxu1 }
 0x193   : > { %v1551_v13 = vpop.f32.mrf.mxu2  ;;  %v1315_v56 = vpop.f32.mrf.mxu0 }
 0x194   : > { %v11177_v1 = vadd.f32 %v1670_v14, %v1551_v13  ;;  %v11179_v51 = vadd.f32 %v1434_v16, %v1315_v56  ;;  %v11191_v14 = vpack.c.bf16 %v1009_v44, %v1007_v28 }
 0x196   : > { %15492 = vst [vmem:[#allocation92_spill] sm:$0xff] %v11191_v14 }
 0x198   : > { %v11185_v58 = vpop.f32.mrf.mxu3 }
 0x199   : > { %v1442_v34 = vpop.f32.mrf.mxu1 }
 0x19b   : > { %v1553_v2 = vpop.f32.mrf.mxu2  ;;  %v11197_v13 = vpop.f32.mrf.mxu0 }
 0x19c   : > { %v11193_v16 = vadd.f32 %v1672_v59, %v1553_v2  ;;  %8413 = vmatmul.msk.bf16.gmra.mxu1 %vm1217_vm0, %v11187_v37  ;;  %v1016_v59 = vld [vmem:[%s10692_s14 + $0x88] sm:$0xff] }
 0x19d   : > { %8435 = vmatmul.msk.bf16.gmra.mxu3 %vm1217_vm0, %v11187_v37  ;;  %v11211_v40 = vpack.c.bf16 %v1018_v19, %v1016_v59  ;;  %v1011_v37 = vld [vmem:[%s10692_s14 + $0x60] sm:$0xff] }
 0x19e   : > { %1357 = vmatmul.bf16.gmra.mxu0 %v11191_v14  ;;  %v11217_v54 = vpack.c.bf16 %v1013_v63, %v1011_v37  ;;  %v11227_v37 = vpack.c.bf16 %v1022_v39, %v1020_v30  ;;  %v1015_v63 = vld [vmem:[%s10692_s14 + $0x80] sm:$0xff] }
 0x19f   : > { %15493 = vst [vmem:[#allocation93_spill] sm:$0xff] %v11211_v40  ;;  %v11233_v33 = vpack.c.bf16 %v1017_v38, %v1015_v63 }
 0x1a0   : > { %v11204_v31 = vpop.f32.mrf.mxu3  ;;  %1595 = vmatmul.bf16.gmra.mxu2 %v11191_v14  ;;  %15494 = vst [vmem:[#allocation94_spill] sm:$0xff] %v11217_v54 }
 0x1a1   : > { %v1444_v28 = vpop.f32.mrf.mxu1  ;;  %15495 = vst [vmem:[#allocation95_spill] sm:$0xff] %v11227_v37 }
 0x1a2   : > { %15496 = vst [vmem:[#allocation96_spill] sm:$0xff] %v11233_v33 }
 0x1a3   : > { %v11207_v44 = vpop.f32.mrf.mxu2  ;;  %v1320_v2 = vpop.f32.mrf.mxu0 }
 0x1a8   : > { %v1682_v5 = vpop.f32.mrf.mxu3 }
 0x1a9   : > { %v1447_v56 = vpop.f32.mrf.mxu1 }
 0x1ab   : > { %v11215_v47 = vpop.f32.mrf.mxu2  ;;  %v1323_v14 = vpop.f32.mrf.mxu0 }
 0x1ac   : > { %8414 = vmatmul.msk.bf16.gmra.mxu1 %vm1217_vm0, %v11211_v40  ;;  %v1443_v20 = vadd.f32 %v1442_v34, %v1323_v14  ;;  %v1028_v34 = vld [vmem:[%s10692_s14 + $0xe8] sm:$0xff] }
 0x1ad   : > { %8436 = vmatmul.msk.bf16.gmra.mxu3 %vm1217_vm0, %v11211_v40 }
 0x1ae   : > { %1362 = vmatmul.bf16.gmra.mxu0 %v11217_v54 }
 0x1b0   : > { %v1685_v59 = vpop.f32.mrf.mxu3  ;;  %1600 = vmatmul.bf16.gmra.mxu2 %v11217_v54 }
 0x1b1   : > { %v1449_v19 = vpop.f32.mrf.mxu1 }
 0x1b3   : > { %v1561_v25 = vpop.f32.mrf.mxu2  ;;  %v1325_v45 = vpop.f32.mrf.mxu0 }
 0x1b4   : > { %v1445_v17 = vadd.f32 %v1444_v28, %v1325_v45 }
 0x1b6   : > { %v2962_v15 = vpack.c.bf16 %v1445_v17, %v1443_v20 }
 0x1b8   : > { %v1687_v29 = vpop.f32.mrf.mxu3 }
 0x1b9   : > { %v11231_v24 = vpop.f32.mrf.mxu1 }
 0x1bb   : > { %v1563_v40 = vpop.f32.mrf.mxu2  ;;  %v1328_v54 = vpop.f32.mrf.mxu0 }
 0x1bc   : > { %8415 = vmatmul.msk.bf16.gmra.mxu1 %vm1217_vm0, %v11227_v37  ;;  %v1448_v63 = vadd.f32 %v1447_v56, %v1328_v54  ;;  %v11256_v54 = vpack.c.bf16 %v1021_v6, %v1019_v21 }
 0x1bd   : > { %8437 = vmatmul.msk.bf16.gmra.mxu3 %vm1217_vm0, %v11227_v37  ;;  %v11249_v37 = vpack.c.bf16 %v1026_v27, %v1024_v18  ;;  %v1438_v18 = vadd.f32 %v11157_v52, %v11197_v13 }
 0x1be   : > { %1367 = vmatmul.bf16.gmra.mxu0 %v11233_v33  ;;  %15498 = vst [vmem:[#allocation98_spill] sm:$0xff] %v11256_v54 }
 0x1bf   : > { %15497 = vst [vmem:[#allocation97_spill] sm:$0xff] %v11249_v37 }
 0x1c0   : > { %v11240_v30 = vpop.f32.mrf.mxu3  ;;  %1605 = vmatmul.bf16.gmra.mxu2 %v11233_v33  ;;  %v1440_v33 = vadd.f32 %v11175_v60, %v1320_v2  ;;  %v1032_v2 = vld [vmem:[%s10692_s14 + $0x108] sm:$0xff] }
 0x1c1   : > { %v11243_v39 = vpop.f32.mrf.mxu1 }
 0x1c2   : > { %v2960_v17 = vpack.c.bf16 %v1440_v33, %v1438_v18  ;;  %v15499_v33 = vpack.c.bf16 %v11179_v51, %v11167_v50  ;;  %v15503_v50 = vpack.c.bf16 %v11193_v16, %v11177_v1  ;;  %v15505_v1 = vpack.c.bf16 %v11161_v7, %v11145_v46  ;;  %v1029_v7 = vld [vmem:[%s10692_s14 + $0xf0] sm:$0xff] }
 0x1c3   : > { %v1566_v23 = vpop.f32.mrf.mxu2  ;;  %v1330_v38 = vpop.f32.mrf.mxu0  ;;  %v15506_v16 = vpack.c.bf16 %v11095_v57, %v11087_v3  ;;  %v15509_v46 = vpack.c.bf16 %v11107_v8, %v11093_v48  ;;  %v1027_v57 = vld [vmem:[%s10692_s14 + $0xe0] sm:$0xff] }
 0x1c4   : > { %v1450_v32 = vadd.f32 %v1449_v19, %v1330_v38  ;;  %v1686_v56 = vadd.f32 %v1685_v59, %v1566_v23  ;;  %v1034_v59 = vld [vmem:[%s10692_s14 + $0x118] sm:$0xff] }
 0x1c5   : > { %v11326_v3 = vpack.c.bf16 %v1034_v59, %v1032_v2  ;;  %v1035_v59 = vld [vmem:[%s10692_s14 + $0x120] sm:$0xff] }
 0x1c6   : > { %v2964_v26 = vpack.c.bf16 %v1450_v32, %v1448_v63 }
 0x1c7   : > { %15510 = vst [vmem:[#allocation101_spill] sm:$0xff] %v11326_v3 }
 0x1c8   : > { %v11247_v10 = vpop.f32.mrf.mxu3  ;;  %3005 = vmatpush.bf16.msra.mxu1 %v2964_v26  ;;  %v1683_v26 = vadd.f32 %v1682_v5, %v1563_v40  ;;  %v1030_v40 = vld [vmem:[%s10692_s14 + $0xf8] sm:$0xff]  ;;  %v1023_v5 = vld [vmem:[%s10692_s14 + $0xc0] sm:$0xff] }
 0x1c9   : > { %v11253_v0 = vpop.f32.mrf.mxu1 }
 0x1cb   : > { %v1568_v62 = vpop.f32.mrf.mxu2  ;;  %v11260_v32 = vpop.f32.mrf.mxu0 }
 0x1cc   : > { %v1688_v19 = vadd.f32 %v1687_v29, %v1568_v62  ;;  %8416 = vmatmul.msk.bf16.gmra.mxu1 %vm1217_vm0, %v11249_v37  ;;  %v1681_v62 = vadd.f32 %v11204_v31, %v1561_v25  ;;  %v1676_v29 = vadd.f32 %v11172_v22, %v11207_v44  ;;  %v15501_v22 = vpack.c.bf16 %v11147_v53, %v11139_v42 }
 0x1cd   : > { %8438 = vmatmul.msk.bf16.gmra.mxu3 %vm1217_vm0, %v11249_v37  ;;  %3006 = vmatpush.bf16.msra.mxu1 %v2962_v15  ;;  %v1678_v15 = vadd.f32 %v11185_v58, %v11215_v47  ;;  %v11286_v47 = vpack.c.bf16 %v1030_v40, %v1028_v34  ;;  %v1025_v58 = vld [vmem:[%s10692_s14 + $0xd0] sm:$0xff]  ;;  %v15504_v42 = vpack.c.bf16 %v11121_v61, %v11113_v49 }
 0x1ce   : > { %v2965_v27 = vpack.c.bf16 %v1688_v19, %v1686_v56  ;;  %1372 = vmatmul.bf16.gmra.mxu0 %v11256_v54  ;;  %v2963_v21 = vpack.c.bf16 %v1683_v26, %v1681_v62  ;;  %v11295_v13 = vpack.c.bf16 %v1025_v58, %v1023_v5  ;;  %v15507_v49 = vpack.c.bf16 %v11133_v41, %v11119_v35 }
 0x1cf   : > { %v2961_v45 = vpack.c.bf16 %v1678_v15, %v1676_v29  ;;  %15500 = vst [vmem:[#allocation99_spill] sm:$0xff] %v11286_v47  ;;  %v15508_v44 = vpack.c.bf16 %v11069_v43, %v11063_v4  ;;  %v11330_v41 = vpack.c.bf16 %v1029_v7, %v1027_v57  ;;  %v15512_v4 = vpack.c.bf16 %v11081_v55, %v11067_v36  ;;  %v1033_v29 = vld [vmem:[%s10692_s14 + $0x110] sm:$0xff] }
 0x1d0   : > { %v11268_v6 = vpop.f32.mrf.mxu3  ;;  %1610 = vmatmul.bf16.gmra.mxu2 %v11256_v54  ;;  %3131 = vmatpush.bf16.msra.mxu0 %v2965_v27  ;;  %15502 = vst [vmem:[#allocation100_spill] sm:$0xff] %v11295_v13  ;;  %v1036_v27 = vld [vmem:[%s10692_s14 + $0x128] sm:$0xff] }
 0x1d1   : > { %3007 = vmatpush.bf16.msra.mxu1 %v2960_v17  ;;  %v1459_v20 = vpop.f32.mrf.mxu1  ;;  %15511 = vst [vmem:[#allocation102_spill] sm:$0xff] %v11330_v41  ;;  %v1038_v17 = vld [vmem:[%s10692_s14 + $0x138] sm:$0xff] }
 0x1d2   : > { %v11343_v15 = vpack.c.bf16 %v1038_v17, %v1036_v27  ;;  %v1760_v27 = vmul.f32 %v10857_v11, %v10857_v11  ;;  %v1039_v17 = vld [vmem:[%s10692_s14 + $0x140] sm:$0xff] }
 0x1d3   : > { %v11273_v23 = vpop.f32.mrf.mxu2  ;;  %v11277_v25 = vpop.f32.mrf.mxu0 }
 0x1d4   : > { %3132 = vmatpush.bf16.msra.mxu0 %v2963_v21  ;;  %15513 = vst [vmem:[#allocation103_spill] sm:$0xff] %v11343_v15  ;;  %v1031_v21 = vld [vmem:[%s10692_s14 + $0x100] sm:$0xff]  ;;  %v1455_v5 = vadd.f32 %v11243_v39, %v11277_v25 }
 0x1d5   : > { %3008 = vmatpush.bf16.msra.mxu1 %v15499_v33 }
 0x1d8   : > { %v11284_v52 = vpop.f32.mrf.mxu3  ;;  %3133 = vmatpush.bf16.msra.mxu0 %v2961_v45  ;;  %v11348_v45 = vpack.c.bf16 %v1033_v29, %v1031_v21 }
 0x1d9   : > { %3009 = vmatpush.bf16.msra.mxu1 %v15501_v22  ;;  %v1462_v60 = vpop.f32.mrf.mxu1 }
 0x1da   : > { %15514 = vst [vmem:[#allocation104_spill] sm:$0xff] %v11348_v45 }
 0x1db   : > { %v11293_v14 = vpop.f32.mrf.mxu2  ;;  %v1338_v51 = vpop.f32.mrf.mxu0 }
 0x1dc   : > { %8417 = vmatmul.msk.bf16.gmra.mxu1 %vm1217_vm0, %v11286_v47  ;;  %3134 = vmatpush.bf16.msra.mxu0 %v15503_v50  ;;  %v1458_v34 = vadd.f32 %v11253_v0, %v1338_v51  ;;  %v1453_v50 = vadd.f32 %v11231_v24, %v11260_v32  ;;  %v1693_v24 = vadd.f32 %v11247_v10, %v11293_v14  ;;  %v15532_v10 = vld [vmem:[#allocation61_spill] sm:$0xff] }
 0x1dd   : > { %8439 = vmatmul.msk.bf16.gmra.mxu3 %vm1217_vm0, %v11286_v47  ;;  %3010 = vmatpush.bf16.msra.mxu1 %v15504_v42 }
 0x1de   : > { %1377 = vmatmul.bf16.gmra.mxu0 %v11295_v13  ;;  %v2966_v39 = vpack.c.bf16 %v1455_v5, %v1453_v50 }
 0x1e0   : > { %v1700_v53 = vpop.f32.mrf.mxu3  ;;  %1615 = vmatmul.bf16.gmra.mxu2 %v11295_v13  ;;  %3135 = vmatpush.bf16.msra.mxu0 %v15505_v1 }
 0x1e1   : > { %3011 = vmatpush.bf16.msra.mxu1 %v15506_v16  ;;  %v1464_v31 = vpop.f32.mrf.mxu1 }
 0x1e3   : > { %v1576_v28 = vpop.f32.mrf.mxu2  ;;  %v1340_v61 = vpop.f32.mrf.mxu0 }
 0x1e4   : > { %3136 = vmatpush.bf16.msra.mxu0 %v15507_v49  ;;  %v1460_v55 = vadd.f32 %v1459_v20, %v1340_v61  ;;  %v1696_v42 = vadd.f32 %v11268_v6, %v1576_v28  ;;  %v1040_v28 = vld [vmem:[%s10692_s14 + $0x148] sm:$0xff]  ;;  %v1042_v61 = vld [vmem:[%s10692_s14 + $0x158] sm:$0xff] }
 0x1e5   : > { %3012 = vmatpush.bf16.msra.mxu1 %v15508_v44  ;;  %v11376_v2 = vpack.c.bf16 %v1042_v61, %v1040_v28 }
 0x1e6   : > { %v2968_v58 = vpack.c.bf16 %v1460_v55, %v1458_v34  ;;  %v9511_v55 = vld [vmem:[%s10685_s8 + $0x8] sm:$0xff] }
 0x1e7   : > { %15515 = vst [vmem:[#allocation105_spill] sm:$0xff] %v11376_v2 }
 0x1e8   : > { %v1702_v38 = vpop.f32.mrf.mxu3  ;;  %3137 = vmatpush.bf16.msra.mxu0 %v15509_v46 }
 0x1e9   : > { %v1467_v63 = vpop.f32.mrf.mxu1 }
 0x1eb   : > { %v1578_v35 = vpop.f32.mrf.mxu2  ;;  %v1343_v43 = vpop.f32.mrf.mxu0 }
 0x1ec   : > { %8418 = vmatmul.msk.bf16.gmra.mxu1 %vm1217_vm0, %v11326_v3  ;;  %3138 = vmatpush.bf16.msra.mxu0 %v15512_v4  ;;  %v1463_v18 = vadd.f32 %v1462_v60, %v1343_v43  ;;  %v1698_v51 = vadd.f32 %v11284_v52, %v1578_v35 }
 0x1ed   : > { %8440 = vmatmul.msk.bf16.gmra.mxu3 %vm1217_vm0, %v11326_v3  ;;  %v15536_v3 = vld [vmem:[#allocation67_spill] sm:$0xff] }
 0x1ee   : > { %1382 = vmatmul.bf16.gmra.mxu0 %v11330_v41  ;;  %v2969_v32 = vpack.c.bf16 %v1698_v51, %v1696_v42 }
 0x1f0   : > { %v1705_v48 = vpop.f32.mrf.mxu3  ;;  %1620 = vmatmul.bf16.gmra.mxu2 %v11330_v41 }
 0x1f1   : > { %v1469_v8 = vpop.f32.mrf.mxu1 }
 0x1f3   : > { %v1581_v56 = vpop.f32.mrf.mxu2  ;;  %v1345_v19 = vpop.f32.mrf.mxu0 }
 0x1f4   : > { %v1465_v26 = vadd.f32 %v1464_v31, %v1345_v19  ;;  %v1701_v22 = vadd.f32 %v1700_v53, %v1581_v56  ;;  %v1691_v31 = vadd.f32 %v11240_v30, %v11273_v23 }
 0x1f6   : > { %v2970_v36 = vpack.c.bf16 %v1465_v26, %v1463_v18  ;;  %v2967_v44 = vpack.c.bf16 %v1693_v24, %v1691_v31  ;;  %v15518_v24 = vld [vmem:[#allocation45_spill] sm:$0xff] }
 0x1f8   : > { %v1707_v62 = vpop.f32.mrf.mxu3  ;;  %3073 = vmatpush.bf16.msra.mxu3 %v2970_v36  ;;  %v1041_v36 = vld [vmem:[%s10692_s14 + $0x150] sm:$0xff] }
 0x1f9   : > { %v1472_v33 = vpop.f32.mrf.mxu1  ;;  %v11405_v34 = vpack.c.bf16 %v1041_v36, %v1039_v17  ;;  %v15522_v36 = vld [vmem:[#allocation49_spill] sm:$0xff] }
 0x1fb   : > { %v1583_v40 = vpop.f32.mrf.mxu2  ;;  %v1348_v20 = vpop.f32.mrf.mxu0  ;;  %15517 = vst [vmem:[#allocation107_spill] sm:$0xff] %v11405_v34 }
 0x1fc   : > { %v1703_v60 = vadd.f32 %v1702_v38, %v1583_v40  ;;  %8419 = vmatmul.msk.bf16.gmra.mxu1 %vm1217_vm0, %v11343_v15  ;;  %3074 = vmatpush.bf16.msra.mxu3 %v2968_v58  ;;  %v11368_v49 = vadd.f32 %v1467_v63, %v1348_v20  ;;  %v1037_v38 = vld [vmem:[%s10692_s14 + $0x130] sm:$0xff]  ;;  %v1762_v58 = vmul.f32 %v10860_v12, %v10860_v12 }
 0x1fd   : > { %8441 = vmatmul.msk.bf16.gmra.mxu3 %vm1217_vm0, %v11343_v15  ;;  %v11380_v30 = vpack.c.bf16 %v1037_v38, %v1035_v59  ;;  %v1764_v12 = vmul.f32 %v10896_v9, %v10896_v9  ;;  %v15520_v59 = vld [vmem:[#allocation46_spill] sm:$0xff] }
 0x1fe   : > { %v2971_v0 = vpack.c.bf16 %v1703_v60, %v1701_v22  ;;  %1387 = vmatmul.bf16.gmra.mxu0 %v11348_v45  ;;  %v9512_v22 = vld [vmem:[%s10685_s8 + $0x18] sm:$0xff]  ;;  %v1767_v38 = vmul.f32 %v15520_v59, %v15520_v59 }
 0x1ff   : > { %15516 = vst [vmem:[#allocation106_spill] sm:$0xff] %v11380_v30  ;;  %v1763_v60 = vmul.f32 %v9512_v22, %v9512_v22 }
 0x200   : > { %v1710_v25 = vpop.f32.mrf.mxu3  ;;  %1625 = vmatmul.bf16.gmra.mxu2 %v11348_v45  ;;  %3075 = vmatpush.bf16.msra.mxu3 %v2966_v39 }
 0x201   : > { %3199 = vmatpush.bf16.msra.mxu2 %v2971_v0  ;;  %v1474_v53 = vpop.f32.mrf.mxu1 }
 0x203   : > { %v1586_v52 = vpop.f32.mrf.mxu2  ;;  %v1350_v16 = vpop.f32.mrf.mxu0 }
 0x204   : > { %v11364_v1 = vadd.f32 %v1705_v48, %v1586_v52  ;;  %v11370_v6 = vadd.f32 %v1469_v8, %v1350_v16 }
 0x205   : > { %3200 = vmatpush.bf16.msra.mxu2 %v2969_v32  ;;  %v1765_v32 = vmul.f32 %v15518_v24, %v15518_v24 }
 0x208   : > { %v1712_v14 = vpop.f32.mrf.mxu3 }
 0x209   : > { %3201 = vmatpush.bf16.msra.mxu2 %v2967_v44  ;;  %v1477_v46 = vpop.f32.mrf.mxu1 }
 0x20b   : > { %v1588_v57 = vpop.f32.mrf.mxu2  ;;  %v1353_v7 = vpop.f32.mrf.mxu0 }
 0x20c   : > { %v11382_v23 = vadd.f32 %v1707_v62, %v1588_v57  ;;  %8420 = vmatmul.msk.bf16.gmra.mxu1 %vm1217_vm0, %v11376_v2  ;;  %v11394_v56 = vadd.f32 %v1472_v33, %v1353_v7  ;;  %v1761_v62 = vmul.f32 %v9511_v55, %v9511_v55  ;;  %v1769_v55 = vmul.f32 %v15522_v36, %v15522_v36 }
 0x20d   : > { %8442 = vmatmul.msk.bf16.gmra.mxu3 %vm1217_vm0, %v11376_v2 }
 0x20e   : > { %1392 = vmatmul.bf16.gmra.mxu0 %v11380_v30 }
 0x210   : > { %v1715_v35 = vpop.f32.mrf.mxu3  ;;  %1630 = vmatmul.bf16.gmra.mxu2 %v11380_v30  ;;  %v9513_v30 = vld [vmem:[%s10685_s8 + $0xc8] sm:$0xff] }
 0x211   : > { %v1479_v4 = vpop.f32.mrf.mxu1  ;;  %v1785_v13 = vmul.f32 %v9513_v30, %v9513_v30 }
 0x213   : > { %v1591_v43 = vpop.f32.mrf.mxu2  ;;  %v1355_v8 = vpop.f32.mrf.mxu0 }
 0x214   : > { %v11392_v48 = vadd.f32 %v1710_v25, %v1591_v43  ;;  %v11396_v19 = vadd.f32 %v1474_v53, %v1355_v8 }
 0x218   : > { %v1717_v26 = vpop.f32.mrf.mxu3 }
 0x219   : > { %v1482_v21 = vpop.f32.mrf.mxu1 }
 0x21b   : > { %v1593_v29 = vpop.f32.mrf.mxu2  ;;  %v1358_v40 = vpop.f32.mrf.mxu0 }
 0x21c   : > { %v11407_v33 = vadd.f32 %v1712_v14, %v1593_v29  ;;  %2106 = vmatmul.f32.vlgmr.msrb.gmra.mxu1 %v1760_v27  ;;  %v11419_v39 = vadd.f32 %v1477_v46, %v1358_v40  ;;  %v15519_v14 = vld [vmem:[#allocation52_spill] sm:$0xff] }
 0x21d   : > { %8443 = vmatmul.msk.f32.vlgmr.msrb.gmra.mxu3 %vm1217_vm0, %v1761_v62  ;;  %v1766_v9 = vmul.f32 %v15519_v14, %v15519_v14  ;;  %v15525_v14 = vld [vmem:[#allocation63_spill] sm:$0xff] }
 0x21e   : > { %1397 = vmatmul.bf16.gmra.mxu0 %v11405_v34  ;;  %v1772_v59 = vmul.f32 %v15525_v14, %v15525_v14 }
 0x220   : > { %v1720_v11 = vpop.f32.mrf.mxu3  ;;  %1635 = vmatmul.bf16.gmra.mxu2 %v11405_v34 }
 0x221   : > { %v1484_v20 = vpop.f32.mrf.mxu1 }
 0x223   : > { %v1596_v50 = vpop.f32.mrf.mxu2  ;;  %v1360_v51 = vpop.f32.mrf.mxu0 }
 0x224   : > { %v11417_v0 = vadd.f32 %v1715_v35, %v1596_v50  ;;  %2109 = vmatmul.f32.gmra.mxu1 %v1762_v58  ;;  %v11422_v25 = vadd.f32 %v1479_v4, %v1360_v51  ;;  %v15524_v50 = vld [vmem:[#allocation50_spill] sm:$0xff] }
 0x225   : > { %8444 = vmatmul.msk.f32.gmra.mxu3 %vm1217_vm0, %v1763_v60  ;;  %v1771_v51 = vmul.f32 %v15524_v50, %v15524_v50 }
 0x228   : > { %v1722_v53 = vpop.f32.mrf.mxu3 }
 0x229   : > { %v1487_v52 = vpop.f32.mrf.mxu1 }
 0x22b   : > { %v1598_v16 = vpop.f32.mrf.mxu2  ;;  %v1363_v28 = vpop.f32.mrf.mxu0 }
 0x22c   : > { %v11430_v31 = vadd.f32 %v1717_v26, %v1598_v16  ;;  %2112 = vmatmul.f32.gmra.mxu1 %v1764_v12  ;;  %v11442_v4 = vadd.f32 %v1482_v21, %v1363_v28 }
 0x22d   : > { %8445 = vmatmul.msk.f32.gmra.mxu3 %vm1217_vm0, %v1765_v32 }
 0x22e   : > { %2536 = vmatmul.f32.vlgmr.msrb.gmra.mxu0 %v1760_v27  ;;  %v15521_v27 = vld [vmem:[#allocation57_spill] sm:$0xff] }
 0x22f   : > { %v1768_v17 = vmul.f32 %v15521_v27, %v15521_v27 }
 0x230   : > { %v1725_v44 = vpop.f32.mrf.mxu3  ;;  %8509 = vmatmul.msk.f32.vlgmr.msrb.gmra.mxu2 %vm1217_vm0, %v1761_v62 }
 0x231   : > { %v1489_v46 = vpop.f32.mrf.mxu1 }
 0x233   : > { %v1601_v57 = vpop.f32.mrf.mxu2  ;;  %v1365_v35 = vpop.f32.mrf.mxu0 }
 0x234   : > { %v11440_v7 = vadd.f32 %v1720_v11, %v1601_v57  ;;  %2115 = vmatmul.f32.gmra.mxu1 %v1766_v9  ;;  %v11445_v43 = vadd.f32 %v1484_v20, %v1365_v35  ;;  %v15526_v57 = vld [vmem:[#allocation54_spill] sm:$0xff] }
 0x235   : > { %8446 = vmatmul.msk.f32.gmra.mxu3 %vm1217_vm0, %v1767_v38 }
 0x236   : > { %2539 = vmatmul.f32.gmra.mxu0 %v1762_v58 }
 0x238   : > { %v1727_v26 = vpop.f32.mrf.mxu3  ;;  %8510 = vmatmul.msk.f32.gmra.mxu2 %vm1217_vm0, %v1763_v60  ;;  %v15523_v60 = vld [vmem:[#allocation58_spill] sm:$0xff] }
 0x239   : > { %v11454_v62 = vpop.f32.mrf.mxu1  ;;  %v1770_v20 = vmul.f32 %v15523_v60, %v15523_v60  ;;  %v15528_v60 = vld [vmem:[#allocation55_spill] sm:$0xff] }
 0x23b   : > { %v1603_v21 = vpop.f32.mrf.mxu2  ;;  %v1368_v40 = vpop.f32.mrf.mxu0 }
 0x23c   : > { %v11456_v29 = vadd.f32 %v1722_v53, %v1603_v21  ;;  %2118 = vmatmul.f32.gmra.mxu1 %v1768_v17  ;;  %v11459_v11 = vadd.f32 %v1487_v52, %v1368_v40  ;;  %v15527_v21 = vld [vmem:[#allocation64_spill] sm:$0xff] }
 0x23d   : > { %8447 = vmatmul.msk.f32.gmra.mxu3 %vm1217_vm0, %v1769_v55  ;;  %v1774_v40 = vmul.f32 %v15527_v21, %v15527_v21 }
 0x23e   : > { %2542 = vmatmul.f32.gmra.mxu0 %v1764_v12 }
 0x240   : > { %v11463_v22 = vpop.f32.mrf.mxu3  ;;  %8511 = vmatmul.msk.f32.gmra.mxu2 %vm1217_vm0, %v1765_v32 }
 0x241   : > { %v11470_v53 = vpop.f32.mrf.mxu1 }
 0x243   : > { %v1606_v24 = vpop.f32.mrf.mxu2  ;;  %v1370_v52 = vpop.f32.mrf.mxu0 }
 0x244   : > { %v11472_v16 = vadd.f32 %v1725_v44, %v1606_v24  ;;  %2121 = vmatmul.f32.gmra.mxu1 %v1770_v20  ;;  %v11475_v12 = vadd.f32 %v1489_v46, %v1370_v52  ;;  %v1773_v44 = vmul.f32 %v15526_v57, %v15526_v57  ;;  %v15530_v57 = vld [vmem:[#allocation60_spill] sm:$0xff] }
 0x245   : > { %8448 = vmatmul.msk.f32.gmra.mxu3 %vm1217_vm0, %v1771_v51 }
 0x246   : > { %2545 = vmatmul.f32.gmra.mxu0 %v1766_v9 }
 0x248   : > { %v11479_v28 = vpop.f32.mrf.mxu3  ;;  %8512 = vmatmul.msk.f32.gmra.mxu2 %vm1217_vm0, %v1767_v38 }
 0x249   : > { %v11486_v35 = vpop.f32.mrf.mxu1 }
 0x24b   : > { %v1608_v27 = vpop.f32.mrf.mxu2  ;;  %v11490_v46 = vpop.f32.mrf.mxu0 }
 0x24c   : > { %v11488_v36 = vadd.f32 %v1727_v26, %v1608_v27  ;;  %2124 = vmatmul.f32.gmra.mxu1 %v1772_v59  ;;  %v1775_v26 = vmul.f32 %v15528_v60, %v15528_v60  ;;  %v1777_v27 = vmul.f32 %v15530_v57, %v15530_v57 }
 0x24d   : > { %8449 = vmatmul.msk.f32.gmra.mxu3 %vm1217_vm0, %v1773_v44 }
 0x24e   : > { %2548 = vmatmul.f32.gmra.mxu0 %v1768_v17  ;;  %v15529_v17 = vld [vmem:[#allocation69_spill] sm:$0xff] }
 0x250   : > { %v11495_v38 = vpop.f32.mrf.mxu3  ;;  %8513 = vmatmul.msk.f32.gmra.mxu2 %vm1217_vm0, %v1769_v55  ;;  %v1776_v55 = vmul.f32 %v15529_v17, %v15529_v17  ;;  %v1779_v17 = vmul.f32 %v15532_v10, %v15532_v10 }
 0x251   : > { %v1499_v50 = vpop.f32.mrf.mxu1 }
 0x253   : > { %v11502_v24 = vpop.f32.mrf.mxu2  ;;  %v1375_v52 = vpop.f32.mrf.mxu0 }
 0x254   : > { %2127 = vmatmul.f32.gmra.mxu1 %v1774_v40 }
 0x255   : > { %8450 = vmatmul.msk.f32.gmra.mxu3 %vm1217_vm0, %v1775_v26 }
 0x256   : > { %2551 = vmatmul.f32.gmra.mxu0 %v1770_v20  ;;  %v15531_v20 = vld [vmem:[#allocation70_spill] sm:$0xff] }
 0x258   : > { %v1737_v14 = vpop.f32.mrf.mxu3  ;;  %8514 = vmatmul.msk.f32.gmra.mxu2 %vm1217_vm0, %v1771_v51  ;;  %v1778_v51 = vmul.f32 %v15531_v20, %v15531_v20 }
 0x259   : > { %v1502_v21 = vpop.f32.mrf.mxu1 }
 0x25b   : > { %v11510_v63 = vpop.f32.mrf.mxu2  ;;  %v1378_v60 = vpop.f32.mrf.mxu0 }
 0x25c   : > { %2130 = vmatmul.f32.gmra.mxu1 %v1776_v55  ;;  %v1498_v54 = vadd.f32 %v11486_v35, %v1378_v60 }
 0x25d   : > { %8451 = vmatmul.msk.f32.gmra.mxu3 %vm1217_vm0, %v1777_v27 }
 0x25e   : > { %2554 = vmatmul.f32.gmra.mxu0 %v1772_v59  ;;  %v15533_v59 = vld [vmem:[#allocation73_spill] sm:$0xff] }
 0x25f   : > { %v1780_v42 = vmul.f32 %v15533_v59, %v15533_v59  ;;  %v1783_v59 = vmul.f32 %v15536_v3, %v15536_v3 }
 0x260   : > { %v1740_v5 = vpop.f32.mrf.mxu3  ;;  %8515 = vmatmul.msk.f32.gmra.mxu2 %vm1217_vm0, %v1773_v44  ;;  %v15534_v44 = vld [vmem:[#allocation66_spill] sm:$0xff] }
 0x261   : > { %v1504_v61 = vpop.f32.mrf.mxu1  ;;  %v1781_v9 = vmul.f32 %v15534_v44, %v15534_v44 }
 0x263   : > { %v1616_v18 = vpop.f32.mrf.mxu2  ;;  %v1380_v57 = vpop.f32.mrf.mxu0 }
 0x264   : > { %2133 = vmatmul.f32.gmra.mxu1 %v1778_v51  ;;  %v1500_v47 = vadd.f32 %v1499_v50, %v1380_v57 }
 0x265   : > { %8452 = vmatmul.msk.f32.gmra.mxu3 %vm1217_vm0, %v1779_v17 }
 0x266   : > { %2557 = vmatmul.f32.gmra.mxu0 %v1774_v40  ;;  %v15535_v40 = vld [vmem:[#allocation74_spill] sm:$0xff] }
 0x268   : > { %v1742_v58 = vpop.f32.mrf.mxu3  ;;  %8516 = vmatmul.msk.f32.gmra.mxu2 %vm1217_vm0, %v1775_v26  ;;  %v1782_v26 = vmul.f32 %v15535_v40, %v15535_v40  ;;  %v15537_v40 = vld [vmem:[#allocation77_spill] sm:$0xff] }
 0x269   : > { %v11524_v20 = vpop.f32.mrf.mxu1  ;;  %v1784_v3 = vmul.f32 %v15537_v40, %v15537_v40 }
 0x26b   : > { %v1618_v8 = vpop.f32.mrf.mxu2  ;;  %v1383_v10 = vpop.f32.mrf.mxu0 }
 0x26c   : > { %2136 = vmatmul.f32.gmra.mxu1 %v1780_v42  ;;  %v1503_v37 = vadd.f32 %v1502_v21, %v1383_v10  ;;  %v1495_v21 = vadd.f32 %v11470_v53, %v1375_v52 }
 0x26d   : > { %8453 = vmatmul.msk.f32.gmra.mxu3 %vm1217_vm0, %v1781_v9 }
 0x26e   : > { %2560 = vmatmul.f32.gmra.mxu0 %v1776_v55 }
 0x270   : > { %v11527_v32 = vpop.f32.mrf.mxu3  ;;  %8517 = vmatmul.msk.f32.gmra.mxu2 %vm1217_vm0, %v1777_v27 }
 0x271   : > { %v11534_v44 = vpop.f32.mrf.mxu1 }
 0x273   : > { %v1621_v15 = vpop.f32.mrf.mxu2  ;;  %v1385_v2 = vpop.f32.mrf.mxu0 }
 0x274   : > { %2139 = vmatmul.f32.gmra.mxu1 %v1782_v26  ;;  %v1505_v55 = vadd.f32 %v1504_v61, %v1385_v2  ;;  %v3269_v2 = vpack.c.bf16 %v1500_v47, %v1498_v54  ;;  %v1736_v54 = vadd.f32 %v11495_v38, %v1616_v18  ;;  %v1731_v18 = vadd.f32 %v11463_v22, %v11502_v24 }
 0x275   : > { %8454 = vmatmul.msk.f32.gmra.mxu3 %vm1217_vm0, %v1783_v59  ;;  %v15538_v38 = vpack.c.bf16 %v11475_v12, %v11459_v11  ;;  %v15539_v24 = vpack.c.bf16 %v11445_v43, %v11442_v4  ;;  %v15540_v12 = vpack.c.bf16 %v11488_v36, %v11472_v16  ;;  %v15542_v43 = vpack.c.bf16 %v11456_v29, %v11440_v7  ;;  %v9519_v36 = vld [vmem:[%s10685_s8 + $0xf8] sm:$0xff] }
 0x276   : > { %v3271_v45 = vpack.c.bf16 %v1505_v55, %v1503_v37  ;;  %2563 = vmatmul.f32.gmra.mxu0 %v1778_v51  ;;  %v1741_v37 = vadd.f32 %v1740_v5, %v1621_v15  ;;  %v9514_v15 = vld [vmem:[%s10685_s8 + $0xd0] sm:$0xff]  ;;  %v15543_v16 = vpack.c.bf16 %v11396_v19, %v11394_v56  ;;  %v1791_v40 = vmul.f32 %v9519_v36, %v9519_v36 }
 0x277   : > { %v1786_v5 = vmul.f32 %v9514_v15, %v9514_v15  ;;  %v15545_v29 = vpack.c.bf16 %v11370_v6, %v11368_v49  ;;  %v15546_v19 = vpack.c.bf16 %v11407_v33, %v11392_v48  ;;  %v15547_v49 = vpack.c.bf16 %v11382_v23, %v11364_v1  ;;  %v9522_v48 = vld [vmem:[%s10685_s8 + $0x110] sm:$0xff] }
 0x278   : > { %v11537_v27 = vpop.f32.mrf.mxu3  ;;  %8518 = vmatmul.msk.f32.gmra.mxu2 %vm1217_vm0, %v1779_v17  ;;  %3279 = vmatpush.bf16.msrb.mxu1 %v3271_v45  ;;  %v1493_v17 = vadd.f32 %v11454_v62, %v11490_v46  ;;  %v1738_v45 = vadd.f32 %v1737_v14, %v1618_v8  ;;  %v1733_v8 = vadd.f32 %v11479_v28, %v11510_v63  ;;  %v9516_v28 = vld [vmem:[%s10685_s8 + $0xe0] sm:$0xff]  ;;  %v9517_v14 = vld [vmem:[%s10685_s8 + $0xe8] sm:$0xff] }
 0x279   : > { %v11544_v34 = vpop.f32.mrf.mxu1  ;;  %v1788_v22 = vmul.f32 %v9516_v28, %v9516_v28  ;;  %v1789_v60 = vmul.f32 %v9517_v14, %v9517_v14  ;;  %v1794_v33 = vmul.f32 %v9522_v48, %v9522_v48 }
 0x27a   : > { %v3267_v35 = vpack.c.bf16 %v1495_v21, %v1493_v17  ;;  %v3270_v46 = vpack.c.bf16 %v1738_v45, %v1736_v54  ;;  %v3268_v52 = vpack.c.bf16 %v1733_v8, %v1731_v18  ;;  %v9523_v17 = vld [vmem:[%s10685_s8 + $0x118] sm:$0xff]  ;;  %v9525_v18 = vld [vmem:[%s10685_s8 + $0x128] sm:$0xff] }
 0x27b   : > { %v1623_v61 = vpop.f32.mrf.mxu2  ;;  %v11547_v51 = vpop.f32.mrf.mxu0  ;;  %v1795_v45 = vmul.f32 %v9523_v17, %v9523_v17 }
 0x27c   : > { %v1743_v50 = vadd.f32 %v1742_v58, %v1623_v61  ;;  %2142 = vmatmul.f32.gmra.mxu1 %v1784_v3  ;;  %v9515_v58 = vld [vmem:[%s10685_s8 + $0xd8] sm:$0xff] }
 0x27d   : > { %8455 = vmatmul.msk.f32.gmra.mxu3 %vm1217_vm0, %v1785_v13  ;;  %3280 = vmatpush.bf16.msrb.mxu1 %v3269_v2  ;;  %v1787_v53 = vmul.f32 %v9515_v58, %v9515_v58 }
 0x27e   : > { %v3272_v30 = vpack.c.bf16 %v1743_v50, %v1741_v37  ;;  %2566 = vmatmul.f32.gmra.mxu0 %v1780_v42 }
 0x280   : > { %v11553_v47 = vpop.f32.mrf.mxu3  ;;  %8519 = vmatmul.msk.f32.gmra.mxu2 %vm1217_vm0, %v1781_v9  ;;  %3405 = vmatpush.bf16.msrb.mxu0 %v3272_v30 }
 0x281   : > { %3281 = vmatpush.bf16.msrb.mxu1 %v3267_v35  ;;  %v11558_v62 = vpop.f32.mrf.mxu1 }
 0x283   : > { %v11562_v42 = vpop.f32.mrf.mxu2  ;;  %v11566_v9 = vpop.f32.mrf.mxu0 }
 0x284   : > { %2145 = vmatmul.f32.gmra.mxu1 %v1786_v5  ;;  %3406 = vmatpush.bf16.msrb.mxu0 %v3270_v46 }
 0x285   : > { %8456 = vmatmul.msk.f32.gmra.mxu3 %vm1217_vm0, %v1787_v53  ;;  %3282 = vmatpush.bf16.msrb.mxu1 %v15538_v38  ;;  %v1797_v38 = vmul.f32 %v9525_v18, %v9525_v18 }
 0x286   : > { %2569 = vmatmul.f32.gmra.mxu0 %v1782_v26  ;;  %v15541_v26 = vpack.c.bf16 %v11422_v25, %v11419_v39 }
 0x288   : > { %v11572_v63 = vpop.f32.mrf.mxu3  ;;  %8520 = vmatmul.msk.f32.gmra.mxu2 %vm1217_vm0, %v1783_v59  ;;  %3407 = vmatpush.bf16.msrb.mxu0 %v3268_v52  ;;  %v9518_v59 = vld [vmem:[%s10685_s8 + $0xf0] sm:$0xff] }
 0x289   : > { %3283 = vmatpush.bf16.msrb.mxu1 %v15539_v24  ;;  %v1517_v57 = vpop.f32.mrf.mxu1  ;;  %v1790_v55 = vmul.f32 %v9518_v59, %v9518_v59  ;;  %v1510_v24 = vadd.f32 %v11534_v44, %v11566_v9  ;;  %v9526_v44 = vld [vmem:[%s10685_s8 + $0x130] sm:$0xff] }
 0x28a   : > { %v1798_v9 = vmul.f32 %v9526_v44, %v9526_v44 }
 0x28b   : > { %v11580_v11 = vpop.f32.mrf.mxu2  ;;  %v1393_v10 = vpop.f32.mrf.mxu0 }
 0x28c   : > { %2148 = vmatmul.f32.gmra.mxu1 %v1788_v22  ;;  %3408 = vmatpush.bf16.msrb.mxu0 %v15540_v12  ;;  %v1513_v28 = vadd.f32 %v11544_v34, %v1393_v10  ;;  %v1508_v12 = vadd.f32 %v11524_v20, %v11547_v51  ;;  %v1748_v51 = vadd.f32 %v11537_v27, %v11580_v11  ;;  %v9528_v27 = vld [vmem:[%s10685_s8 + $0x140] sm:$0xff] }
 0x28d   : > { %8457 = vmatmul.msk.f32.gmra.mxu3 %vm1217_vm0, %v1789_v60  ;;  %3284 = vmatpush.bf16.msrb.mxu1 %v15541_v26  ;;  %v1800_v11 = vmul.f32 %v9528_v27, %v9528_v27 }
 0x28e   : > { %2572 = vmatmul.f32.gmra.mxu0 %v1784_v3  ;;  %v9520_v3 = vld [vmem:[%s10685_s8 + $0x100] sm:$0xff]  ;;  %v3273_v10 = vpack.c.bf16 %v1510_v24, %v1508_v12 }
 0x290   : > { %v1755_v4 = vpop.f32.mrf.mxu3  ;;  %8521 = vmatmul.msk.f32.gmra.mxu2 %vm1217_vm0, %v1785_v13  ;;  %3409 = vmatpush.bf16.msrb.mxu0 %v15542_v43  ;;  %v15544_v13 = vpack.c.bf16 %v11430_v31, %v11417_v0  ;;  %v1792_v0 = vmul.f32 %v9520_v3, %v9520_v3  ;;  %v9521_v31 = vld [vmem:[%s10685_s8 + $0x108] sm:$0xff] }
 0x291   : > { %3285 = vmatpush.bf16.msrb.mxu1 %v15543_v16  ;;  %v1519_v39 = vpop.f32.mrf.mxu1  ;;  %v1793_v21 = vmul.f32 %v9521_v31, %v9521_v31  ;;  %v9530_v31 = vld [vmem:[%s10685_s8 + $0x150] sm:$0xff] }
 0x293   : > { %v11598_v25 = vpop.f32.mrf.mxu2  ;;  %v1395_v7 = vpop.f32.mrf.mxu0 }
 0x294   : > { %2151 = vmatmul.f32.gmra.mxu1 %v1790_v55  ;;  %3410 = vmatpush.bf16.msrb.mxu0 %v15544_v13 }
 0x295   : > { %8458 = vmatmul.msk.f32.gmra.mxu3 %vm1217_vm0, %v1791_v40  ;;  %3286 = vmatpush.bf16.msrb.mxu1 %v15545_v29  ;;  %v9529_v29 = vld [vmem:[%s10685_s8 + $0x148] sm:$0xff] }
 0x296   : > { %2575 = vmatmul.f32.gmra.mxu0 %v1786_v5  ;;  %v1515_v5 = vadd.f32 %v11558_v62, %v1395_v7 }
 0x298   : > { %v1757_v56 = vpop.f32.mrf.mxu3  ;;  %8522 = vmatmul.msk.f32.gmra.mxu2 %vm1217_vm0, %v1787_v53  ;;  %3411 = vmatpush.bf16.msrb.mxu0 %v15546_v19  ;;  %v9524_v53 = vld [vmem:[%s10685_s8 + $0x120] sm:$0xff]  ;;  %v3275_v14 = vpack.c.bf16 %v1515_v5, %v1513_v28 }
 0x299   : > { %v2107_v2 = vpop.f32.mrf.mxu1  ;;  %v1796_v8 = vmul.f32 %v9524_v53, %v9524_v53 }
 0x29b   : > { %v1633_v61 = vpop.f32.mrf.mxu2  ;;  %v1398_v6 = vpop.f32.mrf.mxu0 }
 0x29c   : > { %2154 = vmatmul.f32.gmra.mxu1 %v1792_v0  ;;  %3412 = vmatpush.bf16.msrb.mxu0 %v15547_v49  ;;  %v1518_v23 = vadd.f32 %v1517_v57, %v1398_v6  ;;  %v1753_v34 = vadd.f32 %v11572_v63, %v1633_v61  ;;  %v9531_v61 = vld [vmem:[%s10685_s8 + $0x158] sm:$0xff] }
 0x29d   : > { %8459 = vmatmul.msk.f32.gmra.mxu3 %vm1217_vm0, %v1793_v21  ;;  %v1803_v49 = vmul.f32 %v9531_v61, %v9531_v61 }
 0x29e   : > { %2578 = vmatmul.f32.gmra.mxu0 %v1788_v22 }
 0x2a0   : > { %v2322_v37 = vpop.f32.mrf.mxu3  ;;  %8523 = vmatmul.msk.f32.gmra.mxu2 %vm1217_vm0, %v1789_v60 }
 0x2a1   : > { %v11619_v50 = vadd.f32 %v2322_v37, %v2107_v2  ;;  %v2110_v30 = vpop.f32.mrf.mxu1 }
 0x2a3   : > { %15548 = vst [vmem:[#allocation45_spill] sm:$0xff] %v11619_v50  ;;  %v1636_v35 = vpop.f32.mrf.mxu2  ;;  %v1400_v1 = vpop.f32.mrf.mxu0  ;;  %v11883_v50 = vld [vmem:[%s10692_s14 + $0xd8] sm:$0xff] }
 0x2a4   : > { %2157 = vmatmul.f32.gmra.mxu1 %v1794_v33  ;;  %v1520_v54 = vadd.f32 %v1519_v39, %v1400_v1  ;;  %v1756_v62 = vadd.f32 %v1755_v4, %v1636_v35  ;;  %v1751_v4 = vadd.f32 %v11553_v47, %v11598_v25  ;;  %v1746_v47 = vadd.f32 %v11527_v32, %v11562_v42  ;;  %v11675_v1 = vld [vmem:[%s10692_s14 + $0x8] sm:$0xff] }
 0x2a5   : > { %8460 = vmatmul.msk.f32.gmra.mxu3 %vm1217_vm0, %v1795_v45 }
 0x2a6   : > { %v3277_v15 = vpack.c.bf16 %v1520_v54, %v1518_v23  ;;  %2581 = vmatmul.f32.gmra.mxu0 %v1790_v55  ;;  %v9527_v55 = vld [vmem:[%s10685_s8 + $0x138] sm:$0xff]  ;;  %v3276_v63 = vpack.c.bf16 %v1753_v34, %v1751_v4  ;;  %v3274_v25 = vpack.c.bf16 %v1748_v51, %v1746_v47  ;;  %v1805_v23 = vmul.f32 %v11675_v1, %v11675_v1  ;;  %v11707_v34 = vld [vmem:[%s10692_s14 + $0x28] sm:$0xff] }
 0x2a7   : > { %v1799_v16 = vmul.f32 %v9527_v55, %v9527_v55 }
 0x2a8   : > { %v2325_v58 = vpop.f32.mrf.mxu3  ;;  %8524 = vmatmul.msk.f32.gmra.mxu2 %vm1217_vm0, %v1791_v40  ;;  %3347 = vmatpush.bf16.msrb.mxu3 %v3277_v15 }
 0x2a9   : > { %v11626_v46 = vadd.f32 %v2325_v58, %v2110_v30  ;;  %v2113_v52 = vpop.f32.mrf.mxu1 }
 0x2ab   : > { %15549 = vst [vmem:[#allocation52_spill] sm:$0xff] %v11626_v46  ;;  %v1638_v22 = vpop.f32.mrf.mxu2  ;;  %v2537_v57 = vpop.f32.mrf.mxu0 }
 0x2ac   : > { %v1758_v60 = vadd.f32 %v1757_v56, %v1638_v22  ;;  %2160 = vmatmul.f32.gmra.mxu1 %v1796_v8  ;;  %3348 = vmatpush.bf16.msrb.mxu3 %v3275_v14  ;;  %v1801_v56 = vmul.f32 %v9529_v29, %v9529_v29 }
 0x2ad   : > { %8461 = vmatmul.msk.f32.gmra.mxu3 %vm1217_vm0, %v1797_v38 }
 0x2ae   : > { %v3278_v26 = vpack.c.bf16 %v1758_v60, %v1756_v62  ;;  %2584 = vmatmul.f32.gmra.mxu0 %v1792_v0 }
 0x2b0   : > { %v2328_v43 = vpop.f32.mrf.mxu3  ;;  %8525 = vmatmul.msk.f32.gmra.mxu2 %vm1217_vm0, %v1793_v21  ;;  %3349 = vmatpush.bf16.msrb.mxu3 %v3273_v10  ;;  %v1802_v21 = vmul.f32 %v9530_v31, %v9530_v31  ;;  %v1809_v10 = vmul.f32 %v11707_v34, %v11707_v34 }
 0x2b1   : > { %v11640_v59 = vadd.f32 %v2328_v43, %v2113_v52  ;;  %3473 = vmatpush.bf16.msrb.mxu2 %v3278_v26  ;;  %v2116_v20 = vpop.f32.mrf.mxu1  ;;  %v11691_v52 = vld [vmem:[%s10692_s14 + $0x18] sm:$0xff] }
 0x2b2   : > { %v1807_v28 = vmul.f32 %v11691_v52, %v11691_v52 }
 0x2b3   : > { %15550 = vst [vmem:[#allocation46_spill] sm:$0xff] %v11640_v59  ;;  %v2752_v36 = vpop.f32.mrf.mxu2  ;;  %v2540_v39 = vpop.f32.mrf.mxu0  ;;  %v11899_v59 = vld [vmem:[%s10692_s14 + $0xe8] sm:$0xff] }
 0x2b4   : > { %v11645_v40 = vadd.f32 %v2752_v36, %v2537_v57  ;;  %2163 = vmatmul.f32.gmra.mxu1 %v1798_v9  ;;  %v11700_v57 = vld [vmem:[%s10692_s14 + $0x20] sm:$0xff] }
 0x2b5   : > { %8462 = vmatmul.msk.f32.gmra.mxu3 %vm1217_vm0, %v1799_v16  ;;  %3474 = vmatpush.bf16.msrb.mxu2 %v3276_v63  ;;  %v1808_v12 = vmul.f32 %v11700_v57, %v11700_v57  ;;  %v11723_v63 = vld [vmem:[%s10692_s14 + $0x38] sm:$0xff] }
 0x2b6   : > { %15551 = vst [vmem:[#allocation57_spill] sm:$0xff] %v11645_v40  ;;  %2587 = vmatmul.f32.gmra.mxu0 %v1794_v33  ;;  %v1811_v36 = vmul.f32 %v11723_v63, %v11723_v63 }
 0x2b8   : > { %v2331_v13 = vpop.f32.mrf.mxu3  ;;  %8526 = vmatmul.msk.f32.gmra.mxu2 %vm1217_vm0, %v1795_v45  ;;  %v11668_v45 = vld [vmem:[%s10692_s14] sm:$0xff] }
 0x2b9   : > { %v11652_v7 = vadd.f32 %v2331_v13, %v2116_v20  ;;  %3475 = vmatpush.bf16.msrb.mxu2 %v3274_v25  ;;  %v2119_v19 = vpop.f32.mrf.mxu1  ;;  %v1804_v30 = vmul.f32 %v11668_v45, %v11668_v45 }
 0x2bb   : > { %15552 = vst [vmem:[#allocation49_spill] sm:$0xff] %v11652_v7  ;;  %v2755_v3 = vpop.f32.mrf.mxu2  ;;  %v2543_v42 = vpop.f32.mrf.mxu0 }
 0x2bc   : > { %v11655_v32 = vadd.f32 %v2755_v3, %v2540_v39  ;;  %2166 = vmatmul.f32.gmra.mxu1 %v1800_v11 }
 0x2bd   : > { %8463 = vmatmul.msk.f32.gmra.mxu3 %vm1217_vm0, %v1801_v56 }
 0x2be   : > { %15553 = vst [vmem:[#allocation58_spill] sm:$0xff] %v11655_v32  ;;  %2590 = vmatmul.f32.gmra.mxu0 %v1796_v8  ;;  %v11684_v8 = vld [vmem:[%s10692_s14 + $0x10] sm:$0xff] }
 0x2bf   : > { %v1806_v18 = vmul.f32 %v11684_v8, %v11684_v8 }
 0x2c0   : > { %v2334_v0 = vpop.f32.mrf.mxu3  ;;  %8527 = vmatmul.msk.f32.gmra.mxu2 %vm1217_vm0, %v1797_v38 }
 0x2c1   : > { %v11660_v2 = vadd.f32 %v2334_v0, %v2119_v19  ;;  %v2122_v6 = vpop.f32.mrf.mxu1  ;;  %v11739_v19 = vld [vmem:[%s10692_s14 + $0x48] sm:$0xff] }
 0x2c2   : > { %v1813_v3 = vmul.f32 %v11739_v19, %v11739_v19 }
 0x2c3   : > { %15554 = vst [vmem:[#allocation50_spill] sm:$0xff] %v11660_v2  ;;  %v2758_v37 = vpop.f32.mrf.mxu2  ;;  %v2546_v33 = vpop.f32.mrf.mxu0 }
 0x2c4   : > { %v11663_v48 = vadd.f32 %v2758_v37, %v2543_v42  ;;  %2169 = vmatmul.f32.gmra.mxu1 %v1802_v21 }
 0x2c5   : > { %8464 = vmatmul.msk.f32.gmra.mxu3 %vm1217_vm0, %v1803_v49 }
 0x2c6   : > { %15555 = vst [vmem:[#allocation63_spill] sm:$0xff] %v11663_v48  ;;  %2593 = vmatmul.f32.gmra.mxu0 %v1798_v9  ;;  %v11851_v48 = vld [vmem:[%s10692_s14 + $0xb8] sm:$0xff] }
 0x2c8   : > { %v2337_v17 = vpop.f32.mrf.mxu3  ;;  %8528 = vmatmul.msk.f32.gmra.mxu2 %vm1217_vm0, %v1799_v16  ;;  %v11716_v16 = vld [vmem:[%s10692_s14 + $0x30] sm:$0xff] }
 0x2c9   : > { %v11672_v35 = vadd.f32 %v2337_v17, %v2122_v6  ;;  %v2125_v54 = vpop.f32.mrf.mxu1  ;;  %v1810_v20 = vmul.f32 %v11716_v16, %v11716_v16 }
 0x2cb   : > { %15556 = vst [vmem:[#allocation54_spill] sm:$0xff] %v11672_v35  ;;  %v2761_v15 = vpop.f32.mrf.mxu2  ;;  %v2549_v58 = vpop.f32.mrf.mxu0  ;;  %v11931_v35 = vld [vmem:[%s10692_s14 + $0x108] sm:$0xff] }
 0x2cc   : > { %v11679_v5 = vadd.f32 %v2761_v15, %v2546_v33  ;;  %2172 = vmatmul.f32.gmra.mxu1 %v1804_v30  ;;  %v11755_v33 = vld [vmem:[%s10692_s14 + $0x58] sm:$0xff] }
 0x2cd   : > { %8465 = vmatmul.msk.f32.gmra.mxu3 %vm1217_vm0, %v1805_v23  ;;  %v1815_v17 = vmul.f32 %v11755_v33, %v11755_v33 }
 0x2ce   : > { %15557 = vst [vmem:[#allocation64_spill] sm:$0xff] %v11679_v5  ;;  %2596 = vmatmul.f32.gmra.mxu0 %v1800_v11  ;;  %v11732_v11 = vld [vmem:[%s10692_s14 + $0x40] sm:$0xff] }
 0x2cf   : > { %v1812_v29 = vmul.f32 %v11732_v11, %v11732_v11 }
 0x2d0   : > { %v2340_v53 = vpop.f32.mrf.mxu3  ;;  %8529 = vmatmul.msk.f32.gmra.mxu2 %vm1217_vm0, %v1801_v56 }
 0x2d1   : > { %v11688_v38 = vadd.f32 %v2340_v53, %v2125_v54  ;;  %v2128_v22 = vpop.f32.mrf.mxu1  ;;  %v11764_v53 = vld [vmem:[%s10692_s14 + $0x60] sm:$0xff] }
 0x2d3   : > { %15558 = vst [vmem:[#allocation55_spill] sm:$0xff] %v11688_v38  ;;  %v2764_v24 = vpop.f32.mrf.mxu2  ;;  %v2552_v62 = vpop.f32.mrf.mxu0 }
 0x2d4   : > { %v11695_v14 = vadd.f32 %v2764_v24, %v2549_v58  ;;  %2175 = vmatmul.f32.gmra.mxu1 %v1806_v18 }
 0x2d5   : > { %8466 = vmatmul.msk.f32.gmra.mxu3 %vm1217_vm0, %v1807_v28 }
 0x2d6   : > { %15559 = vst [vmem:[#allocation69_spill] sm:$0xff] %v11695_v14  ;;  %2599 = vmatmul.f32.gmra.mxu0 %v1802_v21 }
 0x2d8   : > { %v2343_v60 = vpop.f32.mrf.mxu3  ;;  %8530 = vmatmul.msk.f32.gmra.mxu2 %vm1217_vm0, %v1803_v49  ;;  %v11748_v49 = vld [vmem:[%s10692_s14 + $0x50] sm:$0xff] }
 0x2d9   : > { %v11704_v26 = vadd.f32 %v2343_v60, %v2128_v22  ;;  %v2131_v43 = vpop.f32.mrf.mxu1  ;;  %v1814_v6 = vmul.f32 %v11748_v49, %v11748_v49  ;;  %v11771_v22 = vld [vmem:[%s10692_s14 + $0x68] sm:$0xff] }
 0x2da   : > { %v1817_v24 = vmul.f32 %v11771_v22, %v11771_v22 }
 0x2db   : > { %15560 = vst [vmem:[#allocation60_spill] sm:$0xff] %v11704_v26  ;;  %v2767_v44 = vpop.f32.mrf.mxu2  ;;  %v2555_v4 = vpop.f32.mrf.mxu0  ;;  %v11947_v26 = vld [vmem:[%s10692_s14 + $0x118] sm:$0xff] }
 0x2dc   : > { %v11711_v9 = vadd.f32 %v2767_v44, %v2552_v62  ;;  %2178 = vmatmul.f32.gmra.mxu1 %v1808_v12  ;;  %v11780_v44 = vld [vmem:[%s10692_s14 + $0x70] sm:$0xff] }
 0x2dd   : > { %8467 = vmatmul.msk.f32.gmra.mxu3 %vm1217_vm0, %v1809_v10 }
 0x2de   : > { %15561 = vst [vmem:[#allocation70_spill] sm:$0xff] %v11711_v9  ;;  %2602 = vmatmul.f32.gmra.mxu0 %v1804_v30 }
 0x2e0   : > { %v2346_v55 = vpop.f32.mrf.mxu3  ;;  %8531 = vmatmul.msk.f32.gmra.mxu2 %vm1217_vm0, %v1805_v23 }
 0x2e1   : > { %v11720_v51 = vadd.f32 %v2346_v55, %v2131_v43  ;;  %v2134_v39 = vpop.f32.mrf.mxu1 }
 0x2e3   : > { %15562 = vst [vmem:[#allocation61_spill] sm:$0xff] %v11720_v51  ;;  %v2770_v47 = vpop.f32.mrf.mxu2  ;;  %v2558_v13 = vpop.f32.mrf.mxu0 }
 0x2e4   : > { %v11727_v25 = vadd.f32 %v2770_v47, %v2555_v4  ;;  %2181 = vmatmul.f32.gmra.mxu1 %v1810_v20  ;;  %v1818_v4 = vmul.f32 %v11780_v44, %v11780_v44 }
 0x2e5   : > { %8468 = vmatmul.msk.f32.gmra.mxu3 %vm1217_vm0, %v1811_v36 }
 0x2e6   : > { %15563 = vst [vmem:[#allocation73_spill] sm:$0xff] %v11727_v25  ;;  %2605 = vmatmul.f32.gmra.mxu0 %v1806_v18  ;;  %v1816_v18 = vmul.f32 %v11764_v53, %v11764_v53  ;;  %v11867_v25 = vld [vmem:[%s10692_s14 + $0xc8] sm:$0xff] }
 0x2e8   : > { %v2349_v27 = vpop.f32.mrf.mxu3  ;;  %8532 = vmatmul.msk.f32.gmra.mxu2 %vm1217_vm0, %v1807_v28 }
 0x2e9   : > { %v11736_v56 = vadd.f32 %v2349_v27, %v2134_v39  ;;  %v2137_v42 = vpop.f32.mrf.mxu1 }
 0x2eb   : > { %15564 = vst [vmem:[#allocation66_spill] sm:$0xff] %v11736_v56  ;;  %v2773_v0 = vpop.f32.mrf.mxu2  ;;  %v2561_v21 = vpop.f32.mrf.mxu0  ;;  %v11963_v56 = vld [vmem:[%s10692_s14 + $0x128] sm:$0xff] }
 0x2ec   : > { %v11743_v31 = vadd.f32 %v2773_v0, %v2558_v13  ;;  %2184 = vmatmul.f32.gmra.mxu1 %v1812_v29 }
 0x2ed   : > { %8469 = vmatmul.msk.f32.gmra.mxu3 %vm1217_vm0, %v1813_v3 }
 0x2ee   : > { %15565 = vst [vmem:[#allocation74_spill] sm:$0xff] %v11743_v31  ;;  %2608 = vmatmul.f32.gmra.mxu0 %v1808_v12 }
 0x2f0   : > { %v2352_v61 = vpop.f32.mrf.mxu3  ;;  %8533 = vmatmul.msk.f32.gmra.mxu2 %vm1217_vm0, %v1809_v10 }
 0x2f1   : > { %v11752_v37 = vadd.f32 %v2352_v61, %v2137_v42  ;;  %v2140_v30 = vpop.f32.mrf.mxu1 }
 0x2f3   : > { %15566 = vst [vmem:[#allocation67_spill] sm:$0xff] %v11752_v37  ;;  %v2776_v23 = vpop.f32.mrf.mxu2  ;;  %v2564_v15 = vpop.f32.mrf.mxu0  ;;  %v11979_v37 = vld [vmem:[%s10692_s14 + $0x138] sm:$0xff] }
 0x2f4   : > { %v11759_v54 = vadd.f32 %v2776_v23, %v2561_v21  ;;  %2187 = vmatmul.f32.gmra.mxu1 %v1814_v6  ;;  %v11803_v21 = vld [vmem:[%s10692_s14 + $0x88] sm:$0xff] }
 0x2f5   : > { %8470 = vmatmul.msk.f32.gmra.mxu3 %vm1217_vm0, %v1815_v17  ;;  %v1821_v61 = vmul.f32 %v11803_v21, %v11803_v21 }
 0x2f6   : > { %15567 = vst [vmem:[#allocation77_spill] sm:$0xff] %v11759_v54  ;;  %2611 = vmatmul.f32.gmra.mxu0 %v1810_v20  ;;  %v11787_v20 = vld [vmem:[%s10692_s14 + $0x78] sm:$0xff] }
 0x2f8   : > { %v2355_v58 = vpop.f32.mrf.mxu3  ;;  %8534 = vmatmul.msk.f32.gmra.mxu2 %vm1217_vm0, %v1811_v36  ;;  %v1819_v36 = vmul.f32 %v11787_v20, %v11787_v20 }
 0x2f9   : > { %v11768_v28 = vadd.f32 %v2355_v58, %v2140_v30  ;;  %v2143_v62 = vpop.f32.mrf.mxu1  ;;  %v11812_v58 = vld [vmem:[%s10692_s14 + $0x90] sm:$0xff] }
 0x2fb   : > { %15568 = vst [vmem:[#allocation108_spill] sm:$0xff] %v11768_v28  ;;  %v2779_v60 = vpop.f32.mrf.mxu2  ;;  %v2567_v10 = vpop.f32.mrf.mxu0  ;;  %v11995_v28 = vld [vmem:[%s10692_s14 + $0x148] sm:$0xff] }
 0x2fc   : > { %v11775_v12 = vadd.f32 %v2779_v60, %v2564_v15  ;;  %2190 = vmatmul.f32.gmra.mxu1 %v1816_v18 }
 0x2fd   : > { %8471 = vmatmul.msk.f32.gmra.mxu3 %vm1217_vm0, %v1817_v24 }
 0x2fe   : > { %15569 = vst [vmem:[#allocation109_spill] sm:$0xff] %v11775_v12  ;;  %2614 = vmatmul.f32.gmra.mxu0 %v1812_v29 }
 0x300   : > { %v2358_v43 = vpop.f32.mrf.mxu3  ;;  %8535 = vmatmul.msk.f32.gmra.mxu2 %vm1217_vm0, %v1813_v3  ;;  %v11796_v3 = vld [vmem:[%s10692_s14 + $0x80] sm:$0xff] }
 0x301   : > { %v11784_v55 = vadd.f32 %v2358_v43, %v2143_v62  ;;  %v2146_v39 = vpop.f32.mrf.mxu1  ;;  %v1820_v42 = vmul.f32 %v11796_v3, %v11796_v3  ;;  %v1822_v62 = vmul.f32 %v11812_v58, %v11812_v58 }
 0x303   : > { %15570 = vst [vmem:[#allocation110_spill] sm:$0xff] %v11784_v55  ;;  %v2782_v47 = vpop.f32.mrf.mxu2  ;;  %v2570_v27 = vpop.f32.mrf.mxu0  ;;  %v12011_v55 = vld [vmem:[%s10692_s14 + $0x158] sm:$0xff] }
 0x304   : > { %v11791_v13 = vadd.f32 %v2782_v47, %v2567_v10  ;;  %2193 = vmatmul.f32.gmra.mxu1 %v1818_v4  ;;  %v11819_v10 = vld [vmem:[%s10692_s14 + $0x98] sm:$0xff] }
 0x305   : > { %8472 = vmatmul.msk.f32.gmra.mxu3 %vm1217_vm0, %v1819_v36  ;;  %v1823_v43 = vmul.f32 %v11819_v10, %v11819_v10 }
 0x306   : > { %15571 = vst [vmem:[#allocation111_spill] sm:$0xff] %v11791_v13  ;;  %2617 = vmatmul.f32.gmra.mxu0 %v1814_v6 }
 0x308   : > { %v2361_v29 = vpop.f32.mrf.mxu3  ;;  %8536 = vmatmul.msk.f32.gmra.mxu2 %vm1217_vm0, %v1815_v17 }
 0x309   : > { %v11800_v0 = vadd.f32 %v2361_v29, %v2146_v39  ;;  %v2149_v30 = vpop.f32.mrf.mxu1  ;;  %v11828_v29 = vld [vmem:[%s10692_s14 + $0xa0] sm:$0xff] }
 0x30b   : > { %15572 = vst [vmem:[#allocation112_spill] sm:$0xff] %v11800_v0  ;;  %v2785_v23 = vpop.f32.mrf.mxu2  ;;  %v2573_v15 = vpop.f32.mrf.mxu0  ;;  %v9577_v0 = vld [vmem:[%s10685_s8 + $0x8] sm:$0xff] }
 0x30c   : > { %v11807_v6 = vadd.f32 %v2785_v23, %v2570_v27  ;;  %2196 = vmatmul.f32.gmra.mxu1 %v1820_v42 }
 0x30d   : > { %8473 = vmatmul.msk.f32.gmra.mxu3 %vm1217_vm0, %v1821_v61 }
 0x30e   : > { %15573 = vst [vmem:[#allocation113_spill] sm:$0xff] %v11807_v6  ;;  %2620 = vmatmul.f32.gmra.mxu0 %v1816_v18 }
 0x310   : > { %v2364_v17 = vpop.f32.mrf.mxu3  ;;  %8537 = vmatmul.msk.f32.gmra.mxu2 %vm1217_vm0, %v1817_v24 }
 0x311   : > { %v11816_v60 = vadd.f32 %v2364_v17, %v2149_v30  ;;  %v2152_v39 = vpop.f32.mrf.mxu1  ;;  %v1824_v30 = vmul.f32 %v11828_v29, %v11828_v29  ;;  %v11835_v17 = vld [vmem:[%s10692_s14 + $0xa8] sm:$0xff] }
 0x313   : > { %15574 = vst [vmem:[#allocation114_spill] sm:$0xff] %v11816_v60  ;;  %v2788_v47 = vpop.f32.mrf.mxu2  ;;  %v2576_v27 = vpop.f32.mrf.mxu0 }
 0x314   : > { %v11823_v18 = vadd.f32 %v2788_v47, %v2573_v15  ;;  %2199 = vmatmul.f32.gmra.mxu1 %v1822_v62  ;;  %v1825_v15 = vmul.f32 %v11835_v17, %v11835_v17 }
 0x315   : > { %8474 = vmatmul.msk.f32.gmra.mxu3 %vm1217_vm0, %v1823_v43 }
 0x316   : > { %15575 = vst [vmem:[#allocation115_spill] sm:$0xff] %v11823_v18  ;;  %2623 = vmatmul.f32.gmra.mxu0 %v1818_v4 }
 0x318   : > { %v2367_v24 = vpop.f32.mrf.mxu3  ;;  %8538 = vmatmul.msk.f32.gmra.mxu2 %vm1217_vm0, %v1819_v36 }
 0x319   : > { %v11832_v23 = vadd.f32 %v2367_v24, %v2152_v39  ;;  %v2155_v47 = vpop.f32.mrf.mxu1  ;;  %v11844_v39 = vld [vmem:[%s10692_s14 + $0xb0] sm:$0xff] }
 0x31a   : > { %v1826_v24 = vmul.f32 %v11844_v39, %v11844_v39 }
 0x31b   : > { %v2791_v41 = vpop.f32.mrf.mxu2  ;;  %v2579_v40 = vpop.f32.mrf.mxu0 }
 0x31c   : > { %v11839_v4 = vadd.f32 %v2791_v41, %v2576_v27  ;;  %2202 = vmatmul.f32.gmra.mxu1 %v1824_v30  ;;  %v1827_v41 = vmul.f32 %v11851_v48, %v11851_v48 }
 0x31d   : > { %8475 = vmatmul.msk.f32.gmra.mxu3 %vm1217_vm0, %v1825_v15 }
 0x31e   : > { %15576 = vst [vmem:[#allocation116_spill] sm:$0xff] %v11839_v4  ;;  %2626 = vmatmul.f32.gmra.mxu0 %v1820_v42  ;;  %v11915_v4 = vld [vmem:[%s10692_s14 + $0xf8] sm:$0xff] }
 0x320   : > { %v2370_v36 = vpop.f32.mrf.mxu3  ;;  %8539 = vmatmul.msk.f32.gmra.mxu2 %vm1217_vm0, %v1821_v61 }
 0x321   : > { %v11848_v32 = vadd.f32 %v2370_v36, %v2155_v47  ;;  %v2158_v27 = vpop.f32.mrf.mxu1  ;;  %v11860_v47 = vld [vmem:[%s10692_s14 + $0xc0] sm:$0xff] }
 0x322   : > { %v1828_v36 = vmul.f32 %v11860_v47, %v11860_v47 }
 0x323   : > { %15577 = vst [vmem:[#allocation117_spill] sm:$0xff] %v11848_v32  ;;  %v2794_v5 = vpop.f32.mrf.mxu2  ;;  %v2582_v14 = vpop.f32.mrf.mxu0 }
 0x324   : > { %v11855_v42 = vadd.f32 %v2794_v5, %v2579_v40  ;;  %2205 = vmatmul.f32.gmra.mxu1 %v1826_v24  ;;  %v1829_v40 = vmul.f32 %v11867_v25, %v11867_v25 }
 0x325   : > { %8476 = vmatmul.msk.f32.gmra.mxu3 %vm1217_vm0, %v1827_v41 }
 0x326   : > { %15578 = vst [vmem:[#allocation118_spill] sm:$0xff] %v11855_v42  ;;  %2629 = vmatmul.f32.gmra.mxu0 %v1822_v62 }
 0x328   : > { %v2373_v61 = vpop.f32.mrf.mxu3  ;;  %8540 = vmatmul.msk.f32.gmra.mxu2 %vm1217_vm0, %v1823_v43 }
 0x329   : > { %v11864_v9 = vadd.f32 %v2373_v61, %v2158_v27  ;;  %v2161_v5 = vpop.f32.mrf.mxu1  ;;  %v11876_v27 = vld [vmem:[%s10692_s14 + $0xd0] sm:$0xff] }
 0x32a   : > { %v1830_v61 = vmul.f32 %v11876_v27, %v11876_v27 }
 0x32b   : > { %15579 = vst [vmem:[#allocation119_spill] sm:$0xff] %v11864_v9  ;;  %v2797_v31 = vpop.f32.mrf.mxu2  ;;  %v2585_v54 = vpop.f32.mrf.mxu0 }
 0x32c   : > { %v11871_v62 = vadd.f32 %v2797_v31, %v2582_v14  ;;  %2208 = vmatmul.f32.gmra.mxu1 %v1828_v36  ;;  %v1831_v14 = vmul.f32 %v11883_v50, %v11883_v50 }
 0x32d   : > { %8477 = vmatmul.msk.f32.gmra.mxu3 %vm1217_vm0, %v1829_v40 }
 0x32e   : > { %15580 = vst [vmem:[#allocation120_spill] sm:$0xff] %v11871_v62  ;;  %2632 = vmatmul.f32.gmra.mxu0 %v1824_v30 }
 0x330   : > { %v2376_v43 = vpop.f32.mrf.mxu3  ;;  %8541 = vmatmul.msk.f32.gmra.mxu2 %vm1217_vm0, %v1825_v15 }
 0x331   : > { %v11880_v12 = vadd.f32 %v2376_v43, %v2161_v5  ;;  %v2164_v31 = vpop.f32.mrf.mxu1  ;;  %v11892_v5 = vld [vmem:[%s10692_s14 + $0xe0] sm:$0xff] }
 0x332   : > { %v1832_v43 = vmul.f32 %v11892_v5, %v11892_v5 }
 0x333   : > { %15581 = vst [vmem:[#allocation121_spill] sm:$0xff] %v11880_v12  ;;  %v2800_v13 = vpop.f32.mrf.mxu2  ;;  %v2588_v46 = vpop.f32.mrf.mxu0 }
 0x334   : > { %v11887_v30 = vadd.f32 %v2800_v13, %v2585_v54  ;;  %2211 = vmatmul.f32.gmra.mxu1 %v1830_v61  ;;  %v1833_v54 = vmul.f32 %v11899_v59, %v11899_v59 }
 0x335   : > { %8478 = vmatmul.msk.f32.gmra.mxu3 %vm1217_vm0, %v1831_v14 }
 0x336   : > { %15582 = vst [vmem:[#allocation122_spill] sm:$0xff] %v11887_v30  ;;  %2635 = vmatmul.f32.gmra.mxu0 %v1826_v24 }
 0x338   : > { %v2379_v15 = vpop.f32.mrf.mxu3  ;;  %8542 = vmatmul.msk.f32.gmra.mxu2 %vm1217_vm0, %v1827_v41 }
 0x339   : > { %v11896_v6 = vadd.f32 %v2379_v15, %v2164_v31  ;;  %v2167_v13 = vpop.f32.mrf.mxu1  ;;  %v11908_v31 = vld [vmem:[%s10692_s14 + $0xf0] sm:$0xff] }
 0x33a   : > { %v1834_v15 = vmul.f32 %v11908_v31, %v11908_v31 }
 0x33b   : > { %15583 = vst [vmem:[#allocation123_spill] sm:$0xff] %v11896_v6  ;;  %v2803_v30 = vpop.f32.mrf.mxu2  ;;  %v2591_v18 = vpop.f32.mrf.mxu0 }
 0x33c   : > { %v11903_v24 = vadd.f32 %v2803_v30, %v2588_v46  ;;  %2214 = vmatmul.f32.gmra.mxu1 %v1832_v43  ;;  %v1835_v46 = vmul.f32 %v11915_v4, %v11915_v4 }
 0x33d   : > { %8479 = vmatmul.msk.f32.gmra.mxu3 %vm1217_vm0, %v1833_v54 }
 0x33e   : > { %15584 = vst [vmem:[#allocation124_spill] sm:$0xff] %v11903_v24  ;;  %2638 = vmatmul.f32.gmra.mxu0 %v1828_v36 }
 0x340   : > { %v2382_v41 = vpop.f32.mrf.mxu3  ;;  %8543 = vmatmul.msk.f32.gmra.mxu2 %vm1217_vm0, %v1829_v40 }
 0x341   : > { %v11912_v7 = vadd.f32 %v2382_v41, %v2167_v13  ;;  %v2170_v30 = vpop.f32.mrf.mxu1  ;;  %v11924_v13 = vld [vmem:[%s10692_s14 + $0x100] sm:$0xff] }
 0x342   : > { %v1836_v41 = vmul.f32 %v11924_v13, %v11924_v13 }
 0x343   : > { %15585 = vst [vmem:[#allocation125_spill] sm:$0xff] %v11912_v7  ;;  %v2806_v24 = vpop.f32.mrf.mxu2  ;;  %v2594_v2 = vpop.f32.mrf.mxu0  ;;  %v1849_v7 = vmul.f32 %v9577_v0, %v11675_v1  ;;  %v9579_v1 = vld [vmem:[%s10685_s8 + $0x18] sm:$0xff] }
 0x344   : > { %v11919_v36 = vadd.f32 %v2806_v24, %v2591_v18  ;;  %2217 = vmatmul.f32.gmra.mxu1 %v1834_v15  ;;  %v1837_v18 = vmul.f32 %v11931_v35, %v11931_v35  ;;  %v1851_v0 = vmul.f32 %v9579_v1, %v11691_v52  ;;  %v9581_v52 = vld [vmem:[%s10685_s8 + $0x28] sm:$0xff] }
 0x345   : > { %8480 = vmatmul.msk.f32.gmra.mxu3 %vm1217_vm0, %v1835_v46 }
 0x346   : > { %15586 = vst [vmem:[#allocation126_spill] sm:$0xff] %v11919_v36  ;;  %2641 = vmatmul.f32.gmra.mxu0 %v1830_v61 }
 0x348   : > { %v2385_v40 = vpop.f32.mrf.mxu3  ;;  %8544 = vmatmul.msk.f32.gmra.mxu2 %vm1217_vm0, %v1831_v14 }
 0x349   : > { %v11928_v42 = vadd.f32 %v2385_v40, %v2170_v30  ;;  %v2173_v24 = vpop.f32.mrf.mxu1  ;;  %v11940_v30 = vld [vmem:[%s10692_s14 + $0x110] sm:$0xff] }
 0x34a   : > { %v1838_v40 = vmul.f32 %v11940_v30, %v11940_v30 }
 0x34b   : > { %v2809_v36 = vpop.f32.mrf.mxu2  ;;  %v2597_v62 = vpop.f32.mrf.mxu0 }
 0x34c   : > { %v11935_v61 = vadd.f32 %v2809_v36, %v2594_v2  ;;  %2220 = vmatmul.f32.gmra.mxu1 %v1836_v41  ;;  %v1839_v2 = vmul.f32 %v11947_v26, %v11947_v26 }
 0x34d   : > { %8481 = vmatmul.msk.f32.gmra.mxu3 %vm1217_vm0, %v1837_v18 }
 0x34e   : > { %15587 = vst [vmem:[#allocation127_spill] sm:$0xff] %v11935_v61  ;;  %2644 = vmatmul.f32.gmra.mxu0 %v1832_v43 }
 0x350   : > { %v2388_v14 = vpop.f32.mrf.mxu3  ;;  %8545 = vmatmul.msk.f32.gmra.mxu2 %vm1217_vm0, %v1833_v54 }
 0x351   : > { %v11944_v38 = vadd.f32 %v2388_v14, %v2173_v24  ;;  %v2176_v36 = vpop.f32.mrf.mxu1  ;;  %v11956_v24 = vld [vmem:[%s10692_s14 + $0x120] sm:$0xff] }
 0x352   : > { %v1840_v14 = vmul.f32 %v11956_v24, %v11956_v24 }
 0x353   : > { %15588 = vst [vmem:[#allocation128_spill] sm:$0xff] %v11944_v38  ;;  %v2812_v61 = vpop.f32.mrf.mxu2  ;;  %v2600_v51 = vpop.f32.mrf.mxu0 }
 0x354   : > { %v11951_v43 = vadd.f32 %v2812_v61, %v2597_v62  ;;  %2223 = vmatmul.f32.gmra.mxu1 %v1838_v40  ;;  %v1841_v62 = vmul.f32 %v11963_v56, %v11963_v56 }
 0x355   : > { %8482 = vmatmul.msk.f32.gmra.mxu3 %vm1217_vm0, %v1839_v2 }
 0x356   : > { %15589 = vst [vmem:[#allocation129_spill] sm:$0xff] %v11951_v43  ;;  %2647 = vmatmul.f32.gmra.mxu0 %v1834_v15 }
 0x358   : > { %v2391_v54 = vpop.f32.mrf.mxu3  ;;  %8546 = vmatmul.msk.f32.gmra.mxu2 %vm1217_vm0, %v1835_v46 }
 0x359   : > { %v11960_v38 = vadd.f32 %v2391_v54, %v2176_v36  ;;  %v2179_v61 = vpop.f32.mrf.mxu1  ;;  %v11972_v36 = vld [vmem:[%s10692_s14 + $0x130] sm:$0xff] }
 0x35a   : > { %v1842_v54 = vmul.f32 %v11972_v36, %v11972_v36 }
 0x35b   : > { %15590 = vst [vmem:[#allocation130_spill] sm:$0xff] %v11960_v38  ;;  %v2815_v43 = vpop.f32.mrf.mxu2  ;;  %v2603_v32 = vpop.f32.mrf.mxu0 }
 0x35c   : > { %v11967_v15 = vadd.f32 %v2815_v43, %v2600_v51  ;;  %2226 = vmatmul.f32.gmra.mxu1 %v1840_v14  ;;  %v1843_v51 = vmul.f32 %v11979_v37, %v11979_v37 }
 0x35d   : > { %8483 = vmatmul.msk.f32.gmra.mxu3 %vm1217_vm0, %v1841_v62 }
 0x35e   : > { %15591 = vst [vmem:[#allocation131_spill] sm:$0xff] %v11967_v15  ;;  %2650 = vmatmul.f32.gmra.mxu0 %v1836_v41 }
 0x360   : > { %v2394_v46 = vpop.f32.mrf.mxu3  ;;  %8547 = vmatmul.msk.f32.gmra.mxu2 %vm1217_vm0, %v1837_v18 }
 0x361   : > { %v11976_v38 = vadd.f32 %v2394_v46, %v2179_v61  ;;  %v2182_v43 = vpop.f32.mrf.mxu1  ;;  %v11988_v61 = vld [vmem:[%s10692_s14 + $0x140] sm:$0xff] }
 0x362   : > { %v1844_v46 = vmul.f32 %v11988_v61, %v11988_v61 }
 0x363   : > { %15592 = vst [vmem:[#allocation132_spill] sm:$0xff] %v11976_v38  ;;  %v2818_v15 = vpop.f32.mrf.mxu2  ;;  %v2606_v9 = vpop.f32.mrf.mxu0 }
 0x364   : > { %v11983_v41 = vadd.f32 %v2818_v15, %v2603_v32  ;;  %2229 = vmatmul.f32.gmra.mxu1 %v1842_v54  ;;  %v1845_v32 = vmul.f32 %v11995_v28, %v11995_v28 }
 0x365   : > { %8484 = vmatmul.msk.f32.gmra.mxu3 %vm1217_vm0, %v1843_v51 }
 0x366   : > { %15593 = vst [vmem:[#allocation133_spill] sm:$0xff] %v11983_v41  ;;  %2653 = vmatmul.f32.gmra.mxu0 %v1838_v40 }
 0x368   : > { %v2397_v18 = vpop.f32.mrf.mxu3  ;;  %8548 = vmatmul.msk.f32.gmra.mxu2 %vm1217_vm0, %v1839_v2 }
 0x369   : > { %v11992_v38 = vadd.f32 %v2397_v18, %v2182_v43  ;;  %v2185_v15 = vpop.f32.mrf.mxu1  ;;  %v12004_v43 = vld [vmem:[%s10692_s14 + $0x150] sm:$0xff] }
 0x36a   : > { %v1846_v18 = vmul.f32 %v12004_v43, %v12004_v43 }
 0x36b   : > { %15594 = vst [vmem:[#allocation134_spill] sm:$0xff] %v11992_v38  ;;  %v2821_v41 = vpop.f32.mrf.mxu2  ;;  %v2609_v12 = vpop.f32.mrf.mxu0 }
 0x36c   : > { %v11999_v40 = vadd.f32 %v2821_v41, %v2606_v9  ;;  %2232 = vmatmul.f32.gmra.mxu1 %v1844_v46  ;;  %v1847_v9 = vmul.f32 %v12011_v55, %v12011_v55 }
 0x36d   : > { %8485 = vmatmul.msk.f32.gmra.mxu3 %vm1217_vm0, %v1845_v32 }
 0x36e   : > { %15595 = vst [vmem:[#allocation135_spill] sm:$0xff] %v11999_v40  ;;  %2656 = vmatmul.f32.gmra.mxu0 %v1840_v14 }
 0x370   : > { %v2400_v2 = vpop.f32.mrf.mxu3  ;;  %8549 = vmatmul.msk.f32.gmra.mxu2 %vm1217_vm0, %v1841_v62 }
 0x371   : > { %v12008_v38 = vadd.f32 %v2400_v2, %v2185_v15  ;;  %v2188_v41 = vpop.f32.mrf.mxu1  ;;  %v9576_v15 = vld [vmem:[%s10685_s8] sm:$0xff] }
 0x372   : > { %v1848_v2 = vmul.f32 %v9576_v15, %v11668_v45  ;;  %v9578_v45 = vld [vmem:[%s10685_s8 + $0x10] sm:$0xff] }
 0x373   : > { %15596 = vst [vmem:[#allocation136_spill] sm:$0xff] %v12008_v38  ;;  %v2824_v40 = vpop.f32.mrf.mxu2  ;;  %v2612_v6 = vpop.f32.mrf.mxu0 }
 0x374   : > { %v12015_v14 = vadd.f32 %v2824_v40, %v2609_v12  ;;  %2235 = vmatmul.f32.gmra.mxu1 %v1846_v18 }
 0x375   : > { %8486 = vmatmul.msk.f32.gmra.mxu3 %vm1217_vm0, %v1847_v9 }
 0x376   : > { %15597 = vst [vmem:[#allocation137_spill] sm:$0xff] %v12015_v14  ;;  %2659 = vmatmul.f32.gmra.mxu0 %v1842_v54 }
 0x378   : > { %v2403_v62 = vpop.f32.mrf.mxu3  ;;  %8550 = vmatmul.msk.f32.gmra.mxu2 %vm1217_vm0, %v1843_v51  ;;  %v1850_v51 = vmul.f32 %v9578_v45, %v11684_v8  ;;  %v9580_v8 = vld [vmem:[%s10685_s8 + $0x20] sm:$0xff] }
 0x379   : > { %v12021_v38 = vadd.f32 %v2403_v62, %v2188_v41  ;;  %v2191_v12 = vpop.f32.mrf.mxu1 }
 0x37b   : > { %v2827_v40 = vpop.f32.mrf.mxu2  ;;  %v2615_v60 = vpop.f32.mrf.mxu0 }
 0x37c   : > { %v12025_v14 = vadd.f32 %v2827_v40, %v2612_v6  ;;  %2238 = vmatmul.f32.gmra.mxu1 %v1848_v2 }
 0x37d   : > { %8487 = vmatmul.msk.f32.gmra.mxu3 %vm1217_vm0, %v1849_v7 }
 0x37e   : > { %2662 = vmatmul.f32.gmra.mxu0 %v1844_v46 }
 0x380   : > { %v2406_v54 = vpop.f32.mrf.mxu3  ;;  %8551 = vmatmul.msk.f32.gmra.mxu2 %vm1217_vm0, %v1845_v32  ;;  %v1852_v32 = vmul.f32 %v9580_v8, %v11700_v57  ;;  %v9582_v57 = vld [vmem:[%s10685_s8 + $0x30] sm:$0xff] }
 0x381   : > { %v12031_v41 = vadd.f32 %v2406_v54, %v2191_v12  ;;  %v2194_v6 = vpop.f32.mrf.mxu1  ;;  %v1853_v54 = vmul.f32 %v9581_v52, %v11707_v34  ;;  %v9583_v34 = vld [vmem:[%s10685_s8 + $0x38] sm:$0xff] }
 0x383   : > { %v2830_v62 = vpop.f32.mrf.mxu2  ;;  %v2618_v40 = vpop.f32.mrf.mxu0 }
 0x384   : > { %v12035_v15 = vadd.f32 %v2830_v62, %v2615_v60  ;;  %2241 = vmatmul.f32.gmra.mxu1 %v1850_v51 }
 0x385   : > { %8488 = vmatmul.msk.f32.gmra.mxu3 %vm1217_vm0, %v1851_v0 }
 0x386   : > { %2665 = vmatmul.f32.gmra.mxu0 %v1846_v18 }
 0x388   : > { %v2409_v46 = vpop.f32.mrf.mxu3  ;;  %8552 = vmatmul.msk.f32.gmra.mxu2 %vm1217_vm0, %v1847_v9  ;;  %v1854_v9 = vmul.f32 %v9582_v57, %v11716_v16 }
 0x389   : > { %v12041_v12 = vadd.f32 %v2409_v46, %v2194_v6  ;;  %v2197_v60 = vpop.f32.mrf.mxu1  ;;  %v1855_v46 = vmul.f32 %v9583_v34, %v11723_v63  ;;  %v9585_v63 = vld [vmem:[%s10685_s8 + $0x48] sm:$0xff] }
 0x38b   : > { %v2833_v45 = vpop.f32.mrf.mxu2  ;;  %v2621_v62 = vpop.f32.mrf.mxu0 }
 0x38c   : > { %v12045_v1 = vadd.f32 %v2833_v45, %v2618_v40  ;;  %2244 = vmatmul.f32.gmra.mxu1 %v1852_v32 }
 0x38d   : > { %8489 = vmatmul.msk.f32.gmra.mxu3 %vm1217_vm0, %v1853_v54 }
 0x38e   : > { %2668 = vmatmul.f32.gmra.mxu0 %v1848_v2 }
 0x390   : > { %v2412_v18 = vpop.f32.mrf.mxu3  ;;  %8553 = vmatmul.msk.f32.gmra.mxu2 %vm1217_vm0, %v1849_v7  ;;  %v9584_v7 = vld [vmem:[%s10685_s8 + $0x40] sm:$0xff] }
 0x391   : > { %v12051_v6 = vadd.f32 %v2412_v18, %v2197_v60  ;;  %v2200_v40 = vpop.f32.mrf.mxu1  ;;  %v1856_v16 = vmul.f32 %v9584_v7, %v11732_v11  ;;  %v1857_v18 = vmul.f32 %v9585_v63, %v11739_v19  ;;  %v9586_v11 = vld [vmem:[%s10685_s8 + $0x50] sm:$0xff]  ;;  %v9587_v19 = vld [vmem:[%s10685_s8 + $0x58] sm:$0xff] }
 0x393   : > { %v2836_v8 = vpop.f32.mrf.mxu2  ;;  %v2624_v45 = vpop.f32.mrf.mxu0 }
 0x394   : > { %v12055_v52 = vadd.f32 %v2836_v8, %v2621_v62  ;;  %2247 = vmatmul.f32.gmra.mxu1 %v1854_v9 }
 0x395   : > { %8490 = vmatmul.msk.f32.gmra.mxu3 %vm1217_vm0, %v1855_v46 }
 0x396   : > { %2671 = vmatmul.f32.gmra.mxu0 %v1850_v51 }
 0x398   : > { %v2415_v2 = vpop.f32.mrf.mxu3  ;;  %8554 = vmatmul.msk.f32.gmra.mxu2 %vm1217_vm0, %v1851_v0  ;;  %v1858_v0 = vmul.f32 %v9586_v11, %v11748_v49  ;;  %v9588_v49 = vld [vmem:[%s10685_s8 + $0x60] sm:$0xff] }
 0x399   : > { %v12061_v60 = vadd.f32 %v2415_v2, %v2200_v40  ;;  %v2203_v62 = vpop.f32.mrf.mxu1  ;;  %v1859_v2 = vmul.f32 %v9587_v19, %v11755_v33  ;;  %v9589_v33 = vld [vmem:[%s10685_s8 + $0x68] sm:$0xff] }
 0x39b   : > { %v2839_v57 = vpop.f32.mrf.mxu2  ;;  %v2627_v8 = vpop.f32.mrf.mxu0 }
 0x39c   : > { %v12065_v34 = vadd.f32 %v2839_v57, %v2624_v45  ;;  %2250 = vmatmul.f32.gmra.mxu1 %v1856_v16 }
 0x39d   : > { %8491 = vmatmul.msk.f32.gmra.mxu3 %vm1217_vm0, %v1857_v18 }
 0x39e   : > { %2674 = vmatmul.f32.gmra.mxu0 %v1852_v32 }
 0x3a0   : > { %v2418_v51 = vpop.f32.mrf.mxu3  ;;  %8555 = vmatmul.msk.f32.gmra.mxu2 %vm1217_vm0, %v1853_v54  ;;  %v1860_v54 = vmul.f32 %v9588_v49, %v11764_v53  ;;  %v9590_v53 = vld [vmem:[%s10685_s8 + $0x70] sm:$0xff] }
 0x3a1   : > { %v12071_v40 = vadd.f32 %v2418_v51, %v2203_v62  ;;  %v2206_v45 = vpop.f32.mrf.mxu1  ;;  %v1861_v51 = vmul.f32 %v9589_v33, %v11771_v22  ;;  %v9591_v22 = vld [vmem:[%s10685_s8 + $0x78] sm:$0xff] }
 0x3a3   : > { %v2842_v7 = vpop.f32.mrf.mxu2  ;;  %v2630_v57 = vpop.f32.mrf.mxu0 }
 0x3a4   : > { %v12075_v63 = vadd.f32 %v2842_v7, %v2627_v8  ;;  %2253 = vmatmul.f32.gmra.mxu1 %v1858_v0 }
 0x3a5   : > { %8492 = vmatmul.msk.f32.gmra.mxu3 %vm1217_vm0, %v1859_v2 }
 0x3a6   : > { %2677 = vmatmul.f32.gmra.mxu0 %v1854_v9 }
 0x3a8   : > { %v2421_v32 = vpop.f32.mrf.mxu3  ;;  %8556 = vmatmul.msk.f32.gmra.mxu2 %vm1217_vm0, %v1855_v46  ;;  %v1862_v46 = vmul.f32 %v9590_v53, %v11780_v44  ;;  %v9592_v44 = vld [vmem:[%s10685_s8 + $0x80] sm:$0xff] }
 0x3a9   : > { %v12081_v62 = vadd.f32 %v2421_v32, %v2206_v45  ;;  %v2209_v8 = vpop.f32.mrf.mxu1  ;;  %v1863_v32 = vmul.f32 %v9591_v22, %v11787_v20  ;;  %v9593_v20 = vld [vmem:[%s10685_s8 + $0x88] sm:$0xff] }
 0x3ab   : > { %v2845_v11 = vpop.f32.mrf.mxu2  ;;  %v2633_v7 = vpop.f32.mrf.mxu0 }
 0x3ac   : > { %v12085_v19 = vadd.f32 %v2845_v11, %v2630_v57  ;;  %2256 = vmatmul.f32.gmra.mxu1 %v1860_v54 }
 0x3ad   : > { %8493 = vmatmul.msk.f32.gmra.mxu3 %vm1217_vm0, %v1861_v51 }
 0x3ae   : > { %2680 = vmatmul.f32.gmra.mxu0 %v1856_v16 }
 0x3b0   : > { %v2424_v9 = vpop.f32.mrf.mxu3  ;;  %8557 = vmatmul.msk.f32.gmra.mxu2 %vm1217_vm0, %v1857_v18  ;;  %v1864_v18 = vmul.f32 %v9592_v44, %v11796_v3  ;;  %v9594_v3 = vld [vmem:[%s10685_s8 + $0x90] sm:$0xff] }
 0x3b1   : > { %v12091_v45 = vadd.f32 %v2424_v9, %v2209_v8  ;;  %v2212_v57 = vpop.f32.mrf.mxu1  ;;  %v1865_v9 = vmul.f32 %v9593_v20, %v11803_v21  ;;  %v9595_v21 = vld [vmem:[%s10685_s8 + $0x98] sm:$0xff] }
 0x3b3   : > { %v2848_v49 = vpop.f32.mrf.mxu2  ;;  %v2636_v11 = vpop.f32.mrf.mxu0 }
 0x3b4   : > { %v12095_v33 = vadd.f32 %v2848_v49, %v2633_v7  ;;  %2259 = vmatmul.f32.gmra.mxu1 %v1862_v46 }
 0x3b5   : > { %8494 = vmatmul.msk.f32.gmra.mxu3 %vm1217_vm0, %v1863_v32 }
 0x3b6   : > { %2683 = vmatmul.f32.gmra.mxu0 %v1858_v0 }
 0x3b8   : > { %v2427_v16 = vpop.f32.mrf.mxu3  ;;  %8558 = vmatmul.msk.f32.gmra.mxu2 %vm1217_vm0, %v1859_v2  ;;  %v1866_v2 = vmul.f32 %v9594_v3, %v11812_v58  ;;  %v9596_v58 = vld [vmem:[%s10685_s8 + $0xa0] sm:$0xff] }
 0x3b9   : > { %v12101_v8 = vadd.f32 %v2427_v16, %v2212_v57  ;;  %v2215_v7 = vpop.f32.mrf.mxu1  ;;  %v1867_v16 = vmul.f32 %v9595_v21, %v11819_v10  ;;  %v9597_v10 = vld [vmem:[%s10685_s8 + $0xa8] sm:$0xff] }
 0x3bb   : > { %v2851_v53 = vpop.f32.mrf.mxu2  ;;  %v2639_v49 = vpop.f32.mrf.mxu0 }
 0x3bc   : > { %v12105_v22 = vadd.f32 %v2851_v53, %v2636_v11  ;;  %2262 = vmatmul.f32.gmra.mxu1 %v1864_v18 }
 0x3bd   : > { %8495 = vmatmul.msk.f32.gmra.mxu3 %vm1217_vm0, %v1865_v9 }
 0x3be   : > { %2686 = vmatmul.f32.gmra.mxu0 %v1860_v54 }
 0x3c0   : > { %v2430_v0 = vpop.f32.mrf.mxu3  ;;  %8559 = vmatmul.msk.f32.gmra.mxu2 %vm1217_vm0, %v1861_v51  ;;  %v1868_v51 = vmul.f32 %v9596_v58, %v11828_v29  ;;  %v9598_v29 = vld [vmem:[%s10685_s8 + $0xb0] sm:$0xff] }
 0x3c1   : > { %v12111_v57 = vadd.f32 %v2430_v0, %v2215_v7  ;;  %v2218_v11 = vpop.f32.mrf.mxu1  ;;  %v1869_v0 = vmul.f32 %v9597_v10, %v11835_v17  ;;  %v9599_v17 = vld [vmem:[%s10685_s8 + $0xb8] sm:$0xff] }
 0x3c3   : > { %v2854_v44 = vpop.f32.mrf.mxu2  ;;  %v2642_v53 = vpop.f32.mrf.mxu0 }
 0x3c4   : > { %v12115_v20 = vadd.f32 %v2854_v44, %v2639_v49  ;;  %2265 = vmatmul.f32.gmra.mxu1 %v1866_v2 }
 0x3c5   : > { %8496 = vmatmul.msk.f32.gmra.mxu3 %vm1217_vm0, %v1867_v16 }
 0x3c6   : > { %2689 = vmatmul.f32.gmra.mxu0 %v1862_v46 }
 0x3c8   : > { %v2433_v54 = vpop.f32.mrf.mxu3  ;;  %8560 = vmatmul.msk.f32.gmra.mxu2 %vm1217_vm0, %v1863_v32  ;;  %v1870_v32 = vmul.f32 %v9598_v29, %v11844_v39  ;;  %v9600_v39 = vld [vmem:[%s10685_s8 + $0xc0] sm:$0xff] }
 0x3c9   : > { %v12121_v7 = vadd.f32 %v2433_v54, %v2218_v11  ;;  %v2221_v49 = vpop.f32.mrf.mxu1  ;;  %v1871_v54 = vmul.f32 %v9599_v17, %v11851_v48  ;;  %v9601_v48 = vld [vmem:[%s10685_s8 + $0xc8] sm:$0xff] }
 0x3cb   : > { %v2857_v3 = vpop.f32.mrf.mxu2  ;;  %v2645_v44 = vpop.f32.mrf.mxu0 }
 0x3cc   : > { %v12125_v21 = vadd.f32 %v2857_v3, %v2642_v53  ;;  %2268 = vmatmul.f32.gmra.mxu1 %v1868_v51 }
 0x3cd   : > { %8497 = vmatmul.msk.f32.gmra.mxu3 %vm1217_vm0, %v1869_v0 }
 0x3ce   : > { %2692 = vmatmul.f32.gmra.mxu0 %v1864_v18 }
 0x3d0   : > { %v2436_v46 = vpop.f32.mrf.mxu3  ;;  %8561 = vmatmul.msk.f32.gmra.mxu2 %vm1217_vm0, %v1865_v9  ;;  %v1872_v9 = vmul.f32 %v9600_v39, %v11860_v47  ;;  %v9602_v47 = vld [vmem:[%s10685_s8 + $0xd0] sm:$0xff] }
 0x3d1   : > { %v12131_v11 = vadd.f32 %v2436_v46, %v2221_v49  ;;  %v2224_v53 = vpop.f32.mrf.mxu1  ;;  %v1873_v46 = vmul.f32 %v9601_v48, %v11867_v25  ;;  %v9603_v25 = vld [vmem:[%s10685_s8 + $0xd8] sm:$0xff] }
 0x3d3   : > { %v2860_v58 = vpop.f32.mrf.mxu2  ;;  %v2648_v3 = vpop.f32.mrf.mxu0 }
 0x3d4   : > { %v12135_v10 = vadd.f32 %v2860_v58, %v2645_v44  ;;  %2271 = vmatmul.f32.gmra.mxu1 %v1870_v32 }
 0x3d5   : > { %8498 = vmatmul.msk.f32.gmra.mxu3 %vm1217_vm0, %v1871_v54 }
 0x3d6   : > { %2695 = vmatmul.f32.gmra.mxu0 %v1866_v2 }
 0x3d8   : > { %v2439_v18 = vpop.f32.mrf.mxu3  ;;  %8562 = vmatmul.msk.f32.gmra.mxu2 %vm1217_vm0, %v1867_v16  ;;  %v1874_v16 = vmul.f32 %v9602_v47, %v11876_v27  ;;  %v9604_v27 = vld [vmem:[%s10685_s8 + $0xe0] sm:$0xff] }
 0x3d9   : > { %v12141_v49 = vadd.f32 %v2439_v18, %v2224_v53  ;;  %v2227_v44 = vpop.f32.mrf.mxu1  ;;  %v1875_v18 = vmul.f32 %v9603_v25, %v11883_v50  ;;  %v9605_v50 = vld [vmem:[%s10685_s8 + $0xe8] sm:$0xff] }
 0x3db   : > { %v2863_v29 = vpop.f32.mrf.mxu2  ;;  %v2651_v58 = vpop.f32.mrf.mxu0 }
 0x3dc   : > { %v12145_v17 = vadd.f32 %v2863_v29, %v2648_v3  ;;  %2274 = vmatmul.f32.gmra.mxu1 %v1872_v9 }
 0x3dd   : > { %8499 = vmatmul.msk.f32.gmra.mxu3 %vm1217_vm0, %v1873_v46 }
 0x3de   : > { %2698 = vmatmul.f32.gmra.mxu0 %v1868_v51 }
 0x3e0   : > { %v2442_v2 = vpop.f32.mrf.mxu3  ;;  %8563 = vmatmul.msk.f32.gmra.mxu2 %vm1217_vm0, %v1869_v0  ;;  %v1876_v0 = vmul.f32 %v9604_v27, %v11892_v5  ;;  %v9606_v5 = vld [vmem:[%s10685_s8 + $0xf0] sm:$0xff] }
 0x3e1   : > { %v12151_v53 = vadd.f32 %v2442_v2, %v2227_v44  ;;  %v2230_v3 = vpop.f32.mrf.mxu1  ;;  %v1877_v2 = vmul.f32 %v9605_v50, %v11899_v59  ;;  %v9607_v59 = vld [vmem:[%s10685_s8 + $0xf8] sm:$0xff] }
 0x3e3   : > { %v2866_v39 = vpop.f32.mrf.mxu2  ;;  %v2654_v29 = vpop.f32.mrf.mxu0 }
 0x3e4   : > { %v12155_v48 = vadd.f32 %v2866_v39, %v2651_v58  ;;  %2277 = vmatmul.f32.gmra.mxu1 %v1874_v16 }
 0x3e5   : > { %8500 = vmatmul.msk.f32.gmra.mxu3 %vm1217_vm0, %v1875_v18 }
 0x3e6   : > { %2701 = vmatmul.f32.gmra.mxu0 %v1870_v32 }
 0x3e8   : > { %v2445_v51 = vpop.f32.mrf.mxu3  ;;  %8564 = vmatmul.msk.f32.gmra.mxu2 %vm1217_vm0, %v1871_v54  ;;  %v1878_v54 = vmul.f32 %v9606_v5, %v11908_v31  ;;  %v9608_v31 = vld [vmem:[%s10685_s8 + $0x100] sm:$0xff] }
 0x3e9   : > { %v12161_v44 = vadd.f32 %v2445_v51, %v2230_v3  ;;  %v2233_v58 = vpop.f32.mrf.mxu1  ;;  %v1879_v51 = vmul.f32 %v9607_v59, %v11915_v4  ;;  %v9609_v4 = vld [vmem:[%s10685_s8 + $0x108] sm:$0xff] }
 0x3eb   : > { %v2869_v47 = vpop.f32.mrf.mxu2  ;;  %v2657_v39 = vpop.f32.mrf.mxu0 }
 0x3ec   : > { %v12165_v25 = vadd.f32 %v2869_v47, %v2654_v29  ;;  %2280 = vmatmul.f32.gmra.mxu1 %v1876_v0 }
 0x3ed   : > { %8501 = vmatmul.msk.f32.gmra.mxu3 %vm1217_vm0, %v1877_v2 }
 0x3ee   : > { %2704 = vmatmul.f32.gmra.mxu0 %v1872_v9 }
 0x3f0   : > { %v2448_v32 = vpop.f32.mrf.mxu3  ;;  %8565 = vmatmul.msk.f32.gmra.mxu2 %vm1217_vm0, %v1873_v46  ;;  %v1880_v46 = vmul.f32 %v9608_v31, %v11924_v13  ;;  %v9610_v13 = vld [vmem:[%s10685_s8 + $0x110] sm:$0xff] }
 0x3f1   : > { %v12171_v3 = vadd.f32 %v2448_v32, %v2233_v58  ;;  %v2236_v29 = vpop.f32.mrf.mxu1  ;;  %v1881_v32 = vmul.f32 %v9609_v4, %v11931_v35  ;;  %v9611_v35 = vld [vmem:[%s10685_s8 + $0x118] sm:$0xff] }
 0x3f3   : > { %v2872_v27 = vpop.f32.mrf.mxu2  ;;  %v2660_v47 = vpop.f32.mrf.mxu0 }
 0x3f4   : > { %v12175_v50 = vadd.f32 %v2872_v27, %v2657_v39  ;;  %2283 = vmatmul.f32.gmra.mxu1 %v1878_v54 }
 0x3f5   : > { %8502 = vmatmul.msk.f32.gmra.mxu3 %vm1217_vm0, %v1879_v51 }
 0x3f6   : > { %2707 = vmatmul.f32.gmra.mxu0 %v1874_v16 }
 0x3f8   : > { %v2451_v9 = vpop.f32.mrf.mxu3  ;;  %8566 = vmatmul.msk.f32.gmra.mxu2 %vm1217_vm0, %v1875_v18  ;;  %v1882_v18 = vmul.f32 %v9610_v13, %v11940_v30  ;;  %v9612_v30 = vld [vmem:[%s10685_s8 + $0x120] sm:$0xff] }
 0x3f9   : > { %v12181_v58 = vadd.f32 %v2451_v9, %v2236_v29  ;;  %v2239_v39 = vpop.f32.mrf.mxu1  ;;  %v1883_v9 = vmul.f32 %v9611_v35, %v11947_v26  ;;  %v9613_v26 = vld [vmem:[%s10685_s8 + $0x128] sm:$0xff] }
 0x3fb   : > { %v2875_v5 = vpop.f32.mrf.mxu2  ;;  %v2663_v27 = vpop.f32.mrf.mxu0 }
 0x3fc   : > { %v12185_v59 = vadd.f32 %v2875_v5, %v2660_v47  ;;  %2286 = vmatmul.f32.gmra.mxu1 %v1880_v46 }
 0x3fd   : > { %8503 = vmatmul.msk.f32.gmra.mxu3 %vm1217_vm0, %v1881_v32 }
 0x3fe   : > { %2710 = vmatmul.f32.gmra.mxu0 %v1876_v0 }
 0x400   : > { %v2454_v16 = vpop.f32.mrf.mxu3  ;;  %8567 = vmatmul.msk.f32.gmra.mxu2 %vm1217_vm0, %v1877_v2  ;;  %v1884_v2 = vmul.f32 %v9612_v30, %v11956_v24  ;;  %v9614_v24 = vld [vmem:[%s10685_s8 + $0x130] sm:$0xff] }
 0x401   : > { %v12191_v29 = vadd.f32 %v2454_v16, %v2239_v39  ;;  %v2242_v47 = vpop.f32.mrf.mxu1  ;;  %v1885_v16 = vmul.f32 %v9613_v26, %v11963_v56  ;;  %v9615_v56 = vld [vmem:[%s10685_s8 + $0x138] sm:$0xff] }
 0x403   : > { %15598 = vst [vmem:[#allocation138_spill] sm:$0xff] %v12191_v29  ;;  %v2878_v31 = vpop.f32.mrf.mxu2  ;;  %v2666_v5 = vpop.f32.mrf.mxu0 }
 0x404   : > { %v12195_v4 = vadd.f32 %v2878_v31, %v2663_v27  ;;  %2289 = vmatmul.f32.gmra.mxu1 %v1882_v18 }
 0x405   : > { %8504 = vmatmul.msk.f32.gmra.mxu3 %vm1217_vm0, %v1883_v9 }
 0x406   : > { %2713 = vmatmul.f32.gmra.mxu0 %v1878_v54 }
 0x408   : > { %v2457_v0 = vpop.f32.mrf.mxu3  ;;  %8568 = vmatmul.msk.f32.gmra.mxu2 %vm1217_vm0, %v1879_v51  ;;  %v1886_v51 = vmul.f32 %v9614_v24, %v11972_v36  ;;  %v9616_v36 = vld [vmem:[%s10685_s8 + $0x140] sm:$0xff] }
 0x409   : > { %v12201_v39 = vadd.f32 %v2457_v0, %v2242_v47  ;;  %v2245_v27 = vpop.f32.mrf.mxu1  ;;  %v1887_v0 = vmul.f32 %v9615_v56, %v11979_v37  ;;  %v9617_v37 = vld [vmem:[%s10685_s8 + $0x148] sm:$0xff] }
 0x40b   : > { %15599 = vst [vmem:[#allocation139_spill] sm:$0xff] %v12201_v39  ;;  %v2881_v13 = vpop.f32.mrf.mxu2  ;;  %v2669_v31 = vpop.f32.mrf.mxu0  ;;  %v15644_v39 = vld [vmem:[#allocation111_spill] sm:$0xff] }
 0x40c   : > { %v12205_v35 = vadd.f32 %v2881_v13, %v2666_v5  ;;  %2292 = vmatmul.f32.gmra.mxu1 %v1884_v2 }
 0x40d   : > { %8505 = vmatmul.msk.f32.gmra.mxu3 %vm1217_vm0, %v1885_v16 }
 0x40e   : > { %2716 = vmatmul.f32.gmra.mxu0 %v1880_v46 }
 0x410   : > { %v2460_v54 = vpop.f32.mrf.mxu3  ;;  %8569 = vmatmul.msk.f32.gmra.mxu2 %vm1217_vm0, %v1881_v32  ;;  %v1888_v32 = vmul.f32 %v9616_v36, %v11988_v61 }
 0x411   : > { %v12211_v47 = vadd.f32 %v2460_v54, %v2245_v27  ;;  %v2248_v5 = vpop.f32.mrf.mxu1  ;;  %v1889_v54 = vmul.f32 %v9617_v37, %v11995_v28 }
 0x413   : > { %15600 = vst [vmem:[#allocation140_spill] sm:$0xff] %v12211_v47  ;;  %v2884_v30 = vpop.f32.mrf.mxu2  ;;  %v2672_v13 = vpop.f32.mrf.mxu0  ;;  %v15645_v47 = vld [vmem:[#allocation45_spill] sm:$0xff] }
 0x414   : > { %v12215_v26 = vadd.f32 %v2884_v30, %v2669_v31  ;;  %2295 = vmatmul.f32.gmra.mxu1 %v1886_v51 }
 0x415   : > { %8506 = vmatmul.msk.f32.gmra.mxu3 %vm1217_vm0, %v1887_v0 }
 0x416   : > { %15601 = vst [vmem:[#allocation141_spill] sm:$0xff] %v12215_v26  ;;  %2719 = vmatmul.f32.gmra.mxu0 %v1882_v18  ;;  %v1045_v26 = vld [vmem:[#allocation6 + $0x10] sm:$0xff] }
 0x418   : > { %v2463_v46 = vpop.f32.mrf.mxu3  ;;  %8570 = vmatmul.msk.f32.gmra.mxu2 %vm1217_vm0, %v1883_v9  ;;  %v9618_v9 = vld [vmem:[%s10685_s8 + $0x150] sm:$0xff] }
 0x419   : > { %v12221_v27 = vadd.f32 %v2463_v46, %v2248_v5  ;;  %v2251_v31 = vpop.f32.mrf.mxu1  ;;  %v1890_v61 = vmul.f32 %v9618_v9, %v12004_v43  ;;  %v9619_v46 = vld [vmem:[%s10685_s8 + $0x158] sm:$0xff]  ;;  %s953_s8 = scalar_lea.vmem %s16178_s4, %s16184_s21 }
 0x41a   : > { %v1891_v28 = vmul.f32 %v9619_v46, %v12011_v55 }
 0x41b   : > { %15602 = vst [vmem:[#allocation142_spill] sm:$0xff] %v12221_v27  ;;  %v2887_v24 = vpop.f32.mrf.mxu2  ;;  %v2675_v30 = vpop.f32.mrf.mxu0 }
 0x41c   : > { %v12225_v56 = vadd.f32 %v2887_v24, %v2672_v13  ;;  %2298 = vmatmul.f32.gmra.mxu1 %v1888_v32 }
 0x41d   : > { %8507 = vmatmul.msk.f32.gmra.mxu3 %vm1217_vm0, %v1889_v54 }
 0x41e   : > { %15603 = vst [vmem:[#allocation143_spill] sm:$0xff] %v12225_v56  ;;  %2722 = vmatmul.f32.gmra.mxu0 %v1884_v2  ;;  %v1043_v2 = vld [vmem:[#allocation6] sm:$0xff]  ;;  %v1044_v56 = vld [vmem:[#allocation6 + $0x8] sm:$0xff] }
 0x41f   : > { %v12239_v43 = vpack.c.bf16 %v1045_v26, %v1043_v2  ;;  %v15614_v2 = vld [vmem:[#allocation121_spill] sm:$0xff] }
 0x420   : > { %v2466_v18 = vpop.f32.mrf.mxu3  ;;  %8571 = vmatmul.msk.f32.gmra.mxu2 %vm1217_vm0, %v1885_v16  ;;  %v1046_v16 = vld [vmem:[#allocation6 + $0x18] sm:$0xff] }
 0x421   : > { %v12231_v5 = vadd.f32 %v2466_v18, %v2251_v31  ;;  %v2254_v36 = vpop.f32.mrf.mxu1  ;;  %v12243_v55 = vpack.c.bf16 %v1046_v16, %v1044_v56  ;;  %v15611_v56 = vld [vmem:[#allocation112_spill] sm:$0xff] }
 0x422   : > { %v15616_v16 = vld [vmem:[#allocation108_spill] sm:$0xff] }
 0x423   : > { %15604 = vst [vmem:[#allocation144_spill] sm:$0xff] %v12231_v5  ;;  %v2890_v37 = vpop.f32.mrf.mxu2  ;;  %v2678_v24 = vpop.f32.mrf.mxu0 }
 0x424   : > { %v12235_v13 = vadd.f32 %v2890_v37, %v2675_v30  ;;  %2301 = vmatmul.f32.gmra.mxu1 %v1890_v61  ;;  %v15612_v37 = vld [vmem:[#allocation123_spill] sm:$0xff] }
 0x425   : > { %8508 = vmatmul.msk.f32.gmra.mxu3 %vm1217_vm0, %v1891_v28 }
 0x426   : > { %15605 = vst [vmem:[#allocation145_spill] sm:$0xff] %v12235_v13  ;;  %2725 = vmatmul.f32.gmra.mxu0 %v1886_v51  ;;  %v15608_v51 = vld [vmem:[#allocation114_spill] sm:$0xff] }
 0x428   : > { %v2469_v29 = vpop.f32.mrf.mxu3  ;;  %8572 = vmatmul.msk.f32.gmra.mxu2 %vm1217_vm0, %v1887_v0 }
 0x429   : > { %v12241_v31 = vadd.f32 %v2469_v29, %v2254_v36  ;;  %v2257_v30 = vpop.f32.mrf.mxu1  ;;  %v15609_v29 = vld [vmem:[#allocation125_spill] sm:$0xff] }
 0x42b   : > { %15606 = vst [vmem:[#allocation146_spill] sm:$0xff] %v12241_v31  ;;  %v2893_v18 = vpop.f32.mrf.mxu2  ;;  %v2681_v46 = vpop.f32.mrf.mxu0  ;;  %v15656_v31 = vld [vmem:[#allocation64_spill] sm:$0xff] }
 0x42c   : > { %v12245_v9 = vadd.f32 %v2893_v18, %v2678_v24  ;;  %3013 = vmatmul.bf16.vlgmr.msra.gmra.mxu1 %v12239_v43  ;;  %v15613_v24 = vld [vmem:[#allocation110_spill] sm:$0xff]  ;;  %v1047_v18 = vld [vmem:[#allocation6 + $0x20] sm:$0xff] }
 0x42d   : > { %8575 = vmatmul.msk.bf16.vlgmr.msra.gmra.mxu3 %vm1217_vm0, %v12243_v55  ;;  %3594 = vmatpush.msra.mxu1 %v11832_v23 }
 0x42e   : > { %15607 = vst [vmem:[#allocation147_spill] sm:$0xff] %v12245_v9  ;;  %3684 = vmatpush.msra.mxu3 %v11928_v42  ;;  %2728 = vmatmul.f32.gmra.mxu0 %v1888_v32 }
 0x42f   : > { %3595 = vmatpush.msra.mxu1 %v15608_v51  ;;  %v1049_v51 = vld [vmem:[#allocation6 + $0x30] sm:$0xff] }
 0x430   : > { %3685 = vmatpush.msra.mxu3 %v15609_v29  ;;  %v2472_v0 = vpop.f32.mrf.mxu3  ;;  %8573 = vmatmul.msk.f32.gmra.mxu2 %vm1217_vm0, %v1889_v54  ;;  %v15617_v54 = vld [vmem:[#allocation119_spill] sm:$0xff] }
 0x431   : > { %v12255_v26 = vadd.f32 %v2472_v0, %v2257_v30  ;;  %3596 = vmatpush.msra.mxu1 %v15611_v56  ;;  %v2260_v36 = vpop.f32.mrf.mxu1  ;;  %v1048_v30 = vld [vmem:[#allocation6 + $0x28] sm:$0xff]  ;;  %v1050_v29 = vld [vmem:[#allocation6 + $0x38] sm:$0xff] }
 0x432   : > { %3686 = vmatpush.msra.mxu3 %v15612_v37  ;;  %v15618_v0 = vld [vmem:[#allocation67_spill] sm:$0xff]  ;;  %v15619_v56 = vld [vmem:[#allocation117_spill] sm:$0xff] }
 0x433   : > { %15610 = vst [vmem:[#allocation114_spill] sm:$0xff] %v12255_v26  ;;  %3597 = vmatpush.msra.mxu1 %v15613_v24  ;;  %v2896_v23 = vpop.f32.mrf.mxu2  ;;  %v2684_v32 = vpop.f32.mrf.mxu0  ;;  %v12268_v24 = vpack.c.bf16 %v1049_v51, %v1047_v18  ;;  %v15626_v51 = vld [vmem:[#allocation120_spill] sm:$0xff] }
 0x434   : > { %3687 = vmatpush.msra.mxu3 %v15614_v2  ;;  %v12261_v42 = vadd.f32 %v2896_v23, %v2681_v46  ;;  %v15621_v23 = vld [vmem:[#allocation66_spill] sm:$0xff]  ;;  %v12273_v2 = vpack.c.bf16 %v1050_v29, %v1048_v30  ;;  %v15629_v30 = vld [vmem:[#allocation131_spill] sm:$0xff] }
 0x435   : > { %3598 = vmatpush.msra.mxu1 %v15616_v16 }
 0x436   : > { %15615 = vst [vmem:[#allocation125_spill] sm:$0xff] %v12261_v42  ;;  %3688 = vmatpush.msra.mxu3 %v15617_v54  ;;  %2731 = vmatmul.f32.gmra.mxu0 %v1890_v61  ;;  %v15622_v54 = vld [vmem:[#allocation61_spill] sm:$0xff] }
 0x437   : > { %3599 = vmatpush.msra.mxu1 %v15618_v0  ;;  %v15630_v0 = vld [vmem:[#allocation118_spill] sm:$0xff]  ;;  %v1052_v42 = vld [vmem:[#allocation6 + $0x48] sm:$0xff] }
 0x438   : > { %3689 = vmatpush.msra.mxu3 %v15619_v56  ;;  %v2475_v37 = vpop.f32.mrf.mxu3  ;;  %8574 = vmatmul.msk.f32.gmra.mxu2 %vm1217_vm0, %v1891_v28  ;;  %v15624_v28 = vld [vmem:[#allocation60_spill] sm:$0xff]  ;;  %v15631_v56 = vld [vmem:[#allocation50_spill] sm:$0xff] }
 0x439   : > { %v12270_v46 = vadd.f32 %v2475_v37, %v2260_v36  ;;  %3600 = vmatpush.msra.mxu1 %v15621_v23  ;;  %v2263_v16 = vpop.f32.mrf.mxu1  ;;  %v15625_v36 = vld [vmem:[#allocation55_spill] sm:$0xff]  ;;  %v15632_v37 = vld [vmem:[#allocation129_spill] sm:$0xff] }
 0x43b   : > { %15620 = vst [vmem:[#allocation112_spill] sm:$0xff] %v12270_v46  ;;  %3601 = vmatpush.msra.mxu1 %v15622_v54  ;;  %v2899_v13 = vpop.f32.mrf.mxu2  ;;  %v2687_v61 = vpop.f32.mrf.mxu0 }
 0x43c   : > { %v12276_v9 = vadd.f32 %v2899_v13, %v2684_v32  ;;  %3018 = vmatmul.bf16.gmra.mxu1 %v12268_v24  ;;  %v15628_v32 = vld [vmem:[#allocation54_spill] sm:$0xff] }
 0x43d   : > { %8576 = vmatmul.msk.bf16.gmra.mxu3 %vm1217_vm0, %v12273_v2  ;;  %3602 = vmatpush.msra.mxu1 %v15624_v28  ;;  %v15634_v28 = vld [vmem:[#allocation116_spill] sm:$0xff] }
 0x43e   : > { %15623 = vst [vmem:[#allocation123_spill] sm:$0xff] %v12276_v9  ;;  %3139 = vmatmul.bf16.vlgmr.msra.gmra.mxu0 %v12239_v43  ;;  %v15638_v9 = vld [vmem:[#allocation46_spill] sm:$0xff] }
 0x43f   : > { %3603 = vmatpush.msra.mxu1 %v15625_v36  ;;  %3754 = vmatpush.msra.mxu0 %v15626_v51  ;;  %v15635_v51 = vld [vmem:[#allocation49_spill] sm:$0xff] }
 0x440   : > { %v2478_v18 = vpop.f32.mrf.mxu3  ;;  %8586 = vmatmul.msk.bf16.vlgmr.msra.gmra.mxu2 %vm1217_vm0, %v12243_v55 }
 0x441   : > { %v12287_v13 = vadd.f32 %v2478_v18, %v2263_v16  ;;  %3604 = vmatpush.msra.mxu1 %v15628_v32  ;;  %3844 = vmatpush.msra.mxu2 %v15629_v30  ;;  %v2266_v29 = vpop.f32.mrf.mxu1  ;;  %v15636_v16 = vld [vmem:[#allocation127_spill] sm:$0xff]  ;;  %v1053_v32 = vld [vmem:[#allocation6 + $0x50] sm:$0xff] }
 0x442   : > { %3755 = vmatpush.msra.mxu0 %v15630_v0  ;;  %v1051_v18 = vld [vmem:[#allocation6 + $0x40] sm:$0xff]  ;;  %v1054_v0 = vld [vmem:[#allocation6 + $0x58] sm:$0xff] }
 0x443   : > { %15627 = vst [vmem:[#allocation110_spill] sm:$0xff] %v12287_v13  ;;  %3605 = vmatpush.msra.mxu1 %v15631_v56  ;;  %3845 = vmatpush.msra.mxu2 %v15632_v37  ;;  %v2902_v23 = vpop.f32.mrf.mxu2  ;;  %v2690_v36 = vpop.f32.mrf.mxu0  ;;  %v15637_v30 = vld [vmem:[#allocation115_spill] sm:$0xff]  ;;  %v15639_v56 = vld [vmem:[#allocation126_spill] sm:$0xff] }
 0x444   : > { %v12294_v54 = vadd.f32 %v2902_v23, %v2687_v61  ;;  %3756 = vmatpush.msra.mxu0 %v15634_v28  ;;  %v15640_v61 = vld [vmem:[#allocation113_spill] sm:$0xff]  ;;  %v12303_v23 = vpack.c.bf16 %v1053_v32, %v1051_v18 }
 0x445   : > { %3606 = vmatpush.msra.mxu1 %v15635_v51  ;;  %3846 = vmatpush.msra.mxu2 %v15636_v16  ;;  %v15642_v51 = vld [vmem:[#allocation52_spill] sm:$0xff] }
 0x446   : > { %15633 = vst [vmem:[#allocation121_spill] sm:$0xff] %v12294_v54  ;;  %3757 = vmatpush.msra.mxu0 %v15637_v30  ;;  %v15643_v16 = vld [vmem:[#allocation124_spill] sm:$0xff]  ;;  %v12309_v54 = vpack.c.bf16 %v1054_v0, %v1052_v42  ;;  %v15649_v42 = vld [vmem:[#allocation77_spill] sm:$0xff] }
 0x447   : > { %3607 = vmatpush.msra.mxu1 %v15638_v9  ;;  %3847 = vmatpush.msra.mxu2 %v15639_v56  ;;  %v15646_v9 = vld [vmem:[#allocation122_spill] sm:$0xff]  ;;  %v15652_v0 = vld [vmem:[#allocation73_spill] sm:$0xff] }
 0x448   : > { %v2481_v37 = vpop.f32.mrf.mxu3  ;;  %3758 = vmatpush.msra.mxu0 %v15640_v61 }
 0x449   : > { %v12305_v28 = vadd.f32 %v2481_v37, %v2266_v29  ;;  %3608 = vmatpush.msra.mxu1 %v15642_v51  ;;  %3848 = vmatpush.msra.mxu2 %v15643_v16  ;;  %v2269_v30 = vpop.f32.mrf.mxu1  ;;  %v15648_v29 = vld [vmem:[#allocation109_spill] sm:$0xff]  ;;  %v15654_v51 = vld [vmem:[#allocation70_spill] sm:$0xff] }
 0x44a   : > { %3759 = vmatpush.msra.mxu0 %v15644_v39 }
 0x44b   : > { %15641 = vst [vmem:[#allocation108_spill] sm:$0xff] %v12305_v28  ;;  %3609 = vmatpush.msra.mxu1 %v15645_v47  ;;  %3849 = vmatpush.msra.mxu2 %v15646_v9  ;;  %v2905_v56 = vpop.f32.mrf.mxu2  ;;  %v2693_v18 = vpop.f32.mrf.mxu0  ;;  %v15650_v47 = vld [vmem:[#allocation74_spill] sm:$0xff]  ;;  %v1055_v9 = vld [vmem:[#allocation6 + $0x60] sm:$0xff] }
 0x44c   : > { %v12314_v27 = vadd.f32 %v2905_v56, %v2690_v36  ;;  %3023 = vmatmul.bf16.gmra.mxu1 %v12303_v23  ;;  %3760 = vmatpush.msra.mxu0 %v15648_v29  ;;  %v1057_v56 = vld [vmem:[#allocation6 + $0x70] sm:$0xff] }
 0x44d   : > { %8577 = vmatmul.msk.bf16.gmra.mxu3 %vm1217_vm0, %v12309_v54  ;;  %v15655_v29 = vld [vmem:[#allocation69_spill] sm:$0xff] }
 0x44e   : > { %15647 = vst [vmem:[#allocation119_spill] sm:$0xff] %v12314_v27  ;;  %3761 = vmatpush.msra.mxu0 %v15649_v42  ;;  %v1056_v42 = vld [vmem:[#allocation6 + $0x68] sm:$0xff]  ;;  %v1058_v27 = vld [vmem:[#allocation6 + $0x78] sm:$0xff] }
 0x44f   : > { %3144 = vmatmul.bf16.gmra.mxu0 %v12268_v24 }
 0x450   : > { %v2484_v39 = vpop.f32.mrf.mxu3  ;;  %8587 = vmatmul.msk.bf16.gmra.mxu2 %vm1217_vm0, %v12273_v2  ;;  %3762 = vmatpush.msra.mxu0 %v15650_v47  ;;  %v12337_v47 = vpack.c.bf16 %v1058_v27, %v1056_v42  ;;  %v1059_v42 = vld [vmem:[#allocation6 + $0x80] sm:$0xff] }
 0x451   : > { %v12325_v36 = vadd.f32 %v2484_v39, %v2269_v30  ;;  %v2272_v32 = vpop.f32.mrf.mxu1  ;;  %v12333_v30 = vpack.c.bf16 %v1057_v56, %v1055_v9 }
 0x452   : > { %3763 = vmatpush.msra.mxu0 %v15652_v0  ;;  %v15658_v0 = vld [vmem:[#allocation63_spill] sm:$0xff] }
 0x453   : > { %15651 = vst [vmem:[#allocation67_spill] sm:$0xff] %v12325_v36  ;;  %v2908_v37 = vpop.f32.mrf.mxu2  ;;  %v2696_v16 = vpop.f32.mrf.mxu0 }
 0x454   : > { %v12328_v61 = vadd.f32 %v2908_v37, %v2693_v18  ;;  %3764 = vmatpush.msra.mxu0 %v15654_v51 }
 0x456   : > { %15653 = vst [vmem:[#allocation117_spill] sm:$0xff] %v12328_v61  ;;  %3765 = vmatpush.msra.mxu0 %v15655_v29  ;;  %v15660_v29 = vld [vmem:[#allocation58_spill] sm:$0xff] }
 0x458   : > { %v2487_v5 = vpop.f32.mrf.mxu3  ;;  %3766 = vmatpush.msra.mxu0 %v15656_v31  ;;  %v15661_v31 = vld [vmem:[#allocation57_spill] sm:$0xff] }
 0x459   : > { %v12335_v39 = vadd.f32 %v2487_v5, %v2272_v32  ;;  %v2275_v18 = vpop.f32.mrf.mxu1 }
 0x45a   : > { %3767 = vmatpush.msra.mxu0 %v15658_v0  ;;  %v1061_v0 = vld [vmem:[#allocation6 + $0x90] sm:$0xff] }
 0x45b   : > { %15657 = vst [vmem:[#allocation66_spill] sm:$0xff] %v12335_v39  ;;  %v2911_v37 = vpop.f32.mrf.mxu2  ;;  %v2699_v61 = vpop.f32.mrf.mxu0  ;;  %v12354_v26 = vpack.c.bf16 %v1061_v0, %v1059_v42  ;;  %v1065_v0 = vld [vmem:[#allocation6 + $0xb0] sm:$0xff] }
 0x45c   : > { %v12340_v51 = vadd.f32 %v2911_v37, %v2696_v16  ;;  %3028 = vmatmul.bf16.gmra.mxu1 %v12333_v30  ;;  %3768 = vmatpush.msra.mxu0 %v15660_v29  ;;  %v1060_v37 = vld [vmem:[#allocation6 + $0x88] sm:$0xff]  ;;  %v1062_v29 = vld [vmem:[#allocation6 + $0x98] sm:$0xff] }
 0x45d   : > { %8578 = vmatmul.msk.bf16.gmra.mxu3 %vm1217_vm0, %v12337_v47  ;;  %15664 = vst [vmem:[#allocation120_spill] sm:$0xff] %v12354_v26  ;;  %v12358_v46 = vpack.c.bf16 %v1062_v29, %v1060_v37  ;;  %v1064_v37 = vld [vmem:[#allocation6 + $0xa8] sm:$0xff]  ;;  %v1066_v29 = vld [vmem:[#allocation6 + $0xb8] sm:$0xff] }
 0x45e   : > { %15659 = vst [vmem:[#allocation61_spill] sm:$0xff] %v12340_v51  ;;  %3769 = vmatpush.msra.mxu0 %v15661_v31  ;;  %v12376_v39 = vpack.c.bf16 %v1066_v29, %v1064_v37  ;;  %v1068_v37 = vld [vmem:[#allocation6 + $0xc8] sm:$0xff]  ;;  %v1070_v29 = vld [vmem:[#allocation6 + $0xd8] sm:$0xff] }
 0x45f   : > { %3149 = vmatmul.bf16.gmra.mxu0 %v12303_v23  ;;  %15666 = vst [vmem:[#allocation131_spill] sm:$0xff] %v12358_v46 }
 0x460   : > { %v2490_v27 = vpop.f32.mrf.mxu3  ;;  %8588 = vmatmul.msk.bf16.gmra.mxu2 %vm1217_vm0, %v12309_v54  ;;  %15672 = vst [vmem:[#allocation127_spill] sm:$0xff] %v12376_v39 }
 0x461   : > { %v12350_v5 = vadd.f32 %v2490_v27, %v2275_v18  ;;  %v2278_v32 = vpop.f32.mrf.mxu1 }
 0x463   : > { %15662 = vst [vmem:[#allocation60_spill] sm:$0xff] %v12350_v5  ;;  %v2914_v16 = vpop.f32.mrf.mxu2  ;;  %v2702_v56 = vpop.f32.mrf.mxu0 }
 0x464   : > { %v12352_v9 = vadd.f32 %v2914_v16, %v2699_v61 }
 0x466   : > { %15663 = vst [vmem:[#allocation55_spill] sm:$0xff] %v12352_v9 }
 0x468   : > { %v2493_v51 = vpop.f32.mrf.mxu3 }
 0x469   : > { %v12356_v31 = vadd.f32 %v2493_v51, %v2278_v32  ;;  %v2281_v13 = vpop.f32.mrf.mxu1 }
 0x46b   : > { %15665 = vst [vmem:[#allocation54_spill] sm:$0xff] %v12356_v31  ;;  %v2917_v28 = vpop.f32.mrf.mxu2  ;;  %v2705_v61 = vpop.f32.mrf.mxu0 }
 0x46c   : > { %v12360_v18 = vadd.f32 %v2917_v28, %v2702_v56  ;;  %3033 = vmatmul.bf16.gmra.mxu1 %v12354_v26  ;;  %v1063_v56 = vld [vmem:[#allocation6 + $0xa0] sm:$0xff] }
 0x46d   : > { %8579 = vmatmul.msk.bf16.gmra.mxu3 %vm1217_vm0, %v12358_v46 }
 0x46e   : > { %15667 = vst [vmem:[#allocation118_spill] sm:$0xff] %v12360_v18  ;;  %v12372_v18 = vpack.c.bf16 %v1065_v0, %v1063_v56  ;;  %v1069_v0 = vld [vmem:[#allocation6 + $0xd0] sm:$0xff] }
 0x46f   : > { %3154 = vmatmul.bf16.gmra.mxu0 %v12333_v30 }
 0x470   : > { %v2496_v27 = vpop.f32.mrf.mxu3  ;;  %8589 = vmatmul.msk.bf16.gmra.mxu2 %vm1217_vm0, %v12337_v47  ;;  %15670 = vst [vmem:[#allocation116_spill] sm:$0xff] %v12372_v18 }
 0x471   : > { %v12368_v51 = vadd.f32 %v2496_v27, %v2281_v13  ;;  %v2284_v32 = vpop.f32.mrf.mxu1 }
 0x473   : > { %15668 = vst [vmem:[#allocation50_spill] sm:$0xff] %v12368_v51  ;;  %v2920_v16 = vpop.f32.mrf.mxu2  ;;  %v2708_v28 = vpop.f32.mrf.mxu0 }
 0x474   : > { %v12370_v42 = vadd.f32 %v2920_v16, %v2705_v61 }
 0x476   : > { %15669 = vst [vmem:[#allocation129_spill] sm:$0xff] %v12370_v42 }
 0x478   : > { %v2499_v9 = vpop.f32.mrf.mxu3 }
 0x479   : > { %v12374_v36 = vadd.f32 %v2499_v9, %v2284_v32  ;;  %v2287_v5 = vpop.f32.mrf.mxu1 }
 0x47b   : > { %15671 = vst [vmem:[#allocation49_spill] sm:$0xff] %v12374_v36  ;;  %v2923_v31 = vpop.f32.mrf.mxu2  ;;  %v2711_v61 = vpop.f32.mrf.mxu0  ;;  %v12394_v36 = vpack.c.bf16 %v1070_v29, %v1068_v37  ;;  %v1072_v37 = vld [vmem:[#allocation6 + $0xe8] sm:$0xff]  ;;  %v1074_v29 = vld [vmem:[#allocation6 + $0xf8] sm:$0xff] }
 0x47c   : > { %v12378_v13 = vadd.f32 %v2923_v31, %v2708_v28  ;;  %3038 = vmatmul.bf16.gmra.mxu1 %v12372_v18  ;;  %v1067_v28 = vld [vmem:[#allocation6 + $0xc0] sm:$0xff] }
 0x47d   : > { %8580 = vmatmul.msk.bf16.gmra.mxu3 %vm1217_vm0, %v12376_v39  ;;  %15678 = vst [vmem:[#allocation124_spill] sm:$0xff] %v12394_v36 }
 0x47e   : > { %15673 = vst [vmem:[#allocation115_spill] sm:$0xff] %v12378_v13  ;;  %v12390_v13 = vpack.c.bf16 %v1069_v0, %v1067_v28  ;;  %v1073_v0 = vld [vmem:[#allocation6 + $0xf0] sm:$0xff] }
 0x47f   : > { %3159 = vmatmul.bf16.gmra.mxu0 %v12354_v26 }
 0x480   : > { %v2502_v27 = vpop.f32.mrf.mxu3  ;;  %8590 = vmatmul.msk.bf16.gmra.mxu2 %vm1217_vm0, %v12358_v46  ;;  %15676 = vst [vmem:[#allocation113_spill] sm:$0xff] %v12390_v13 }
 0x481   : > { %v12386_v9 = vadd.f32 %v2502_v27, %v2287_v5  ;;  %v2290_v32 = vpop.f32.mrf.mxu1 }
 0x483   : > { %15674 = vst [vmem:[#allocation46_spill] sm:$0xff] %v12386_v9  ;;  %v2926_v16 = vpop.f32.mrf.mxu2  ;;  %v2714_v31 = vpop.f32.mrf.mxu0 }
 0x484   : > { %v12388_v56 = vadd.f32 %v2926_v16, %v2711_v61 }
 0x486   : > { %15675 = vst [vmem:[#allocation126_spill] sm:$0xff] %v12388_v56 }
 0x488   : > { %v2505_v42 = vpop.f32.mrf.mxu3 }
 0x489   : > { %v12392_v51 = vadd.f32 %v2505_v42, %v2290_v32  ;;  %v2293_v26 = vpop.f32.mrf.mxu1 }
 0x48b   : > { %15677 = vst [vmem:[#allocation52_spill] sm:$0xff] %v12392_v51  ;;  %v2929_v46 = vpop.f32.mrf.mxu2  ;;  %v2717_v61 = vpop.f32.mrf.mxu0  ;;  %v12412_v51 = vpack.c.bf16 %v1074_v29, %v1072_v37  ;;  %v1076_v37 = vld [vmem:[#allocation6 + $0x108] sm:$0xff]  ;;  %v1078_v29 = vld [vmem:[#allocation6 + $0x118] sm:$0xff] }
 0x48c   : > { %v12396_v5 = vadd.f32 %v2929_v46, %v2714_v31  ;;  %3043 = vmatmul.bf16.gmra.mxu1 %v12390_v13  ;;  %v1071_v31 = vld [vmem:[#allocation6 + $0xe0] sm:$0xff] }
 0x48d   : > { %8581 = vmatmul.msk.bf16.gmra.mxu3 %vm1217_vm0, %v12394_v36  ;;  %15684 = vst [vmem:[#allocation74_spill] sm:$0xff] %v12412_v51 }
 0x48e   : > { %15679 = vst [vmem:[#allocation111_spill] sm:$0xff] %v12396_v5  ;;  %v12408_v5 = vpack.c.bf16 %v1073_v0, %v1071_v31  ;;  %v1077_v0 = vld [vmem:[#allocation6 + $0x110] sm:$0xff] }
 0x48f   : > { %3164 = vmatmul.bf16.gmra.mxu0 %v12372_v18 }
 0x490   : > { %v2508_v27 = vpop.f32.mrf.mxu3  ;;  %8591 = vmatmul.msk.bf16.gmra.mxu2 %vm1217_vm0, %v12376_v39  ;;  %15682 = vst [vmem:[#allocation109_spill] sm:$0xff] %v12408_v5 }
 0x491   : > { %v12404_v42 = vadd.f32 %v2508_v27, %v2293_v26  ;;  %v2296_v32 = vpop.f32.mrf.mxu1 }
 0x493   : > { %15680 = vst [vmem:[#allocation45_spill] sm:$0xff] %v12404_v42  ;;  %v2932_v16 = vpop.f32.mrf.mxu2  ;;  %v2720_v46 = vpop.f32.mrf.mxu0 }
 0x494   : > { %v12406_v28 = vadd.f32 %v2932_v16, %v2717_v61 }
 0x496   : > { %15681 = vst [vmem:[#allocation122_spill] sm:$0xff] %v12406_v28 }
 0x498   : > { %v2511_v56 = vpop.f32.mrf.mxu3 }
 0x499   : > { %v12410_v9 = vadd.f32 %v2511_v56, %v2296_v32  ;;  %v2299_v18 = vpop.f32.mrf.mxu1 }
 0x49b   : > { %15683 = vst [vmem:[#allocation77_spill] sm:$0xff] %v12410_v9  ;;  %v2935_v39 = vpop.f32.mrf.mxu2  ;;  %v2723_v61 = vpop.f32.mrf.mxu0  ;;  %v12430_v9 = vpack.c.bf16 %v1078_v29, %v1076_v37  ;;  %v1080_v37 = vld [vmem:[#allocation6 + $0x128] sm:$0xff]  ;;  %v1082_v29 = vld [vmem:[#allocation6 + $0x138] sm:$0xff] }
 0x49c   : > { %v12414_v26 = vadd.f32 %v2935_v39, %v2720_v46  ;;  %3048 = vmatmul.bf16.gmra.mxu1 %v12408_v5  ;;  %v1075_v46 = vld [vmem:[#allocation6 + $0x100] sm:$0xff] }
 0x49d   : > { %8582 = vmatmul.msk.bf16.gmra.mxu3 %vm1217_vm0, %v12412_v51 }
 0x49e   : > { %15685 = vst [vmem:[#allocation73_spill] sm:$0xff] %v12414_v26  ;;  %v12426_v26 = vpack.c.bf16 %v1077_v0, %v1075_v46  ;;  %v1081_v0 = vld [vmem:[#allocation6 + $0x130] sm:$0xff] }
 0x49f   : > { %3169 = vmatmul.bf16.gmra.mxu0 %v12390_v13 }
 0x4a0   : > { %v2514_v27 = vpop.f32.mrf.mxu3  ;;  %8592 = vmatmul.msk.bf16.gmra.mxu2 %vm1217_vm0, %v12394_v36  ;;  %15688 = vst [vmem:[#allocation64_spill] sm:$0xff] %v12426_v26 }
 0x4a1   : > { %v12422_v56 = vadd.f32 %v2514_v27, %v2299_v18  ;;  %v2302_v32 = vpop.f32.mrf.mxu1 }
 0x4a3   : > { %15686 = vst [vmem:[#allocation70_spill] sm:$0xff] %v12422_v56  ;;  %v2938_v16 = vpop.f32.mrf.mxu2  ;;  %v2726_v39 = vpop.f32.mrf.mxu0 }
 0x4a4   : > { %v12424_v31 = vadd.f32 %v2938_v16, %v2723_v61 }
 0x4a6   : > { %15687 = vst [vmem:[#allocation69_spill] sm:$0xff] %v12424_v31 }
 0x4a8   : > { %v2517_v28 = vpop.f32.mrf.mxu3 }
 0x4a9   : > { %v12428_v42 = vadd.f32 %v2517_v28, %v2302_v32  ;;  %v3014_v13 = vpop.f32.mrf.mxu1 }
 0x4ab   : > { %15689 = vst [vmem:[#allocation63_spill] sm:$0xff] %v12428_v42  ;;  %v2941_v36 = vpop.f32.mrf.mxu2  ;;  %v2729_v61 = vpop.f32.mrf.mxu0  ;;  %v12448_v42 = vpack.c.bf16 %v1082_v29, %v1080_v37 }
 0x4ac   : > { %v12432_v18 = vadd.f32 %v2941_v36, %v2726_v39  ;;  %3053 = vmatmul.bf16.gmra.mxu1 %v12426_v26  ;;  %v1079_v39 = vld [vmem:[#allocation6 + $0x120] sm:$0xff] }
 0x4ad   : > { %8583 = vmatmul.msk.bf16.gmra.mxu3 %vm1217_vm0, %v12430_v9 }
 0x4ae   : > { %15690 = vst [vmem:[#allocation58_spill] sm:$0xff] %v12432_v18  ;;  %v12444_v18 = vpack.c.bf16 %v1081_v0, %v1079_v39  ;;  %v1084_v0 = vld [vmem:[#allocation6 + $0x148] sm:$0x3f] }
 0x4af   : > { %3174 = vmatmul.bf16.gmra.mxu0 %v12408_v5 }
 0x4b0   : > { %v3077_v27 = vpop.f32.mrf.mxu3  ;;  %8593 = vmatmul.msk.bf16.gmra.mxu2 %vm1217_vm0, %v12412_v51 }
 0x4b1   : > { %v12440_v28 = vadd.f32 %v3077_v27, %v3014_v13  ;;  %v3016_v32 = vpop.f32.mrf.mxu1 }
 0x4b3   : > { %15691 = vst [vmem:[#allocation57_spill] sm:$0xff] %v12440_v28  ;;  %v2944_v16 = vpop.f32.mrf.mxu2  ;;  %v2732_v36 = vpop.f32.mrf.mxu0 }
 0x4b4   : > { %v12442_v46 = vadd.f32 %v2944_v16, %v2729_v61 }
 0x4b6   : > { %15692 = vst [vmem:[#allocation148_spill] sm:$0xff] %v12442_v46 }
 0x4b8   : > { %v3079_v31 = vpop.f32.mrf.mxu3 }
 0x4b9   : > { %v12446_v56 = vadd.f32 %v3079_v31, %v3016_v32  ;;  %v3019_v5 = vpop.f32.mrf.mxu1 }
 0x4bb   : > { %15693 = vst [vmem:[#allocation149_spill] sm:$0xff] %v12446_v56  ;;  %v2947_v51 = vpop.f32.mrf.mxu2  ;;  %v3140_v61 = vpop.f32.mrf.mxu0 }
 0x4bc   : > { %v12450_v13 = vadd.f32 %v2947_v51, %v2732_v36  ;;  %3058 = vmatmul.bf16.gmra.mxu1 %v12444_v18  ;;  %v1083_v36 = vld [vmem:[#allocation6 + $0x140] sm:$0x3f] }
 0x4bd   : > { %8584 = vmatmul.msk.bf16.gmra.mxu3 %vm1217_vm0, %v12448_v42  ;;  %v12462_v29 = vpack.c.bf16 %v1083_v36, %v1083_v36 }
 0x4be   : > { %15694 = vst [vmem:[#allocation150_spill] sm:$0xff] %v12450_v13  ;;  %v12466_v13 = vpack.c.bf16 %v1084_v0, %v1084_v0 }
 0x4bf   : > { %3179 = vmatmul.bf16.gmra.mxu0 %v12426_v26 }
 0x4c0   : > { %v3082_v27 = vpop.f32.mrf.mxu3  ;;  %8594 = vmatmul.msk.bf16.gmra.mxu2 %vm1217_vm0, %v12430_v9 }
 0x4c1   : > { %v12458_v31 = vadd.f32 %v3082_v27, %v3019_v5  ;;  %v3021_v32 = vpop.f32.mrf.mxu1 }
 0x4c3   : > { %v3203_v16 = vpop.f32.mrf.mxu2  ;;  %v3142_v51 = vpop.f32.mrf.mxu0 }
 0x4c4   : > { %v12460_v39 = vadd.f32 %v3203_v16, %v3140_v61 }
 0x4c6   : > { %15695 = vst [vmem:[#allocation151_spill] sm:$0xff] %v12460_v39 }
 0x4c8   : > { %v3084_v37 = vpop.f32.mrf.mxu3 }
 0x4c9   : > { %v12464_v46 = vadd.f32 %v3084_v37, %v3021_v32  ;;  %v3024_v56 = vpop.f32.mrf.mxu1 }
 0x4cb   : > { %15696 = vst [vmem:[#allocation152_spill] sm:$0xff] %v12464_v46  ;;  %v3205_v28 = vpop.f32.mrf.mxu2 }
 0x4cc   : > { %v12468_v26 = vadd.f32 %v3205_v28, %v3142_v51  ;;  %3063 = vmatmul.bf16.gmra.mxu1 %v12462_v29  ;;  %v3145_v5 = vpop.f32.mrf.mxu0 }
 0x4cd   : > { %8585 = vmatmul.msk.bf16.gmra.mxu3 %vm1217_vm0, %v12466_v13 }
 0x4ce   : > { %15697 = vst [vmem:[#allocation153_spill] sm:$0xff] %v12468_v26 }
 0x4cf   : > { %3184 = vmatmul.bf16.gmra.mxu0 %v12444_v18 }
 0x4d0   : > { %v3087_v61 = vpop.f32.mrf.mxu3  ;;  %8595 = vmatmul.msk.bf16.gmra.mxu2 %vm1217_vm0, %v12448_v42 }
 0x4d1   : > { %v12476_v27 = vadd.f32 %v3087_v61, %v3024_v56  ;;  %v3026_v32 = vpop.f32.mrf.mxu1 }
 0x4d3   : > { %v3208_v16 = vpop.f32.mrf.mxu2 }
 0x4d4   : > { %v12478_v36 = vadd.f32 %v3208_v16, %v3145_v5  ;;  %v3147_v28 = vpop.f32.mrf.mxu0 }
 0x4d8   : > { %v3089_v51 = vpop.f32.mrf.mxu3 }
 0x4d9   : > { %v12480_v0 = vadd.f32 %v3089_v51, %v3026_v32  ;;  %v3029_v37 = vpop.f32.mrf.mxu1 }
 0x4db   : > { %v3210_v26 = vpop.f32.mrf.mxu2 }
 0x4dc   : > { %v12482_v46 = vadd.f32 %v3210_v26, %v3147_v28  ;;  %3287 = vmatmul.bf16.vlgmr.msrb.gmra.mxu1 %v12239_v43  ;;  %v3150_v39 = vpop.f32.mrf.mxu0 }
 0x4dd   : > { %8597 = vmatmul.msk.bf16.vlgmr.msrb.gmra.mxu3 %vm1217_vm0, %v12243_v55  ;;  %3914 = vmatpush.msrb.mxu1 %v12121_v7 }
 0x4de   : > { %4004 = vmatpush.msrb.mxu3 %v12181_v58 }
 0x4df   : > { %3915 = vmatpush.msrb.mxu1 %v12111_v57  ;;  %3189 = vmatmul.bf16.gmra.mxu0 %v12462_v29 }
 0x4e0   : > { %4005 = vmatpush.msrb.mxu3 %v12171_v3  ;;  %v3092_v56 = vpop.f32.mrf.mxu3  ;;  %8596 = vmatmul.msk.bf16.gmra.mxu2 %vm1217_vm0, %v12466_v13 }
 0x4e1   : > { %v12494_v26 = vadd.f32 %v3092_v56, %v3029_v37  ;;  %3916 = vmatpush.msrb.mxu1 %v12101_v8  ;;  %v3031_v5 = vpop.f32.mrf.mxu1 }
 0x4e2   : > { %4006 = vmatpush.msrb.mxu3 %v12161_v44 }
 0x4e3   : > { %3917 = vmatpush.msrb.mxu1 %v12091_v45  ;;  %v3213_v7 = vpop.f32.mrf.mxu2 }
 0x4e4   : > { %4007 = vmatpush.msrb.mxu3 %v12151_v53  ;;  %v12500_v57 = vadd.f32 %v3213_v7, %v3150_v39  ;;  %v3152_v58 = vpop.f32.mrf.mxu0 }
 0x4e5   : > { %3918 = vmatpush.msrb.mxu1 %v12081_v62 }
 0x4e6   : > { %4008 = vmatpush.msrb.mxu3 %v12141_v49 }
 0x4e7   : > { %3919 = vmatpush.msrb.mxu1 %v12071_v40 }
 0x4e8   : > { %4009 = vmatpush.msrb.mxu3 %v12131_v11  ;;  %v3094_v8 = vpop.f32.mrf.mxu3 }
 0x4e9   : > { %v12506_v3 = vadd.f32 %v3094_v8, %v3031_v5  ;;  %3920 = vmatpush.msrb.mxu1 %v12061_v60  ;;  %v3034_v45 = vpop.f32.mrf.mxu1 }
 0x4eb   : > { %3921 = vmatpush.msrb.mxu1 %v12051_v6  ;;  %v3215_v53 = vpop.f32.mrf.mxu2 }
 0x4ec   : > { %v12510_v44 = vadd.f32 %v3215_v53, %v3152_v58  ;;  %3292 = vmatmul.bf16.gmra.mxu1 %v12268_v24  ;;  %v3155_v62 = vpop.f32.mrf.mxu0  ;;  %v15716_v53 = vld [vmem:[#allocation131_spill] sm:$0xff] }
 0x4ed   : > { %8598 = vmatmul.msk.bf16.gmra.mxu3 %vm1217_vm0, %v12273_v2  ;;  %3922 = vmatpush.msrb.mxu1 %v12041_v12  ;;  %v15698_v12 = vld [vmem:[#allocation136_spill] sm:$0xff] }
 0x4ef   : > { %3923 = vmatpush.msrb.mxu1 %v12031_v41  ;;  %3413 = vmatmul.bf16.vlgmr.msrb.gmra.mxu0 %v12239_v43  ;;  %v15702_v43 = vld [vmem:[#allocation128_spill] sm:$0xff] }
 0x4f0   : > { %v3097_v40 = vpop.f32.mrf.mxu3  ;;  %8608 = vmatmul.msk.bf16.vlgmr.msrb.gmra.mxu2 %vm1217_vm0, %v12243_v55  ;;  %4074 = vmatpush.msrb.mxu0 %v12145_v17  ;;  %v15699_v17 = vld [vmem:[#allocation134_spill] sm:$0xff] }
 0x4f1   : > { %v12521_v6 = vadd.f32 %v3097_v40, %v3034_v45  ;;  %3924 = vmatpush.msrb.mxu1 %v12021_v38  ;;  %4164 = vmatpush.msrb.mxu2 %v12205_v35  ;;  %v3036_v60 = vpop.f32.mrf.mxu1  ;;  %v15700_v38 = vld [vmem:[#allocation132_spill] sm:$0xff]  ;;  %v15701_v35 = vld [vmem:[#allocation130_spill] sm:$0xff] }
 0x4f2   : > { %4075 = vmatpush.msrb.mxu0 %v12135_v10  ;;  %v15715_v45 = vld [vmem:[#allocation120_spill] sm:$0xff] }
 0x4f3   : > { %3925 = vmatpush.msrb.mxu1 %v15698_v12  ;;  %4165 = vmatpush.msrb.mxu2 %v12195_v4  ;;  %v3218_v41 = vpop.f32.mrf.mxu2 }
 0x4f4   : > { %v12528_v11 = vadd.f32 %v3218_v41, %v3155_v62  ;;  %4076 = vmatpush.msrb.mxu0 %v12125_v21  ;;  %v3157_v49 = vpop.f32.mrf.mxu0 }
 0x4f5   : > { %3926 = vmatpush.msrb.mxu1 %v15699_v17  ;;  %4166 = vmatpush.msrb.mxu2 %v12185_v59 }
 0x4f6   : > { %4077 = vmatpush.msrb.mxu0 %v12115_v20 }
 0x4f7   : > { %3927 = vmatpush.msrb.mxu1 %v15700_v38  ;;  %4167 = vmatpush.msrb.mxu2 %v12175_v50 }
 0x4f8   : > { %v3099_v10 = vpop.f32.mrf.mxu3  ;;  %4078 = vmatpush.msrb.mxu0 %v12105_v22 }
 0x4f9   : > { %v12537_v4 = vadd.f32 %v3099_v10, %v3036_v60  ;;  %3928 = vmatpush.msrb.mxu1 %v15701_v35  ;;  %4168 = vmatpush.msrb.mxu2 %v12165_v25  ;;  %v3039_v21 = vpop.f32.mrf.mxu1 }
 0x4fa   : > { %4079 = vmatpush.msrb.mxu0 %v12095_v33 }
 0x4fb   : > { %3929 = vmatpush.msrb.mxu1 %v15702_v43  ;;  %4169 = vmatpush.msrb.mxu2 %v12155_v48  ;;  %v3220_v20 = vpop.f32.mrf.mxu2  ;;  %v15722_v43 = vld [vmem:[#allocation127_spill] sm:$0xff] }
 0x4fc   : > { %v12544_v59 = vadd.f32 %v3220_v20, %v3157_v49  ;;  %3297 = vmatmul.bf16.gmra.mxu1 %v12303_v23  ;;  %4080 = vmatpush.msrb.mxu0 %v12085_v19  ;;  %v3160_v22 = vpop.f32.mrf.mxu0 }
 0x4fd   : > { %8599 = vmatmul.msk.bf16.gmra.mxu3 %vm1217_vm0, %v12309_v54 }
 0x4fe   : > { %15703 = vst [vmem:[#allocation136_spill] sm:$0xff] %v12544_v59  ;;  %4081 = vmatpush.msrb.mxu0 %v12075_v63 }
 0x4ff   : > { %3418 = vmatmul.bf16.gmra.mxu0 %v12268_v24 }
 0x500   : > { %v3102_v33 = vpop.f32.mrf.mxu3  ;;  %8609 = vmatmul.msk.bf16.gmra.mxu2 %vm1217_vm0, %v12273_v2  ;;  %4082 = vmatpush.msrb.mxu0 %v12065_v34  ;;  %v15707_v34 = vld [vmem:[#allocation137_spill] sm:$0xff] }
 0x501   : > { %v12555_v48 = vadd.f32 %v3102_v33, %v3039_v21  ;;  %v3041_v25 = vpop.f32.mrf.mxu1  ;;  %v15721_v21 = vld [vmem:[#allocation116_spill] sm:$0xff] }
 0x502   : > { %4083 = vmatpush.msrb.mxu0 %v12055_v52  ;;  %v15709_v52 = vld [vmem:[#allocation135_spill] sm:$0xff] }
 0x503   : > { %15704 = vst [vmem:[#allocation134_spill] sm:$0xff] %v12555_v48  ;;  %v3223_v19 = vpop.f32.mrf.mxu2 }
 0x504   : > { %v12558_v50 = vadd.f32 %v3223_v19, %v3160_v22  ;;  %4084 = vmatpush.msrb.mxu0 %v12045_v1  ;;  %v3162_v55 = vpop.f32.mrf.mxu0 }
 0x506   : > { %15705 = vst [vmem:[#allocation132_spill] sm:$0xff] %v12558_v50  ;;  %4085 = vmatpush.msrb.mxu0 %v12035_v15  ;;  %v15710_v15 = vld [vmem:[#allocation133_spill] sm:$0xff] }
 0x508   : > { %v3104_v63 = vpop.f32.mrf.mxu3  ;;  %4086 = vmatpush.msrb.mxu0 %v12025_v14 }
 0x509   : > { %v12563_v24 = vadd.f32 %v3104_v63, %v3041_v25  ;;  %v3044_v2 = vpop.f32.mrf.mxu1 }
 0x50a   : > { %4087 = vmatpush.msrb.mxu0 %v15707_v34 }
 0x50b   : > { %15706 = vst [vmem:[#allocation130_spill] sm:$0xff] %v12563_v24  ;;  %v3225_v39 = vpop.f32.mrf.mxu2 }
 0x50c   : > { %v12566_v61 = vadd.f32 %v3225_v39, %v3162_v55  ;;  %3302 = vmatmul.bf16.gmra.mxu1 %v12333_v30  ;;  %4088 = vmatpush.msrb.mxu0 %v15709_v52  ;;  %v3165_v32 = vpop.f32.mrf.mxu0  ;;  %v15727_v52 = vld [vmem:[#allocation113_spill] sm:$0xff] }
 0x50d   : > { %8600 = vmatmul.msk.bf16.gmra.mxu3 %vm1217_vm0, %v12337_v47 }
 0x50e   : > { %15708 = vst [vmem:[#allocation128_spill] sm:$0xff] %v12566_v61  ;;  %4089 = vmatpush.msrb.mxu0 %v15710_v15  ;;  %v15728_v15 = vld [vmem:[#allocation124_spill] sm:$0xff] }
 0x50f   : > { %3423 = vmatmul.bf16.gmra.mxu0 %v12303_v23 }
 0x510   : > { %v3107_v14 = vpop.f32.mrf.mxu3  ;;  %8610 = vmatmul.msk.bf16.gmra.mxu2 %vm1217_vm0, %v12309_v54 }
 0x511   : > { %v12576_v1 = vadd.f32 %v3107_v14, %v3044_v2  ;;  %v3046_v16 = vpop.f32.mrf.mxu1 }
 0x513   : > { %15711 = vst [vmem:[#allocation137_spill] sm:$0xff] %v12576_v1  ;;  %v3228_v28 = vpop.f32.mrf.mxu2 }
 0x514   : > { %v12578_v51 = vadd.f32 %v3228_v28, %v3165_v32  ;;  %v3167_v37 = vpop.f32.mrf.mxu0 }
 0x516   : > { %15712 = vst [vmem:[#allocation135_spill] sm:$0xff] %v12578_v51 }
 0x518   : > { %v3109_v56 = vpop.f32.mrf.mxu3 }
 0x519   : > { %v12580_v5 = vadd.f32 %v3109_v56, %v3046_v16  ;;  %v3049_v7 = vpop.f32.mrf.mxu1 }
 0x51b   : > { %15713 = vst [vmem:[#allocation133_spill] sm:$0xff] %v12580_v5  ;;  %v3230_v58 = vpop.f32.mrf.mxu2 }
 0x51c   : > { %v12582_v8 = vadd.f32 %v3230_v58, %v3167_v37  ;;  %3307 = vmatmul.bf16.gmra.mxu1 %v15715_v45  ;;  %v3170_v23 = vpop.f32.mrf.mxu0 }
 0x51d   : > { %8601 = vmatmul.msk.bf16.gmra.mxu3 %vm1217_vm0, %v15716_v53 }
 0x51e   : > { %15714 = vst [vmem:[#allocation154_spill] sm:$0xff] %v12582_v8 }
 0x51f   : > { %3428 = vmatmul.bf16.gmra.mxu0 %v12333_v30 }
 0x520   : > { %v3112_v54 = vpop.f32.mrf.mxu3  ;;  %8611 = vmatmul.msk.bf16.gmra.mxu2 %vm1217_vm0, %v12337_v47 }
 0x521   : > { %v12590_v62 = vadd.f32 %v3112_v54, %v3049_v7  ;;  %v3051_v40 = vpop.f32.mrf.mxu1 }
 0x523   : > { %15717 = vst [vmem:[#allocation120_spill] sm:$0xff] %v12590_v62  ;;  %v3233_v60 = vpop.f32.mrf.mxu2 }
 0x524   : > { %v12592_v12 = vadd.f32 %v3233_v60, %v3170_v23  ;;  %v3172_v41 = vpop.f32.mrf.mxu0 }
 0x526   : > { %15718 = vst [vmem:[#allocation131_spill] sm:$0xff] %v12592_v12 }
 0x528   : > { %v3114_v49 = vpop.f32.mrf.mxu3 }
 0x529   : > { %v12594_v17 = vadd.f32 %v3114_v49, %v3051_v40  ;;  %v3054_v38 = vpop.f32.mrf.mxu1  ;;  %v15733_v40 = vld [vmem:[#allocation109_spill] sm:$0xff] }
 0x52b   : > { %15719 = vst [vmem:[#allocation155_spill] sm:$0xff] %v12594_v17  ;;  %v3235_v10 = vpop.f32.mrf.mxu2 }
 0x52c   : > { %v12596_v35 = vadd.f32 %v3235_v10, %v3172_v41  ;;  %3312 = vmatmul.bf16.gmra.mxu1 %v15721_v21  ;;  %v3175_v30 = vpop.f32.mrf.mxu0  ;;  %v15734_v41 = vld [vmem:[#allocation74_spill] sm:$0xff] }
 0x52d   : > { %8602 = vmatmul.msk.bf16.gmra.mxu3 %vm1217_vm0, %v15722_v43 }
 0x52e   : > { %15720 = vst [vmem:[#allocation156_spill] sm:$0xff] %v12596_v35 }
 0x52f   : > { %3433 = vmatmul.bf16.gmra.mxu0 %v15715_v45 }
 0x530   : > { %v3117_v47 = vpop.f32.mrf.mxu3  ;;  %8612 = vmatmul.msk.bf16.gmra.mxu2 %vm1217_vm0, %v15716_v53 }
 0x531   : > { %v12604_v20 = vadd.f32 %v3117_v47, %v3054_v38  ;;  %v3056_v22 = vpop.f32.mrf.mxu1 }
 0x533   : > { %15723 = vst [vmem:[#allocation116_spill] sm:$0xff] %v12604_v20  ;;  %v3238_v33 = vpop.f32.mrf.mxu2 }
 0x534   : > { %v12606_v25 = vadd.f32 %v3238_v33, %v3175_v30  ;;  %v3177_v19 = vpop.f32.mrf.mxu0 }
 0x536   : > { %15724 = vst [vmem:[#allocation127_spill] sm:$0xff] %v12606_v25 }
 0x538   : > { %v3119_v55 = vpop.f32.mrf.mxu3 }
 0x539   : > { %v12608_v63 = vadd.f32 %v3119_v55, %v3056_v22  ;;  %v3059_v2 = vpop.f32.mrf.mxu1  ;;  %v15738_v55 = vld [vmem:[#allocation64_spill] sm:$0xff] }
 0x53b   : > { %15725 = vst [vmem:[#allocation157_spill] sm:$0xff] %v12608_v63  ;;  %v3240_v34 = vpop.f32.mrf.mxu2 }
 0x53c   : > { %v12610_v39 = vadd.f32 %v3240_v34, %v3177_v19  ;;  %3317 = vmatmul.bf16.gmra.mxu1 %v15727_v52  ;;  %v3180_v32 = vpop.f32.mrf.mxu0 }
 0x53d   : > { %8603 = vmatmul.msk.bf16.gmra.mxu3 %vm1217_vm0, %v15728_v15 }
 0x53e   : > { %15726 = vst [vmem:[#allocation158_spill] sm:$0xff] %v12610_v39 }
 0x53f   : > { %3438 = vmatmul.bf16.gmra.mxu0 %v15721_v21 }
 0x540   : > { %v3122_v14 = vpop.f32.mrf.mxu3  ;;  %8613 = vmatmul.msk.bf16.gmra.mxu2 %vm1217_vm0, %v15722_v43 }
 0x541   : > { %v12618_v16 = vadd.f32 %v3122_v14, %v3059_v2  ;;  %v3061_v28 = vpop.f32.mrf.mxu1 }
 0x543   : > { %15729 = vst [vmem:[#allocation113_spill] sm:$0xff] %v12618_v16  ;;  %v3243_v37 = vpop.f32.mrf.mxu2 }
 0x544   : > { %v12620_v56 = vadd.f32 %v3243_v37, %v3180_v32  ;;  %v3182_v7 = vpop.f32.mrf.mxu0 }
 0x546   : > { %15730 = vst [vmem:[#allocation124_spill] sm:$0xff] %v12620_v56 }
 0x548   : > { %v3124_v58 = vpop.f32.mrf.mxu3 }
 0x549   : > { %v12622_v45 = vadd.f32 %v3124_v58, %v3061_v28  ;;  %v3064_v23 = vpop.f32.mrf.mxu1 }
 0x54b   : > { %15731 = vst [vmem:[#allocation159_spill] sm:$0xff] %v12622_v45  ;;  %v3245_v53 = vpop.f32.mrf.mxu2 }
 0x54c   : > { %v12624_v54 = vadd.f32 %v3245_v53, %v3182_v7  ;;  %3322 = vmatmul.bf16.gmra.mxu1 %v15733_v40  ;;  %v3185_v60 = vpop.f32.mrf.mxu0 }
 0x54d   : > { %8604 = vmatmul.msk.bf16.gmra.mxu3 %vm1217_vm0, %v15734_v41 }
 0x54e   : > { %15732 = vst [vmem:[#allocation160_spill] sm:$0xff] %v12624_v54 }
 0x54f   : > { %3443 = vmatmul.bf16.gmra.mxu0 %v15727_v52 }
 0x550   : > { %v3127_v49 = vpop.f32.mrf.mxu3  ;;  %8614 = vmatmul.msk.bf16.gmra.mxu2 %vm1217_vm0, %v15728_v15  ;;  %v15740_v15 = vld [vmem:[#allocation57_spill] sm:$0xff] }
 0x551   : > { %v12632_v38 = vadd.f32 %v3127_v49, %v3064_v23  ;;  %v3066_v10 = vpop.f32.mrf.mxu1 }
 0x553   : > { %15735 = vst [vmem:[#allocation109_spill] sm:$0xff] %v12632_v38  ;;  %v3248_v21 = vpop.f32.mrf.mxu2 }
 0x554   : > { %v12634_v30 = vadd.f32 %v3248_v21, %v3185_v60  ;;  %v3187_v43 = vpop.f32.mrf.mxu0 }
 0x556   : > { %15736 = vst [vmem:[#allocation74_spill] sm:$0xff] %v12634_v30 }
 0x558   : > { %v3129_v47 = vpop.f32.mrf.mxu3 }
 0x559   : > { %v3288_v22 = vpop.f32.mrf.mxu1 }
 0x55b   : > { %v3250_v33 = vpop.f32.mrf.mxu2 }
 0x55c   : > { %v12636_v19 = vadd.f32 %v3250_v33, %v3187_v43  ;;  %3327 = vmatmul.bf16.gmra.mxu1 %v15738_v55  ;;  %v3190_v2 = vpop.f32.mrf.mxu0 }
 0x55d   : > { %8605 = vmatmul.msk.bf16.gmra.mxu3 %vm1217_vm0, %v12430_v9 }
 0x55e   : > { %15737 = vst [vmem:[#allocation161_spill] sm:$0xff] %v12636_v19 }
 0x55f   : > { %3448 = vmatmul.bf16.gmra.mxu0 %v15733_v40  ;;  %v15744_v40 = vld [vmem:[#allocation149_spill] sm:$0xff] }
 0x560   : > { %v3351_v34 = vpop.f32.mrf.mxu3  ;;  %8615 = vmatmul.msk.bf16.gmra.mxu2 %vm1217_vm0, %v15734_v41 }
 0x561   : > { %v12644_v52 = vadd.f32 %v3351_v34, %v3288_v22  ;;  %v3290_v32 = vpop.f32.mrf.mxu1  ;;  %v15749_v34 = vld [vmem:[#allocation151_spill] sm:$0xff] }
 0x563   : > { %15739 = vst [vmem:[#allocation64_spill] sm:$0xff] %v12644_v52  ;;  %v12648_v14 = vmul.f32 %v12644_v52, %v15740_v15  ;;  %v3253_v28 = vpop.f32.mrf.mxu2 }
 0x564   : > { %v12650_v37 = vadd.f32 %v3253_v28, %v3190_v2  ;;  %v3192_v7 = vpop.f32.mrf.mxu0 }
 0x565   : > { %15741 = vst [vmem:[#allocation57_spill] sm:$0xff] %v12648_v14 }
 0x566   : > { %15742 = vst [vmem:[#allocation162_spill] sm:$0xff] %v12650_v37 }
 0x568   : > { %v3353_v58 = vpop.f32.mrf.mxu3 }
 0x569   : > { %v12652_v23 = vadd.f32 %v3353_v58, %v3290_v32  ;;  %v3293_v53 = vpop.f32.mrf.mxu1 }
 0x56b   : > { %15743 = vst [vmem:[#allocation163_spill] sm:$0xff] %v12652_v23  ;;  %v12656_v60 = vmul.f32 %v12652_v23, %v15744_v40  ;;  %v3255_v41 = vpop.f32.mrf.mxu2 }
 0x56c   : > { %3332 = vmatmul.bf16.gmra.mxu1 %v12444_v18  ;;  %v3414_v49 = vpop.f32.mrf.mxu0 }
 0x56d   : > { %15745 = vst [vmem:[#allocation149_spill] sm:$0xff] %v12656_v60  ;;  %8606 = vmatmul.msk.bf16.gmra.mxu3 %vm1217_vm0, %v12448_v42 }
 0x56f   : > { %3453 = vmatmul.bf16.gmra.mxu0 %v15738_v55 }
 0x570   : > { %v3356_v10 = vpop.f32.mrf.mxu3  ;;  %8616 = vmatmul.msk.bf16.gmra.mxu2 %vm1217_vm0, %v12430_v9  ;;  %v15752_v9 = vld [vmem:[#allocation152_spill] sm:$0xff] }
 0x571   : > { %v12664_v21 = vadd.f32 %v3356_v10, %v3293_v53  ;;  %v3295_v43 = vpop.f32.mrf.mxu1  ;;  %v15755_v10 = vld [vmem:[#allocation153_spill] sm:$0xff] }
 0x573   : > { %15746 = vst [vmem:[#allocation164_spill] sm:$0xff] %v12664_v21  ;;  %v12668_v47 = vmul.f32 %v12664_v21, %v12458_v31  ;;  %v3477_v22 = vpop.f32.mrf.mxu2 }
 0x574   : > { %v12670_v33 = vadd.f32 %v3477_v22, %v3414_v49  ;;  %v3416_v2 = vpop.f32.mrf.mxu0 }
 0x575   : > { %15747 = vst [vmem:[#allocation165_spill] sm:$0xff] %v12668_v47 }
 0x576   : > { %15748 = vst [vmem:[#allocation166_spill] sm:$0xff] %v12670_v33  ;;  %v12674_v32 = vmul.f32 %v12670_v33, %v15749_v34 }
 0x578   : > { %15750 = vst [vmem:[#allocation151_spill] sm:$0xff] %v12674_v32  ;;  %v3358_v55 = vpop.f32.mrf.mxu3 }
 0x579   : > { %v12676_v28 = vadd.f32 %v3358_v55, %v3295_v43  ;;  %v3298_v7 = vpop.f32.mrf.mxu1 }
 0x57b   : > { %15751 = vst [vmem:[#allocation167_spill] sm:$0xff] %v12676_v28  ;;  %v12680_v58 = vmul.f32 %v12676_v28, %v15752_v9  ;;  %v3479_v53 = vpop.f32.mrf.mxu2  ;;  %v12769_v28 = vld [vmem:[#allocation6 + $0x20] sm:$0xff] }
 0x57c   : > { %v12682_v41 = vadd.f32 %v3479_v53, %v3416_v2  ;;  %3337 = vmatmul.bf16.gmra.mxu1 %v12462_v29  ;;  %v3419_v49 = vpop.f32.mrf.mxu0 }
 0x57d   : > { %15753 = vst [vmem:[#allocation152_spill] sm:$0xff] %v12680_v58  ;;  %8607 = vmatmul.msk.bf16.gmra.mxu3 %vm1217_vm0, %v12466_v13 }
 0x57e   : > { %15754 = vst [vmem:[#allocation168_spill] sm:$0xff] %v12682_v41  ;;  %v12689_v22 = vmul.f32 %v12682_v41, %v15755_v10 }
 0x57f   : > { %3458 = vmatmul.bf16.gmra.mxu0 %v12444_v18 }
 0x580   : > { %15756 = vst [vmem:[#allocation153_spill] sm:$0xff] %v12689_v22  ;;  %v3361_v43 = vpop.f32.mrf.mxu3  ;;  %8617 = vmatmul.msk.bf16.gmra.mxu2 %vm1217_vm0, %v12448_v42 }
 0x581   : > { %v12694_v55 = vadd.f32 %v3361_v43, %v3298_v7  ;;  %v3300_v2 = vpop.f32.mrf.mxu1 }
 0x583   : > { %15757 = vst [vmem:[#allocation169_spill] sm:$0xff] %v12694_v55  ;;  %v12698_v53 = vmul.f32 %v12694_v55, %v12476_v27  ;;  %v3482_v58 = vpop.f32.mrf.mxu2  ;;  %v15771_v55 = vld [vmem:[#allocation77_spill] sm:$0xff] }
 0x584   : > { %v12700_v32 = vadd.f32 %v3482_v58, %v3419_v49  ;;  %v3421_v47 = vpop.f32.mrf.mxu0  ;;  %v12717_v49 = vld [vmem:[#allocation6 + $0x8] sm:$0xff] }
 0x585   : > { %15758 = vst [vmem:[#allocation170_spill] sm:$0xff] %v12698_v53  ;;  %v12714_v53 = vld [vmem:[#allocation6] sm:$0xff] }
 0x586   : > { %15759 = vst [vmem:[#allocation171_spill] sm:$0xff] %v12700_v32  ;;  %v12704_v22 = vmul.f32 %v12700_v32, %v12478_v36  ;;  %v15770_v32 = vld [vmem:[#allocation54_spill] sm:$0xff] }
 0x588   : > { %15760 = vst [vmem:[#allocation172_spill] sm:$0xff] %v12704_v22  ;;  %v3363_v18 = vpop.f32.mrf.mxu3 }
 0x589   : > { %v12706_v60 = vadd.f32 %v3363_v18, %v3300_v2  ;;  %v3303_v14 = vpop.f32.mrf.mxu1  ;;  %v15764_v2 = vld [vmem:[#allocation49_spill] sm:$0xff] }
 0x58b   : > { %15761 = vst [vmem:[#allocation173_spill] sm:$0xff] %v12706_v60  ;;  %v12710_v42 = vmul.f32 %v12706_v60, %v12480_v0  ;;  %v3484_v7 = vpop.f32.mrf.mxu2 }
 0x58c   : > { %v12712_v43 = vadd.f32 %v3484_v7, %v3421_v47  ;;  %3610 = vmatmul.f32.vlgmr.msra.gmra.mxu1 %v12714_v53  ;;  %v3424_v58 = vpop.f32.mrf.mxu0  ;;  %v15767_v47 = vld [vmem:[#allocation50_spill] sm:$0xff] }
 0x58d   : > { %15762 = vst [vmem:[#allocation174_spill] sm:$0xff] %v12710_v42  ;;  %8619 = vmatmul.msk.f32.vlgmr.msra.gmra.mxu3 %vm1217_vm0, %v12717_v49  ;;  %4234 = vmatpush.msra.mxu1 %v15764_v2  ;;  %v15766_v42 = vld [vmem:[#allocation63_spill] sm:$0xff]  ;;  %v15768_v7 = vld [vmem:[#allocation70_spill] sm:$0xff] }
 0x58e   : > { %15763 = vst [vmem:[#allocation175_spill] sm:$0xff] %v12712_v43  ;;  %v12724_v18 = vmul.f32 %v12712_v43, %v12482_v46  ;;  %4324 = vmatpush.msra.mxu3 %v15766_v42 }
 0x58f   : > { %4235 = vmatpush.msra.mxu1 %v15767_v47  ;;  %3463 = vmatmul.bf16.gmra.mxu0 %v12462_v29  ;;  %v15773_v47 = vld [vmem:[#allocation60_spill] sm:$0xff] }
 0x590   : > { %15765 = vst [vmem:[#allocation49_spill] sm:$0xff] %v12724_v18  ;;  %4325 = vmatpush.msra.mxu3 %v15768_v7  ;;  %v3366_v22 = vpop.f32.mrf.mxu3  ;;  %8618 = vmatmul.msk.bf16.gmra.mxu2 %vm1217_vm0, %v12466_v13  ;;  %v15774_v18 = vld [vmem:[#allocation45_spill] sm:$0xff] }
 0x591   : > { %v12732_v60 = vadd.f32 %v3366_v22, %v3303_v14  ;;  %4236 = vmatpush.msra.mxu1 %v15770_v32  ;;  %v3305_v2 = vpop.f32.mrf.mxu1  ;;  %v12744_v13 = vld [vmem:[#allocation6 + $0x10] sm:$0xff]  ;;  %v12747_v14 = vld [vmem:[#allocation6 + $0x18] sm:$0xff] }
 0x592   : > { %4326 = vmatpush.msra.mxu3 %v15771_v55  ;;  %v15776_v32 = vld [vmem:[#allocation66_spill] sm:$0xff]  ;;  %v15778_v55 = vld [vmem:[#allocation52_spill] sm:$0xff] }
 0x593   : > { %15769 = vst [vmem:[#allocation63_spill] sm:$0xff] %v12732_v60  ;;  %v12738_v42 = vmul.f32 %v12732_v60, %v12494_v26  ;;  %4237 = vmatpush.msra.mxu1 %v15773_v47  ;;  %v3487_v29 = vpop.f32.mrf.mxu2 }
 0x594   : > { %4327 = vmatpush.msra.mxu3 %v15774_v18  ;;  %v12742_v7 = vadd.f32 %v3487_v29, %v3424_v58  ;;  %v3426_v43 = vpop.f32.mrf.mxu0  ;;  %3613 = vmatmul.f32.gmra.mxu1 %v12744_v13  ;;  %v15779_v58 = vld [vmem:[#allocation67_spill] sm:$0xff]  ;;  %v15780_v18 = vld [vmem:[#allocation46_spill] sm:$0xff] }
 0x595   : > { %15772 = vst [vmem:[#allocation50_spill] sm:$0xff] %v12738_v42  ;;  %8620 = vmatmul.msk.f32.gmra.mxu3 %vm1217_vm0, %v12747_v14  ;;  %4238 = vmatpush.msra.mxu1 %v15776_v32  ;;  %v15782_v42 = vld [vmem:[#allocation108_spill] sm:$0xff]  ;;  %v15784_v32 = vld [vmem:[#allocation110_spill] sm:$0xff] }
 0x596   : > { %15775 = vst [vmem:[#allocation70_spill] sm:$0xff] %v12742_v7  ;;  %v12754_v22 = vmul.f32 %v12742_v7, %v12500_v57  ;;  %4328 = vmatpush.msra.mxu3 %v15778_v55 }
 0x597   : > { %4239 = vmatpush.msra.mxu1 %v15779_v58  ;;  %v12772_v58 = vld [vmem:[#allocation6 + $0x28] sm:$0xff] }
 0x598   : > { %15777 = vst [vmem:[#allocation54_spill] sm:$0xff] %v12754_v22  ;;  %4329 = vmatpush.msra.mxu3 %v15780_v18  ;;  %v3368_v47 = vpop.f32.mrf.mxu3  ;;  %v15788_v18 = vld [vmem:[#allocation114_spill] sm:$0xff] }
 0x599   : > { %v12759_v29 = vadd.f32 %v3368_v47, %v3305_v2  ;;  %4240 = vmatpush.msra.mxu1 %v15782_v42  ;;  %v3308_v60 = vpop.f32.mrf.mxu1  ;;  %v15786_v2 = vld [vmem:[#allocation112_spill] sm:$0xff] }
 0x59b   : > { %15781 = vst [vmem:[#allocation77_spill] sm:$0xff] %v12759_v29  ;;  %v12764_v41 = vmul.f32 %v12759_v29, %v12506_v3  ;;  %4241 = vmatpush.msra.mxu1 %v15784_v32  ;;  %v3489_v7 = vpop.f32.mrf.mxu2  ;;  %v15791_v32 = vld [vmem:[#allocation146_spill] sm:$0xff] }
 0x59c   : > { %v12767_v22 = vadd.f32 %v3489_v7, %v3426_v43  ;;  %v3429_v55 = vpop.f32.mrf.mxu0  ;;  %3616 = vmatmul.f32.gmra.mxu1 %v12769_v28  ;;  %v15789_v7 = vld [vmem:[#allocation111_spill] sm:$0xff]  ;;  %v15793_v29 = vld [vmem:[#allocation126_spill] sm:$0xff] }
 0x59d   : > { %15783 = vst [vmem:[#allocation60_spill] sm:$0xff] %v12764_v41  ;;  %8621 = vmatmul.msk.f32.gmra.mxu3 %vm1217_vm0, %v12772_v58  ;;  %4242 = vmatpush.msra.mxu1 %v15786_v2  ;;  %v15792_v41 = vld [vmem:[#allocation150_spill] sm:$0xff] }
 0x59e   : > { %15785 = vst [vmem:[#allocation45_spill] sm:$0xff] %v12767_v22  ;;  %v12779_v42 = vmul.f32 %v12767_v22, %v12510_v44  ;;  %v15796_v22 = vld [vmem:[#allocation148_spill] sm:$0xff] }
 0x59f   : > { %4243 = vmatpush.msra.mxu1 %v15788_v18  ;;  %3770 = vmatmul.f32.vlgmr.msra.gmra.mxu0 %v12714_v53 }
 0x5a0   : > { %15787 = vst [vmem:[#allocation66_spill] sm:$0xff] %v12779_v42  ;;  %v3371_v43 = vpop.f32.mrf.mxu3  ;;  %8640 = vmatmul.msk.f32.vlgmr.msra.gmra.mxu2 %vm1217_vm0, %v12717_v49  ;;  %4394 = vmatpush.msra.mxu0 %v15789_v7  ;;  %v15795_v42 = vld [vmem:[#allocation144_spill] sm:$0xff]  ;;  %v12800_v7 = vld [vmem:[#allocation6 + $0x30] sm:$0xff] }
 0x5a1   : > { %v12786_v47 = vadd.f32 %v3371_v43, %v3308_v60  ;;  %4244 = vmatpush.msra.mxu1 %v15791_v32  ;;  %4484 = vmatpush.msra.mxu2 %v15792_v41  ;;  %v3310_v2 = vpop.f32.mrf.mxu1  ;;  %v15798_v60 = vld [vmem:[#allocation115_spill] sm:$0xff]  ;;  %v15804_v32 = vld [vmem:[#allocation69_spill] sm:$0xff] }
 0x5a2   : > { %4395 = vmatpush.msra.mxu0 %v15793_v29  ;;  %v12803_v41 = vld [vmem:[#allocation6 + $0x38] sm:$0xff] }
 0x5a3   : > { %15790 = vst [vmem:[#allocation52_spill] sm:$0xff] %v12786_v47  ;;  %v12793_v18 = vmul.f32 %v12786_v47, %v12521_v6  ;;  %4245 = vmatpush.msra.mxu1 %v15795_v42  ;;  %4485 = vmatpush.msra.mxu2 %v15796_v22  ;;  %v3492_v33 = vpop.f32.mrf.mxu2  ;;  %v15799_v29 = vld [vmem:[#allocation142_spill] sm:$0xff]  ;;  %v15803_v42 = vld [vmem:[#allocation140_spill] sm:$0xff] }
 0x5a4   : > { %v12797_v21 = vadd.f32 %v3492_v33, %v3429_v55  ;;  %4396 = vmatpush.msra.mxu0 %v15798_v60  ;;  %v3431_v43 = vpop.f32.mrf.mxu0  ;;  %3619 = vmatmul.f32.gmra.mxu1 %v12800_v7  ;;  %v15801_v33 = vld [vmem:[#allocation58_spill] sm:$0xff]  ;;  %v15802_v55 = vld [vmem:[#allocation129_spill] sm:$0xff] }
 0x5a5   : > { %15794 = vst [vmem:[#allocation67_spill] sm:$0xff] %v12793_v18  ;;  %8622 = vmatmul.msk.f32.gmra.mxu3 %vm1217_vm0, %v12803_v41  ;;  %4246 = vmatpush.msra.mxu1 %v15799_v29  ;;  %v15805_v18 = vld [vmem:[#allocation118_spill] sm:$0xff]  ;;  %v15807_v29 = vld [vmem:[#allocation139_spill] sm:$0xff] }
 0x5a6   : > { %15797 = vst [vmem:[#allocation46_spill] sm:$0xff] %v12797_v21  ;;  %v12810_v22 = vmul.f32 %v12797_v21, %v12528_v11  ;;  %4486 = vmatpush.msra.mxu2 %v15801_v33  ;;  %4397 = vmatpush.msra.mxu0 %v15802_v55  ;;  %v15808_v33 = vld [vmem:[#allocation73_spill] sm:$0xff]  ;;  %v15809_v55 = vld [vmem:[#allocation55_spill] sm:$0xff] }
 0x5a7   : > { %4247 = vmatpush.msra.mxu1 %v15803_v42  ;;  %3773 = vmatmul.f32.gmra.mxu0 %v12744_v13 }
 0x5a8   : > { %15800 = vst [vmem:[#allocation108_spill] sm:$0xff] %v12810_v22  ;;  %4487 = vmatpush.msra.mxu2 %v15804_v32  ;;  %v3373_v60 = vpop.f32.mrf.mxu3  ;;  %4398 = vmatpush.msra.mxu0 %v15805_v18  ;;  %v15811_v32 = vld [vmem:[#allocation138_spill] sm:$0xff] }
 0x5a9   : > { %v12818_v47 = vadd.f32 %v3373_v60, %v3310_v2  ;;  %8641 = vmatmul.msk.f32.gmra.mxu2 %vm1217_vm0, %v12747_v14  ;;  %4248 = vmatpush.msra.mxu1 %v15807_v29  ;;  %v3313_v22 = vpop.f32.mrf.mxu1  ;;  %v15812_v18 = vld [vmem:[#allocation122_spill] sm:$0xff]  ;;  %v15814_v60 = vld [vmem:[#allocation61_spill] sm:$0xff] }
 0x5aa   : > { %4488 = vmatpush.msra.mxu2 %v15808_v33  ;;  %4399 = vmatpush.msra.mxu0 %v15809_v55  ;;  %v12834_v29 = vld [vmem:[#allocation6 + $0x48] sm:$0xff]  ;;  %v12838_v33 = vld [vmem:[#allocation6 + $0x40] sm:$0xff] }
 0x5ab   : > { %15806 = vst [vmem:[#allocation110_spill] sm:$0xff] %v12818_v47  ;;  %v12827_v42 = vmul.f32 %v12818_v47, %v12537_v4  ;;  %4249 = vmatpush.msra.mxu1 %v15811_v32  ;;  %v3494_v21 = vpop.f32.mrf.mxu2  ;;  %v15816_v32 = vld [vmem:[#allocation117_spill] sm:$0xff] }
 0x5ac   : > { %4489 = vmatpush.msra.mxu2 %v15812_v18  ;;  %v12831_v2 = vadd.f32 %v3494_v21, %v3431_v43  ;;  %4400 = vmatpush.msra.mxu0 %v15814_v60  ;;  %v3434_v23 = vpop.f32.mrf.mxu0  ;;  %v15817_v43 = vld [vmem:[#allocation119_spill] sm:$0xff] }
 0x5ad   : > { %15810 = vst [vmem:[#allocation112_spill] sm:$0xff] %v12827_v42  ;;  %8623 = vmatmul.msk.f32.gmra.mxu3 %vm1217_vm0, %v12834_v29  ;;  %3622 = vmatmul.f32.gmra.mxu1 %v12838_v33  ;;  %v15819_v42 = vld [vmem:[#allocation121_spill] sm:$0xff] }
 0x5ae   : > { %15813 = vst [vmem:[#allocation114_spill] sm:$0xff] %v12831_v2  ;;  %v12843_v55 = vmul.f32 %v12831_v2, %v12544_v59  ;;  %4401 = vmatpush.msra.mxu0 %v15816_v32  ;;  %v15822_v32 = vld [vmem:[#allocation123_spill] sm:$0xff] }
 0x5af   : > { %3776 = vmatmul.f32.gmra.mxu0 %v12769_v28  ;;  %v12860_v59 = vld [vmem:[#allocation6 + $0x58] sm:$0xff] }
 0x5b0   : > { %15815 = vst [vmem:[#allocation111_spill] sm:$0xff] %v12843_v55  ;;  %v3376_v21 = vpop.f32.mrf.mxu3  ;;  %4402 = vmatpush.msra.mxu0 %v15817_v43 }
 0x5b1   : > { %v12848_v18 = vadd.f32 %v3376_v21, %v3313_v22  ;;  %8642 = vmatmul.msk.f32.gmra.mxu2 %vm1217_vm0, %v12772_v58  ;;  %v3315_v60 = vpop.f32.mrf.mxu1  ;;  %v12864_v22 = vld [vmem:[#allocation6 + $0x50] sm:$0xff] }
 0x5b2   : > { %4403 = vmatpush.msra.mxu0 %v15819_v42  ;;  %v15824_v21 = vld [vmem:[#allocation125_spill] sm:$0xff] }
 0x5b3   : > { %15818 = vst [vmem:[#allocation146_spill] sm:$0xff] %v12848_v18  ;;  %v12855_v47 = vmul.f32 %v12848_v18, %v12555_v48  ;;  %v3497_v55 = vpop.f32.mrf.mxu2  ;;  %v12886_v48 = vld [vmem:[#allocation6 + $0x68] sm:$0xff] }
 0x5b4   : > { %v12857_v2 = vadd.f32 %v3497_v55, %v3434_v23  ;;  %4404 = vmatpush.msra.mxu0 %v15822_v32  ;;  %v3436_v52 = vpop.f32.mrf.mxu0  ;;  %v15825_v55 = vld [vmem:[#allocation147_spill] sm:$0xff] }
 0x5b5   : > { %15820 = vst [vmem:[#allocation150_spill] sm:$0xff] %v12855_v47  ;;  %8624 = vmatmul.msk.f32.gmra.mxu3 %vm1217_vm0, %v12860_v59  ;;  %3625 = vmatmul.f32.gmra.mxu1 %v12864_v22  ;;  %v15827_v47 = vld [vmem:[#allocation145_spill] sm:$0xff] }
 0x5b6   : > { %15821 = vst [vmem:[#allocation126_spill] sm:$0xff] %v12857_v2  ;;  %v12869_v42 = vmul.f32 %v12857_v2, %v12558_v50  ;;  %4405 = vmatpush.msra.mxu0 %v15824_v21  ;;  %v15830_v21 = vld [vmem:[#allocation143_spill] sm:$0xff] }
 0x5b7   : > { %3779 = vmatmul.f32.gmra.mxu0 %v12800_v7 }
 0x5b8   : > { %15823 = vst [vmem:[#allocation144_spill] sm:$0xff] %v12869_v42  ;;  %v3378_v23 = vpop.f32.mrf.mxu3  ;;  %4406 = vmatpush.msra.mxu0 %v15825_v55 }
 0x5b9   : > { %v12874_v43 = vadd.f32 %v3378_v23, %v3315_v60  ;;  %8643 = vmatmul.msk.f32.gmra.mxu2 %vm1217_vm0, %v12803_v41  ;;  %v3318_v32 = vpop.f32.mrf.mxu1  ;;  %v12890_v60 = vld [vmem:[#allocation6 + $0x60] sm:$0xff]  ;;  %v15832_v23 = vld [vmem:[#allocation141_spill] sm:$0xff] }
 0x5ba   : > { %4407 = vmatpush.msra.mxu0 %v15827_v47 }
 0x5bb   : > { %15826 = vst [vmem:[#allocation148_spill] sm:$0xff] %v12874_v43  ;;  %v12881_v18 = vmul.f32 %v12874_v43, %v12563_v24  ;;  %v3499_v42 = vpop.f32.mrf.mxu2  ;;  %v12931_v24 = vld [vmem:[#allocation6 + $0x88] sm:$0xff] }
 0x5bc   : > { %v12883_v2 = vadd.f32 %v3499_v42, %v3436_v52  ;;  %4408 = vmatpush.msra.mxu0 %v15830_v21  ;;  %v3439_v50 = vpop.f32.mrf.mxu0 }
 0x5bd   : > { %15828 = vst [vmem:[#allocation115_spill] sm:$0xff] %v12881_v18  ;;  %8625 = vmatmul.msk.f32.gmra.mxu3 %vm1217_vm0, %v12886_v48  ;;  %3628 = vmatmul.f32.gmra.mxu1 %v12890_v60 }
 0x5be   : > { %15829 = vst [vmem:[#allocation142_spill] sm:$0xff] %v12883_v2  ;;  %v12895_v47 = vmul.f32 %v12883_v2, %v12566_v61  ;;  %4409 = vmatpush.msra.mxu0 %v15832_v23  ;;  %v12913_v23 = vld [vmem:[#allocation6 + $0x70] sm:$0xff] }
 0x5bf   : > { %3782 = vmatmul.f32.gmra.mxu0 %v12838_v33 }
 0x5c0   : > { %15831 = vst [vmem:[#allocation58_spill] sm:$0xff] %v12895_v47  ;;  %v3381_v52 = vpop.f32.mrf.mxu3  ;;  %v12909_v47 = vld [vmem:[#allocation6 + $0x78] sm:$0xff] }
 0x5c1   : > { %v12899_v42 = vadd.f32 %v3381_v52, %v3318_v32  ;;  %8644 = vmatmul.msk.f32.gmra.mxu2 %vm1217_vm0, %v12834_v29  ;;  %v3320_v55 = vpop.f32.mrf.mxu1 }
 0x5c3   : > { %15833 = vst [vmem:[#allocation129_spill] sm:$0xff] %v12899_v42  ;;  %v12905_v21 = vmul.f32 %v12899_v42, %v12576_v1  ;;  %v3502_v18 = vpop.f32.mrf.mxu2 }
 0x5c4   : > { %v12907_v43 = vadd.f32 %v3502_v18, %v3439_v50  ;;  %v3441_v2 = vpop.f32.mrf.mxu0 }
 0x5c5   : > { %15834 = vst [vmem:[#allocation140_spill] sm:$0xff] %v12905_v21  ;;  %8626 = vmatmul.msk.f32.gmra.mxu3 %vm1217_vm0, %v12909_v47  ;;  %3631 = vmatmul.f32.gmra.mxu1 %v12913_v23 }
 0x5c6   : > { %15835 = vst [vmem:[#allocation69_spill] sm:$0xff] %v12907_v43  ;;  %v12918_v32 = vmul.f32 %v12907_v43, %v12578_v51  ;;  %v12953_v51 = vld [vmem:[#allocation6 + $0x98] sm:$0xff] }
 0x5c7   : > { %3785 = vmatmul.f32.gmra.mxu0 %v12864_v22 }
 0x5c8   : > { %15836 = vst [vmem:[#allocation118_spill] sm:$0xff] %v12918_v32  ;;  %v3383_v52 = vpop.f32.mrf.mxu3  ;;  %v12935_v32 = vld [vmem:[#allocation6 + $0x80] sm:$0xff] }
 0x5c9   : > { %v12921_v21 = vadd.f32 %v3383_v52, %v3320_v55  ;;  %8645 = vmatmul.msk.f32.gmra.mxu2 %vm1217_vm0, %v12860_v59  ;;  %v3323_v50 = vpop.f32.mrf.mxu1 }
 0x5cb   : > { %15837 = vst [vmem:[#allocation139_spill] sm:$0xff] %v12921_v21  ;;  %v12927_v18 = vmul.f32 %v12921_v21, %v12580_v5  ;;  %v3504_v42 = vpop.f32.mrf.mxu2 }
 0x5cc   : > { %v12929_v1 = vadd.f32 %v3504_v42, %v3441_v2  ;;  %v3444_v61 = vpop.f32.mrf.mxu0 }
 0x5cd   : > { %15838 = vst [vmem:[#allocation73_spill] sm:$0xff] %v12927_v18  ;;  %8627 = vmatmul.msk.f32.gmra.mxu3 %vm1217_vm0, %v12931_v24  ;;  %3634 = vmatmul.f32.gmra.mxu1 %v12935_v32 }
 0x5ce   : > { %15839 = vst [vmem:[#allocation55_spill] sm:$0xff] %v12929_v1  ;;  %v12940_v55 = vmul.f32 %v12929_v1, %v12582_v8  ;;  %v12975_v8 = vld [vmem:[#allocation6 + $0xa8] sm:$0xff] }
 0x5cf   : > { %3788 = vmatmul.f32.gmra.mxu0 %v12890_v60 }
 0x5d0   : > { %15840 = vst [vmem:[#allocation138_spill] sm:$0xff] %v12940_v55  ;;  %v3386_v52 = vpop.f32.mrf.mxu3  ;;  %v12957_v55 = vld [vmem:[#allocation6 + $0x90] sm:$0xff] }
 0x5d1   : > { %v12943_v18 = vadd.f32 %v3386_v52, %v3323_v50  ;;  %8646 = vmatmul.msk.f32.gmra.mxu2 %vm1217_vm0, %v12886_v48  ;;  %v3325_v2 = vpop.f32.mrf.mxu1 }
 0x5d3   : > { %15841 = vst [vmem:[#allocation122_spill] sm:$0xff] %v12943_v18  ;;  %v12949_v42 = vmul.f32 %v12943_v18, %v12590_v62  ;;  %v3507_v21 = vpop.f32.mrf.mxu2 }
 0x5d4   : > { %v12951_v43 = vadd.f32 %v3507_v21, %v3444_v61  ;;  %v3446_v5 = vpop.f32.mrf.mxu0 }
 0x5d5   : > { %15842 = vst [vmem:[#allocation61_spill] sm:$0xff] %v12949_v42  ;;  %8628 = vmatmul.msk.f32.gmra.mxu3 %vm1217_vm0, %v12953_v51  ;;  %3637 = vmatmul.f32.gmra.mxu1 %v12957_v55 }
 0x5d6   : > { %15843 = vst [vmem:[#allocation117_spill] sm:$0xff] %v12951_v43  ;;  %v12962_v50 = vmul.f32 %v12951_v43, %v12592_v12  ;;  %v12997_v12 = vld [vmem:[#allocation6 + $0xb8] sm:$0xff] }
 0x5d7   : > { %3791 = vmatmul.f32.gmra.mxu0 %v12913_v23 }
 0x5d8   : > { %15844 = vst [vmem:[#allocation119_spill] sm:$0xff] %v12962_v50  ;;  %v3388_v52 = vpop.f32.mrf.mxu3  ;;  %v12979_v50 = vld [vmem:[#allocation6 + $0xa0] sm:$0xff] }
 0x5d9   : > { %v12965_v42 = vadd.f32 %v3388_v52, %v3325_v2  ;;  %8647 = vmatmul.msk.f32.gmra.mxu2 %vm1217_vm0, %v12909_v47  ;;  %v3328_v61 = vpop.f32.mrf.mxu1 }
 0x5db   : > { %15845 = vst [vmem:[#allocation121_spill] sm:$0xff] %v12965_v42  ;;  %v12971_v21 = vmul.f32 %v12965_v42, %v12594_v17  ;;  %v3509_v18 = vpop.f32.mrf.mxu2 }
 0x5dc   : > { %v12973_v1 = vadd.f32 %v3509_v18, %v3446_v5  ;;  %v3449_v62 = vpop.f32.mrf.mxu0 }
 0x5dd   : > { %15846 = vst [vmem:[#allocation123_spill] sm:$0xff] %v12971_v21  ;;  %8629 = vmatmul.msk.f32.gmra.mxu3 %vm1217_vm0, %v12975_v8  ;;  %3640 = vmatmul.f32.gmra.mxu1 %v12979_v50 }
 0x5de   : > { %15847 = vst [vmem:[#allocation125_spill] sm:$0xff] %v12973_v1  ;;  %v12984_v2 = vmul.f32 %v12973_v1, %v12596_v35  ;;  %v13019_v35 = vld [vmem:[#allocation6 + $0xc8] sm:$0xff] }
 0x5df   : > { %3794 = vmatmul.f32.gmra.mxu0 %v12935_v32 }
 0x5e0   : > { %15848 = vst [vmem:[#allocation147_spill] sm:$0xff] %v12984_v2  ;;  %v3391_v52 = vpop.f32.mrf.mxu3  ;;  %v13001_v2 = vld [vmem:[#allocation6 + $0xb0] sm:$0xff] }
 0x5e1   : > { %v12987_v21 = vadd.f32 %v3391_v52, %v3328_v61  ;;  %8648 = vmatmul.msk.f32.gmra.mxu2 %vm1217_vm0, %v12931_v24  ;;  %v3330_v5 = vpop.f32.mrf.mxu1 }
 0x5e3   : > { %15849 = vst [vmem:[#allocation145_spill] sm:$0xff] %v12987_v21  ;;  %v12993_v18 = vmul.f32 %v12987_v21, %v12604_v20  ;;  %v3512_v42 = vpop.f32.mrf.mxu2 }
 0x5e4   : > { %v12995_v43 = vadd.f32 %v3512_v42, %v3449_v62  ;;  %v3451_v17 = vpop.f32.mrf.mxu0 }
 0x5e5   : > { %15850 = vst [vmem:[#allocation143_spill] sm:$0xff] %v12993_v18  ;;  %8630 = vmatmul.msk.f32.gmra.mxu3 %vm1217_vm0, %v12997_v12  ;;  %3643 = vmatmul.f32.gmra.mxu1 %v13001_v2 }
 0x5e6   : > { %15851 = vst [vmem:[#allocation141_spill] sm:$0xff] %v12995_v43  ;;  %v13006_v61 = vmul.f32 %v12995_v43, %v12606_v25  ;;  %v13041_v25 = vld [vmem:[#allocation6 + $0xd8] sm:$0xff] }
 0x5e7   : > { %3797 = vmatmul.f32.gmra.mxu0 %v12957_v55 }
 0x5e8   : > { %15852 = vst [vmem:[#allocation176_spill] sm:$0xff] %v13006_v61  ;;  %v3393_v52 = vpop.f32.mrf.mxu3  ;;  %v13023_v61 = vld [vmem:[#allocation6 + $0xc0] sm:$0xff] }
 0x5e9   : > { %v13009_v18 = vadd.f32 %v3393_v52, %v3330_v5  ;;  %8649 = vmatmul.msk.f32.gmra.mxu2 %vm1217_vm0, %v12953_v51  ;;  %v3333_v62 = vpop.f32.mrf.mxu1 }
 0x5eb   : > { %15853 = vst [vmem:[#allocation177_spill] sm:$0xff] %v13009_v18  ;;  %v13015_v42 = vmul.f32 %v13009_v18, %v12608_v63  ;;  %v3514_v21 = vpop.f32.mrf.mxu2 }
 0x5ec   : > { %v13017_v1 = vadd.f32 %v3514_v21, %v3451_v17  ;;  %v3454_v20 = vpop.f32.mrf.mxu0 }
 0x5ed   : > { %15854 = vst [vmem:[#allocation178_spill] sm:$0xff] %v13015_v42  ;;  %8631 = vmatmul.msk.f32.gmra.mxu3 %vm1217_vm0, %v13019_v35  ;;  %3646 = vmatmul.f32.gmra.mxu1 %v13023_v61 }
 0x5ee   : > { %15855 = vst [vmem:[#allocation179_spill] sm:$0xff] %v13017_v1  ;;  %v13028_v5 = vmul.f32 %v13017_v1, %v12610_v39  ;;  %v13063_v39 = vld [vmem:[#allocation6 + $0xe8] sm:$0xff] }
 0x5ef   : > { %3800 = vmatmul.f32.gmra.mxu0 %v12979_v50 }
 0x5f0   : > { %15856 = vst [vmem:[#allocation180_spill] sm:$0xff] %v13028_v5  ;;  %v3396_v52 = vpop.f32.mrf.mxu3  ;;  %v13045_v5 = vld [vmem:[#allocation6 + $0xd0] sm:$0xff] }
 0x5f1   : > { %v13031_v42 = vadd.f32 %v3396_v52, %v3333_v62  ;;  %8650 = vmatmul.msk.f32.gmra.mxu2 %vm1217_vm0, %v12975_v8  ;;  %v3335_v17 = vpop.f32.mrf.mxu1 }
 0x5f3   : > { %15857 = vst [vmem:[#allocation181_spill] sm:$0xff] %v13031_v42  ;;  %v13037_v21 = vmul.f32 %v13031_v42, %v12618_v16  ;;  %v3517_v18 = vpop.f32.mrf.mxu2 }
 0x5f4   : > { %v13039_v43 = vadd.f32 %v3517_v18, %v3454_v20  ;;  %v3456_v63 = vpop.f32.mrf.mxu0 }
 0x5f5   : > { %15858 = vst [vmem:[#allocation182_spill] sm:$0xff] %v13037_v21  ;;  %8632 = vmatmul.msk.f32.gmra.mxu3 %vm1217_vm0, %v13041_v25  ;;  %3649 = vmatmul.f32.gmra.mxu1 %v13045_v5 }
 0x5f6   : > { %15859 = vst [vmem:[#allocation183_spill] sm:$0xff] %v13039_v43  ;;  %v13050_v62 = vmul.f32 %v13039_v43, %v12620_v56  ;;  %v13085_v56 = vld [vmem:[#allocation6 + $0xf8] sm:$0xff] }
 0x5f7   : > { %3803 = vmatmul.f32.gmra.mxu0 %v13001_v2 }
 0x5f8   : > { %15860 = vst [vmem:[#allocation184_spill] sm:$0xff] %v13050_v62  ;;  %v3398_v52 = vpop.f32.mrf.mxu3  ;;  %v13067_v62 = vld [vmem:[#allocation6 + $0xe0] sm:$0xff] }
 0x5f9   : > { %v13053_v21 = vadd.f32 %v3398_v52, %v3335_v17  ;;  %8651 = vmatmul.msk.f32.gmra.mxu2 %vm1217_vm0, %v12997_v12  ;;  %v3338_v20 = vpop.f32.mrf.mxu1 }
 0x5fb   : > { %15861 = vst [vmem:[#allocation185_spill] sm:$0xff] %v13053_v21  ;;  %v13059_v18 = vmul.f32 %v13053_v21, %v12622_v45  ;;  %v3519_v42 = vpop.f32.mrf.mxu2 }
 0x5fc   : > { %v13061_v1 = vadd.f32 %v3519_v42, %v3456_v63  ;;  %v3459_v16 = vpop.f32.mrf.mxu0 }
 0x5fd   : > { %15862 = vst [vmem:[#allocation186_spill] sm:$0xff] %v13059_v18  ;;  %8633 = vmatmul.msk.f32.gmra.mxu3 %vm1217_vm0, %v13063_v39  ;;  %3652 = vmatmul.f32.gmra.mxu1 %v13067_v62 }
 0x5fe   : > { %15863 = vst [vmem:[#allocation187_spill] sm:$0xff] %v13061_v1  ;;  %v13072_v17 = vmul.f32 %v13061_v1, %v12624_v54  ;;  %v13105_v1 = vld [vmem:[#allocation6 + $0x100] sm:$0xff] }
 0x5ff   : > { %3806 = vmatmul.f32.gmra.mxu0 %v13023_v61  ;;  %15870 = vst [vmem:[#allocation194_spill] sm:$0xff] %v13105_v1 }
 0x600   : > { %15864 = vst [vmem:[#allocation188_spill] sm:$0xff] %v13072_v17  ;;  %v3401_v52 = vpop.f32.mrf.mxu3  ;;  %v13089_v17 = vld [vmem:[#allocation6 + $0xf0] sm:$0xff] }
 0x601   : > { %v13075_v18 = vadd.f32 %v3401_v52, %v3338_v20  ;;  %8652 = vmatmul.msk.f32.gmra.mxu2 %vm1217_vm0, %v13019_v35  ;;  %v3340_v63 = vpop.f32.mrf.mxu1 }
 0x603   : > { %15865 = vst [vmem:[#allocation189_spill] sm:$0xff] %v13075_v18  ;;  %v13081_v42 = vmul.f32 %v13075_v18, %v12632_v38  ;;  %v3522_v21 = vpop.f32.mrf.mxu2  ;;  %v13101_v18 = vld [vmem:[#allocation6 + $0x108] sm:$0xff] }
 0x604   : > { %v13083_v43 = vadd.f32 %v3522_v21, %v3459_v16  ;;  %v3461_v45 = vpop.f32.mrf.mxu0 }
 0x605   : > { %15866 = vst [vmem:[#allocation190_spill] sm:$0xff] %v13081_v42  ;;  %8634 = vmatmul.msk.f32.gmra.mxu3 %vm1217_vm0, %v13085_v56  ;;  %3655 = vmatmul.f32.gmra.mxu1 %v13089_v17 }
 0x606   : > { %15867 = vst [vmem:[#allocation191_spill] sm:$0xff] %v13083_v43  ;;  %v13094_v20 = vmul.f32 %v13083_v43, %v12634_v30 }
 0x607   : > { %3809 = vmatmul.f32.gmra.mxu0 %v13045_v5 }
 0x608   : > { %15868 = vst [vmem:[#allocation192_spill] sm:$0xff] %v13094_v20  ;;  %v3403_v52 = vpop.f32.mrf.mxu3 }
 0x609   : > { %8653 = vmatmul.msk.f32.gmra.mxu2 %vm1217_vm0, %v13041_v25  ;;  %v3611_v16 = vpop.f32.mrf.mxu1 }
 0x60b   : > { %v3524_v21 = vpop.f32.mrf.mxu2 }
 0x60c   : > { %v13099_v63 = vadd.f32 %v3524_v21, %v3461_v45  ;;  %v3464_v42 = vpop.f32.mrf.mxu0  ;;  %v13115_v45 = vmul.f32 %v15740_v15, %v15740_v15  ;;  %v13129_v15 = vld [vmem:[#allocation6 + $0x110] sm:$0xff] }
 0x60d   : > { %8635 = vmatmul.msk.f32.gmra.mxu3 %vm1217_vm0, %v13101_v18  ;;  %3658 = vmatmul.f32.gmra.mxu1 %v13105_v1 }
 0x60e   : > { %15869 = vst [vmem:[#allocation193_spill] sm:$0xff] %v13099_v63  ;;  %v13110_v52 = vmul.f32 %v13099_v63, %v12636_v19  ;;  %v13125_v63 = vld [vmem:[#allocation6 + $0x118] sm:$0xff] }
 0x60f   : > { %3812 = vmatmul.f32.gmra.mxu0 %v13067_v62  ;;  %15872 = vst [vmem:[#allocation196_spill] sm:$0xff] %v13115_v45 }
 0x610   : > { %15871 = vst [vmem:[#allocation195_spill] sm:$0xff] %v13110_v52  ;;  %v3691_v20 = vpop.f32.mrf.mxu3 }
 0x611   : > { %v13117_v21 = vadd.f32 %v3691_v20, %v3611_v16  ;;  %8654 = vmatmul.msk.f32.gmra.mxu2 %vm1217_vm0, %v13063_v39  ;;  %v3614_v43 = vpop.f32.mrf.mxu1 }
 0x613   : > { %15873 = vst [vmem:[#allocation197_spill] sm:$0xff] %v13117_v21  ;;  %v3527_v38 = vpop.f32.mrf.mxu2 }
 0x614   : > { %v13123_v54 = vadd.f32 %v3527_v38, %v3464_v42  ;;  %v3466_v52 = vpop.f32.mrf.mxu0  ;;  %v13139_v38 = vmul.f32 %v15744_v40, %v15744_v40 }
 0x615   : > { %8636 = vmatmul.msk.f32.gmra.mxu3 %vm1217_vm0, %v13125_v63  ;;  %3661 = vmatmul.f32.gmra.mxu1 %v13129_v15 }
 0x616   : > { %15874 = vst [vmem:[#allocation198_spill] sm:$0xff] %v13123_v54  ;;  %v13134_v20 = vmul.f32 %v13123_v54, %v12650_v37  ;;  %v13147_v54 = vld [vmem:[#allocation6 + $0x128] sm:$0xff] }
 0x617   : > { %3815 = vmatmul.f32.gmra.mxu0 %v13089_v17  ;;  %15876 = vst [vmem:[#allocation200_spill] sm:$0xff] %v13139_v38 }
 0x618   : > { %15875 = vst [vmem:[#allocation199_spill] sm:$0xff] %v13134_v20  ;;  %v3694_v16 = vpop.f32.mrf.mxu3  ;;  %v13151_v20 = vld [vmem:[#allocation6 + $0x120] sm:$0xff] }
 0x619   : > { %v13141_v42 = vadd.f32 %v3694_v16, %v3614_v43  ;;  %8655 = vmatmul.msk.f32.gmra.mxu2 %vm1217_vm0, %v13085_v56  ;;  %v3617_v52 = vpop.f32.mrf.mxu1  ;;  %v13157_v43 = vmul.f32 %v12458_v31, %v12458_v31  ;;  %v13175_v31 = vld [vmem:[#allocation6 + $0x130] sm:$0xff] }
 0x61b   : > { %15877 = vst [vmem:[#allocation201_spill] sm:$0xff] %v13141_v42  ;;  %v3529_v45 = vpop.f32.mrf.mxu2  ;;  %v13167_v42 = vmul.f32 %v15749_v34, %v15749_v34  ;;  %v13183_v34 = vmul.f32 %v15752_v9, %v15752_v9  ;;  %v13201_v9 = vld [vmem:[#allocation6 + $0x140] sm:$0x3f] }
 0x61c   : > { %v3771_v21 = vpop.f32.mrf.mxu0  ;;  %15878 = vst [vmem:[#allocation202_spill] sm:$0xff] %v13157_v43 }
 0x61d   : > { %8637 = vmatmul.msk.f32.gmra.mxu3 %vm1217_vm0, %v13147_v54  ;;  %3664 = vmatmul.f32.gmra.mxu1 %v13151_v20  ;;  %15880 = vst [vmem:[#allocation204_spill] sm:$0xff] %v13167_v42 }
 0x61e   : > { %15882 = vst [vmem:[#allocation206_spill] sm:$0xff] %v13183_v34 }
 0x61f   : > { %3818 = vmatmul.f32.gmra.mxu0 %v13105_v1  ;;  %v13171_v1 = vld [vmem:[#allocation6 + $0x138] sm:$0xff] }
 0x620   : > { %v3697_v40 = vpop.f32.mrf.mxu3 }
 0x621   : > { %v13159_v16 = vadd.f32 %v3697_v40, %v3617_v52  ;;  %8656 = vmatmul.msk.f32.gmra.mxu2 %vm1217_vm0, %v13101_v18  ;;  %v3620_v45 = vpop.f32.mrf.mxu1  ;;  %v13193_v52 = vmul.f32 %v15755_v10, %v15755_v10  ;;  %v13209_v10 = vmul.f32 %v12476_v27, %v12476_v27  ;;  %v15888_v27 = vld [vmem:[#allocation86_spill] sm:$0xff] }
 0x623   : > { %15879 = vst [vmem:[#allocation203_spill] sm:$0xff] %v13159_v16  ;;  %v3851_v38 = vpop.f32.mrf.mxu2 }
 0x624   : > { %v13169_v37 = vadd.f32 %v3851_v38, %v3771_v21  ;;  %v3774_v19 = vpop.f32.mrf.mxu0  ;;  %15884 = vst [vmem:[#allocation208_spill] sm:$0xff] %v13193_v52 }
 0x625   : > { %8638 = vmatmul.msk.f32.gmra.mxu3 %vm1217_vm0, %v13171_v1  ;;  %3667 = vmatmul.f32.gmra.mxu1 %v13175_v31  ;;  %15885 = vst [vmem:[#allocation209_spill] sm:$0xff] %v13209_v10  ;;  %v15890_v10 = vld [vmem:[#allocation78_spill] sm:$0xff] }
 0x626   : > { %15881 = vst [vmem:[#allocation205_spill] sm:$0xff] %v13169_v37  ;;  %v13197_v37 = vld [vmem:[#allocation6 + $0x148] sm:$0x3f] }
 0x627   : > { %3821 = vmatmul.f32.gmra.mxu0 %v13129_v15 }
 0x628   : > { %v3700_v40 = vpop.f32.mrf.mxu3 }
 0x629   : > { %v13185_v21 = vadd.f32 %v3700_v40, %v3620_v45  ;;  %8657 = vmatmul.msk.f32.gmra.mxu2 %vm1217_vm0, %v13125_v63  ;;  %v13219_v45 = vmul.f32 %v12478_v36, %v12478_v36  ;;  %v13233_v36 = vmul.f32 %v12480_v0, %v12480_v0 }
 0x62a   : > { %v3623_v38 = vpop.f32.mrf.mxu1 }
 0x62b   : > { %15883 = vst [vmem:[#allocation207_spill] sm:$0xff] %v13185_v21 }
 0x62c   : > { %v3854_v43 = vpop.f32.mrf.mxu2  ;;  %v3777_v16 = vpop.f32.mrf.mxu0  ;;  %15886 = vst [vmem:[#allocation210_spill] sm:$0xff] %v13219_v45 }
 0x62d   : > { %v13195_v42 = vadd.f32 %v3854_v43, %v3774_v19  ;;  %8639 = vmatmul.msk.f32.gmra.mxu3 %vm1217_vm0, %v13197_v37  ;;  %3670 = vmatmul.f32.gmra.mxu1 %v13201_v9 }
 0x62f   : > { %3824 = vmatmul.f32.gmra.mxu0 %v13151_v20 }
 0x630   : > { %v3703_v40 = vpop.f32.mrf.mxu3 }
 0x631   : > { %v13211_v19 = vadd.f32 %v3703_v40, %v3623_v38  ;;  %8658 = vmatmul.msk.f32.gmra.mxu2 %vm1217_vm0, %v13147_v54  ;;  %v15889_v38 = vld [vmem:[#allocation80_spill] sm:$0xff] }
 0x632   : > { %v3626_v43 = vpop.f32.mrf.mxu1 }
 0x634   : > { %v3857_v34 = vpop.f32.mrf.mxu2  ;;  %v3780_v21 = vpop.f32.mrf.mxu0 }
 0x635   : > { %v13221_v52 = vadd.f32 %v3857_v34, %v3777_v16  ;;  %8661 = vmatmul.msk.f32.vlgmr.msrb.gmra.mxu3 %vm1217_vm0, %v12717_v49  ;;  %3930 = vmatmul.f32.vlgmr.msrb.gmra.mxu1 %v12714_v53 }
 0x636   : > { %5287 = vmatpush.bf16.msrb.mxu3 %v15888_v27  ;;  %5244 = vmatpush.bf16.msrb.mxu1 %v15889_v38  ;;  %v15891_v27 = vld [vmem:[#allocation84_spill] sm:$0xff]  ;;  %v15896_v38 = vld [vmem:[#allocation71_spill] sm:$0xff] }
 0x637   : > { %15887 = vst [vmem:[#allocation211_spill] sm:$0xff] %v13221_v52  ;;  %3827 = vmatmul.f32.gmra.mxu0 %v13175_v31  ;;  %v13245_v52 = vmul.f32 %v12482_v46, %v12482_v46  ;;  %v13259_v46 = vmul.f32 %v12494_v26, %v12494_v26  ;;  %v15898_v26 = vld [vmem:[#allocation65_spill] sm:$0xff] }
 0x638   : > { %v3706_v30 = vpop.f32.mrf.mxu3 }
 0x639   : > { %v13235_v16 = vadd.f32 %v3706_v30, %v3626_v43  ;;  %8659 = vmatmul.msk.f32.gmra.mxu2 %vm1217_vm0, %v13171_v1  ;;  %15892 = vst [vmem:[#allocation86_spill] sm:$0xff] %v13245_v52  ;;  %v15894_v30 = vld [vmem:[#allocation75_spill] sm:$0xff]  ;;  %v13270_v52 = vmul.f32 %v12500_v57, %v12500_v57  ;;  %v13284_v57 = vmul.f32 %v12506_v3, %v12506_v3 }
 0x63a   : > { %v3629_v34 = vpop.f32.mrf.mxu1  ;;  %5245 = vmatpush.bf16.msrb.mxu1 %v15890_v10  ;;  %5288 = vmatpush.bf16.msrb.mxu3 %v15891_v27  ;;  %v15895_v10 = vld [vmem:[#allocation82_spill] sm:$0xff]  ;;  %v13297_v3 = vmul.f32 %v12510_v44, %v12510_v44  ;;  %v13312_v44 = vmul.f32 %v12521_v6, %v12521_v6  ;;  %v13325_v6 = vmul.f32 %v12528_v11, %v12528_v11 }
 0x63b   : > { %15897 = vst [vmem:[#allocation78_spill] sm:$0xff] %v13270_v52 }
 0x63c   : > { %v3860_v40 = vpop.f32.mrf.mxu2  ;;  %v3783_v45 = vpop.f32.mrf.mxu0  ;;  %15909 = vst [vmem:[#allocation84_spill] sm:$0xff] %v13325_v6 }
 0x63d   : > { %v13247_v0 = vadd.f32 %v3860_v40, %v3780_v21  ;;  %8662 = vmatmul.msk.f32.gmra.mxu3 %vm1217_vm0, %v12747_v14  ;;  %3933 = vmatmul.f32.gmra.mxu1 %v12744_v13 }
 0x63e   : > { %5246 = vmatpush.bf16.msrb.mxu1 %v15894_v30  ;;  %5289 = vmatpush.bf16.msrb.mxu3 %v15895_v10  ;;  %v15900_v30 = vld [vmem:[#allocation83_spill] sm:$0xff] }
 0x63f   : > { %15893 = vst [vmem:[#allocation80_spill] sm:$0xff] %v13247_v0  ;;  %3830 = vmatmul.f32.gmra.mxu0 %v13201_v9 }
 0x640   : > { %v3709_v27 = vpop.f32.mrf.mxu3 }
 0x641   : > { %v13261_v21 = vadd.f32 %v3709_v27, %v3629_v34  ;;  %8660 = vmatmul.msk.f32.gmra.mxu2 %vm1217_vm0, %v13197_v37  ;;  %v15899_v27 = vld [vmem:[#allocation76_spill] sm:$0xff] }
 0x642   : > { %v3632_v40 = vpop.f32.mrf.mxu1  ;;  %5247 = vmatpush.bf16.msrb.mxu1 %v15896_v38 }
 0x644   : > { %v3863_v10 = vpop.f32.mrf.mxu2  ;;  %v3786_v43 = vpop.f32.mrf.mxu0 }
 0x645   : > { %v13272_v0 = vadd.f32 %v3863_v10, %v3783_v45  ;;  %8663 = vmatmul.msk.f32.gmra.mxu3 %vm1217_vm0, %v12772_v58  ;;  %3936 = vmatmul.f32.gmra.mxu1 %v12769_v28 }
 0x646   : > { %5248 = vmatpush.bf16.msrb.mxu1 %v15898_v26  ;;  %v15901_v26 = vld [vmem:[#allocation59_spill] sm:$0xff] }
 0x647   : > { %4090 = vmatmul.f32.vlgmr.msrb.gmra.mxu0 %v12714_v53 }
 0x648   : > { %v3712_v38 = vpop.f32.mrf.mxu3  ;;  %5320 = vmatpush.bf16.msrb.mxu0 %v15899_v27  ;;  %v15902_v27 = vld [vmem:[#allocation72_spill] sm:$0xff] }
 0x649   : > { %v13286_v45 = vadd.f32 %v3712_v38, %v3632_v40  ;;  %8682 = vmatmul.msk.f32.vlgmr.msrb.gmra.mxu2 %vm1217_vm0, %v12717_v49  ;;  %v15903_v49 = vld [vmem:[#allocation81_spill] sm:$0xff] }
 0x64a   : > { %v3635_v10 = vpop.f32.mrf.mxu1  ;;  %5363 = vmatpush.bf16.msrb.mxu2 %v15900_v30  ;;  %5249 = vmatpush.bf16.msrb.mxu1 %v15901_v26  ;;  %v15904_v30 = vld [vmem:[#allocation53_spill] sm:$0xff] }
 0x64c   : > { %v3866_v34 = vpop.f32.mrf.mxu2  ;;  %v3789_v52 = vpop.f32.mrf.mxu0  ;;  %5321 = vmatpush.bf16.msrb.mxu0 %v15902_v27  ;;  %v15905_v27 = vld [vmem:[#allocation68_spill] sm:$0xff] }
 0x64d   : > { %v13299_v40 = vadd.f32 %v3866_v34, %v3786_v43  ;;  %8664 = vmatmul.msk.f32.gmra.mxu3 %vm1217_vm0, %v12803_v41  ;;  %3939 = vmatmul.f32.gmra.mxu1 %v12800_v7 }
 0x64e   : > { %5364 = vmatpush.bf16.msrb.mxu2 %v15903_v49  ;;  %5250 = vmatpush.bf16.msrb.mxu1 %v15904_v30  ;;  %v15906_v49 = vld [vmem:[#allocation48_spill] sm:$0xff]  ;;  %v15907_v30 = vld [vmem:[#allocation79_spill] sm:$0xff] }
 0x64f   : > { %4093 = vmatmul.f32.gmra.mxu0 %v12744_v13  ;;  %v15911_v13 = vld [vmem:[#allocation51_spill] sm:$0xff] }
 0x650   : > { %v3715_v26 = vpop.f32.mrf.mxu3  ;;  %5322 = vmatpush.bf16.msrb.mxu0 %v15905_v27  ;;  %v15908_v27 = vld [vmem:[#allocation62_spill] sm:$0xff] }
 0x651   : > { %v13314_v43 = vadd.f32 %v3715_v26, %v3635_v10  ;;  %8683 = vmatmul.msk.f32.gmra.mxu2 %vm1217_vm0, %v12747_v14 }
 0x652   : > { %v3638_v34 = vpop.f32.mrf.mxu1  ;;  %5251 = vmatpush.bf16.msrb.mxu1 %v15906_v49  ;;  %5365 = vmatpush.bf16.msrb.mxu2 %v15907_v30  ;;  %v15910_v49 = vld [vmem:[#allocation56_spill] sm:$0xff]  ;;  %v13338_v30 = vmul.f32 %v12537_v4, %v12537_v4 }
 0x654   : > { %v3869_v38 = vpop.f32.mrf.mxu2  ;;  %v3792_v53 = vpop.f32.mrf.mxu0  ;;  %5323 = vmatpush.bf16.msrb.mxu0 %v15908_v27 }
 0x655   : > { %v13327_v10 = vadd.f32 %v3869_v38, %v3789_v52  ;;  %8665 = vmatmul.msk.f32.gmra.mxu3 %vm1217_vm0, %v12834_v29  ;;  %3942 = vmatmul.f32.gmra.mxu1 %v12838_v33 }
 0x657   : > { %4096 = vmatmul.f32.gmra.mxu0 %v12769_v28  ;;  %v15912_v28 = vld [vmem:[#allocation136_spill] sm:$0xff] }
 0x658   : > { %v3718_v26 = vpop.f32.mrf.mxu3  ;;  %5324 = vmatpush.bf16.msrb.mxu0 %v15910_v49  ;;  %v13349_v49 = vmul.f32 %v15912_v28, %v15912_v28 }
 0x659   : > { %v13340_v11 = vadd.f32 %v3718_v26, %v3638_v34  ;;  %8684 = vmatmul.msk.f32.gmra.mxu2 %vm1217_vm0, %v12772_v58  ;;  %v15915_v34 = vld [vmem:[#allocation47_spill] sm:$0xff] }
 0x65a   : > { %v3641_v52 = vpop.f32.mrf.mxu1  ;;  %15913 = vst [vmem:[#allocation75_spill] sm:$0xff] %v13349_v49  ;;  %v15918_v49 = vld [vmem:[#allocation44_spill] sm:$0xff] }
 0x65c   : > { %v3872_v27 = vpop.f32.mrf.mxu2  ;;  %v3795_v14 = vpop.f32.mrf.mxu0  ;;  %5325 = vmatpush.bf16.msrb.mxu0 %v15911_v13  ;;  %v15916_v13 = vld [vmem:[#allocation134_spill] sm:$0xff] }
 0x65d   : > { %v13351_v6 = vadd.f32 %v3872_v27, %v3792_v53  ;;  %8666 = vmatmul.msk.f32.gmra.mxu3 %vm1217_vm0, %v12860_v59  ;;  %3945 = vmatmul.f32.gmra.mxu1 %v12864_v22  ;;  %v13362_v26 = vmul.f32 %v15916_v13, %v15916_v13 }
 0x65f   : > { %15914 = vst [vmem:[#allocation82_spill] sm:$0xff] %v13351_v6  ;;  %4099 = vmatmul.f32.gmra.mxu0 %v12800_v7  ;;  %v15919_v7 = vld [vmem:[#allocation132_spill] sm:$0xff] }
 0x660   : > { %v3721_v58 = vpop.f32.mrf.mxu3  ;;  %5326 = vmatpush.bf16.msrb.mxu0 %v15915_v34  ;;  %15917 = vst [vmem:[#allocation71_spill] sm:$0xff] %v13362_v26  ;;  %v13373_v34 = vmul.f32 %v15919_v7, %v15919_v7  ;;  %v15923_v26 = vld [vmem:[#allocation128_spill] sm:$0xff] }
 0x661   : > { %v13364_v28 = vadd.f32 %v3721_v58, %v3641_v52  ;;  %8685 = vmatmul.msk.f32.gmra.mxu2 %vm1217_vm0, %v12803_v41  ;;  %v15920_v58 = vld [vmem:[#allocation130_spill] sm:$0xff]  ;;  %v13395_v41 = vmul.f32 %v15923_v26, %v15923_v26 }
 0x662   : > { %v3644_v53 = vpop.f32.mrf.mxu1 }
 0x664   : > { %v3875_v38 = vpop.f32.mrf.mxu2  ;;  %v3798_v4 = vpop.f32.mrf.mxu0  ;;  %5327 = vmatpush.bf16.msrb.mxu0 %v15918_v49  ;;  %v13385_v49 = vmul.f32 %v15920_v58, %v15920_v58 }
 0x665   : > { %v13375_v6 = vadd.f32 %v3875_v38, %v3795_v14  ;;  %8667 = vmatmul.msk.f32.gmra.mxu3 %vm1217_vm0, %v12886_v48  ;;  %3948 = vmatmul.f32.gmra.mxu1 %v12890_v60 }
 0x666   : > { %15921 = vst [vmem:[#allocation65_spill] sm:$0xff] %v13385_v49 }
 0x667   : > { %4102 = vmatmul.f32.gmra.mxu0 %v12838_v33 }
 0x668   : > { %v3724_v52 = vpop.f32.mrf.mxu3 }
 0x669   : > { %v13387_v13 = vadd.f32 %v3724_v52, %v3644_v53  ;;  %8686 = vmatmul.msk.f32.gmra.mxu2 %vm1217_vm0, %v12834_v29  ;;  %v15924_v52 = vld [vmem:[#allocation137_spill] sm:$0xff] }
 0x66a   : > { %v3647_v14 = vpop.f32.mrf.mxu1  ;;  %v13407_v58 = vmul.f32 %v15924_v52, %v15924_v52 }
 0x66b   : > { %15922 = vst [vmem:[#allocation76_spill] sm:$0xff] %v13387_v13  ;;  %v15927_v13 = vld [vmem:[#allocation135_spill] sm:$0xff] }
 0x66c   : > { %v3878_v7 = vpop.f32.mrf.mxu2  ;;  %v3801_v27 = vpop.f32.mrf.mxu0  ;;  %15925 = vst [vmem:[#allocation83_spill] sm:$0xff] %v13407_v58  ;;  %v13417_v29 = vmul.f32 %v15927_v13, %v15927_v13 }
 0x66d   : > { %v13397_v33 = vadd.f32 %v3878_v7, %v3798_v4  ;;  %8668 = vmatmul.msk.f32.gmra.mxu3 %vm1217_vm0, %v12909_v47  ;;  %3951 = vmatmul.f32.gmra.mxu1 %v12913_v23 }
 0x66f   : > { %4105 = vmatmul.f32.gmra.mxu0 %v12864_v22 }
 0x670   : > { %v3727_v53 = vpop.f32.mrf.mxu3 }
 0x671   : > { %v13409_v38 = vadd.f32 %v3727_v53, %v3647_v14  ;;  %8687 = vmatmul.msk.f32.gmra.mxu2 %vm1217_vm0, %v12860_v59  ;;  %v15928_v53 = vld [vmem:[#allocation133_spill] sm:$0xff] }
 0x672   : > { %v3650_v4 = vpop.f32.mrf.mxu1  ;;  %v13429_v52 = vmul.f32 %v15928_v53, %v15928_v53 }
 0x673   : > { %15926 = vst [vmem:[#allocation59_spill] sm:$0xff] %v13409_v38  ;;  %v15931_v38 = vld [vmem:[#allocation154_spill] sm:$0xff] }
 0x674   : > { %v3881_v7 = vpop.f32.mrf.mxu2  ;;  %v3804_v49 = vpop.f32.mrf.mxu0  ;;  %15929 = vst [vmem:[#allocation72_spill] sm:$0xff] %v13429_v52  ;;  %v13439_v59 = vmul.f32 %v15931_v38, %v15931_v38 }
 0x675   : > { %v13419_v22 = vadd.f32 %v3881_v7, %v3801_v27  ;;  %8669 = vmatmul.msk.f32.gmra.mxu3 %vm1217_vm0, %v12931_v24  ;;  %3954 = vmatmul.f32.gmra.mxu1 %v12935_v32 }
 0x677   : > { %4108 = vmatmul.f32.gmra.mxu0 %v12890_v60 }
 0x678   : > { %v3730_v14 = vpop.f32.mrf.mxu3 }
 0x679   : > { %v13431_v26 = vadd.f32 %v3730_v14, %v3650_v4  ;;  %8688 = vmatmul.msk.f32.gmra.mxu2 %vm1217_vm0, %v12886_v48  ;;  %v15932_v14 = vld [vmem:[#allocation120_spill] sm:$0xff] }
 0x67a   : > { %v3653_v27 = vpop.f32.mrf.mxu1  ;;  %v13451_v53 = vmul.f32 %v15932_v14, %v15932_v14 }
 0x67b   : > { %15930 = vst [vmem:[#allocation81_spill] sm:$0xff] %v13431_v26  ;;  %v15935_v26 = vld [vmem:[#allocation131_spill] sm:$0xff] }
 0x67c   : > { %v3884_v7 = vpop.f32.mrf.mxu2  ;;  %v3807_v58 = vpop.f32.mrf.mxu0  ;;  %15933 = vst [vmem:[#allocation53_spill] sm:$0xff] %v13451_v53  ;;  %v13461_v48 = vmul.f32 %v15935_v26, %v15935_v26 }
 0x67d   : > { %v13441_v60 = vadd.f32 %v3884_v7, %v3804_v49  ;;  %8670 = vmatmul.msk.f32.gmra.mxu3 %vm1217_vm0, %v12953_v51  ;;  %3957 = vmatmul.f32.gmra.mxu1 %v12957_v55 }
 0x67f   : > { %4111 = vmatmul.f32.gmra.mxu0 %v12913_v23 }
 0x680   : > { %v3733_v4 = vpop.f32.mrf.mxu3 }
 0x681   : > { %v13453_v13 = vadd.f32 %v3733_v4, %v3653_v27  ;;  %8689 = vmatmul.msk.f32.gmra.mxu2 %vm1217_vm0, %v12909_v47  ;;  %v15936_v4 = vld [vmem:[#allocation155_spill] sm:$0xff] }
 0x682   : > { %v3656_v49 = vpop.f32.mrf.mxu1  ;;  %v13473_v14 = vmul.f32 %v15936_v4, %v15936_v4 }
 0x683   : > { %15934 = vst [vmem:[#allocation68_spill] sm:$0xff] %v13453_v13  ;;  %v15939_v13 = vld [vmem:[#allocation156_spill] sm:$0xff] }
 0x684   : > { %v3887_v7 = vpop.f32.mrf.mxu2  ;;  %v3810_v52 = vpop.f32.mrf.mxu0  ;;  %15937 = vst [vmem:[#allocation48_spill] sm:$0xff] %v13473_v14  ;;  %v13483_v47 = vmul.f32 %v15939_v13, %v15939_v13 }
 0x685   : > { %v13463_v23 = vadd.f32 %v3887_v7, %v3807_v58  ;;  %8671 = vmatmul.msk.f32.gmra.mxu3 %vm1217_vm0, %v12975_v8  ;;  %3960 = vmatmul.f32.gmra.mxu1 %v12979_v50 }
 0x687   : > { %4114 = vmatmul.f32.gmra.mxu0 %v12935_v32 }
 0x688   : > { %v3736_v27 = vpop.f32.mrf.mxu3 }
 0x689   : > { %v13475_v38 = vadd.f32 %v3736_v27, %v3656_v49  ;;  %8690 = vmatmul.msk.f32.gmra.mxu2 %vm1217_vm0, %v12931_v24  ;;  %v15940_v27 = vld [vmem:[#allocation116_spill] sm:$0xff] }
 0x68a   : > { %v3659_v58 = vpop.f32.mrf.mxu1  ;;  %v13495_v4 = vmul.f32 %v15940_v27, %v15940_v27 }
 0x68b   : > { %15938 = vst [vmem:[#allocation79_spill] sm:$0xff] %v13475_v38  ;;  %v15943_v38 = vld [vmem:[#allocation127_spill] sm:$0xff] }
 0x68c   : > { %v3890_v7 = vpop.f32.mrf.mxu2  ;;  %v3813_v53 = vpop.f32.mrf.mxu0  ;;  %15941 = vst [vmem:[#allocation62_spill] sm:$0xff] %v13495_v4  ;;  %v13505_v24 = vmul.f32 %v15943_v38, %v15943_v38 }
 0x68d   : > { %v13485_v32 = vadd.f32 %v3890_v7, %v3810_v52  ;;  %8672 = vmatmul.msk.f32.gmra.mxu3 %vm1217_vm0, %v12997_v12  ;;  %3963 = vmatmul.f32.gmra.mxu1 %v13001_v2 }
 0x68f   : > { %4117 = vmatmul.f32.gmra.mxu0 %v12957_v55 }
 0x690   : > { %v3739_v49 = vpop.f32.mrf.mxu3 }
 0x691   : > { %v13497_v26 = vadd.f32 %v3739_v49, %v3659_v58  ;;  %8691 = vmatmul.msk.f32.gmra.mxu2 %vm1217_vm0, %v12953_v51  ;;  %v15944_v49 = vld [vmem:[#allocation157_spill] sm:$0xff] }
 0x692   : > { %v3662_v52 = vpop.f32.mrf.mxu1  ;;  %v13517_v27 = vmul.f32 %v15944_v49, %v15944_v49 }
 0x693   : > { %15942 = vst [vmem:[#allocation56_spill] sm:$0xff] %v13497_v26  ;;  %v15947_v26 = vld [vmem:[#allocation158_spill] sm:$0xff] }
 0x694   : > { %v3893_v7 = vpop.f32.mrf.mxu2  ;;  %v3816_v14 = vpop.f32.mrf.mxu0  ;;  %15945 = vst [vmem:[#allocation51_spill] sm:$0xff] %v13517_v27  ;;  %v13527_v51 = vmul.f32 %v15947_v26, %v15947_v26 }
 0x695   : > { %v13507_v55 = vadd.f32 %v3893_v7, %v3813_v53  ;;  %8673 = vmatmul.msk.f32.gmra.mxu3 %vm1217_vm0, %v13019_v35  ;;  %3966 = vmatmul.f32.gmra.mxu1 %v13023_v61 }
 0x697   : > { %4120 = vmatmul.f32.gmra.mxu0 %v12979_v50 }
 0x698   : > { %v3742_v58 = vpop.f32.mrf.mxu3 }
 0x699   : > { %v13519_v13 = vadd.f32 %v3742_v58, %v3662_v52  ;;  %8692 = vmatmul.msk.f32.gmra.mxu2 %vm1217_vm0, %v12975_v8  ;;  %v15948_v58 = vld [vmem:[#allocation113_spill] sm:$0xff] }
 0x69a   : > { %v3665_v53 = vpop.f32.mrf.mxu1  ;;  %v13539_v49 = vmul.f32 %v15948_v58, %v15948_v58 }
 0x69b   : > { %15946 = vst [vmem:[#allocation136_spill] sm:$0xff] %v13519_v13  ;;  %v15951_v13 = vld [vmem:[#allocation124_spill] sm:$0xff] }
 0x69c   : > { %v3896_v7 = vpop.f32.mrf.mxu2  ;;  %v3819_v4 = vpop.f32.mrf.mxu0  ;;  %15949 = vst [vmem:[#allocation47_spill] sm:$0xff] %v13539_v49  ;;  %v13549_v8 = vmul.f32 %v15951_v13, %v15951_v13 }
 0x69d   : > { %v13529_v50 = vadd.f32 %v3896_v7, %v3816_v14  ;;  %8674 = vmatmul.msk.f32.gmra.mxu3 %vm1217_vm0, %v13041_v25  ;;  %3969 = vmatmul.f32.gmra.mxu1 %v13045_v5 }
 0x69e   : > { %15952 = vst [vmem:[#allocation44_spill] sm:$0xff] %v13549_v8  ;;  %v15969_v8 = vld [vmem:[#allocation197_spill] sm:$0xff] }
 0x69f   : > { %4123 = vmatmul.f32.gmra.mxu0 %v13001_v2 }
 0x6a0   : > { %v3745_v52 = vpop.f32.mrf.mxu3 }
 0x6a1   : > { %v13541_v38 = vadd.f32 %v3745_v52, %v3665_v53  ;;  %8693 = vmatmul.msk.f32.gmra.mxu2 %vm1217_vm0, %v12997_v12  ;;  %v15953_v52 = vld [vmem:[#allocation159_spill] sm:$0xff] }
 0x6a2   : > { %v3668_v14 = vpop.f32.mrf.mxu1  ;;  %v13561_v58 = vmul.f32 %v15953_v52, %v15953_v52 }
 0x6a3   : > { %15950 = vst [vmem:[#allocation134_spill] sm:$0xff] %v13541_v38  ;;  %v15956_v38 = vld [vmem:[#allocation160_spill] sm:$0xff] }
 0x6a4   : > { %v3899_v7 = vpop.f32.mrf.mxu2  ;;  %v3822_v27 = vpop.f32.mrf.mxu0  ;;  %15954 = vst [vmem:[#allocation132_spill] sm:$0xff] %v13561_v58  ;;  %v13571_v12 = vmul.f32 %v15956_v38, %v15956_v38 }
 0x6a5   : > { %v13551_v2 = vadd.f32 %v3899_v7, %v3819_v4  ;;  %8675 = vmatmul.msk.f32.gmra.mxu3 %vm1217_vm0, %v13063_v39  ;;  %3972 = vmatmul.f32.gmra.mxu1 %v13067_v62 }
 0x6a6   : > { %15957 = vst [vmem:[#allocation128_spill] sm:$0xff] %v13571_v12  ;;  %v15967_v12 = vld [vmem:[#allocation161_spill] sm:$0xff] }
 0x6a7   : > { %4126 = vmatmul.f32.gmra.mxu0 %v13023_v61 }
 0x6a8   : > { %v3748_v53 = vpop.f32.mrf.mxu3 }
 0x6a9   : > { %v13563_v26 = vadd.f32 %v3748_v53, %v3668_v14  ;;  %8694 = vmatmul.msk.f32.gmra.mxu2 %vm1217_vm0, %v13019_v35  ;;  %v15959_v53 = vld [vmem:[#allocation109_spill] sm:$0xff] }
 0x6aa   : > { %v3671_v4 = vpop.f32.mrf.mxu1  ;;  %v13583_v52 = vmul.f32 %v15959_v53, %v15959_v53  ;;  %v15966_v53 = vld [vmem:[#allocation64_spill] sm:$0xff] }
 0x6ab   : > { %15955 = vst [vmem:[#allocation130_spill] sm:$0xff] %v13563_v26  ;;  %v15962_v26 = vld [vmem:[#allocation74_spill] sm:$0xff]  ;;  %v4596_v38 = vmul.f32 %v15966_v53, %v15966_v53 }
 0x6ac   : > { %v3902_v7 = vpop.f32.mrf.mxu2  ;;  %v3825_v49 = vpop.f32.mrf.mxu0  ;;  %15960 = vst [vmem:[#allocation135_spill] sm:$0xff] %v13583_v52  ;;  %v13593_v35 = vmul.f32 %v15962_v26, %v15962_v26 }
 0x6ad   : > { %v13573_v61 = vadd.f32 %v3902_v7, %v3822_v27  ;;  %8676 = vmatmul.msk.f32.gmra.mxu3 %vm1217_vm0, %v13085_v56  ;;  %3975 = vmatmul.f32.gmra.mxu1 %v13089_v17 }
 0x6ae   : > { %15963 = vst [vmem:[#allocation154_spill] sm:$0xff] %v13593_v35 }
 0x6af   : > { %15958 = vst [vmem:[#allocation137_spill] sm:$0xff] %v13573_v61  ;;  %4129 = vmatmul.f32.gmra.mxu0 %v13045_v5  ;;  %v13609_v61 = vmul.f32 %v15967_v12, %v15967_v12  ;;  %v15973_v12 = vld [vmem:[#allocation163_spill] sm:$0xff] }
 0x6b0   : > { %v3751_v14 = vpop.f32.mrf.mxu3 }
 0x6b1   : > { %v13585_v13 = vadd.f32 %v3751_v14, %v3671_v4  ;;  %8695 = vmatmul.msk.f32.gmra.mxu2 %vm1217_vm0, %v13041_v25  ;;  %v15965_v4 = vld [vmem:[#allocation194_spill] sm:$0xff]  ;;  %15968 = vst [vmem:[#allocation131_spill] sm:$0xff] %v13609_v61  ;;  %v15970_v25 = vld [vmem:[#allocation196_spill] sm:$0xff] }
 0x6b2   : > { %v3931_v27 = vpop.f32.mrf.mxu1  ;;  %v15971_v35 = vsub.f32 %v15969_v8, %v15970_v25 }
 0x6b3   : > { %15961 = vst [vmem:[#allocation133_spill] sm:$0xff] %v13585_v13 }
 0x6b4   : > { %v3905_v7 = vpop.f32.mrf.mxu2  ;;  %v3828_v58 = vpop.f32.mrf.mxu0 }
 0x6b5   : > { %v13595_v5 = vadd.f32 %v3905_v7, %v3825_v49  ;;  %8677 = vmatmul.msk.f32.gmra.mxu3 %vm1217_vm0, %v13101_v18  ;;  %3978 = vmatmul.f32.gmra.mxu1 %v15965_v4 }
 0x6b7   : > { %15964 = vst [vmem:[#allocation120_spill] sm:$0xff] %v13595_v5  ;;  %4132 = vmatmul.f32.gmra.mxu0 %v13067_v62 }
 0x6b8   : > { %v4011_v14 = vpop.f32.mrf.mxu3 }
 0x6b9   : > { %v4012_v52 = vadd.f32 %v4011_v14, %v3931_v27  ;;  %8696 = vmatmul.msk.f32.gmra.mxu2 %vm1217_vm0, %v13063_v39  ;;  %v4598_v27 = vmul.f32 %v15973_v12, %v15973_v12  ;;  %v15974_v14 = vld [vmem:[#allocation162_spill] sm:$0xff] }
 0x6ba   : > { %v3934_v49 = vpop.f32.mrf.mxu1  ;;  %v13630_v53 = vmul.f32 %v15974_v14, %v15974_v14 }
 0x6bb   : > { %v4722_v26 = vsub.f32 %v4012_v52, %v4596_v38 }
 0x6bc   : > { %v3908_v7 = vpop.f32.mrf.mxu2  ;;  %v3831_v13 = vpop.f32.mrf.mxu0  ;;  %15975 = vst [vmem:[#allocation156_spill] sm:$0xff] %v13630_v53 }
 0x6bd   : > { %v13614_v62 = vadd.f32 %v4722_v26, %v15971_v35  ;;  %v13616_v5 = vadd.f32 %v3908_v7, %v3828_v58  ;;  %8678 = vmatmul.msk.f32.gmra.mxu3 %vm1217_vm0, %v13125_v63  ;;  %3981 = vmatmul.f32.gmra.mxu1 %v13129_v15  ;;  %v15976_v26 = vld [vmem:[#allocation201_spill] sm:$0xff]  ;;  %v15977_v7 = vld [vmem:[#allocation200_spill] sm:$0xff] }
 0x6be   : > { %v15978_v39 = vsub.f32 %v15976_v26, %v15977_v7  ;;  %v15982_v26 = vld [vmem:[#allocation203_spill] sm:$0xff]  ;;  %v15983_v7 = vld [vmem:[#allocation202_spill] sm:$0xff] }
 0x6bf   : > { %15972 = vst [vmem:[#allocation155_spill] sm:$0xff] %v13616_v5  ;;  %4135 = vmatmul.f32.gmra.mxu0 %v13089_v17 }
 0x6c0   : > { %v4014_v52 = vpop.f32.mrf.mxu3 }
 0x6c1   : > { %v4015_v38 = vadd.f32 %v4014_v52, %v3934_v49  ;;  %8697 = vmatmul.msk.f32.gmra.mxu2 %vm1217_vm0, %v13085_v56  ;;  %v15980_v52 = vld [vmem:[#allocation164_spill] sm:$0xff]  ;;  %v15984_v56 = vsub.f32 %v15982_v26, %v15983_v7  ;;  %v15991_v7 = vld [vmem:[#allocation207_spill] sm:$0xff] }
 0x6c2   : > { %v3937_v8 = vpop.f32.mrf.mxu1  ;;  %v4600_v12 = vmul.f32 %v15980_v52, %v15980_v52 }
 0x6c3   : > { %v4724_v58 = vsub.f32 %v4015_v38, %v4598_v27 }
 0x6c4   : > { %v3911_v35 = vpop.f32.mrf.mxu2  ;;  %v4091_v25 = vpop.f32.mrf.mxu0 }
 0x6c5   : > { %v13635_v17 = vadd.f32 %v4724_v58, %v15978_v39  ;;  %v13637_v61 = vadd.f32 %v3911_v35, %v3831_v13  ;;  %8679 = vmatmul.msk.f32.gmra.mxu3 %vm1217_vm0, %v13147_v54  ;;  %3984 = vmatmul.f32.gmra.mxu1 %v13151_v20  ;;  %v15981_v35 = vld [vmem:[#allocation166_spill] sm:$0xff] }
 0x6c6   : > { %v4597_v14 = vmul.f32 %v15981_v35, %v15981_v35 }
 0x6c7   : > { %15979 = vst [vmem:[#allocation116_spill] sm:$0xff] %v13637_v61  ;;  %4138 = vmatmul.f32.gmra.mxu0 %v15965_v4 }
 0x6c8   : > { %v4017_v49 = vpop.f32.mrf.mxu3 }
 0x6c9   : > { %v4018_v27 = vadd.f32 %v4017_v49, %v3937_v8  ;;  %8698 = vmatmul.msk.f32.gmra.mxu2 %vm1217_vm0, %v13101_v18  ;;  %v15986_v49 = vld [vmem:[#allocation167_spill] sm:$0xff] }
 0x6ca   : > { %v3940_v13 = vpop.f32.mrf.mxu1  ;;  %v4602_v52 = vmul.f32 %v15986_v49, %v15986_v49 }
 0x6cb   : > { %v4726_v39 = vsub.f32 %v4018_v27, %v4600_v12  ;;  %v15987_v12 = vld [vmem:[#allocation205_spill] sm:$0xff]  ;;  %v15988_v27 = vld [vmem:[#allocation204_spill] sm:$0xff] }
 0x6cc   : > { %v4171_v38 = vpop.f32.mrf.mxu2  ;;  %v4094_v58 = vpop.f32.mrf.mxu0  ;;  %v15989_v35 = vsub.f32 %v15987_v12, %v15988_v27 }
 0x6cd   : > { %v13654_v53 = vadd.f32 %v4726_v39, %v15984_v56  ;;  %v4172_v4 = vadd.f32 %v4171_v38, %v4091_v25  ;;  %8680 = vmatmul.msk.f32.gmra.mxu3 %vm1217_vm0, %v13171_v1  ;;  %3987 = vmatmul.f32.gmra.mxu1 %v13175_v31 }
 0x6cf   : > { %15985 = vst [vmem:[#allocation127_spill] sm:$0xff] %v13654_v53  ;;  %v4723_v8 = vsub.f32 %v4172_v4, %v4597_v14  ;;  %4141 = vmatmul.f32.gmra.mxu0 %v13129_v15  ;;  %v15990_v14 = vld [vmem:[#allocation168_spill] sm:$0xff]  ;;  %v15992_v4 = vld [vmem:[#allocation206_spill] sm:$0xff] }
 0x6d0   : > { %v4020_v18 = vpop.f32.mrf.mxu3  ;;  %v4599_v15 = vmul.f32 %v15990_v14, %v15990_v14  ;;  %v15993_v53 = vsub.f32 %v15991_v7, %v15992_v4 }
 0x6d1   : > { %v13665_v61 = vadd.f32 %v4723_v8, %v15989_v35  ;;  %v4021_v56 = vadd.f32 %v4020_v18, %v3940_v13  ;;  %8699 = vmatmul.msk.f32.gmra.mxu2 %vm1217_vm0, %v13125_v63  ;;  %v15994_v8 = vld [vmem:[#allocation169_spill] sm:$0xff] }
 0x6d2   : > { %v3943_v25 = vpop.f32.mrf.mxu1  ;;  %v4604_v18 = vmul.f32 %v15994_v8, %v15994_v8  ;;  %v16001_v8 = vld [vmem:[#allocation211_spill] sm:$0xff] }
 0x6d3   : > { %v4728_v39 = vsub.f32 %v4021_v56, %v4602_v52  ;;  %v15995_v52 = vld [vmem:[#allocation208_spill] sm:$0xff] }
 0x6d4   : > { %v4174_v38 = vpop.f32.mrf.mxu2  ;;  %v4097_v26 = vpop.f32.mrf.mxu0  ;;  %v15996_v12 = vsub.f32 %v13195_v42, %v15995_v52  ;;  %v9662_v42 = vld [vmem:[#allocation6 + $0x8] sm:$0xff] }
 0x6d5   : > { %v13674_v49 = vadd.f32 %v4728_v39, %v15993_v53  ;;  %v4175_v5 = vadd.f32 %v4174_v38, %v4094_v58  ;;  %8681 = vmatmul.msk.f32.gmra.mxu3 %vm1217_vm0, %v13197_v37  ;;  %3990 = vmatmul.f32.gmra.mxu1 %v13201_v9  ;;  %v15998_v38 = vld [vmem:[#allocation209_spill] sm:$0xff] }
 0x6d6   : > { %v15999_v14 = vsub.f32 %v13211_v19, %v15998_v38 }
 0x6d7   : > { %v4725_v13 = vsub.f32 %v4175_v5, %v4599_v15  ;;  %4144 = vmatmul.f32.gmra.mxu0 %v13151_v20  ;;  %v15997_v5 = vld [vmem:[#allocation171_spill] sm:$0xff] }
 0x6d8   : > { %v4023_v63 = vpop.f32.mrf.mxu3  ;;  %v4601_v20 = vmul.f32 %v15997_v5, %v15997_v5  ;;  %v16004_v5 = vld [vmem:[#allocation175_spill] sm:$0xff] }
 0x6d9   : > { %v13685_v27 = vadd.f32 %v4725_v13, %v15996_v12  ;;  %v4024_v53 = vadd.f32 %v4023_v63, %v3943_v25  ;;  %8700 = vmatmul.msk.f32.gmra.mxu2 %vm1217_vm0, %v13147_v54  ;;  %v9663_v25 = vld [vmem:[#allocation6] sm:$0xff]  ;;  %v16000_v13 = vld [vmem:[#allocation173_spill] sm:$0xff] }
 0x6da   : > { %v3946_v58 = vpop.f32.mrf.mxu1  ;;  %v4606_v63 = vmul.f32 %v16000_v13, %v16000_v13 }
 0x6db   : > { %v4730_v35 = vsub.f32 %v4024_v53, %v4604_v18  ;;  %v16002_v18 = vld [vmem:[#allocation210_spill] sm:$0xff] }
 0x6dc   : > { %v4177_v56 = vpop.f32.mrf.mxu2  ;;  %v4100_v39 = vpop.f32.mrf.mxu0  ;;  %v16003_v52 = vsub.f32 %v16001_v8, %v16002_v18  ;;  %v16008_v8 = vld [vmem:[#allocation86_spill] sm:$0xff] }
 0x6dd   : > { %v13694_v15 = vadd.f32 %v4730_v35, %v15999_v14  ;;  %v4178_v7 = vadd.f32 %v4177_v56, %v4097_v26  ;;  %8703 = vmatmul.msk.f32.vlgmr.msra.gmra.mxu3 %vm1217_vm0, %v9662_v42  ;;  %4250 = vmatmul.f32.vlgmr.msra.gmra.mxu1 %v9663_v25 }
 0x6df   : > { %v4727_v4 = vsub.f32 %v4178_v7, %v4601_v20  ;;  %4147 = vmatmul.f32.gmra.mxu0 %v13175_v31  ;;  %v4603_v31 = vmul.f32 %v16004_v5, %v16004_v5  ;;  %v16005_v20 = vsub.f32 %v13235_v16, %v13233_v36  ;;  %v9664_v7 = vld [vmem:[#allocation6 + $0x18] sm:$0xff]  ;;  %v16011_v5 = vsub.f32 %v13261_v21, %v13259_v46 }
 0x6e0   : > { %v4026_v54 = vpop.f32.mrf.mxu3 }
 0x6e1   : > { %v13703_v12 = vadd.f32 %v4727_v4, %v16003_v52  ;;  %v4027_v19 = vadd.f32 %v4026_v54, %v3946_v58  ;;  %8701 = vmatmul.msk.f32.gmra.mxu2 %vm1217_vm0, %v13171_v1  ;;  %v9665_v58 = vld [vmem:[#allocation6 + $0x10] sm:$0xff]  ;;  %v16006_v54 = vld [vmem:[#allocation63_spill] sm:$0xff] }
 0x6e2   : > { %v3949_v26 = vpop.f32.mrf.mxu1  ;;  %v4608_v13 = vmul.f32 %v16006_v54, %v16006_v54  ;;  %v16013_v54 = vld [vmem:[#allocation77_spill] sm:$0xff] }
 0x6e3   : > { %v4732_v53 = vsub.f32 %v4027_v19, %v4606_v63  ;;  %v16007_v63 = vld [vmem:[#allocation80_spill] sm:$0xff] }
 0x6e4   : > { %v4180_v35 = vpop.f32.mrf.mxu2  ;;  %v4103_v56 = vpop.f32.mrf.mxu0  ;;  %v16009_v18 = vsub.f32 %v16007_v63, %v16008_v8  ;;  %v16014_v63 = vld [vmem:[#allocation78_spill] sm:$0xff] }
 0x6e5   : > { %v13712_v38 = vadd.f32 %v4732_v53, %v16005_v20  ;;  %v4181_v14 = vadd.f32 %v4180_v35, %v4100_v39  ;;  %8704 = vmatmul.msk.f32.gmra.mxu3 %vm1217_vm0, %v9664_v7  ;;  %4253 = vmatmul.f32.gmra.mxu1 %v9665_v58  ;;  %v16010_v35 = vld [vmem:[#allocation70_spill] sm:$0xff]  ;;  %v16015_v8 = vsub.f32 %v13272_v0, %v16014_v63 }
 0x6e7   : > { %v4729_v4 = vsub.f32 %v4181_v14, %v4603_v31  ;;  %4150 = vmatmul.f32.gmra.mxu0 %v13201_v9  ;;  %v4605_v9 = vmul.f32 %v16010_v35, %v16010_v35  ;;  %v9666_v14 = vld [vmem:[#allocation6 + $0x28] sm:$0xff] }
 0x6e8   : > { %v4029_v1 = vpop.f32.mrf.mxu3  ;;  %v16018_v35 = vld [vmem:[#allocation45_spill] sm:$0xff] }
 0x6e9   : > { %v13721_v52 = vadd.f32 %v4729_v4, %v16009_v18  ;;  %v4030_v36 = vadd.f32 %v4029_v1, %v3949_v26  ;;  %8702 = vmatmul.msk.f32.gmra.mxu2 %vm1217_vm0, %v13197_v37  ;;  %v9667_v26 = vld [vmem:[#allocation6 + $0x20] sm:$0xff]  ;;  %v16012_v1 = vld [vmem:[#allocation102_spill] sm:$0xff] }
 0x6ea   : > { %v3952_v16 = vpop.f32.mrf.mxu1  ;;  %v16016_v18 = vld [vmem:[#allocation107_spill] sm:$0xff] }
 0x6eb   : > { %v4734_v39 = vsub.f32 %v4030_v36, %v4608_v13  ;;  %v4610_v13 = vmul.f32 %v16013_v54, %v16013_v54  ;;  %v16021_v54 = vld [vmem:[#allocation98_spill] sm:$0xff] }
 0x6ec   : > { %v4183_v19 = vpop.f32.mrf.mxu2  ;;  %v4106_v53 = vpop.f32.mrf.mxu0 }
 0x6ed   : > { %v13730_v31 = vadd.f32 %v4734_v39, %v16011_v5  ;;  %v4184_v20 = vadd.f32 %v4183_v19, %v4103_v56  ;;  %8705 = vmatmul.msk.f32.gmra.mxu3 %vm1217_vm0, %v9666_v14  ;;  %4256 = vmatmul.f32.gmra.mxu1 %v9667_v26  ;;  %v16017_v19 = vld [vmem:[#allocation100_spill] sm:$0xff]  ;;  %v16019_v5 = vsub.f32 %v13286_v45, %v13284_v57 }
 0x6ee   : > { %v16023_v57 = vsub.f32 %v13299_v40, %v13297_v3 }
 0x6ef   : > { %v4731_v4 = vsub.f32 %v4184_v20, %v4605_v9  ;;  %4410 = vmatmul.f32.vlgmr.msra.gmra.mxu0 %v9663_v25  ;;  %v4607_v9 = vmul.f32 %v16018_v35, %v16018_v35 }
 0x6f0   : > { %v4032_v37 = vpop.f32.mrf.mxu3  ;;  %5568 = vmatpush.bf16.msra.mxu0 %v16012_v1 }
 0x6f1   : > { %v13739_v46 = vadd.f32 %v4731_v4, %v16015_v8  ;;  %v4033_v21 = vadd.f32 %v4032_v37, %v3952_v16  ;;  %8724 = vmatmul.msk.f32.vlgmr.msra.gmra.mxu2 %vm1217_vm0, %v9662_v42  ;;  %v9668_v16 = vld [vmem:[#allocation6 + $0x38] sm:$0xff]  ;;  %v9669_v42 = vld [vmem:[#allocation6 + $0x30] sm:$0xff] }
 0x6f2   : > { %v3955_v56 = vpop.f32.mrf.mxu1  ;;  %5611 = vmatpush.bf16.msra.mxu2 %v16016_v18  ;;  %v16020_v4 = vld [vmem:[#allocation106_spill] sm:$0xff] }
 0x6f3   : > { %v4736_v36 = vsub.f32 %v4033_v21, %v4610_v13  ;;  %v16022_v13 = vld [vmem:[#allocation52_spill] sm:$0xff] }
 0x6f4   : > { %v4186_v39 = vpop.f32.mrf.mxu2  ;;  %v4109_v25 = vpop.f32.mrf.mxu0  ;;  %5569 = vmatpush.bf16.msra.mxu0 %v16017_v19  ;;  %v4612_v63 = vmul.f32 %v16022_v13, %v16022_v13  ;;  %v16024_v21 = vld [vmem:[#allocation104_spill] sm:$0xff]  ;;  %v16026_v19 = vld [vmem:[#allocation46_spill] sm:$0xff] }
 0x6f5   : > { %v13749_v0 = vadd.f32 %v4736_v36, %v16019_v5  ;;  %v4187_v20 = vadd.f32 %v4186_v39, %v4106_v53  ;;  %8706 = vmatmul.msk.f32.gmra.mxu3 %vm1217_vm0, %v9668_v16  ;;  %4259 = vmatmul.f32.gmra.mxu1 %v9669_v42  ;;  %v16025_v39 = vld [vmem:[#allocation96_spill] sm:$0xff]  ;;  %v4609_v35 = vmul.f32 %v16026_v19, %v16026_v19  ;;  %v9672_v19 = vld [vmem:[#allocation6 + $0x58] sm:$0xff] }
 0x6f6   : > { %5612 = vmatpush.bf16.msra.mxu2 %v16020_v4  ;;  %v16028_v4 = vld [vmem:[#allocation94_spill] sm:$0xff] }
 0x6f7   : > { %v4733_v37 = vsub.f32 %v4187_v20, %v4607_v9  ;;  %4413 = vmatmul.f32.gmra.mxu0 %v9665_v58  ;;  %v16027_v9 = vsub.f32 %v13314_v43, %v13312_v44 }
 0x6f8   : > { %v4035_v1 = vpop.f32.mrf.mxu3  ;;  %5570 = vmatpush.bf16.msra.mxu0 %v16021_v54  ;;  %v16030_v54 = vld [vmem:[#allocation84_spill] sm:$0xff] }
 0x6f9   : > { %v13759_v45 = vadd.f32 %v4733_v37, %v16023_v57  ;;  %v4036_v53 = vadd.f32 %v4035_v1, %v3955_v56  ;;  %8725 = vmatmul.msk.f32.gmra.mxu2 %vm1217_vm0, %v9664_v7  ;;  %v9670_v56 = vld [vmem:[#allocation6 + $0x48] sm:$0xff]  ;;  %v9671_v7 = vld [vmem:[#allocation6 + $0x40] sm:$0xff]  ;;  %v16029_v37 = vld [vmem:[#allocation110_spill] sm:$0xff]  ;;  %v16031_v13 = vsub.f32 %v13327_v10, %v16030_v54 }
 0x6fa   : > { %v3958_v8 = vpop.f32.mrf.mxu1  ;;  %5613 = vmatpush.bf16.msra.mxu2 %v16024_v21  ;;  %v4614_v1 = vmul.f32 %v16029_v37, %v16029_v37  ;;  %v16032_v21 = vld [vmem:[#allocation92_spill] sm:$0xff] }
 0x6fb   : > { %v4738_v18 = vsub.f32 %v4036_v53, %v4612_v63 }
 0x6fc   : > { %v4189_v36 = vpop.f32.mrf.mxu2  ;;  %v4112_v58 = vpop.f32.mrf.mxu0  ;;  %5571 = vmatpush.bf16.msra.mxu0 %v16025_v39 }
 0x6fd   : > { %v13769_v3 = vadd.f32 %v4738_v18, %v16027_v9  ;;  %v4190_v40 = vadd.f32 %v4189_v36, %v4109_v25  ;;  %8707 = vmatmul.msk.f32.gmra.mxu3 %vm1217_vm0, %v9670_v56  ;;  %4262 = vmatmul.f32.gmra.mxu1 %v9671_v7  ;;  %v16034_v36 = vsub.f32 %v13340_v11, %v13338_v30  ;;  %v16035_v9 = vld [vmem:[#allocation90_spill] sm:$0xff] }
 0x6ff   : > { %v4735_v5 = vsub.f32 %v4190_v40, %v4609_v35  ;;  %4416 = vmatmul.f32.gmra.mxu0 %v9667_v26  ;;  %v16033_v26 = vld [vmem:[#allocation114_spill] sm:$0xff] }
 0x700   : > { %v4038_v20 = vpop.f32.mrf.mxu3  ;;  %5572 = vmatpush.bf16.msra.mxu0 %v16028_v4  ;;  %v4611_v18 = vmul.f32 %v16033_v26, %v16033_v26  ;;  %v16036_v40 = vld [vmem:[#allocation146_spill] sm:$0xff]  ;;  %v16038_v4 = vld [vmem:[#allocation75_spill] sm:$0xff] }
 0x701   : > { %v13778_v44 = vadd.f32 %v4735_v5, %v16031_v13  ;;  %v4039_v43 = vadd.f32 %v4038_v20, %v3958_v8  ;;  %8726 = vmatmul.msk.f32.gmra.mxu2 %vm1217_vm0, %v9666_v14  ;;  %v9673_v8 = vld [vmem:[#allocation6 + $0x50] sm:$0xff]  ;;  %v4616_v5 = vmul.f32 %v16036_v40, %v16036_v40 }
 0x702   : > { %v3961_v25 = vpop.f32.mrf.mxu1  ;;  %v16037_v20 = vld [vmem:[#allocation82_spill] sm:$0xff] }
 0x703   : > { %v4740_v63 = vsub.f32 %v4039_v43, %v4614_v1  ;;  %v16039_v37 = vsub.f32 %v16037_v20, %v16038_v4  ;;  %v16040_v43 = vld [vmem:[#allocation88_spill] sm:$0xff] }
 0x704   : > { %v4192_v57 = vpop.f32.mrf.mxu2  ;;  %v4115_v53 = vpop.f32.mrf.mxu0  ;;  %5573 = vmatpush.bf16.msra.mxu0 %v16032_v21 }
 0x705   : > { %v13787_v39 = vadd.f32 %v4740_v63, %v16034_v36  ;;  %v4193_v10 = vadd.f32 %v4192_v57, %v4112_v58  ;;  %8708 = vmatmul.msk.f32.gmra.mxu3 %vm1217_vm0, %v9672_v19  ;;  %4265 = vmatmul.f32.gmra.mxu1 %v9673_v8  ;;  %v16042_v57 = vld [vmem:[#allocation71_spill] sm:$0xff]  ;;  %v9674_v36 = vld [vmem:[#allocation6 + $0x68] sm:$0xff] }
 0x706   : > { %v16043_v21 = vsub.f32 %v13364_v28, %v16042_v57 }
 0x707   : > { %v4737_v14 = vsub.f32 %v4193_v10, %v4611_v18  ;;  %4419 = vmatmul.f32.gmra.mxu0 %v9669_v42  ;;  %v16041_v42 = vld [vmem:[#allocation126_spill] sm:$0xff] }
 0x708   : > { %v4041_v35 = vpop.f32.mrf.mxu3  ;;  %5574 = vmatpush.bf16.msra.mxu0 %v16035_v9  ;;  %v4613_v63 = vmul.f32 %v16041_v42, %v16041_v42  ;;  %v16045_v9 = vsub.f32 %v13375_v6, %v13373_v34  ;;  %v9677_v6 = vld [vmem:[#allocation6 + $0x70] sm:$0xff] }
 0x709   : > { %v13796_v30 = vadd.f32 %v4737_v14, %v16039_v37  ;;  %v4042_v11 = vadd.f32 %v4041_v35, %v3961_v25  ;;  %8727 = vmatmul.msk.f32.gmra.mxu2 %vm1217_vm0, %v9668_v16  ;;  %v9675_v25 = vld [vmem:[#allocation6 + $0x60] sm:$0xff]  ;;  %v16046_v37 = vld [vmem:[#allocation142_spill] sm:$0xff] }
 0x70a   : > { %v3964_v58 = vpop.f32.mrf.mxu1  ;;  %v16044_v14 = vld [vmem:[#allocation148_spill] sm:$0xff] }
 0x70b   : > { %v4742_v1 = vsub.f32 %v4042_v11, %v4616_v5  ;;  %v4618_v35 = vmul.f32 %v16044_v14, %v16044_v14  ;;  %v4615_v11 = vmul.f32 %v16046_v37, %v16046_v37 }
 0x70c   : > { %v4195_v54 = vpop.f32.mrf.mxu2  ;;  %v4118_v13 = vpop.f32.mrf.mxu0  ;;  %5575 = vmatpush.bf16.msra.mxu0 %v16040_v43 }
 0x70d   : > { %v13805_v26 = vadd.f32 %v4742_v1, %v16043_v21  ;;  %v4196_v18 = vadd.f32 %v4195_v54, %v4115_v53  ;;  %8709 = vmatmul.msk.f32.gmra.mxu3 %vm1217_vm0, %v9674_v36  ;;  %4268 = vmatmul.f32.gmra.mxu1 %v9675_v25  ;;  %v16048_v1 = vld [vmem:[#allocation65_spill] sm:$0xff]  ;;  %v16051_v21 = vsub.f32 %v13397_v33, %v13395_v41  ;;  %v9679_v41 = vld [vmem:[#allocation6 + $0x80] sm:$0xff] }
 0x70f   : > { %v4739_v16 = vsub.f32 %v4196_v18, %v4613_v63  ;;  %4422 = vmatmul.f32.gmra.mxu0 %v9671_v7  ;;  %v16047_v7 = vld [vmem:[#allocation76_spill] sm:$0xff]  ;;  %v9676_v63 = vld [vmem:[#allocation6 + $0x78] sm:$0xff] }
 0x710   : > { %v4044_v10 = vpop.f32.mrf.mxu3  ;;  %v16049_v54 = vsub.f32 %v16047_v7, %v16048_v1  ;;  %v9678_v7 = vld [vmem:[#allocation6 + $0x88] sm:$0xff] }
 0x711   : > { %v13813_v40 = vadd.f32 %v4739_v16, %v16045_v9  ;;  %v4045_v28 = vadd.f32 %v4044_v10, %v3964_v58  ;;  %8728 = vmatmul.msk.f32.gmra.mxu2 %vm1217_vm0, %v9670_v56  ;;  %v16050_v58 = vld [vmem:[#allocation129_spill] sm:$0xff] }
 0x712   : > { %v3967_v53 = vpop.f32.mrf.mxu1  ;;  %v4620_v57 = vmul.f32 %v16050_v58, %v16050_v58  ;;  %v16052_v9 = vld [vmem:[#allocation69_spill] sm:$0xff] }
 0x713   : > { %v4744_v5 = vsub.f32 %v4045_v28, %v4618_v35  ;;  %v4617_v28 = vmul.f32 %v16052_v9, %v16052_v9 }
 0x714   : > { %v4198_v20 = vpop.f32.mrf.mxu2  ;;  %v4121_v4 = vpop.f32.mrf.mxu0 }
 0x715   : > { %v13821_v43 = vadd.f32 %v4744_v5, %v16049_v54  ;;  %v4199_v42 = vadd.f32 %v4198_v20, %v4118_v13  ;;  %8710 = vmatmul.msk.f32.gmra.mxu3 %vm1217_vm0, %v9676_v63  ;;  %4271 = vmatmul.f32.gmra.mxu1 %v9677_v6  ;;  %v16054_v5 = vld [vmem:[#allocation83_spill] sm:$0xff]  ;;  %v16057_v54 = vsub.f32 %v13419_v22, %v13417_v29  ;;  %v9681_v29 = vld [vmem:[#allocation6 + $0x90] sm:$0xff] }
 0x717   : > { %v4741_v34 = vsub.f32 %v4199_v42, %v4615_v11  ;;  %4425 = vmatmul.f32.gmra.mxu0 %v9673_v8  ;;  %v16053_v8 = vld [vmem:[#allocation59_spill] sm:$0xff] }
 0x718   : > { %v4047_v56 = vpop.f32.mrf.mxu3  ;;  %v16055_v20 = vsub.f32 %v16053_v8, %v16054_v5  ;;  %v9680_v8 = vld [vmem:[#allocation6 + $0x98] sm:$0xff] }
 0x719   : > { %v13829_v18 = vadd.f32 %v4741_v34, %v16051_v21  ;;  %v4048_v16 = vadd.f32 %v4047_v56, %v3967_v53  ;;  %8729 = vmatmul.msk.f32.gmra.mxu2 %vm1217_vm0, %v9672_v19  ;;  %v16056_v53 = vld [vmem:[#allocation139_spill] sm:$0xff] }
 0x71a   : > { %v3970_v13 = vpop.f32.mrf.mxu1  ;;  %v4622_v1 = vmul.f32 %v16056_v53, %v16056_v53  ;;  %v16058_v21 = vld [vmem:[#allocation55_spill] sm:$0xff] }
 0x71b   : > { %v4746_v10 = vsub.f32 %v4048_v16, %v4620_v57  ;;  %v4619_v16 = vmul.f32 %v16058_v21, %v16058_v21 }
 0x71c   : > { %v4201_v14 = vpop.f32.mrf.mxu2  ;;  %v4124_v35 = vpop.f32.mrf.mxu0 }
 0x71d   : > { %v13837_v37 = vadd.f32 %v4746_v10, %v16055_v20  ;;  %v4202_v11 = vadd.f32 %v4201_v14, %v4121_v4  ;;  %8711 = vmatmul.msk.f32.gmra.mxu3 %vm1217_vm0, %v9678_v7  ;;  %4274 = vmatmul.f32.gmra.mxu1 %v9679_v41  ;;  %v16060_v10 = vld [vmem:[#allocation72_spill] sm:$0xff]  ;;  %v16063_v20 = vsub.f32 %v13441_v60, %v13439_v59 }
 0x71e   : > { %v9683_v59 = vld [vmem:[#allocation6 + $0xa0] sm:$0xff] }
 0x71f   : > { %v4743_v33 = vsub.f32 %v4202_v11, %v4617_v28  ;;  %4428 = vmatmul.f32.gmra.mxu0 %v9675_v25  ;;  %v16059_v25 = vld [vmem:[#allocation81_spill] sm:$0xff] }
 0x720   : > { %v4050_v19 = vpop.f32.mrf.mxu3  ;;  %v16061_v14 = vsub.f32 %v16059_v25, %v16060_v10  ;;  %v9682_v25 = vld [vmem:[#allocation6 + $0xa8] sm:$0xff] }
 0x721   : > { %v13845_v42 = vadd.f32 %v4743_v33, %v16057_v54  ;;  %v4051_v34 = vadd.f32 %v4050_v19, %v3970_v13  ;;  %8730 = vmatmul.msk.f32.gmra.mxu2 %vm1217_vm0, %v9674_v36  ;;  %v16062_v13 = vld [vmem:[#allocation122_spill] sm:$0xff]  ;;  %v16064_v54 = vld [vmem:[#allocation117_spill] sm:$0xff] }
 0x722   : > { %v3973_v4 = vpop.f32.mrf.mxu1  ;;  %v4624_v5 = vmul.f32 %v16062_v13, %v16062_v13 }
 0x723   : > { %v4748_v56 = vsub.f32 %v4051_v34, %v4622_v1  ;;  %v4621_v34 = vmul.f32 %v16064_v54, %v16064_v54 }
 0x724   : > { %v4204_v58 = vpop.f32.mrf.mxu2  ;;  %v4127_v57 = vpop.f32.mrf.mxu0 }
 0x725   : > { %v13853_v9 = vadd.f32 %v4748_v56, %v16061_v14  ;;  %v4205_v28 = vadd.f32 %v4204_v58, %v4124_v35  ;;  %8712 = vmatmul.msk.f32.gmra.mxu3 %vm1217_vm0, %v9680_v8  ;;  %4277 = vmatmul.f32.gmra.mxu1 %v9681_v29  ;;  %v16066_v56 = vld [vmem:[#allocation53_spill] sm:$0xff]  ;;  %v16069_v14 = vsub.f32 %v13463_v23, %v13461_v48 }
 0x726   : > { %v9685_v48 = vld [vmem:[#allocation6 + $0xb0] sm:$0xff] }
 0x727   : > { %v4745_v22 = vsub.f32 %v4205_v28, %v4619_v16  ;;  %4431 = vmatmul.f32.gmra.mxu0 %v9677_v6  ;;  %v16065_v6 = vld [vmem:[#allocation68_spill] sm:$0xff] }
 0x728   : > { %v4053_v36 = vpop.f32.mrf.mxu3  ;;  %v16067_v58 = vsub.f32 %v16065_v6, %v16066_v56  ;;  %v9684_v6 = vld [vmem:[#allocation6 + $0xb8] sm:$0xff] }
 0x729   : > { %v13861_v11 = vadd.f32 %v4745_v22, %v16063_v20  ;;  %v4054_v33 = vadd.f32 %v4053_v36, %v3973_v4  ;;  %8731 = vmatmul.msk.f32.gmra.mxu2 %vm1217_vm0, %v9676_v63  ;;  %v16068_v4 = vld [vmem:[#allocation121_spill] sm:$0xff] }
 0x72a   : > { %v3976_v35 = vpop.f32.mrf.mxu1  ;;  %v4626_v10 = vmul.f32 %v16068_v4, %v16068_v4  ;;  %v16070_v20 = vld [vmem:[#allocation125_spill] sm:$0xff] }
 0x72b   : > { %v4750_v19 = vsub.f32 %v4054_v33, %v4624_v5  ;;  %v4623_v33 = vmul.f32 %v16070_v20, %v16070_v20 }
 0x72c   : > { %v4207_v53 = vpop.f32.mrf.mxu2  ;;  %v4130_v1 = vpop.f32.mrf.mxu0 }
 0x72d   : > { %v13869_v21 = vadd.f32 %v4750_v19, %v16067_v58  ;;  %v4208_v16 = vadd.f32 %v4207_v53, %v4127_v57  ;;  %8713 = vmatmul.msk.f32.gmra.mxu3 %vm1217_vm0, %v9682_v25  ;;  %4280 = vmatmul.f32.gmra.mxu1 %v9683_v59  ;;  %v16072_v19 = vld [vmem:[#allocation48_spill] sm:$0xff]  ;;  %v16075_v58 = vsub.f32 %v13485_v32, %v13483_v47 }
 0x72e   : > { %v9687_v47 = vld [vmem:[#allocation6 + $0xc0] sm:$0xff] }
 0x72f   : > { %v4747_v60 = vsub.f32 %v4208_v16, %v4621_v34  ;;  %4434 = vmatmul.f32.gmra.mxu0 %v9679_v41  ;;  %v16071_v41 = vld [vmem:[#allocation79_spill] sm:$0xff] }
 0x730   : > { %v4056_v63 = vpop.f32.mrf.mxu3  ;;  %v16073_v53 = vsub.f32 %v16071_v41, %v16072_v19  ;;  %v9686_v41 = vld [vmem:[#allocation6 + $0xc8] sm:$0xff] }
 0x731   : > { %v13877_v28 = vadd.f32 %v4747_v60, %v16069_v14  ;;  %v4057_v22 = vadd.f32 %v4056_v63, %v3976_v35  ;;  %8732 = vmatmul.msk.f32.gmra.mxu2 %vm1217_vm0, %v9678_v7  ;;  %v16074_v35 = vld [vmem:[#allocation145_spill] sm:$0xff] }
 0x732   : > { %v3979_v57 = vpop.f32.mrf.mxu1  ;;  %v4628_v56 = vmul.f32 %v16074_v35, %v16074_v35  ;;  %v16076_v14 = vld [vmem:[#allocation141_spill] sm:$0xff] }
 0x733   : > { %v4752_v36 = vsub.f32 %v4057_v22, %v4626_v10  ;;  %v4625_v22 = vmul.f32 %v16076_v14, %v16076_v14 }
 0x734   : > { %v4210_v13 = vpop.f32.mrf.mxu2  ;;  %v4133_v5 = vpop.f32.mrf.mxu0 }
 0x735   : > { %v13885_v54 = vadd.f32 %v4752_v36, %v16073_v53  ;;  %v4211_v34 = vadd.f32 %v4210_v13, %v4130_v1  ;;  %8714 = vmatmul.msk.f32.gmra.mxu3 %vm1217_vm0, %v9684_v6  ;;  %4283 = vmatmul.f32.gmra.mxu1 %v9685_v48  ;;  %v16078_v36 = vld [vmem:[#allocation62_spill] sm:$0xff]  ;;  %v16081_v53 = vsub.f32 %v13507_v55, %v13505_v24 }
 0x736   : > { %v9689_v24 = vld [vmem:[#allocation6 + $0xd0] sm:$0xff] }
 0x737   : > { %v4749_v23 = vsub.f32 %v4211_v34, %v4623_v33  ;;  %4437 = vmatmul.f32.gmra.mxu0 %v9681_v29  ;;  %v16077_v29 = vld [vmem:[#allocation56_spill] sm:$0xff] }
 0x738   : > { %v4059_v7 = vpop.f32.mrf.mxu3  ;;  %v16079_v13 = vsub.f32 %v16077_v29, %v16078_v36  ;;  %v9688_v29 = vld [vmem:[#allocation6 + $0xd8] sm:$0xff] }
 0x739   : > { %v13893_v16 = vadd.f32 %v4749_v23, %v16075_v58  ;;  %v4060_v60 = vadd.f32 %v4059_v7, %v3979_v57  ;;  %8733 = vmatmul.msk.f32.gmra.mxu2 %vm1217_vm0, %v9680_v8  ;;  %v16080_v57 = vld [vmem:[#allocation177_spill] sm:$0xff]  ;;  %v16082_v58 = vld [vmem:[#allocation179_spill] sm:$0xff] }
 0x73a   : > { %v3982_v1 = vpop.f32.mrf.mxu1  ;;  %v4630_v19 = vmul.f32 %v16080_v57, %v16080_v57 }
 0x73b   : > { %v4754_v63 = vsub.f32 %v4060_v60, %v4628_v56  ;;  %v4627_v60 = vmul.f32 %v16082_v58, %v16082_v58 }
 0x73c   : > { %v4213_v4 = vpop.f32.mrf.mxu2  ;;  %v4136_v10 = vpop.f32.mrf.mxu0 }
 0x73d   : > { %v13901_v20 = vadd.f32 %v4754_v63, %v16079_v13  ;;  %v4214_v33 = vadd.f32 %v4213_v4, %v4133_v5  ;;  %8715 = vmatmul.msk.f32.gmra.mxu3 %vm1217_vm0, %v9686_v41  ;;  %4286 = vmatmul.f32.gmra.mxu1 %v9687_v47  ;;  %v16084_v63 = vld [vmem:[#allocation51_spill] sm:$0xff]  ;;  %v16087_v13 = vsub.f32 %v13529_v50, %v13527_v51 }
 0x73e   : > { %v9691_v51 = vld [vmem:[#allocation6 + $0xe0] sm:$0xff] }
 0x73f   : > { %v4751_v32 = vsub.f32 %v4214_v33, %v4625_v22  ;;  %4440 = vmatmul.f32.gmra.mxu0 %v9683_v59  ;;  %v16083_v59 = vld [vmem:[#allocation136_spill] sm:$0xff] }
 0x740   : > { %v4062_v8 = vpop.f32.mrf.mxu3  ;;  %v16085_v4 = vsub.f32 %v16083_v59, %v16084_v63  ;;  %v9690_v59 = vld [vmem:[#allocation6 + $0xe8] sm:$0xff] }
 0x741   : > { %v13909_v34 = vadd.f32 %v4751_v32, %v16081_v53  ;;  %v4063_v23 = vadd.f32 %v4062_v8, %v3982_v1  ;;  %8734 = vmatmul.msk.f32.gmra.mxu2 %vm1217_vm0, %v9682_v25  ;;  %v16086_v1 = vld [vmem:[#allocation181_spill] sm:$0xff]  ;;  %v16088_v53 = vld [vmem:[#allocation183_spill] sm:$0xff] }
 0x742   : > { %v3985_v5 = vpop.f32.mrf.mxu1  ;;  %v4632_v36 = vmul.f32 %v16086_v1, %v16086_v1 }
 0x743   : > { %v4756_v7 = vsub.f32 %v4063_v23, %v4630_v19  ;;  %v4629_v23 = vmul.f32 %v16088_v53, %v16088_v53 }
 0x744   : > { %v4216_v35 = vpop.f32.mrf.mxu2  ;;  %v4139_v56 = vpop.f32.mrf.mxu0 }
 0x745   : > { %v13917_v14 = vadd.f32 %v4756_v7, %v16085_v4  ;;  %v4217_v22 = vadd.f32 %v4216_v35, %v4136_v10  ;;  %8716 = vmatmul.msk.f32.gmra.mxu3 %vm1217_vm0, %v9688_v29  ;;  %4289 = vmatmul.f32.gmra.mxu1 %v9689_v24  ;;  %v16090_v7 = vld [vmem:[#allocation47_spill] sm:$0xff]  ;;  %v16093_v4 = vld [vmem:[#allocation44_spill] sm:$0xff] }
 0x747   : > { %v4753_v55 = vsub.f32 %v4217_v22, %v4627_v60  ;;  %4443 = vmatmul.f32.gmra.mxu0 %v9685_v48  ;;  %v16089_v48 = vld [vmem:[#allocation134_spill] sm:$0xff]  ;;  %v16094_v22 = vsub.f32 %v13551_v2, %v16093_v4 }
 0x748   : > { %v4065_v25 = vpop.f32.mrf.mxu3  ;;  %v16091_v35 = vsub.f32 %v16089_v48, %v16090_v7  ;;  %v9692_v7 = vld [vmem:[#allocation6 + $0xf8] sm:$0xff]  ;;  %v9693_v2 = vld [vmem:[#allocation6 + $0xf0] sm:$0xff] }
 0x749   : > { %v13925_v33 = vadd.f32 %v4753_v55, %v16087_v13  ;;  %v4066_v32 = vadd.f32 %v4065_v25, %v3985_v5  ;;  %8735 = vmatmul.msk.f32.gmra.mxu2 %vm1217_vm0, %v9684_v6  ;;  %v16092_v5 = vld [vmem:[#allocation185_spill] sm:$0xff] }
 0x74a   : > { %v3988_v10 = vpop.f32.mrf.mxu1  ;;  %v4634_v63 = vmul.f32 %v16092_v5, %v16092_v5 }
 0x74b   : > { %v4758_v8 = vsub.f32 %v4066_v32, %v4632_v36  ;;  %v16095_v32 = vld [vmem:[#allocation187_spill] sm:$0xff] }
 0x74c   : > { %v4219_v57 = vpop.f32.mrf.mxu2  ;;  %v4142_v19 = vpop.f32.mrf.mxu0 }
 0x74d   : > { %v13933_v58 = vadd.f32 %v4758_v8, %v16091_v35  ;;  %v4220_v60 = vadd.f32 %v4219_v57, %v4139_v56  ;;  %8717 = vmatmul.msk.f32.gmra.mxu3 %vm1217_vm0, %v9690_v59  ;;  %4292 = vmatmul.f32.gmra.mxu1 %v9691_v51  ;;  %v4631_v8 = vmul.f32 %v16095_v32, %v16095_v32  ;;  %v16097_v57 = vld [vmem:[#allocation132_spill] sm:$0xff]  ;;  %v16099_v35 = vld [vmem:[#allocation189_spill] sm:$0xff] }
 0x74f   : > { %v4755_v50 = vsub.f32 %v4220_v60, %v4629_v23  ;;  %4446 = vmatmul.f32.gmra.mxu0 %v9687_v47  ;;  %v16096_v47 = vld [vmem:[#allocation130_spill] sm:$0xff]  ;;  %v4636_v60 = vmul.f32 %v16099_v35, %v16099_v35  ;;  %v16107_v35 = vld [vmem:[#allocation120_spill] sm:$0xff] }
 0x750   : > { %v4068_v6 = vpop.f32.mrf.mxu3  ;;  %v16098_v53 = vsub.f32 %v16096_v47, %v16097_v57 }
 0x751   : > { %v13941_v55 = vadd.f32 %v4755_v50, %v16094_v22  ;;  %v4069_v25 = vadd.f32 %v4068_v6, %v3988_v10  ;;  %8736 = vmatmul.msk.f32.gmra.mxu2 %vm1217_vm0, %v9686_v41  ;;  %v16100_v50 = vld [vmem:[#allocation137_spill] sm:$0xff]  ;;  %v16101_v6 = vld [vmem:[#allocation128_spill] sm:$0xff] }
 0x752   : > { %v3991_v56 = vpop.f32.mrf.mxu1  ;;  %v16102_v5 = vsub.f32 %v16100_v50, %v16101_v6 }
 0x753   : > { %v4760_v1 = vsub.f32 %v4069_v25, %v4634_v63 }
 0x754   : > { %v4222_v36 = vpop.f32.mrf.mxu2  ;;  %v4145_v13 = vpop.f32.mrf.mxu0 }
 0x755   : > { %v13949_v23 = vadd.f32 %v4760_v1, %v16098_v53  ;;  %v4223_v48 = vadd.f32 %v4222_v36, %v4142_v19  ;;  %8718 = vmatmul.msk.f32.gmra.mxu3 %vm1217_vm0, %v9692_v7  ;;  %4295 = vmatmul.f32.gmra.mxu1 %v9693_v2  ;;  %v16103_v36 = vld [vmem:[#allocation191_spill] sm:$0xff] }
 0x756   : > { %v4633_v32 = vmul.f32 %v16103_v36, %v16103_v36 }
 0x757   : > { %v4757_v10 = vsub.f32 %v4223_v48, %v4631_v8  ;;  %4449 = vmatmul.f32.gmra.mxu0 %v9689_v24  ;;  %v16104_v24 = vld [vmem:[#allocation133_spill] sm:$0xff]  ;;  %v16105_v8 = vld [vmem:[#allocation135_spill] sm:$0xff] }
 0x758   : > { %v4071_v41 = vpop.f32.mrf.mxu3  ;;  %v16106_v47 = vsub.f32 %v16104_v24, %v16105_v8  ;;  %v9694_v48 = vld [vmem:[#allocation6 + $0x108] sm:$0xff]  ;;  %v9696_v8 = vld [vmem:[#allocation6 + $0x118] sm:$0xff] }
 0x759   : > { %v13957_v63 = vadd.f32 %v4757_v10, %v16102_v5  ;;  %v4072_v4 = vadd.f32 %v4071_v41, %v3991_v56  ;;  %8737 = vmatmul.msk.f32.gmra.mxu2 %vm1217_vm0, %v9688_v29  ;;  %v9695_v10 = vld [vmem:[#allocation6 + $0x100] sm:$0xff]  ;;  %v4932_v29 = vadd.f32 58.5225, %v13614_v62  ;;  %v16111_v24 = vld [vmem:[#allocation193_spill] sm:$0xff] }
 0x75a   : > { %v4251_v19 = vpop.f32.mrf.mxu1  ;;  %v4635_v62 = vmul.f32 %v16111_v24, %v16111_v24 }
 0x75b   : > { %v4762_v22 = vsub.f32 %v4072_v4, %v4636_v60  ;;  %v16108_v60 = vld [vmem:[#allocation154_spill] sm:$0xff]  ;;  %9381 = vrcp.f32 %v4932_v29  ;;  %v16110_v4 = vld [vmem:[#allocation57_spill] sm:$0xff] }
 0x75c   : > { %v4225_v25 = vpop.f32.mrf.mxu2  ;;  %v4148_v1 = vpop.f32.mrf.mxu0  ;;  %v16109_v50 = vsub.f32 %v16107_v35, %v16108_v60  ;;  %v16112_v35 = vld [vmem:[#allocation155_spill] sm:$0xff] }
 0x75d   : > { %v13965_v57 = vadd.f32 %v4762_v22, %v16106_v47  ;;  %v4226_v53 = vadd.f32 %v4225_v25, %v4145_v13  ;;  %8719 = vmatmul.msk.f32.gmra.mxu3 %vm1217_vm0, %v9694_v48  ;;  %4298 = vmatmul.f32.gmra.mxu1 %v9695_v10  ;;  %v9697_v47 = vld [vmem:[#allocation6 + $0x110] sm:$0xff]  ;;  %v16113_v60 = vld [vmem:[#allocation131_spill] sm:$0xff] }
 0x75f   : > { %v4759_v56 = vsub.f32 %v4226_v53, %v4633_v32  ;;  %4452 = vmatmul.f32.gmra.mxu0 %v9691_v51 }
 0x760   : > { %v4331_v41 = vpop.f32.mrf.mxu3 }
 0x761   : > { %v13972_v6 = vadd.f32 %v4759_v56, %v16109_v50  ;;  %v4332_v5 = vadd.f32 %v4331_v41, %v4251_v19  ;;  %8738 = vmatmul.msk.f32.gmra.mxu2 %vm1217_vm0, %v9690_v59  ;;  %v4934_v19 = vadd.f32 58.5225, %v13635_v17  ;;  %v9382_v29 = vpop.eup %9381  ;;  %v16114_v50 = vsub.f32 %v16112_v35, %v16113_v60 }
 0x762   : > { %v4254_v13 = vpop.f32.mrf.mxu1 }
 0x763   : > { %v4764_v22 = vsub.f32 %v4332_v5, %v16110_v4  ;;  %9383 = vrcp.f32 %v4934_v19 }
 0x764   : > { %v4228_v25 = vpop.f32.mrf.mxu2  ;;  %v4151_v36 = vpop.f32.mrf.mxu0 }
 0x765   : > { %v4806_v32 = vmul.f32 2.0, %v4764_v22  ;;  %v4229_v51 = vadd.f32 %v4228_v25, %v4148_v1  ;;  %8720 = vmatmul.msk.f32.gmra.mxu3 %vm1217_vm0, %v9696_v8  ;;  %4301 = vmatmul.f32.gmra.mxu1 %v9697_v47  ;;  %v16116_v22 = vld [vmem:[#allocation149_spill] sm:$0xff] }
 0x767   : > { %v4848_v53 = vadd.f32 58.5225, %v4806_v32  ;;  %v4761_v59 = vsub.f32 %v4229_v51, %v4635_v62  ;;  %4455 = vmatmul.f32.gmra.mxu0 %v9693_v2  ;;  %v16117_v62 = vld [vmem:[#allocation198_spill] sm:$0xff] }
 0x768   : > { %v4334_v56 = vpop.f32.mrf.mxu3  ;;  %v4637_v2 = vmul.f32 %v16117_v62, %v16117_v62 }
 0x769   : > { %v13980_v41 = vmul.f32 %v9382_v29, %v4848_v53  ;;  %v13985_v5 = vadd.f32 %v4761_v59, %v16114_v50  ;;  %v4335_v1 = vadd.f32 %v4334_v56, %v4254_v13  ;;  %8739 = vmatmul.msk.f32.gmra.mxu2 %vm1217_vm0, %v9692_v7  ;;  %v13991_v53 = vld [vmem:[#allocation6 + $0x128] sm:$0xff]  ;;  %v9699_v59 = vld [vmem:[#allocation6 + $0x120] sm:$0xff]  ;;  %v9384_v56 = vpop.eup %9383 }
 0x76a   : > { %v4257_v4 = vpop.f32.mrf.mxu1  ;;  %v16118_v13 = vld [vmem:[#allocation127_spill] sm:$0xff]  ;;  %v16119_v50 = vld [vmem:[#allocation116_spill] sm:$0xff] }
 0x76b   : > { %16115 = vst [vmem:[#allocation157_spill] sm:$0xff] %v13985_v5  ;;  %v4766_v25 = vsub.f32 %v4335_v1, %v16116_v22  ;;  %v4936_v7 = vadd.f32 58.5225, %v16118_v13  ;;  %v16120_v1 = vld [vmem:[#allocation156_spill] sm:$0xff]  ;;  %v16123_v13 = vld [vmem:[#allocation165_spill] sm:$0xff] }
 0x76c   : > { %v4231_v17 = vpop.f32.mrf.mxu2  ;;  %v4411_v24 = vpop.f32.mrf.mxu0  ;;  %v16121_v22 = vsub.f32 %v16119_v50, %v16120_v1 }
 0x76d   : > { %v4808_v32 = vmul.f32 2.0, %v4766_v25  ;;  %v4232_v51 = vadd.f32 %v4231_v17, %v4151_v36  ;;  %8721 = vmatmul.msk.f32.gmra.mxu3 %vm1217_vm0, %v13991_v53  ;;  %4304 = vmatmul.f32.gmra.mxu1 %v9699_v59  ;;  %9385 = vrcp.f32 %v4936_v7  ;;  %v4933_v17 = vadd.f32 58.5225, %v13665_v61 }
 0x76f   : > { %v4850_v19 = vadd.f32 58.5225, %v4808_v32  ;;  %v4763_v29 = vsub.f32 %v4232_v51, %v4637_v2  ;;  %4458 = vmatmul.f32.gmra.mxu0 %v9695_v10  ;;  %9387 = vrcp.f32 %v4933_v17  ;;  %v16125_v17 = vld [vmem:[#allocation152_spill] sm:$0xff] }
 0x770   : > { %v4337_v35 = vpop.f32.mrf.mxu3 }
 0x771   : > { %v13996_v60 = vmul.f32 %v9384_v56, %v4850_v19  ;;  %v14001_v36 = vadd.f32 %v4763_v29, %v16121_v22  ;;  %v4338_v25 = vadd.f32 %v4337_v35, %v4257_v4  ;;  %8740 = vmatmul.msk.f32.gmra.mxu2 %vm1217_vm0, %v9694_v48  ;;  %v14006_v19 = vld [vmem:[#allocation6 + $0x138] sm:$0xff]  ;;  %v14010_v29 = vld [vmem:[#allocation6 + $0x130] sm:$0xff]  ;;  %v4938_v48 = vadd.f32 58.5225, %v13674_v49 }
 0x772   : > { %v4260_v62 = vpop.f32.mrf.mxu1  ;;  %v16124_v4 = vld [vmem:[#allocation151_spill] sm:$0xff]  ;;  %v4935_v22 = vadd.f32 58.5225, %v13685_v27 }
 0x773   : > { %16122 = vst [vmem:[#allocation158_spill] sm:$0xff] %v14001_v36  ;;  %v4768_v32 = vsub.f32 %v4338_v25, %v16123_v13  ;;  %v9386_v56 = vpop.eup %9385  ;;  %9389 = vrcp.f32 %v4938_v48  ;;  %v9112_v27 = vld [vmem:[#allocation18 + $0x4] sm:$0xf]  ;;  %v4940_v48 = vadd.f32 58.5225, %v13694_v15 }
 0x774   : > { %v4491_v2 = vpop.f32.mrf.mxu2  ;;  %v4414_v10 = vpop.f32.mrf.mxu0  ;;  %9391 = vrcp.f32 %v4935_v22 }
 0x775   : > { %v4810_v51 = vmul.f32 2.0, %v4768_v32  ;;  %v4492_v5 = vadd.f32 %v4491_v2, %v4411_v24  ;;  %8722 = vmatmul.msk.f32.gmra.mxu3 %vm1217_vm0, %v14006_v19  ;;  %4307 = vmatmul.f32.gmra.mxu1 %v14010_v29  ;;  %v9388_v49 = vpop.eup %9387  ;;  %9393 = vrcp.f32 %v4940_v48 }
 0x777   : > { %v4852_v61 = vadd.f32 58.5225, %v4810_v51  ;;  %v4765_v7 = vsub.f32 %v4492_v5, %v16124_v4  ;;  %4461 = vmatmul.f32.gmra.mxu0 %v9697_v47 }
 0x778   : > { %v4340_v35 = vpop.f32.mrf.mxu3 }
 0x779   : > { %v14015_v50 = vmul.f32 %v9386_v56, %v4852_v61  ;;  %v4807_v24 = vmul.f32 2.0, %v4765_v7  ;;  %v4341_v1 = vadd.f32 %v4340_v35, %v4260_v62  ;;  %8741 = vmatmul.msk.f32.gmra.mxu2 %vm1217_vm0, %v9696_v8  ;;  %v14020_v61 = vld [vmem:[#allocation6 + $0x148] sm:$0x3f]  ;;  %v14024_v8 = vld [vmem:[#allocation6 + $0x140] sm:$0x3f] }
 0x77a   : > { %v4263_v25 = vpop.f32.mrf.mxu1  ;;  %v8749_v62 = vld [vmem:[#allocation18 + $0x8] sm:$0xf0]  ;;  %v8747_v7 = vld [vmem:[#allocation18] sm:$0xf]  ;;  %v9113_v56 = vld [vmem:[#allocation18 + $0x4] sm:$0xf0] }
 0x77b   : > { %v4849_v13 = vadd.f32 58.5225, %v4807_v24  ;;  %v4770_v32 = vsub.f32 %v4341_v1, %v16125_v17  ;;  %v14037_v15 = vor.u32 %v9113_v56, %v8747_v7 }
 0x77c   : > { %v4494_v2 = vpop.f32.mrf.mxu2  ;;  %v4417_v5 = vpop.f32.mrf.mxu0 }
 0x77d   : > { %v5017_v47 = vmul.f32 %v9388_v49, %v4849_v13  ;;  %v4812_v51 = vmul.f32 2.0, %v4770_v32  ;;  %v4495_v4 = vadd.f32 %v4494_v2, %v4414_v10  ;;  %8723 = vmatmul.msk.f32.gmra.mxu3 %vm1217_vm0, %v14020_v61  ;;  %4310 = vmatmul.f32.gmra.mxu1 %v14024_v8  ;;  %v16126_v10 = vld [vmem:[#allocation153_spill] sm:$0xff]  ;;  %v9390_v13 = vpop.eup %9389  ;;  %v14031_v49 = vor.u32 %v9112_v27, %v8749_v62 }
 0x77e   : > { %v9392_v27 = vpop.eup %9391 }
 0x77f   : > { %v5059_v35 = vsel %vm5058_vm1, %v5017_v47, 0.0  ;;  %v4854_v24 = vadd.f32 58.5225, %v4812_v51  ;;  %v4767_v1 = vsub.f32 %v4495_v4, %v16126_v10  ;;  %4464 = vmatmul.f32.gmra.mxu0 %v9699_v59  ;;  %v4937_v47 = vadd.f32 58.5225, %v13703_v12  ;;  %v9394_v7 = vpop.eup %9393 }
 0x780   : > { %v5060_v17 = vadd.f32 %v5059_v35, %v13980_v41  ;;  %v4343_v32 = vpop.f32.mrf.mxu3  ;;  %v16127_v41 = vld [vmem:[#allocation170_spill] sm:$0xff]  ;;  %v4942_v12 = vadd.f32 58.5225, %v13712_v38  ;;  %v4939_v38 = vadd.f32 58.5225, %v13721_v52 }
 0x781   : > { %v14033_v2 = vmul.f32 %v9390_v13, %v4854_v24  ;;  %v4809_v36 = vmul.f32 2.0, %v4767_v1  ;;  %v4344_v22 = vadd.f32 %v4343_v32, %v4263_v25  ;;  %8742 = vmatmul.msk.f32.gmra.mxu2 %vm1217_vm0, %v13991_v53  ;;  %9395 = vrcp.f32 %v4937_v47 }
 0x782   : > { %v5061_v59 = vadd.f32 %v5060_v17, %v13996_v60  ;;  %v4266_v51 = vpop.f32.mrf.mxu1  ;;  %9397 = vrcp.f32 %v4942_v12  ;;  %v8755_v12 = vld [vmem:[#allocation18 + $0x10] sm:$0xf] }
 0x783   : > { %v4851_v4 = vadd.f32 58.5225, %v4809_v36  ;;  %v4772_v35 = vsub.f32 %v4344_v22, %v16127_v41  ;;  %v16128_v36 = vld [vmem:[#allocation172_spill] sm:$0xff]  ;;  %v16129_v41 = vld [vmem:[#allocation174_spill] sm:$0xff]  ;;  %9399 = vrcp.f32 %v4939_v38  ;;  %v4941_v38 = vadd.f32 58.5225, %v13739_v46 }
 0x784   : > { %v4497_v62 = vpop.f32.mrf.mxu2  ;;  %v4420_v24 = vpop.f32.mrf.mxu0  ;;  %v4946_v46 = vadd.f32 58.5225, %v13749_v0 }
 0x785   : > { %v5019_v10 = vmul.f32 %v9392_v27, %v4851_v4  ;;  %v4814_v1 = vmul.f32 2.0, %v4772_v35  ;;  %v4498_v25 = vadd.f32 %v4497_v62, %v4417_v5  ;;  %8785 = vmatmul.msk.bf16.vlgmr.msrb.gmra.mxu3 %vm1217_vm0, %v14031_v49  ;;  %5252 = vmatmul.bf16.vlgmr.msrb.gmra.mxu1 %v14037_v15 }
 0x787   : > { %v5062_v53 = vsel %vm5058_vm1, %v5019_v10, 0.0  ;;  %v4856_v60 = vadd.f32 58.5225, %v4814_v1  ;;  %v4769_v48 = vsub.f32 %v4498_v25, %v16128_v36  ;;  %4467 = vmatmul.f32.gmra.mxu0 %v14010_v29  ;;  %v9396_v29 = vpop.eup %9395  ;;  %v9114_v25 = vld [vmem:[#allocation18 + $0x14] sm:$0xf] }
 0x788   : > { %v5063_v56 = vadd.f32 %v5062_v53, %v5061_v59  ;;  %v4346_v13 = vpop.f32.mrf.mxu3  ;;  %v9115_v53 = vld [vmem:[#allocation18 + $0x14] sm:$0xf0] }
 0x789   : > { %v14049_v17 = vmul.f32 %v9394_v7, %v4856_v60  ;;  %v4811_v5 = vmul.f32 2.0, %v4769_v48  ;;  %v4347_v32 = vadd.f32 %v4346_v13, %v4266_v51  ;;  %8743 = vmatmul.msk.f32.gmra.mxu2 %vm1217_vm0, %v14006_v19  ;;  %v8757_v51 = vld [vmem:[#allocation18 + $0x18] sm:$0xf0]  ;;  %v4944_v19 = vadd.f32 58.5225, %v13730_v31  ;;  %v16130_v60 = vld [vmem:[#allocation49_spill] sm:$0xff]  ;;  %v9398_v48 = vpop.eup %9397 }
 0x78a   : > { %v5064_v22 = vadd.f32 %v5063_v56, %v14015_v50  ;;  %v4269_v47 = vpop.f32.mrf.mxu1  ;;  %v14060_v13 = vor.u32 %v9114_v25, %v8757_v51  ;;  %v14066_v31 = vor.u32 %v9115_v53, %v8755_v12  ;;  %v16132_v25 = vld [vmem:[#allocation54_spill] sm:$0xff] }
 0x78b   : > { %v4853_v4 = vadd.f32 58.5225, %v4811_v5  ;;  %v4774_v35 = vsub.f32 %v4347_v32, %v16129_v41  ;;  %9401 = vrcp.f32 %v4944_v19 }
 0x78c   : > { %v4500_v27 = vpop.f32.mrf.mxu2  ;;  %v4423_v59 = vpop.f32.mrf.mxu0  ;;  %9403 = vrcp.f32 %v4941_v38 }
 0x78d   : > { %v5021_v62 = vmul.f32 %v9396_v29, %v4853_v4  ;;  %v4816_v10 = vmul.f32 2.0, %v4774_v35  ;;  %v4501_v1 = vadd.f32 %v4500_v27, %v4420_v24  ;;  %v9400_v29 = vpop.eup %9399  ;;  %9405 = vrcp.f32 %v4946_v46 }
 0x78f   : > { %v5065_v52 = vsel %vm5058_vm1, %v5021_v62, 0.0  ;;  %v4858_v50 = vadd.f32 58.5225, %v4816_v10  ;;  %v4771_v36 = vsub.f32 %v4501_v1, %v16130_v60  ;;  %4470 = vmatmul.f32.gmra.mxu0 %v14024_v8  ;;  %v4943_v60 = vadd.f32 58.5225, %v13759_v45 }
 0x790   : > { %v5066_v7 = vadd.f32 %v5065_v52, %v5064_v22  ;;  %v4349_v56 = vpop.f32.mrf.mxu3  ;;  %v16131_v22 = vld [vmem:[#allocation50_spill] sm:$0xff] }
 0x791   : > { %v14062_v24 = vmul.f32 %v9398_v48, %v4858_v50  ;;  %v4813_v5 = vmul.f32 2.0, %v4771_v36  ;;  %v4350_v32 = vadd.f32 %v4349_v56, %v4269_v47  ;;  %8744 = vmatmul.msk.f32.gmra.mxu2 %vm1217_vm0, %v14020_v61  ;;  %v9402_v19 = vpop.eup %9401  ;;  %9407 = vrcp.f32 %v4943_v60  ;;  %v16135_v60 = vld [vmem:[#allocation67_spill] sm:$0xff] }
 0x792   : > { %v5067_v4 = vadd.f32 %v5066_v7, %v14033_v2  ;;  %v4272_v8 = vpop.f32.mrf.mxu1  ;;  %v16133_v7 = vld [vmem:[#allocation60_spill] sm:$0xff] }
 0x793   : > { %v4855_v41 = vadd.f32 58.5225, %v4813_v5  ;;  %v4776_v35 = vsub.f32 %v4350_v32, %v16131_v22  ;;  %v9404_v5 = vpop.eup %9403 }
 0x794   : > { %v4503_v27 = vpop.f32.mrf.mxu2  ;;  %v4426_v62 = vpop.f32.mrf.mxu0 }
 0x795   : > { %v5023_v10 = vmul.f32 %v9400_v29, %v4855_v41  ;;  %v4818_v1 = vmul.f32 2.0, %v4776_v35  ;;  %v4504_v47 = vadd.f32 %v4503_v27, %v4423_v59  ;;  %8786 = vmatmul.msk.bf16.gmra.mxu3 %vm1217_vm0, %v14060_v13  ;;  %5257 = vmatmul.bf16.gmra.mxu1 %v14066_v31  ;;  %v9116_v35 = vld [vmem:[#allocation18 + $0x24] sm:$0xf]  ;;  %v4948_v29 = vadd.f32 58.5225, %v13769_v3  ;;  %v9406_v46 = vpop.eup %9405 }
 0x796   : > { %v8763_v27 = vld [vmem:[#allocation18 + $0x20] sm:$0xf]  ;;  %v4945_v3 = vadd.f32 58.5225, %v13778_v44  ;;  %v4950_v44 = vadd.f32 58.5225, %v13787_v39 }
 0x797   : > { %v5068_v61 = vsel %vm5058_vm1, %v5023_v10, 0.0  ;;  %v4860_v2 = vadd.f32 58.5225, %v4818_v1  ;;  %v4773_v51 = vsub.f32 %v4504_v47, %v16132_v25  ;;  %5328 = vmatmul.bf16.vlgmr.msrb.gmra.mxu0 %v14037_v15  ;;  %v9117_v10 = vld [vmem:[#allocation18 + $0x24] sm:$0xf0]  ;;  %v16134_v1 = vld [vmem:[#allocation66_spill] sm:$0xff]  ;;  %9409 = vrcp.f32 %v4948_v29 }
 0x798   : > { %v5069_v12 = vadd.f32 %v5068_v61, %v5067_v4  ;;  %v4352_v53 = vpop.f32.mrf.mxu3  ;;  %9411 = vrcp.f32 %v4945_v3 }
 0x799   : > { %v5028_v52 = vmul.f32 %v9402_v19, %v4860_v2  ;;  %v4815_v59 = vmul.f32 2.0, %v4773_v51  ;;  %v4353_v50 = vadd.f32 %v4352_v53, %v4272_v8  ;;  %8791 = vmatmul.msk.bf16.vlgmr.msrb.gmra.mxu2 %vm1217_vm0, %v14031_v49  ;;  %v8765_v8 = vld [vmem:[#allocation18 + $0x28] sm:$0xf0]  ;;  %9413 = vrcp.f32 %v4950_v44 }
 0x79a   : > { %v5070_v0 = vadd.f32 %v5069_v12, %v14049_v17  ;;  %v4275_v36 = vpop.f32.mrf.mxu1  ;;  %v14086_v25 = vor.u32 %v9116_v35, %v8765_v8  ;;  %v14088_v12 = vor.u32 %v9117_v10, %v8763_v27 }
 0x79b   : > { %v4857_v48 = vadd.f32 58.5225, %v4815_v59  ;;  %v4778_v56 = vsub.f32 %v4353_v50, %v16133_v7  ;;  %v9408_v7 = vpop.eup %9407 }
 0x79c   : > { %v4506_v32 = vpop.f32.mrf.mxu2  ;;  %v4429_v38 = vpop.f32.mrf.mxu0 }
 0x79d   : > { %v5025_v4 = vmul.f32 %v9404_v5, %v4857_v48  ;;  %v4820_v41 = vmul.f32 2.0, %v4778_v56  ;;  %v4507_v22 = vadd.f32 %v4506_v32, %v4426_v62  ;;  %v9410_v35 = vpop.eup %9409 }
 0x79f   : > { %v5071_v45 = vsel %vm5058_vm1, %v5025_v4, 0.0  ;;  %v4862_v17 = vadd.f32 58.5225, %v4820_v41  ;;  %v4775_v47 = vsub.f32 %v4507_v22, %v16134_v1  ;;  %v16136_v41 = vld [vmem:[#allocation108_spill] sm:$0xff] }
 0x7a0   : > { %v5072_v61 = vadd.f32 %v5071_v45, %v5070_v0  ;;  %v4355_v2 = vpop.f32.mrf.mxu3  ;;  %v4947_v45 = vadd.f32 58.5225, %v13796_v30 }
 0x7a1   : > { %v5030_v51 = vmul.f32 %v9406_v46, %v4862_v17  ;;  %v4817_v19 = vmul.f32 2.0, %v4775_v47  ;;  %v4356_v62 = vadd.f32 %v4355_v2, %v4275_v36  ;;  %v16137_v47 = vld [vmem:[#allocation112_spill] sm:$0xff] }
 0x7a2   : > { %v5073_v53 = vadd.f32 %v5072_v61, %v14062_v24  ;;  %v4278_v59 = vpop.f32.mrf.mxu1  ;;  %v9412_v61 = vpop.eup %9411  ;;  %9415 = vrcp.f32 %v4947_v45 }
 0x7a3   : > { %v4859_v50 = vadd.f32 58.5225, %v4817_v19  ;;  %v4780_v48 = vsub.f32 %v4356_v62, %v16135_v60  ;;  %v8773_v60 = vld [vmem:[#allocation18 + $0x38] sm:$0xf0] }
 0x7a4   : > { %v4509_v56 = vpop.f32.mrf.mxu2  ;;  %v4432_v0 = vpop.f32.mrf.mxu0 }
 0x7a5   : > { %v5027_v5 = vmul.f32 %v9408_v7, %v4859_v50  ;;  %v4822_v32 = vmul.f32 2.0, %v4780_v48  ;;  %v4510_v4 = vadd.f32 %v4509_v56, %v4429_v38  ;;  %8787 = vmatmul.msk.bf16.gmra.mxu3 %vm1217_vm0, %v14086_v25  ;;  %5262 = vmatmul.bf16.gmra.mxu1 %v14088_v12  ;;  %v9118_v50 = vld [vmem:[#allocation18 + $0x34] sm:$0xf]  ;;  %v8771_v48 = vld [vmem:[#allocation18 + $0x30] sm:$0xf]  ;;  %v16138_v56 = vld [vmem:[#allocation111_spill] sm:$0xff] }
 0x7a6   : > { %v9119_v7 = vld [vmem:[#allocation18 + $0x34] sm:$0xf0] }
 0x7a7   : > { %v5074_v24 = vsel %vm5058_vm1, %v5027_v5, 0.0  ;;  %v4864_v36 = vadd.f32 58.5225, %v4822_v32  ;;  %v4777_v22 = vsub.f32 %v4510_v4, %v16136_v41  ;;  %5333 = vmatmul.bf16.gmra.mxu0 %v14066_v31  ;;  %v9414_v32 = vpop.eup %9413 }
 0x7a8   : > { %v5075_v8 = vadd.f32 %v5074_v24, %v5073_v53  ;;  %v4358_v29 = vpop.f32.mrf.mxu3  ;;  %v14107_v24 = vor.u32 %v9118_v50, %v8773_v60  ;;  %v9416_v45 = vpop.eup %9415 }
 0x7a9   : > { %v5032_v27 = vmul.f32 %v9410_v35, %v4864_v36  ;;  %v4819_v38 = vmul.f32 2.0, %v4777_v22  ;;  %v4359_v10 = vadd.f32 %v4358_v29, %v4278_v59  ;;  %8792 = vmatmul.msk.bf16.gmra.mxu2 %vm1217_vm0, %v14060_v13  ;;  %v4952_v59 = vadd.f32 58.5225, %v13805_v26 }
 0x7aa   : > { %v5076_v39 = vadd.f32 %v5075_v8, %v5028_v52  ;;  %v4281_v17 = vpop.f32.mrf.mxu1  ;;  %v14109_v22 = vor.u32 %v9119_v7, %v8771_v48  ;;  %v4949_v26 = vadd.f32 58.5225, %v13813_v40 }
 0x7ab   : > { %v4861_v1 = vadd.f32 58.5225, %v4819_v38  ;;  %v4782_v46 = vsub.f32 %v4359_v10, %v16137_v47  ;;  %9417 = vrcp.f32 %v4952_v59  ;;  %v16139_v38 = vld [vmem:[#allocation150_spill] sm:$0xff] }
 0x7ac   : > { %v4512_v2 = vpop.f32.mrf.mxu2  ;;  %v4435_v19 = vpop.f32.mrf.mxu0  ;;  %9419 = vrcp.f32 %v4949_v26  ;;  %v9120_v26 = vld [vmem:[#allocation18 + $0x44] sm:$0xf] }
 0x7ad   : > { %v5029_v62 = vmul.f32 %v9412_v61, %v4861_v1  ;;  %v4824_v3 = vmul.f32 2.0, %v4782_v46  ;;  %v4513_v53 = vadd.f32 %v4512_v2, %v4432_v0  ;;  %v16140_v2 = vld [vmem:[#allocation144_spill] sm:$0xff] }
 0x7af   : > { %v5077_v30 = vsel %vm5058_vm1, %v5029_v62, 0.0  ;;  %v4866_v52 = vadd.f32 58.5225, %v4824_v3  ;;  %v4779_v5 = vsub.f32 %v4513_v53, %v16138_v56 }
 0x7b0   : > { %v5078_v4 = vadd.f32 %v5077_v30, %v5076_v39  ;;  %v4361_v44 = vpop.f32.mrf.mxu3 }
 0x7b1   : > { %v5034_v36 = vmul.f32 %v9414_v32, %v4866_v52  ;;  %v4821_v41 = vmul.f32 2.0, %v4779_v5  ;;  %v4362_v0 = vadd.f32 %v4361_v44, %v4281_v17  ;;  %v4954_v17 = vadd.f32 58.5225, %v13821_v43  ;;  %v9418_v3 = vpop.eup %9417  ;;  %v16141_v52 = vld [vmem:[#allocation115_spill] sm:$0xff] }
 0x7b2   : > { %v5079_v35 = vadd.f32 %v5078_v4, %v5030_v51  ;;  %v4284_v8 = vpop.f32.mrf.mxu1  ;;  %v4951_v43 = vadd.f32 58.5225, %v13829_v18  ;;  %v9420_v5 = vpop.eup %9419 }
 0x7b3   : > { %v4863_v29 = vadd.f32 58.5225, %v4821_v41  ;;  %v4784_v10 = vsub.f32 %v4362_v0, %v16139_v38  ;;  %9421 = vrcp.f32 %v4954_v17  ;;  %v9121_v38 = vld [vmem:[#allocation18 + $0x44] sm:$0xf0] }
 0x7b4   : > { %v4515_v1 = vpop.f32.mrf.mxu2  ;;  %v4438_v47 = vpop.f32.mrf.mxu0  ;;  %9423 = vrcp.f32 %v4951_v43 }
 0x7b5   : > { %v5031_v39 = vmul.f32 %v9416_v45, %v4863_v29  ;;  %v4826_v46 = vmul.f32 2.0, %v4784_v10  ;;  %v4516_v61 = vadd.f32 %v4515_v1, %v4435_v19  ;;  %8788 = vmatmul.msk.bf16.gmra.mxu3 %vm1217_vm0, %v14107_v24  ;;  %5267 = vmatmul.bf16.gmra.mxu1 %v14109_v22  ;;  %v8779_v29 = vld [vmem:[#allocation18 + $0x40] sm:$0xf] }
 0x7b6   : > { %v16142_v10 = vld [vmem:[#allocation58_spill] sm:$0xff] }
 0x7b7   : > { %v5080_v40 = vsel %vm5058_vm1, %v5031_v39, 0.0  ;;  %v4868_v51 = vadd.f32 58.5225, %v4826_v46  ;;  %v4781_v62 = vsub.f32 %v4516_v61, %v16140_v2  ;;  %5338 = vmatmul.bf16.gmra.mxu0 %v14088_v12 }
 0x7b8   : > { %v5081_v53 = vadd.f32 %v5080_v40, %v5079_v35  ;;  %v4364_v50 = vpop.f32.mrf.mxu3  ;;  %v8781_v35 = vld [vmem:[#allocation18 + $0x48] sm:$0xf0] }
 0x7b9   : > { %v14120_v60 = vmul.f32 %v9418_v3, %v4868_v51  ;;  %v4823_v19 = vmul.f32 2.0, %v4781_v62  ;;  %v4365_v59 = vadd.f32 %v4364_v50, %v4284_v8  ;;  %8793 = vmatmul.msk.bf16.gmra.mxu2 %vm1217_vm0, %v14086_v25  ;;  %v4956_v8 = vadd.f32 58.5225, %v13837_v37  ;;  %v9422_v1 = vpop.eup %9421 }
 0x7ba   : > { %v5082_v48 = vadd.f32 %v5081_v53, %v5032_v27  ;;  %v4287_v7 = vpop.f32.mrf.mxu1  ;;  %v14129_v61 = vor.u32 %v9120_v26, %v8781_v35  ;;  %v14131_v51 = vor.u32 %v9121_v38, %v8779_v29  ;;  %v4953_v37 = vadd.f32 58.5225, %v13845_v42  ;;  %v16143_v53 = vld [vmem:[#allocation140_spill] sm:$0xff] }
 0x7bb   : > { %v4865_v30 = vadd.f32 58.5225, %v4823_v19  ;;  %v4786_v56 = vsub.f32 %v4365_v59, %v16141_v52  ;;  %9425 = vrcp.f32 %v4956_v8  ;;  %v9424_v19 = vpop.eup %9423  ;;  %v5152_v35 = vld [vmem:[#allocation18 + $0x50] sm:$0xff] }
 0x7bc   : > { %v4518_v32 = vpop.f32.mrf.mxu2  ;;  %v4441_v4 = vpop.f32.mrf.mxu0  ;;  %9427 = vrcp.f32 %v4953_v37  ;;  %v5206_v37 = vunpack.c.l.b16 %v5152_v35 }
 0x7bd   : > { %v5033_v44 = vmul.f32 %v9420_v5, %v4865_v30  ;;  %v4828_v41 = vmul.f32 2.0, %v4786_v56  ;;  %v4519_v0 = vadd.f32 %v4518_v32, %v4438_v47  ;;  %v16144_v56 = vld [vmem:[#allocation118_spill] sm:$0xff] }
 0x7bf   : > { %v5083_v18 = vsel %vm5058_vm1, %v5033_v44, 0.0  ;;  %v4870_v27 = vadd.f32 58.5225, %v4828_v41  ;;  %v4783_v45 = vsub.f32 %v4519_v0, %v16142_v10 }
 0x7c0   : > { %v5084_v39 = vadd.f32 %v5083_v18, %v5082_v48  ;;  %v4367_v46 = vpop.f32.mrf.mxu3  ;;  %v16145_v18 = vld [vmem:[#allocation73_spill] sm:$0xff] }
 0x7c1   : > { %v5038_v17 = vmul.f32 %v9422_v1, %v4870_v27  ;;  %v4825_v40 = vmul.f32 2.0, %v4783_v45  ;;  %v4368_v47 = vadd.f32 %v4367_v46, %v4287_v7  ;;  %v4958_v7 = vadd.f32 58.5225, %v13853_v9  ;;  %v9426_v32 = vpop.eup %9425 }
 0x7c2   : > { %v5085_v2 = vadd.f32 %v5084_v39, %v5034_v36  ;;  %v4290_v62 = vpop.f32.mrf.mxu1  ;;  %v4955_v9 = vadd.f32 58.5225, %v13861_v11  ;;  %v9428_v10 = vpop.eup %9427  ;;  %v5207_v39 = vunpack.c.h.b16 %v5152_v35 }
 0x7c3   : > { %v4867_v3 = vadd.f32 58.5225, %v4825_v40  ;;  %v4788_v50 = vsub.f32 %v4368_v47, %v16143_v53  ;;  %9429 = vrcp.f32 %v4958_v7  ;;  %v14156_v7 = vpack.c.b16 %v5206_v37, %v5206_v37 }
 0x7c4   : > { %v4521_v59 = vpop.f32.mrf.mxu2  ;;  %v4444_v43 = vpop.f32.mrf.mxu0  ;;  %9431 = vrcp.f32 %v4955_v9  ;;  %v9129_v9 = vld [vmem:[#allocation24 + $0x38] sm:$0xff] }
 0x7c5   : > { %v5035_v48 = vmul.f32 %v9424_v19, %v4867_v3  ;;  %v4830_v30 = vmul.f32 2.0, %v4788_v50  ;;  %v4522_v52 = vadd.f32 %v4521_v59, %v4441_v4  ;;  %8789 = vmatmul.msk.bf16.gmra.mxu3 %vm1217_vm0, %v14129_v61  ;;  %5272 = vmatmul.bf16.gmra.mxu1 %v14131_v51  ;;  %v16146_v3 = vld [vmem:[#allocation138_spill] sm:$0xff]  ;;  %v14152_v59 = vpack.c.b16 %v5207_v39, %v5207_v39 }
 0x7c6   : > { %5492 = vmatpush.bf16.msra.mxu1 %v9129_v9  ;;  %5750 = vmatpush.bf16.msrb.mxu0 %v9129_v9  ;;  %v16151_v9 = vld [vmem:[#allocation143_spill] sm:$0xff] }
 0x7c7   : > { %v5086_v42 = vsel %vm5058_vm1, %v5035_v48, 0.0  ;;  %v4872_v36 = vadd.f32 58.5225, %v4830_v30  ;;  %v4785_v5 = vsub.f32 %v4522_v52, %v16144_v56  ;;  %5343 = vmatmul.bf16.gmra.mxu0 %v14109_v22  ;;  %v16147_v56 = vld [vmem:[#allocation61_spill] sm:$0xff] }
 0x7c8   : > { %v5087_v44 = vadd.f32 %v5086_v42, %v5085_v2  ;;  %v4370_v41 = vpop.f32.mrf.mxu3  ;;  %v4960_v2 = vadd.f32 58.5225, %v13869_v21 }
 0x7c9   : > { %v14142_v0 = vmul.f32 %v9426_v32, %v4872_v36  ;;  %v4827_v4 = vmul.f32 2.0, %v4785_v5  ;;  %v4371_v26 = vadd.f32 %v4370_v41, %v4290_v62  ;;  %8794 = vmatmul.msk.bf16.gmra.mxu2 %vm1217_vm0, %v14107_v24  ;;  %v9430_v53 = vpop.eup %9429 }
 0x7ca   : > { %v5088_v8 = vadd.f32 %v5087_v44, %v14120_v60  ;;  %v4293_v29 = vpop.f32.mrf.mxu1  ;;  %9433 = vrcp.f32 %v4960_v2  ;;  %v9432_v32 = vpop.eup %9431  ;;  %v16149_v2 = vld [vmem:[#allocation123_spill] sm:$0xff] }
 0x7cb   : > { %v4869_v38 = vadd.f32 58.5225, %v4827_v4  ;;  %v4790_v27 = vsub.f32 %v4371_v26, %v16145_v18 }
 0x7cc   : > { %v4524_v45 = vpop.f32.mrf.mxu2  ;;  %v4447_v1 = vpop.f32.mrf.mxu0 }
 0x7cd   : > { %v5037_v46 = vmul.f32 %v9428_v10, %v4869_v38  ;;  %v4832_v40 = vmul.f32 2.0, %v4790_v27  ;;  %v4525_v47 = vadd.f32 %v4524_v45, %v4444_v43  ;;  %v4957_v43 = vadd.f32 58.5225, %v13877_v28 }
 0x7ce   : > { %v4962_v28 = vadd.f32 58.5225, %v13885_v54  ;;  %v9128_v54 = vld [vmem:[#allocation24 + $0x30] sm:$0xff] }
 0x7cf   : > { %v5089_v62 = vsel %vm5058_vm1, %v5037_v46, 0.0  ;;  %v4874_v11 = vadd.f32 58.5225, %v4832_v40  ;;  %v4787_v60 = vsub.f32 %v4525_v47, %v16146_v3  ;;  %9435 = vrcp.f32 %v4957_v43  ;;  %5493 = vmatpush.bf16.msra.mxu1 %v9128_v54  ;;  %5751 = vmatpush.bf16.msrb.mxu0 %v9128_v54 }
 0x7d0   : > { %v5090_v50 = vadd.f32 %v5089_v62, %v5088_v8  ;;  %v4373_v19 = vpop.f32.mrf.mxu3  ;;  %v9434_v18 = vpop.eup %9433  ;;  %9437 = vrcp.f32 %v4962_v28  ;;  %v4959_v46 = vadd.f32 58.5225, %v13893_v16 }
 0x7d1   : > { %v14154_v48 = vmul.f32 %v9430_v53, %v4874_v11  ;;  %v4829_v30 = vmul.f32 2.0, %v4787_v60  ;;  %v4374_v52 = vadd.f32 %v4373_v19, %v4293_v29  ;;  %v16148_v29 = vld [vmem:[#allocation119_spill] sm:$0xff] }
 0x7d2   : > { %v5091_v21 = vadd.f32 %v5090_v50, %v5038_v17  ;;  %v4296_v42 = vpop.f32.mrf.mxu1  ;;  %9439 = vrcp.f32 %v4959_v46 }
 0x7d3   : > { %v4871_v36 = vadd.f32 58.5225, %v4829_v30  ;;  %v4792_v5 = vsub.f32 %v4374_v52, %v16147_v56  ;;  %v9127_v30 = vld [vmem:[#allocation24 + $0x28] sm:$0xff]  ;;  %v4964_v52 = vadd.f32 58.5225, %v13901_v20 }
 0x7d4   : > { %v4527_v44 = vpop.f32.mrf.mxu2  ;;  %v4450_v41 = vpop.f32.mrf.mxu0  ;;  %5494 = vmatpush.bf16.msra.mxu1 %v9127_v30  ;;  %5752 = vmatpush.bf16.msrb.mxu0 %v9127_v30 }
 0x7d5   : > { %v5039_v4 = vmul.f32 %v9432_v32, %v4871_v36  ;;  %v4834_v26 = vmul.f32 2.0, %v4792_v5  ;;  %v4528_v35 = vadd.f32 %v4527_v44, %v4447_v1  ;;  %8790 = vmatmul.msk.bf16.gmra.mxu3 %vm1217_vm0, %v14152_v59  ;;  %5277 = vmatmul.bf16.gmra.mxu1 %v14156_v7  ;;  %v9436_v11 = vpop.eup %9435  ;;  %9441 = vrcp.f32 %v4964_v52 }
 0x7d7   : > { %v5092_v17 = vsel %vm5058_vm1, %v5039_v4, 0.0  ;;  %v4876_v8 = vadd.f32 58.5225, %v4834_v26  ;;  %v4789_v38 = vsub.f32 %v4528_v35, %v16148_v29  ;;  %5348 = vmatmul.bf16.gmra.mxu0 %v14131_v51  ;;  %v9126_v4 = vld [vmem:[#allocation24 + $0x20] sm:$0xff] }
 0x7d8   : > { %v5093_v27 = vadd.f32 %v5092_v17, %v5091_v21  ;;  %v4376_v10 = vpop.f32.mrf.mxu3  ;;  %5495 = vmatpush.bf16.msra.mxu1 %v9126_v4  ;;  %5753 = vmatpush.bf16.msrb.mxu0 %v9126_v4 }
 0x7d9   : > { %v14167_v45 = vmul.f32 %v9434_v18, %v4876_v8  ;;  %v4831_v1 = vmul.f32 2.0, %v4789_v38  ;;  %v4377_v39 = vadd.f32 %v4376_v10, %v4296_v42  ;;  %8795 = vmatmul.msk.bf16.gmra.mxu2 %vm1217_vm0, %v14129_v61  ;;  %v9438_v42 = vpop.eup %9437  ;;  %v9125_v10 = vld [vmem:[#allocation24 + $0x18] sm:$0xff] }
 0x7da   : > { %v5094_v40 = vadd.f32 %v5093_v27, %v14142_v0  ;;  %v4299_v47 = vpop.f32.mrf.mxu1  ;;  %v16150_v0 = vld [vmem:[#allocation147_spill] sm:$0xff]  ;;  %v9440_v17 = vpop.eup %9439 }
 0x7db   : > { %v4873_v37 = vadd.f32 58.5225, %v4831_v1  ;;  %v4794_v62 = vsub.f32 %v4377_v39, %v16149_v2  ;;  %v4966_v1 = vadd.f32 58.5225, %v13917_v14  ;;  %v9442_v46 = vpop.eup %9441  ;;  %v9124_v14 = vld [vmem:[#allocation24 + $0x10] sm:$0xff] }
 0x7dc   : > { %v4530_v3 = vpop.f32.mrf.mxu2  ;;  %v4453_v60 = vpop.f32.mrf.mxu0  ;;  %5496 = vmatpush.bf16.msra.mxu1 %v9125_v10  ;;  %5754 = vmatpush.bf16.msrb.mxu0 %v9125_v10 }
 0x7dd   : > { %v5041_v53 = vmul.f32 %v9436_v11, %v4873_v37  ;;  %v4836_v50 = vmul.f32 2.0, %v4794_v62  ;;  %v4531_v19 = vadd.f32 %v4530_v3, %v4450_v41  ;;  %v4961_v41 = vadd.f32 58.5225, %v13909_v34 }
 0x7de   : > { %v4963_v11 = vadd.f32 58.5225, %v13925_v33 }
 0x7df   : > { %v5095_v16 = vsel %vm5058_vm1, %v5041_v53, 0.0  ;;  %v4878_v43 = vadd.f32 58.5225, %v4836_v50  ;;  %v4791_v21 = vsub.f32 %v4531_v19, %v16150_v0  ;;  %9443 = vrcp.f32 %v4961_v41  ;;  %v16153_v50 = vld [vmem:[#allocation178_spill] sm:$0xff] }
 0x7e0   : > { %v5096_v36 = vadd.f32 %v5095_v16, %v5094_v40  ;;  %v4379_v56 = vpop.f32.mrf.mxu3  ;;  %9445 = vrcp.f32 %v4966_v1  ;;  %5497 = vmatpush.bf16.msra.mxu1 %v9124_v14  ;;  %5755 = vmatpush.bf16.msrb.mxu0 %v9124_v14  ;;  %v16156_v1 = vld [vmem:[#allocation99_spill] sm:$0xff]  ;;  %v16158_v14 = vld [vmem:[#allocation97_spill] sm:$0xff] }
 0x7e1   : > { %v14177_v5 = vmul.f32 %v9438_v42, %v4878_v43  ;;  %v4833_v32 = vmul.f32 2.0, %v4791_v21  ;;  %v4380_v44 = vadd.f32 %v4379_v56, %v4299_v47  ;;  %v9123_v42 = vld [vmem:[#allocation24 + $0x8] sm:$0xff]  ;;  %9447 = vrcp.f32 %v4963_v11 }
 0x7e2   : > { %v5097_v20 = vadd.f32 %v5096_v36, %v14154_v48  ;;  %v4302_v26 = vpop.f32.mrf.mxu1  ;;  %v16152_v48 = vld [vmem:[#allocation176_spill] sm:$0xff]  ;;  %v4968_v36 = vadd.f32 58.5225, %v13933_v58 }
 0x7e3   : > { %v4875_v35 = vadd.f32 58.5225, %v4833_v32  ;;  %v4796_v28 = vsub.f32 %v4380_v44, %v16151_v9  ;;  %v9122_v9 = vld [vmem:[#allocation24] sm:$0xff] }
 0x7e4   : > { %v4533_v8 = vpop.f32.mrf.mxu2  ;;  %v4456_v29 = vpop.f32.mrf.mxu0  ;;  %5498 = vmatpush.bf16.msra.mxu1 %v9123_v42  ;;  %5756 = vmatpush.bf16.msrb.mxu0 %v9123_v42  ;;  %9449 = vrcp.f32 %v4968_v36 }
 0x7e5   : > { %v5043_v38 = vmul.f32 %v9440_v17, %v4875_v35  ;;  %v4838_v18 = vmul.f32 2.0, %v4796_v28  ;;  %v4534_v27 = vadd.f32 %v4533_v8, %v4453_v60  ;;  %v9444_v30 = vpop.eup %9443  ;;  %v4965_v28 = vadd.f32 58.5225, %v13941_v55 }
 0x7e6   : > { %v9446_v44 = vpop.eup %9445 }
 0x7e7   : > { %v5098_v34 = vsel %vm5058_vm1, %v5043_v38, 0.0  ;;  %v4880_v39 = vadd.f32 58.5225, %v4838_v18  ;;  %v4793_v54 = vsub.f32 %v4534_v27, %v16152_v48  ;;  %5353 = vmatmul.bf16.gmra.mxu0 %v14156_v7  ;;  %v9448_v18 = vpop.eup %9447  ;;  %9451 = vrcp.f32 %v4965_v28 }
 0x7e8   : > { %v5099_v40 = vadd.f32 %v5098_v34, %v5097_v20  ;;  %v4382_v47 = vpop.f32.mrf.mxu3  ;;  %5499 = vmatpush.bf16.msra.mxu1 %v9122_v9  ;;  %5757 = vmatpush.bf16.msrb.mxu0 %v9122_v9 }
 0x7e9   : > { %v14186_v37 = vmul.f32 %v9442_v46, %v4880_v39  ;;  %v4835_v2 = vmul.f32 2.0, %v4793_v54  ;;  %v4383_v62 = vadd.f32 %v4382_v47, %v4302_v26  ;;  %8796 = vmatmul.msk.bf16.gmra.mxu2 %vm1217_vm0, %v14152_v59  ;;  %v4970_v54 = vadd.f32 58.5225, %v13949_v23  ;;  %v16157_v46 = vld [vmem:[#allocation184_spill] sm:$0xff] }
 0x7ea   : > { %v5100_v3 = vadd.f32 %v5099_v40, %v14167_v45  ;;  %v4305_v60 = vpop.f32.mrf.mxu1  ;;  %v16154_v45 = vld [vmem:[#allocation180_spill] sm:$0xff]  ;;  %v9450_v47 = vpop.eup %9449  ;;  %v4967_v23 = vadd.f32 58.5225, %v13957_v63 }
 0x7eb   : > { %v4877_v53 = vadd.f32 58.5225, %v4835_v2  ;;  %v4798_v19 = vsub.f32 %v4383_v62, %v16153_v50  ;;  %9453 = vrcp.f32 %v4970_v54 }
 0x7ec   : > { %v4536_v52 = vpop.f32.mrf.mxu2  ;;  %v4459_v16 = vpop.f32.mrf.mxu0  ;;  %5644 = vmatpush.bf16.msrb.mxu1 %v16156_v1  ;;  %9455 = vrcp.f32 %v4967_v23 }
 0x7ed   : > { %v5045_v43 = vmul.f32 %v9444_v30, %v4877_v53  ;;  %v4840_v0 = vmul.f32 2.0, %v4798_v19  ;;  %v4537_v21 = vadd.f32 %v4536_v52, %v4456_v29  ;;  %v16155_v29 = vld [vmem:[#allocation182_spill] sm:$0xff] }
 0x7ee   : > { %v16159_v30 = vld [vmem:[#allocation186_spill] sm:$0xff] }
 0x7ef   : > { %v5101_v33 = vsel %vm5058_vm1, %v5045_v43, 0.0  ;;  %v4882_v56 = vadd.f32 58.5225, %v4840_v0  ;;  %v4795_v32 = vsub.f32 %v4537_v21, %v16154_v45  ;;  %v16160_v21 = vld [vmem:[#allocation95_spill] sm:$0xff]  ;;  %v4972_v45 = vadd.f32 58.5225, %v13965_v57 }
 0x7f0   : > { %v5102_v4 = vadd.f32 %v5101_v33, %v5100_v3  ;;  %v4385_v41 = vpop.f32.mrf.mxu3  ;;  %5645 = vmatpush.bf16.msrb.mxu1 %v16158_v14  ;;  %v16166_v14 = vld [vmem:[#allocation89_spill] sm:$0xff] }
 0x7f1   : > { %v14196_v20 = vmul.f32 %v9446_v44, %v4882_v56  ;;  %v4837_v26 = vmul.f32 2.0, %v4795_v32  ;;  %v4386_v35 = vadd.f32 %v4385_v41, %v4305_v60  ;;  %v9132_v56 = vld [vmem:[#allocation24 + $0x50] sm:$0xff]  ;;  %9457 = vrcp.f32 %v4972_v45 }
 0x7f2   : > { %v5103_v58 = vadd.f32 %v5102_v4, %v14177_v5  ;;  %v4308_v17 = vpop.f32.mrf.mxu1  ;;  %5535 = vmatpush.bf16.msra.mxu3 %v9132_v56  ;;  %5793 = vmatpush.bf16.msrb.mxu2 %v9132_v56 }
 0x7f3   : > { %v4879_v8 = vadd.f32 58.5225, %v4837_v26  ;;  %v4800_v38 = vsub.f32 %v4386_v35, %v16155_v29  ;;  %v16162_v35 = vld [vmem:[#allocation93_spill] sm:$0xff] }
 0x7f4   : > { %v4539_v27 = vpop.f32.mrf.mxu2  ;;  %v4462_v10 = vpop.f32.mrf.mxu0  ;;  %5646 = vmatpush.bf16.msrb.mxu1 %v16160_v21  ;;  %v16169_v21 = vld [vmem:[#allocation87_spill] sm:$0xff] }
 0x7f5   : > { %v5047_v34 = vmul.f32 %v9448_v18, %v4879_v8  ;;  %v4842_v39 = vmul.f32 2.0, %v4800_v38  ;;  %v4540_v48 = vadd.f32 %v4539_v27, %v4459_v16  ;;  %v9452_v16 = vpop.eup %9451  ;;  %v4969_v8 = vadd.f32 58.5225, %v13972_v6  ;;  %v16163_v18 = vld [vmem:[#allocation190_spill] sm:$0xff] }
 0x7f6   : > { %v9454_v4 = vpop.eup %9453 }
 0x7f7   : > { %v5104_v55 = vsel %vm5058_vm1, %v5047_v34, 0.0  ;;  %v4884_v5 = vadd.f32 58.5225, %v4842_v39  ;;  %v4797_v40 = vsub.f32 %v4540_v48, %v16157_v46  ;;  %5576 = vmatmul.bf16.vlgmr.msra.gmra.mxu0 %v14037_v15  ;;  %v16164_v39 = vld [vmem:[#allocation91_spill] sm:$0xff]  ;;  %9459 = vrcp.f32 %v4969_v8 }
 0x7f8   : > { %v5105_v2 = vadd.f32 %v5104_v55, %v5103_v58  ;;  %v4388_v62 = vpop.f32.mrf.mxu3  ;;  %5647 = vmatpush.bf16.msrb.mxu1 %v16162_v35  ;;  %v16174_v35 = vld [vmem:[#allocation158_spill] sm:$0xff] }
 0x7f9   : > { %v14207_v11 = vmul.f32 %v9450_v47, %v4884_v5  ;;  %v4839_v3 = vmul.f32 2.0, %v4797_v40  ;;  %v4389_v60 = vadd.f32 %v4388_v62, %v4308_v17  ;;  %8847 = vmatmul.msk.bf16.vlgmr.msra.gmra.mxu2 %vm1217_vm0, %v14031_v49  ;;  %v9131_v17 = vld [vmem:[#allocation24 + $0x48] sm:$0xff]  ;;  %v9130_v5 = vld [vmem:[#allocation24 + $0x40] sm:$0xff] }
 0x7fa   : > { %v5106_v53 = vadd.f32 %v5105_v2, %v14186_v37  ;;  %v4311_v50 = vpop.f32.mrf.mxu1  ;;  %v16161_v37 = vld [vmem:[#allocation188_spill] sm:$0xff]  ;;  %5536 = vmatpush.bf16.msra.mxu3 %v9131_v17  ;;  %5794 = vmatpush.bf16.msrb.mxu2 %v9131_v17 }
 0x7fb   : > { %v4881_v19 = vadd.f32 58.5225, %v4839_v3  ;;  %v4802_v52 = vsub.f32 %v4389_v60, %v16159_v30  ;;  %v16167_v3 = vld [vmem:[#allocation105_spill] sm:$0xff] }
 0x7fc   : > { %v4542_v43 = vpop.f32.mrf.mxu2  ;;  %v4465_v0 = vpop.f32.mrf.mxu0  ;;  %5648 = vmatpush.bf16.msrb.mxu1 %v16164_v39 }
 0x7fd   : > { %v5049_v42 = vmul.f32 %v9452_v16, %v4881_v19  ;;  %v4844_v36 = vmul.f32 2.0, %v4802_v52  ;;  %v4543_v33 = vadd.f32 %v4542_v43, %v4462_v10  ;;  %v9456_v10 = vpop.eup %9455 }
 0x7fe   : > { %5537 = vmatpush.bf16.msra.mxu3 %v9130_v5  ;;  %v9458_v47 = vpop.eup %9457  ;;  %5795 = vmatpush.bf16.msrb.mxu2 %v9130_v5 }
 0x7ff   : > { %v5107_v63 = vsel %vm5058_vm1, %v5049_v42, 0.0  ;;  %v4886_v32 = vadd.f32 58.5225, %v4844_v36  ;;  %v4799_v44 = vsub.f32 %v4543_v33, %v16161_v37  ;;  %v9460_v16 = vpop.eup %9459  ;;  %v16170_v42 = vld [vmem:[#allocation103_spill] sm:$0xff] }
 0x800   : > { %v5108_v41 = vadd.f32 %v5107_v63, %v5106_v53  ;;  %v4391_v26 = vpop.f32.mrf.mxu3  ;;  %5649 = vmatpush.bf16.msrb.mxu1 %v16166_v14  ;;  %v16168_v53 = vld [vmem:[#allocation157_spill] sm:$0xff]  ;;  %v16171_v63 = vld [vmem:[#allocation195_spill] sm:$0xff] }
 0x801   : > { %v5054_v9 = vmul.f32 %v9454_v4, %v4886_v32  ;;  %v4841_v28 = vmul.f32 2.0, %v4799_v44  ;;  %v4392_v58 = vadd.f32 %v4391_v26, %v4311_v50  ;;  %v4971_v50 = vadd.f32 58.5225, %v16168_v53  ;;  %v16173_v4 = vld [vmem:[#allocation101_spill] sm:$0xff] }
 0x802   : > { %v5109_v57 = vadd.f32 %v5108_v41, %v14196_v20  ;;  %v5253_v29 = vpop.f32.mrf.mxu1  ;;  %v16165_v20 = vld [vmem:[#allocation192_spill] sm:$0xff]  ;;  %5687 = vmatpush.bf16.msrb.mxu3 %v16167_v3 }
 0x803   : > { %v4883_v38 = vadd.f32 58.5225, %v4841_v28  ;;  %v4804_v27 = vsub.f32 %v4392_v58, %v16163_v18  ;;  %9461 = vrcp.f32 %v4971_v50  ;;  %v4973_v28 = vadd.f32 58.5225, %v16174_v35 }
 0x804   : > { %v4545_v1 = vpop.f32.mrf.mxu2  ;;  %v4468_v34 = vpop.f32.mrf.mxu0  ;;  %5650 = vmatpush.bf16.msrb.mxu1 %v16169_v21 }
 0x805   : > { %v5051_v48 = vmul.f32 %v9456_v10, %v4883_v38  ;;  %v4846_v54 = vmul.f32 2.0, %v4804_v27  ;;  %v4546_v55 = vadd.f32 %v4545_v1, %v4465_v0  ;;  %9463 = vrcp.f32 %v4973_v28  ;;  %v16175_v1 = vld [vmem:[#allocation199_spill] sm:$0xff] }
 0x806   : > { %5688 = vmatpush.bf16.msrb.mxu3 %v16170_v42 }
 0x807   : > { %v5110_v6 = vsel %vm5058_vm1, %v5051_v48, 0.0  ;;  %v4888_v46 = vadd.f32 58.5225, %v4846_v54  ;;  %v4801_v40 = vsub.f32 %v4546_v55, %v16165_v20  ;;  %5581 = vmatmul.bf16.gmra.mxu0 %v14066_v31 }
 0x808   : > { %v5111_v2 = vadd.f32 %v5110_v6, %v5109_v57  ;;  %v5291_v62 = vpop.f32.mrf.mxu3 }
 0x809   : > { %v4843_v60 = vmul.f32 2.0, %v4801_v40  ;;  %v5056_v23 = vmul.f32 %v9458_v47, %v4888_v46  ;;  %8848 = vmatmul.msk.bf16.gmra.mxu2 %vm1217_vm0, %v14060_v13  ;;  %v5292_v45 = vadd.f32 %v5291_v62, %v5253_v29  ;;  %v9462_v38 = vpop.eup %9461 }
 0x80a   : > { %v5255_v19 = vpop.f32.mrf.mxu1  ;;  %v5112_v30 = vadd.f32 %v5111_v2, %v14207_v11  ;;  %v16172_v11 = vld [vmem:[#allocation85_spill] sm:$0xff]  ;;  %5689 = vmatpush.bf16.msrb.mxu3 %v16173_v4 }
 0x80b   : > { %v4885_v52 = vadd.f32 58.5225, %v4843_v60  ;;  %5651 = vmatpush.bf16.msrb.mxu1 %v16172_v11  ;;  %v9464_v20 = vpop.eup %9463 }
 0x80c   : > { %v4548_v43 = vpop.f32.mrf.mxu2  ;;  %v4471_v0 = vpop.f32.mrf.mxu0 }
 0x80d   : > { %v5053_v36 = vmul.f32 %v9460_v16, %v4885_v52  ;;  %v4549_v33 = vadd.f32 %v4548_v43, %v4468_v34 }
 0x80f   : > { %v5113_v56 = vsel %vm5058_vm1, %v5053_v36, 0.0  ;;  %v4803_v32 = vsub.f32 %v4549_v33, %v16171_v63 }
 0x810   : > { %v5293_v37 = vpop.f32.mrf.mxu3  ;;  %v5114_v44 = vadd.f32 %v5113_v56, %v5112_v30 }
 0x811   : > { %v4845_v41 = vmul.f32 2.0, %v4803_v32  ;;  %v5294_v26 = vadd.f32 %v5293_v37, %v5255_v19 }
 0x812   : > { %v5258_v58 = vpop.f32.mrf.mxu1  ;;  %v5115_v17 = vadd.f32 %v5114_v44, %v5054_v9  ;;  %v5119_v9 = vsel %vm5118_vm2, %v5056_v23, 0.0 }
 0x813   : > { %v4887_v8 = vadd.f32 58.5225, %v4845_v41  ;;  %v5396_v57 = vpack.c.bf16 %v5294_v26, %v5292_v45 }
 0x814   : > { %v4551_v18 = vpop.f32.mrf.mxu2  ;;  %v5329_v27 = vpop.f32.mrf.mxu0 }
 0x815   : > { %v5055_v29 = vmul.f32 %v9462_v38, %v4887_v8  ;;  %v4552_v10 = vadd.f32 %v4551_v18, %v4471_v0  ;;  %5500 = vmatmul.bf16.vlgmr.msra.gmra.mxu1 %v5396_v57 }
 0x817   : > { %v4805_v34 = vsub.f32 %v4552_v10, %v16175_v1  ;;  %v5116_v39 = vsel %vm5058_vm1, %v5055_v29, 0.0  ;;  %5586 = vmatmul.bf16.gmra.mxu0 %v14088_v12  ;;  %vm7903_vm1 = vcmask 89088  }
 0x818   : > { %v5296_v48 = vpop.f32.mrf.mxu3  ;;  %v5117_v54 = vadd.f32 %v5116_v39, %v5115_v17 }
 0x819   : > { %v4847_v55 = vmul.f32 2.0, %v4805_v34  ;;  %8849 = vmatmul.msk.bf16.gmra.mxu2 %vm1217_vm0, %v14086_v25  ;;  %v5297_v62 = vadd.f32 %v5296_v48, %v5258_v58 }
 0x81a   : > { %v5260_v5 = vpop.f32.mrf.mxu1  ;;  %v5120_v6 = vadd.f32 %v5119_v9, %v5117_v54 }
 0x81b   : > { %v4889_v46 = vadd.f32 58.5225, %v4847_v55 }
 0x81c   : > { %v5367_v40 = vpop.f32.mrf.mxu2  ;;  %v5331_v47 = vpop.f32.mrf.mxu0 }
 0x81d   : > { %v5057_v2 = vmul.f32 %v9464_v20, %v4889_v46  ;;  %v5368_v52 = vadd.f32 %v5367_v40, %v5329_v27 }
 0x81f   : > { %v5122_v14 = vsel %vm5121_vm3, %v5057_v2, 0.0 }
 0x820   : > { %v5298_v3 = vpop.f32.mrf.mxu3  ;;  %v5123_v60 = vadd.f32 %v5122_v14, %v5120_v6 }
 0x821   : > { %v5299_v53 = vadd.f32 %v5298_v3, %v5260_v5 }
 0x822   : > { %5124 = vadd.xlane.f32.xlu0 %v5123_v60  ;;  %v5263_v50 = vpop.f32.mrf.mxu1 }
 0x823   : > { %v5398_v19 = vpack.c.bf16 %v5299_v53, %v5297_v62 }
 0x824   : > { %v5369_v23 = vpop.f32.mrf.mxu2  ;;  %v5334_v30 = vpop.f32.mrf.mxu0 }
 0x825   : > { %v5370_v16 = vadd.f32 %v5369_v23, %v5331_v47  ;;  %5505 = vmatmul.bf16.gmra.mxu1 %v5398_v19 }
 0x827   : > { %v5397_v43 = vpack.c.bf16 %v5370_v16, %v5368_v52  ;;  %5591 = vmatmul.bf16.gmra.mxu0 %v14109_v22 }
 0x828   : > { %v5301_v0 = vpop.f32.mrf.mxu3 }
 0x829   : > { %8841 = vmatmul.msk.bf16.vlgmr.msra.gmra.mxu3 %vm1217_vm0, %v5397_v43  ;;  %8850 = vmatmul.msk.bf16.gmra.mxu2 %vm1217_vm0, %v14107_v24  ;;  %v5302_v33 = vadd.f32 %v5301_v0, %v5263_v50 }
 0x82a   : > { %v5265_v21 = vpop.f32.mrf.mxu1 }
 0x82c   : > { %v5372_v42 = vpop.f32.mrf.mxu2  ;;  %v5336_v36 = vpop.f32.mrf.mxu0 }
 0x82d   : > { %v5373_v11 = vadd.f32 %v5372_v42, %v5334_v30 }
 0x830   : > { %v5303_v56 = vpop.f32.mrf.mxu3 }
 0x831   : > { %v5304_v45 = vadd.f32 %v5303_v56, %v5265_v21 }
 0x832   : > { %v5268_v63 = vpop.f32.mrf.mxu1 }
 0x833   : > { %v5400_v32 = vpack.c.bf16 %v5304_v45, %v5302_v33 }
 0x834   : > { %v5374_v37 = vpop.f32.mrf.mxu2  ;;  %v5339_v44 = vpop.f32.mrf.mxu0 }
 0x835   : > { %v5375_v4 = vadd.f32 %v5374_v37, %v5336_v36  ;;  %5510 = vmatmul.bf16.gmra.mxu1 %v5400_v32 }
 0x837   : > { %v5399_v41 = vpack.c.bf16 %v5375_v4, %v5373_v11  ;;  %5596 = vmatmul.bf16.gmra.mxu0 %v14131_v51 }
 0x838   : > { %v5306_v26 = vpop.f32.mrf.mxu3 }
 0x839   : > { %8842 = vmatmul.msk.bf16.gmra.mxu3 %vm1217_vm0, %v5399_v41  ;;  %8851 = vmatmul.msk.bf16.gmra.mxu2 %vm1217_vm0, %v14129_v61  ;;  %v5307_v17 = vadd.f32 %v5306_v26, %v5268_v63 }
 0x83a   : > { %v5270_v35 = vpop.f32.mrf.mxu1 }
 0x83c   : > { %v5377_v28 = vpop.f32.mrf.mxu2  ;;  %v5341_v58 = vpop.f32.mrf.mxu0 }
 0x83d   : > { %v5378_v10 = vadd.f32 %v5377_v28, %v5339_v44  ;;  %v5844_v28 = vld [vmem:[#allocation13 + $0x40] sm:$0xff] }
 0x840   : > { %v5308_v8 = vpop.f32.mrf.mxu3 }
 0x841   : > { %v5309_v57 = vadd.f32 %v5308_v8, %v5270_v35  ;;  %v5843_v8 = vld [vmem:[#allocation13 + $0x38] sm:$0xff] }
 0x842   : > { %v5273_v38 = vpop.f32.mrf.mxu1 }
 0x843   : > { %v5402_v18 = vpack.c.bf16 %v5309_v57, %v5307_v17 }
 0x844   : > { %v5379_v27 = vpop.f32.mrf.mxu2  ;;  %v5344_v29 = vpop.f32.mrf.mxu0 }
 0x845   : > { %v5380_v1 = vadd.f32 %v5379_v27, %v5341_v58  ;;  %5515 = vmatmul.bf16.gmra.mxu1 %v5402_v18  ;;  %v5841_v18 = vld [vmem:[#allocation13 + $0x28] sm:$0xff] }
 0x847   : > { %v5401_v34 = vpack.c.bf16 %v5380_v1, %v5378_v10  ;;  %5601 = vmatmul.bf16.gmra.mxu0 %v14156_v7  ;;  %v5838_v1 = vld [vmem:[#allocation13 + $0x10] sm:$0xff] }
 0x848   : > { %v5311_v39 = vpop.f32.mrf.mxu3 }
 0x849   : > { %8843 = vmatmul.msk.bf16.gmra.mxu3 %vm1217_vm0, %v5401_v34  ;;  %8852 = vmatmul.msk.bf16.gmra.mxu2 %vm1217_vm0, %v14152_v59  ;;  %v5312_v9 = vadd.f32 %v5311_v39, %v5273_v38  ;;  %v5840_v38 = vld [vmem:[#allocation13 + $0x20] sm:$0xff]  ;;  %v5839_v34 = vld [vmem:[#allocation13 + $0x18] sm:$0xff] }
 0x84a   : > { %v5275_v48 = vpop.f32.mrf.mxu1  ;;  %v5854_v27 = vpack.c.bf16 %v5841_v18, %v5840_v38  ;;  %v5853_v39 = vpack.c.bf16 %v5839_v34, %v5838_v1 }
 0x84c   : > { %v5382_v54 = vpop.f32.mrf.mxu2  ;;  %v5346_v55 = vpop.f32.mrf.mxu0 }
 0x84d   : > { %v5383_v2 = vadd.f32 %v5382_v54, %v5344_v29 }
 0x850   : > { %v5313_v5 = vpop.f32.mrf.mxu3 }
 0x851   : > { %v5314_v6 = vadd.f32 %v5313_v5, %v5275_v48  ;;  %v5837_v48 = vld [vmem:[#allocation13 + $0x8] sm:$0xff] }
 0x852   : > { %v5278_v46 = vpop.f32.mrf.mxu1 }
 0x853   : > { %v5404_v20 = vpack.c.bf16 %v5314_v6, %v5312_v9 }
 0x854   : > { %v5384_v40 = vpop.f32.mrf.mxu2  ;;  %v5349_v47 = vpop.f32.mrf.mxu0 }
 0x855   : > { %v5385_v62 = vadd.f32 %v5384_v40, %v5346_v55  ;;  %5520 = vmatmul.bf16.gmra.mxu1 %v5404_v20 }
 0x857   : > { %v5403_v14 = vpack.c.bf16 %v5385_v62, %v5383_v2 }
 0x858   : > { %v5316_v3 = vpop.f32.mrf.mxu3 }
 0x859   : > { %8844 = vmatmul.msk.bf16.gmra.mxu3 %vm1217_vm0, %v5403_v14  ;;  %v5317_v19 = vadd.f32 %v5316_v3, %v5278_v46 }
 0x85a   : > { %v5280_v60 = vpop.f32.mrf.mxu1 }
 0x85b   : > { %v5406_v30 = vpack.c.bf16 %v5317_v19, %v5317_v19 }
 0x85c   : > { %v5387_v53 = vpop.f32.mrf.mxu2  ;;  %v5351_v50 = vpop.f32.mrf.mxu0 }
 0x85d   : > { %v5388_v43 = vadd.f32 %v5387_v53, %v5349_v47 }
 0x860   : > { %v5318_v23 = vpop.f32.mrf.mxu3 }
 0x864   : > { %v5389_v52 = vpop.f32.mrf.mxu2  ;;  %v5354_v16 = vpop.f32.mrf.mxu0 }
 0x865   : > { %v5390_v0 = vadd.f32 %v5389_v52, %v5351_v50  ;;  %5525 = vmatmul.bf16.gmra.mxu1 %v5406_v30 }
 0x867   : > { %v5405_v21 = vpack.c.bf16 %v5390_v0, %v5388_v43 }
 0x869   : > { %8845 = vmatmul.msk.bf16.gmra.mxu3 %vm1217_vm0, %v5405_v21 }
 0x86c   : > { %v5392_v42 = vpop.f32.mrf.mxu2  ;;  %v5356_v36 = vpop.f32.mrf.mxu0 }
 0x86d   : > { %v5393_v33 = vadd.f32 %v5392_v42, %v5354_v16 }
 0x86f   : > { %v5407_v45 = vpack.c.bf16 %v5393_v33, %v5393_v33 }
 0x874   : > { %v5394_v56 = vpop.f32.mrf.mxu2  ;;  %v5577_v60 = vpop.f32.mrf.mxu0 }
 0x875   : > { %5652 = vmatmul.bf16.vlgmr.msrb.gmra.mxu1 %v14037_v15  ;;  %v5846_v15 = vld [vmem:[#allocation13 + $0x50] sm:$0xff] }
 0x876   : > { %v5857_v26 = vpack.c.bf16 %v5846_v15, %v5846_v15  ;;  %6108 = vmatpush.msra.mxu3 %v5846_v15 }
 0x879   : > { %8846 = vmatmul.msk.bf16.gmra.mxu3 %vm1217_vm0, %v5407_v45 }
 0x87c   : > { %v5615_v53 = vpop.f32.mrf.mxu2  ;;  %v5579_v52 = vpop.f32.mrf.mxu0 }
 0x87d   : > { %v5616_v30 = vadd.f32 %v5615_v53, %v5577_v60 }
 0x884   : > { %v5617_v16 = vpop.f32.mrf.mxu2 }
 0x885   : > { %5657 = vmatmul.bf16.gmra.mxu1 %v14066_v31  ;;  %v5618_v0 = vadd.f32 %v5617_v16, %v5579_v52 }
 0x887   : > { %v5720_v42 = vpack.c.bf16 %v5618_v0, %v5616_v30 }
 0x889   : > { %8853 = vmatmul.msk.bf16.vlgmr.msrb.gmra.mxu3 %vm1217_vm0, %v14031_v49  ;;  %v5905_v49 = vsel %vm5903_vm4, %v5857_v26, 0  ;;  %5758 = vmatmul.bf16.vlgmr.msrb.gmra.mxu0 %v5720_v42  ;;  %v5582_v26 = vpop.f32.mrf.mxu0 }
 0x88a   : > { %5909 = vmatpush.bf16.msra.mxu1 %v5905_v49 }
 0x892   : > { %v14264_v63 = vpop.f32.mrf.mxu1 }
 0x895   : > { %5662 = vmatmul.bf16.gmra.mxu1 %v14088_v12  ;;  %v5125_v32 = vpop.xlane.xlu0 %5124  ;;  %v5845_v12 = vld [vmem:[#allocation13 + $0x48] sm:$0xff] }
 0x896   : > { %v5126_v37 = vrot.slane %v5125_v32, 4  ;;  %v5856_v58 = vpack.c.bf16 %v5845_v12, %v5844_v28  ;;  %6109 = vmatpush.msra.mxu3 %v5845_v12 }
 0x898   : > { %v5127_v44 = vadd.f32 %v5126_v37, %v5125_v32  ;;  %5910 = vmatpush.bf16.msra.mxu1 %v5856_v58  ;;  %6110 = vmatpush.msra.mxu3 %v5844_v28 }
 0x899   : > { %8854 = vmatmul.msk.bf16.gmra.mxu3 %vm1217_vm0, %v14060_v13  ;;  %v5842_v13 = vld [vmem:[#allocation13 + $0x30] sm:$0xff] }
 0x89a   : > { %v5128_v11 = vrot.slane %v5127_v44, 2  ;;  %v5503_v4 = vpop.f32.mrf.mxu1  ;;  %v5855_v57 = vpack.c.bf16 %v5843_v8, %v5842_v13  ;;  %6111 = vmatpush.msra.mxu3 %v5843_v8 }
 0x89c   : > { %v5129_v41 = vadd.f32 %v5128_v11, %v5127_v44  ;;  %5911 = vmatpush.bf16.msra.mxu1 %v5855_v57  ;;  %6112 = vmatpush.msra.mxu3 %v5842_v13 }
 0x89e   : > { %v5130_v31 = vrot.slane %v5129_v41, 1  ;;  %6113 = vmatpush.msra.mxu3 %v5841_v18 }
 0x8a0   : > { %v5131_v35 = vadd.f32 %v5130_v31, %v5129_v41  ;;  %5912 = vmatpush.bf16.msra.mxu1 %v5854_v27  ;;  %6114 = vmatpush.msra.mxu3 %v5840_v38  ;;  %v5620_v31 = vpop.f32.mrf.mxu2 }
 0x8a1   : > { %v5621_v58 = vadd.f32 %v5620_v31, %v5582_v26 }
 0x8a2   : > { %9155 = vpush %v5131_v35  ;;  %v5506_v17 = vpop.f32.mrf.mxu1  ;;  %6115 = vmatpush.msra.mxu3 %v5839_v34 }
 0x8a4   : > { %5913 = vmatpush.bf16.msra.mxu1 %v5853_v39  ;;  %6116 = vmatpush.msra.mxu3 %v5838_v1 }
 0x8a5   : > { %5667 = vmatmul.bf16.gmra.mxu1 %v14109_v22  ;;  %v5836_v22 = vld [vmem:[#allocation13] sm:$0xff] }
 0x8a6   : > { %v5852_v54 = vpack.c.bf16 %v5837_v48, %v5836_v22  ;;  %6117 = vmatpush.msra.mxu3 %v5837_v48 }
 0x8a8   : > { %5914 = vmatpush.bf16.msra.mxu1 %v5852_v54  ;;  %6118 = vmatpush.msra.mxu3 %v5836_v22  ;;  %v5622_v13 = vpop.f32.mrf.mxu2 }
 0x8a9   : > { %8855 = vmatmul.msk.bf16.gmra.mxu3 %vm1217_vm0, %v14086_v25 }
 0x8aa   : > { %v5508_v29 = vpop.f32.mrf.mxu1 }
 0x8ac   : > { %v5539_v10 = vpop.f32.mrf.mxu3 }
 0x8ad   : > { %v14282_v2 = vadd.f32 %v5539_v10, %v14264_v63 }
 0x8b0   : > { %v5625_v34 = vpop.f32.mrf.mxu2 }
 0x8b2   : > { %v5511_v55 = vpop.f32.mrf.mxu1 }
 0x8b4   : > { %v5541_v9 = vpop.f32.mrf.mxu3 }
 0x8b5   : > { %5672 = vmatmul.bf16.gmra.mxu1 %v14131_v51  ;;  %v14279_v47 = vadd.f32 %v5541_v9, %v5503_v4 }
 0x8b7   : > { %v5972_v36 = vmul.f32 %v14279_v47, %v14279_v47 }
 0x8b9   : > { %8856 = vmatmul.msk.bf16.gmra.mxu3 %vm1217_vm0, %v14107_v24  ;;  %v14286_v24 = vpack.c.bf16 %v14279_v47, %v14282_v2 }
 0x8ba   : > { %v5513_v25 = vpop.f32.mrf.mxu1 }
 0x8bc   : > { %v5544_v5 = vpop.f32.mrf.mxu3 }
 0x8bd   : > { %v14294_v3 = vadd.f32 %v5544_v5, %v5506_v17  ;;  %v5584_v17 = vpop.f32.mrf.mxu0 }
 0x8be   : > { %v5623_v57 = vadd.f32 %v5622_v13, %v5584_v17 }
 0x8bf   : > { %v5973_v37 = vmul.f32 %v14294_v3, %v14294_v3 }
 0x8c0   : > { %v5722_v18 = vpack.c.bf16 %v5623_v57, %v5621_v58 }
 0x8c2   : > { %v5516_v6 = vpop.f32.mrf.mxu1  ;;  %5763 = vmatmul.bf16.gmra.mxu0 %v5722_v18 }
 0x8c4   : > { %v5546_v46 = vpop.f32.mrf.mxu3 }
 0x8c5   : > { %5677 = vmatmul.bf16.gmra.mxu1 %v14156_v7  ;;  %v14292_v14 = vadd.f32 %v5546_v46, %v5508_v29  ;;  %v5587_v1 = vpop.f32.mrf.mxu0  ;;  %v5627_v46 = vpop.f32.mrf.mxu2 }
 0x8c6   : > { %v5626_v5 = vadd.f32 %v5625_v34, %v5587_v1 }
 0x8c7   : > { %v14300_v19 = vpack.c.bf16 %v14292_v14, %v14294_v3  ;;  %v5974_v4 = vmul.f32 %v14292_v14, %v14292_v14 }
 0x8c9   : > { %8857 = vmatmul.msk.bf16.gmra.mxu3 %vm1217_vm0, %v14129_v61 }
 0x8ca   : > { %v5518_v20 = vpop.f32.mrf.mxu1 }
 0x8cc   : > { %v5549_v40 = vpop.f32.mrf.mxu3 }
 0x8cd   : > { %v14311_v56 = vadd.f32 %v5549_v40, %v5511_v55  ;;  %v5630_v60 = vpop.f32.mrf.mxu2 }
 0x8cf   : > { %v5975_v12 = vmul.f32 %v14311_v56, %v14311_v56 }
 0x8d2   : > { %v5521_v51 = vpop.f32.mrf.mxu1 }
 0x8d3   : > { %s9156_s6 = spop %9155 }
 0x8d4   : > { %v5551_v62 = vpop.f32.mrf.mxu3 }
 0x8d5   : > { %8865 = vmatmul.msk.bf16.vlgmr.msra.gmra.mxu1 %vm5869_vm5, %v14286_v24  ;;  %v14309_v33 = vadd.f32 %v5551_v62, %v5513_v25 }
 0x8d7   : > { %v14316_v63 = vpack.c.bf16 %v14309_v33, %v14311_v56  ;;  %v5976_v27 = vmul.f32 %v14309_v33, %v14309_v33 }
 0x8d9   : > { %8858 = vmatmul.msk.bf16.gmra.mxu3 %vm1217_vm0, %v14152_v59  ;;  %v5971_v59 = vmul.f32 %v14282_v2, %v14282_v2 }
 0x8da   : > { %v5523_v61 = vpop.f32.mrf.mxu1 }
 0x8dc   : > { %v5554_v7 = vpop.f32.mrf.mxu3 }
 0x8dd   : > { %v14329_v41 = vadd.f32 %v5554_v7, %v5516_v6  ;;  %v5589_v6 = vpop.f32.mrf.mxu0 }
 0x8de   : > { %v5628_v40 = vadd.f32 %v5627_v46, %v5589_v6 }
 0x8df   : > { %v5977_v9 = vmul.f32 %v14329_v41, %v14329_v41 }
 0x8e0   : > { %v5724_v62 = vpack.c.bf16 %v5628_v40, %v5626_v5 }
 0x8e2   : > { %v14296_v50 = vpop.f32.mrf.mxu1  ;;  %5768 = vmatmul.bf16.gmra.mxu0 %v5724_v62 }
 0x8e4   : > { %v5556_v23 = vpop.f32.mrf.mxu3 }
 0x8e5   : > { %8866 = vmatmul.msk.bf16.gmra.mxu1 %vm5869_vm5, %v14300_v19  ;;  %v14327_v15 = vadd.f32 %v5556_v23, %v5518_v20  ;;  %v5592_v7 = vpop.f32.mrf.mxu0 }
 0x8e7   : > { %v14334_v35 = vpack.c.bf16 %v14327_v15, %v14329_v41 }
 0x8e9   : > { %8876 = vmatmul.msk.f32.vlgmr.msra.gmra.mxu3 %vm5869_vm5, %v5971_v59 }
 0x8ea   : > { %v5528_v43 = vpop.f32.mrf.mxu1 }
 0x8eb   : > { %v5631_v43 = vadd.f32 %v5630_v60, %v5592_v7 }
 0x8ec   : > { %v5559_v21 = vpop.f32.mrf.mxu3 }
 0x8ed   : > { %v14345_v10 = vadd.f32 %v5559_v21, %v5521_v51  ;;  %v5594_v0 = vpop.f32.mrf.mxu0  ;;  %v5632_v21 = vpop.f32.mrf.mxu2 }
 0x8ef   : > { %v5979_v52 = vmul.f32 %v14345_v10, %v14345_v10 }
 0x8f1   : > { %8877 = vmatmul.msk.f32.gmra.mxu3 %vm5869_vm5, %v5972_v36  ;;  %v5633_v36 = vadd.f32 %v5632_v21, %v5594_v0 }
 0x8f2   : > { %v5653_v45 = vpop.f32.mrf.mxu1 }
 0x8f4   : > { %v5561_v32 = vpop.f32.mrf.mxu3 }
 0x8f5   : > { %8867 = vmatmul.msk.bf16.gmra.mxu1 %vm5869_vm5, %v14316_v63  ;;  %v14343_v29 = vadd.f32 %v5561_v32, %v5523_v61  ;;  %v5978_v61 = vmul.f32 %v14327_v15, %v14327_v15  ;;  %v5726_v32 = vpack.c.bf16 %v5633_v36, %v5631_v43 }
 0x8f7   : > { %v14350_v22 = vpack.c.bf16 %v14343_v29, %v14345_v10  ;;  %5773 = vmatmul.bf16.gmra.mxu0 %v5726_v32 }
 0x8f9   : > { %8878 = vmatmul.msk.f32.gmra.mxu3 %vm5869_vm5, %v5973_v37  ;;  %v5980_v37 = vmul.f32 %v14343_v29, %v14343_v29 }
 0x8fa   : > { %v5655_v44 = vpop.f32.mrf.mxu1 }
 0x8fc   : > { %v14323_v11 = vpop.f32.mrf.mxu3 }
 0x8fd   : > { %v14370_v31 = vadd.f32 %v14323_v11, %v14296_v50 }
 0x8ff   : > { %v5981_v17 = vmul.f32 %v14370_v31, %v14370_v31 }
 0x901   : > { %8879 = vmatmul.msk.f32.gmra.mxu3 %vm5869_vm5, %v5974_v4  ;;  %v5635_v4 = vpop.f32.mrf.mxu2 }
 0x902   : > { %v5658_v49 = vpop.f32.mrf.mxu1 }
 0x904   : > { %v5566_v28 = vpop.f32.mrf.mxu3 }
 0x905   : > { %8868 = vmatmul.msk.bf16.gmra.mxu1 %vm5869_vm5, %v14334_v35 }
 0x909   : > { %8880 = vmatmul.msk.f32.gmra.mxu3 %vm5869_vm5, %v5975_v12  ;;  %v5637_v57 = vpop.f32.mrf.mxu2 }
 0x90a   : > { %v5660_v8 = vpop.f32.mrf.mxu1 }
 0x90c   : > { %v5691_v38 = vpop.f32.mrf.mxu3 }
 0x90d   : > { %v5692_v54 = vadd.f32 %v5691_v38, %v5653_v45 }
 0x911   : > { %8881 = vmatmul.msk.f32.gmra.mxu3 %vm5869_vm5, %v5976_v27 }
 0x912   : > { %v5663_v39 = vpop.f32.mrf.mxu1 }
 0x914   : > { %v5693_v48 = vpop.f32.mrf.mxu3 }
 0x915   : > { %v5694_v55 = vadd.f32 %v5693_v48, %v5655_v44  ;;  %8869 = vmatmul.msk.bf16.gmra.mxu1 %vm5869_vm5, %v14350_v22  ;;  %v5597_v44 = vpop.f32.mrf.mxu0 }
 0x916   : > { %v5636_v13 = vadd.f32 %v5635_v4, %v5597_v44 }
 0x917   : > { %v5721_v25 = vpack.c.bf16 %v5694_v55, %v5692_v54  ;;  %v5640_v55 = vpop.f32.mrf.mxu2 }
 0x919   : > { %8859 = vmatmul.msk.bf16.vlgmr.msrb.gmra.mxu2 %vm1217_vm0, %v5721_v25  ;;  %8882 = vmatmul.msk.f32.gmra.mxu3 %vm5869_vm5, %v5977_v9 }
 0x91a   : > { %v5665_v20 = vpop.f32.mrf.mxu1 }
 0x91c   : > { %v5696_v51 = vpop.f32.mrf.mxu3 }
 0x91d   : > { %v5697_v23 = vadd.f32 %v5696_v51, %v5658_v49 }
 0x921   : > { %8883 = vmatmul.msk.f32.gmra.mxu3 %vm5869_vm5, %v5978_v61 }
 0x922   : > { %v5668_v53 = vpop.f32.mrf.mxu1 }
 0x924   : > { %v5698_v59 = vpop.f32.mrf.mxu3 }
 0x925   : > { %v5699_v30 = vadd.f32 %v5698_v59, %v5660_v8  ;;  %v5599_v8 = vpop.f32.mrf.mxu0 }
 0x926   : > { %v5638_v18 = vadd.f32 %v5637_v57, %v5599_v8 }
 0x927   : > { %v5723_v16 = vpack.c.bf16 %v5699_v30, %v5697_v23 }
 0x928   : > { %v5728_v1 = vpack.c.bf16 %v5638_v18, %v5636_v13 }
 0x929   : > { %8860 = vmatmul.msk.bf16.gmra.mxu2 %vm1217_vm0, %v5723_v16  ;;  %8884 = vmatmul.msk.f32.gmra.mxu3 %vm5869_vm5, %v5979_v52 }
 0x92a   : > { %v5670_v42 = vpop.f32.mrf.mxu1  ;;  %5778 = vmatmul.bf16.gmra.mxu0 %v5728_v1 }
 0x92c   : > { %v5701_v45 = vpop.f32.mrf.mxu3 }
 0x92d   : > { %v5702_v49 = vadd.f32 %v5701_v45, %v5663_v39  ;;  %v5602_v54 = vpop.f32.mrf.mxu0 }
 0x92e   : > { %v5641_v25 = vadd.f32 %v5640_v55, %v5602_v54 }
 0x930   : > { %v5730_v6 = vpack.c.bf16 %v5641_v25, %v5641_v25 }
 0x931   : > { %8885 = vmatmul.msk.f32.gmra.mxu3 %vm5869_vm5, %v5980_v37 }
 0x932   : > { %v5673_v26 = vpop.f32.mrf.mxu1 }
 0x934   : > { %v5703_v28 = vpop.f32.mrf.mxu3 }
 0x935   : > { %v5704_v12 = vadd.f32 %v5703_v28, %v5665_v20  ;;  %v5604_v46 = vpop.f32.mrf.mxu0  ;;  %v5642_v20 = vpop.f32.mrf.mxu2 }
 0x937   : > { %v5725_v58 = vpack.c.bf16 %v5704_v12, %v5702_v49 }
 0x939   : > { %8861 = vmatmul.msk.bf16.gmra.mxu2 %vm1217_vm0, %v5725_v58  ;;  %8886 = vmatmul.msk.f32.gmra.mxu3 %vm5869_vm5, %v5981_v17 }
 0x93a   : > { %v5675_v38 = vpop.f32.mrf.mxu1  ;;  %5783 = vmatmul.bf16.gmra.mxu0 %v5730_v6 }
 0x93c   : > { %v5706_v27 = vpop.f32.mrf.mxu3 }
 0x93d   : > { %v5707_v11 = vadd.f32 %v5706_v27, %v5668_v53  ;;  %v5759_v59 = vpop.f32.mrf.mxu0 }
 0x942   : > { %v5678_v50 = vpop.f32.mrf.mxu1 }
 0x944   : > { %v5708_v34 = vpop.f32.mrf.mxu3 }
 0x945   : > { %v5709_v39 = vadd.f32 %v5708_v34, %v5670_v42  ;;  %v5761_v30 = vpop.f32.mrf.mxu0 }
 0x947   : > { %v5727_v48 = vpack.c.bf16 %v5709_v39, %v5707_v11 }
 0x949   : > { %8862 = vmatmul.msk.bf16.gmra.mxu2 %vm1217_vm0, %v5727_v48 }
 0x94a   : > { %v5680_v9 = vpop.f32.mrf.mxu1 }
 0x94c   : > { %v5711_v5 = vpop.f32.mrf.mxu3 }
 0x94d   : > { %v5712_v40 = vadd.f32 %v5711_v5, %v5673_v26  ;;  %v5764_v52 = vpop.f32.mrf.mxu0 }
 0x952   : > { %v14411_v1 = vpop.f32.mrf.mxu1 }
 0x954   : > { %v5713_v51 = vpop.f32.mrf.mxu3 }
 0x955   : > { %v5714_v62 = vadd.f32 %v5713_v51, %v5675_v38  ;;  %v5766_v16 = vpop.f32.mrf.mxu0 }
 0x957   : > { %v5729_v61 = vpack.c.bf16 %v5714_v62, %v5712_v40 }
 0x959   : > { %8863 = vmatmul.msk.bf16.gmra.mxu2 %vm1217_vm0, %v5729_v61 }
 0x95a   : > { %v14425_v25 = vpop.f32.mrf.mxu1 }
 0x95c   : > { %v5716_v7 = vpop.f32.mrf.mxu3 }
 0x95d   : > { %v5717_v60 = vadd.f32 %v5716_v7, %v5678_v50 }
 0x95f   : > { %v5731_v23 = vpack.c.bf16 %v5717_v60, %v5717_v60  ;;  %v5769_v43 = vpop.f32.mrf.mxu0 }
 0x962   : > { %v14440_v7 = vpop.f32.mrf.mxu1 }
 0x964   : > { %v5718_v53 = vpop.f32.mrf.mxu3 }
 0x967   : > { %v5771_v45 = vpop.f32.mrf.mxu0 }
 0x969   : > { %8864 = vmatmul.msk.bf16.gmra.mxu2 %vm1217_vm0, %v5731_v23 }
 0x96c   : > { %v14408_v18 = vpop.f32.mrf.mxu3 }
 0x974   : > { %v5774_v26 = vpop.f32.mrf.mxu0  ;;  %v14421_v48 = vpop.f32.mrf.mxu3 }
 0x97c   : > { %v5776_v17 = vpop.f32.mrf.mxu0  ;;  %v14432_v20 = vpop.f32.mrf.mxu3 }
 0x99c   : > { %v5797_v0 = vpop.f32.mrf.mxu2 }
 0x99d   : > { %v14379_v21 = vadd.f32 %v5797_v0, %v5759_v59  ;;  %v14446_v59 = vpop.f32.mrf.mxu3 }
 0x99f   : > { %v5863_v42 = vpack.c.bf16 %v14379_v21, %v14370_v31  ;;  %v5982_v36 = vmul.f32 %v14379_v21, %v14379_v21 }
 0x9a1   : > { %8870 = vmatmul.msk.bf16.gmra.mxu1 %vm5869_vm5, %v5863_v42  ;;  %8887 = vmatmul.msk.f32.gmra.mxu3 %vm5869_vm5, %v5982_v36 }
 0x9a4   : > { %v5799_v32 = vpop.f32.mrf.mxu2 }
 0x9a5   : > { %v14387_v37 = vadd.f32 %v5799_v32, %v5761_v30 }
 0x9a7   : > { %v5983_v44 = vmul.f32 %v14387_v37, %v14387_v37  ;;  %v6791_v4 = vpack.c.bf16 %v14387_v37, %v14379_v21  ;;  %v5779_v27 = vpop.f32.mrf.mxu0 }
 0x9a9   : > { %8888 = vmatmul.msk.f32.gmra.mxu3 %vm5869_vm5, %v5983_v44 }
 0x9ac   : > { %v5802_v49 = vpop.f32.mrf.mxu2 }
 0x9ad   : > { %v14394_v28 = vadd.f32 %v5802_v49, %v5764_v52 }
 0x9af   : > { %v5864_v12 = vpack.c.bf16 %v14394_v28, %v14387_v37  ;;  %v5984_v58 = vmul.f32 %v14394_v28, %v14394_v28  ;;  %v5781_v54 = vpop.f32.mrf.mxu0 }
 0x9b1   : > { %8871 = vmatmul.msk.bf16.gmra.mxu1 %vm5869_vm5, %v5864_v12  ;;  %8889 = vmatmul.msk.f32.gmra.mxu3 %vm5869_vm5, %v5984_v58 }
 0x9b4   : > { %v5804_v13 = vpop.f32.mrf.mxu2 }
 0x9b5   : > { %v14402_v8 = vadd.f32 %v5804_v13, %v5766_v16  ;;  %v14453_v16 = vpop.f32.mrf.mxu1 }
 0x9b7   : > { %v5985_v57 = vmul.f32 %v14402_v8, %v14402_v8  ;;  %v6792_v38 = vpack.c.bf16 %v14402_v8, %v14394_v28  ;;  %v5784_v46 = vpop.f32.mrf.mxu0 }
 0x9b9   : > { %8890 = vmatmul.msk.f32.gmra.mxu3 %vm5869_vm5, %v5985_v57 }
 0x9bc   : > { %v5807_v50 = vpop.f32.mrf.mxu2 }
 0x9bd   : > { %v14413_v11 = vadd.f32 %v5807_v50, %v5769_v43  ;;  %v5926_v32 = vpop.f32.mrf.mxu1 }
 0x9bf   : > { %v5865_v34 = vpack.c.bf16 %v14413_v11, %v14402_v8  ;;  %v5986_v39 = vmul.f32 %v14413_v11, %v14413_v11  ;;  %v5786_v60 = vpop.f32.mrf.mxu0 }
 0x9c1   : > { %8872 = vmatmul.msk.bf16.gmra.mxu1 %vm5869_vm5, %v5865_v34  ;;  %8891 = vmatmul.msk.f32.gmra.mxu3 %vm5869_vm5, %v5986_v39 }
 0x9c4   : > { %v5809_v55 = vpop.f32.mrf.mxu2 }
 0x9c5   : > { %v14423_v9 = vadd.f32 %v5809_v55, %v5771_v45  ;;  %v14461_v45 = vpop.f32.mrf.mxu3  ;;  %v5928_v57 = vpop.f32.mrf.mxu1 }
 0x9c7   : > { %v5987_v5 = vmul.f32 %v14423_v9, %v14423_v9  ;;  %v6793_v6 = vpack.c.bf16 %v14423_v9, %v14413_v11 }
 0x9c9   : > { %8892 = vmatmul.msk.f32.gmra.mxu3 %vm5869_vm5, %v5987_v5 }
 0x9cc   : > { %v5812_v40 = vpop.f32.mrf.mxu2 }
 0x9cd   : > { %v14434_v51 = vadd.f32 %v5812_v40, %v5774_v26  ;;  %v14472_v58 = vpop.f32.mrf.mxu3  ;;  %v5931_v55 = vpop.f32.mrf.mxu1 }
 0x9cf   : > { %v5866_v62 = vpack.c.bf16 %v14434_v51, %v14423_v9  ;;  %v5988_v61 = vmul.f32 %v14434_v51, %v14434_v51 }
 0x9d1   : > { %8873 = vmatmul.msk.bf16.gmra.mxu1 %vm5869_vm5, %v5866_v62  ;;  %8893 = vmatmul.msk.f32.gmra.mxu3 %vm5869_vm5, %v5988_v61  ;;  %v5995_v62 = vmul.f32 %v14394_v28, %v14294_v3  ;;  %v5998_v3 = vmul.f32 %v14423_v9, %v14309_v33 }
 0x9d4   : > { %v5814_v53 = vpop.f32.mrf.mxu2 }
 0x9d5   : > { %v14444_v23 = vadd.f32 %v5814_v53, %v5776_v17  ;;  %v6138_v34 = vpop.f32.mrf.mxu3  ;;  %v5933_v40 = vpop.f32.mrf.mxu1 }
 0x9d7   : > { %v5989_v30 = vmul.f32 %v14444_v23, %v14444_v23  ;;  %v6794_v52 = vpack.c.bf16 %v14444_v23, %v14434_v51 }
 0x9d9   : > { %8894 = vmatmul.msk.f32.gmra.mxu3 %vm5869_vm5, %v5989_v30 }
 0x9dc   : > { %v5817_v43 = vpop.f32.mrf.mxu2 }
 0x9dd   : > { %v14455_v0 = vadd.f32 %v5817_v43, %v5779_v27  ;;  %v6141_v5 = vpop.f32.mrf.mxu3  ;;  %v5936_v60 = vpop.f32.mrf.mxu1 }
 0x9df   : > { %v5867_v42 = vpack.c.bf16 %v14455_v0, %v14444_v23  ;;  %v5990_v36 = vmul.f32 %v14455_v0, %v14455_v0 }
 0x9e1   : > { %8874 = vmatmul.msk.bf16.gmra.mxu1 %vm5869_vm5, %v5867_v42  ;;  %8895 = vmatmul.msk.f32.gmra.mxu3 %vm5869_vm5, %v5990_v36 }
 0x9e4   : > { %v5819_v44 = vpop.f32.mrf.mxu2 }
 0x9e5   : > { %v14465_v26 = vadd.f32 %v5819_v44, %v5781_v54  ;;  %v5993_v54 = vmul.f32 %v14379_v21, %v14282_v2  ;;  %v6144_v61 = vpop.f32.mrf.mxu3  ;;  %v5996_v2 = vmul.f32 %v14402_v8, %v14292_v14  ;;  %v5938_v30 = vpop.f32.mrf.mxu1 }
 0x9e6   : > { %v6223_v14 = vpack.c.bf16 %v5938_v30, %v5936_v60  ;;  %v14584_v30 = vld [vmem:[#allocation7 + $0x30] sm:$0xff] }
 0x9e7   : > { %v5991_v49 = vmul.f32 %v14465_v26, %v14465_v26  ;;  %v6795_v12 = vpack.c.bf16 %v14465_v26, %v14455_v0 }
 0x9e9   : > { %8896 = vmatmul.msk.f32.gmra.mxu3 %vm5869_vm5, %v5991_v49 }
 0x9ec   : > { %v5822_v17 = vpop.f32.mrf.mxu2 }
 0x9ed   : > { %v14474_v13 = vadd.f32 %v5822_v17, %v5784_v46  ;;  %v5994_v46 = vmul.f32 %v14387_v37, %v14279_v47  ;;  %v6147_v53 = vpop.f32.mrf.mxu3  ;;  %v5997_v47 = vmul.f32 %v14413_v11, %v14311_v56  ;;  %v5999_v56 = vmul.f32 %v14434_v51, %v14329_v41  ;;  %v14517_v41 = vld [vmem:[#allocation7] sm:$0xff] }
 0x9ef   : > { %v5868_v27 = vpack.c.bf16 %v14474_v13, %v14465_v26  ;;  %v5992_v50 = vmul.f32 %v14474_v13, %v14474_v13 }
 0x9f1   : > { %8875 = vmatmul.msk.bf16.gmra.mxu1 %vm5869_vm5, %v5868_v27  ;;  %8897 = vmatmul.msk.f32.gmra.mxu3 %vm5869_vm5, %v5992_v50  ;;  %v6222_v27 = vpack.c.bf16 %v5933_v40, %v5931_v55  ;;  %v6221_v50 = vpack.c.bf16 %v5928_v57, %v5926_v32  ;;  %v14519_v55 = vld [vmem:[#allocation7 + $0x8] sm:$0xff]  ;;  %v6219_v32 = vpack.c.bf16 %v14425_v25, %v14411_v1 }
 0x9f2   : > { %v14527_v40 = vpack.c.bf16 %v14519_v55, %v14517_v41 }
 0x9f4   : > { %v5824_v39 = vpop.f32.mrf.mxu2 }
 0x9f5   : > { %v6150_v43 = vpop.f32.mrf.mxu3 }
 0x9f9   : > { %8898 = vmatmul.msk.f32.gmra.mxu3 %vm5869_vm5, %v5993_v54  ;;  %v6000_v54 = vmul.f32 %v14444_v23, %v14327_v15 }
 0xa01   : > { %8899 = vmatmul.msk.f32.gmra.mxu3 %vm5869_vm5, %v5994_v46  ;;  %v6220_v46 = vpack.c.bf16 %v14453_v16, %v14440_v7  ;;  %v6001_v7 = vmul.f32 %v14455_v0, %v14345_v10  ;;  %v6002_v16 = vmul.f32 %v14465_v26, %v14343_v29  ;;  %v14544_v10 = vld [vmem:[#allocation7 + $0x10] sm:$0xff] }
 0xa09   : > { %8900 = vmatmul.msk.f32.gmra.mxu3 %vm5869_vm5, %v5995_v62  ;;  %v14546_v62 = vld [vmem:[#allocation7 + $0x18] sm:$0xff] }
 0xa11   : > { %8901 = vmatmul.msk.f32.gmra.mxu3 %vm5869_vm5, %v5996_v2 }
 0xa19   : > { %8902 = vmatmul.msk.f32.gmra.mxu3 %vm5869_vm5, %v5997_v47  ;;  %v14586_v47 = vld [vmem:[#allocation7 + $0x38] sm:$0xff] }
 0xa1e   : > { %v5941_v42 = vpop.f32.mrf.mxu1 }
 0xa1f   : > { %v6224_v36 = vpack.c.bf16 %v5941_v42, %v5941_v42  ;;  %v14590_v42 = vpack.c.bf16 %v14586_v47, %v14584_v30 }
 0xa21   : > { %v6241_v44 = vsel %vm5903_vm4, %v6224_v36, 0  ;;  %8903 = vmatmul.msk.f32.gmra.mxu3 %vm5869_vm5, %v5998_v3  ;;  %v14594_v3 = vld [vmem:[#allocation7 + $0x40] sm:$0xff] }
 0xa22   : > { %6245 = vmatpush.bf16.msra.mxu0 %v6241_v44 }
 0xa24   : > { %v14501_v49 = vpop.f32.mrf.mxu3 }
 0xa26   : > { %v14503_v17 = vpop.f32.mrf.mxu1  ;;  %6246 = vmatpush.bf16.msra.mxu0 %v6223_v14 }
 0xa29   : > { %8904 = vmatmul.msk.f32.gmra.mxu3 %vm5869_vm5, %v5999_v56 }
 0xa2a   : > { %6247 = vmatpush.bf16.msra.mxu0 %v6222_v27 }
 0xa2c   : > { %v14508_v33 = vpop.f32.mrf.mxu3 }
 0xa2e   : > { %v14510_v39 = vpop.f32.mrf.mxu1  ;;  %6248 = vmatpush.bf16.msra.mxu0 %v6221_v50 }
 0xa31   : > { %8905 = vmatmul.msk.f32.gmra.mxu3 %vm5869_vm5, %v6000_v54 }
 0xa32   : > { %6249 = vmatpush.bf16.msra.mxu0 %v6220_v46 }
 0xa34   : > { %v14523_v57 = vpop.f32.mrf.mxu3 }
 0xa36   : > { %v14529_v15 = vpop.f32.mrf.mxu1  ;;  %6250 = vmatpush.bf16.msra.mxu0 %v6219_v32 }
 0xa39   : > { %8906 = vmatmul.msk.f32.gmra.mxu3 %vm5869_vm5, %v6001_v7  ;;  %8909 = vmatmul.msk.bf16.vlgmr.msra.gmra.mxu0 %vm5869_vm5, %v14527_v40 }
 0xa3a   : > { %6355 = vmatpush.msrb.mxu0 %v6150_v43 }
 0xa3c   : > { %6356 = vmatpush.msrb.mxu0 %v6147_v53  ;;  %v14536_v1 = vpop.f32.mrf.mxu3 }
 0xa3e   : > { %6357 = vmatpush.msrb.mxu0 %v6144_v61  ;;  %v14538_v25 = vpop.f32.mrf.mxu1 }
 0xa40   : > { %6358 = vmatpush.msrb.mxu0 %v6141_v5  ;;  %v14553_v5 = vpack.c.bf16 %v14546_v62, %v14544_v10 }
 0xa41   : > { %8907 = vmatmul.msk.f32.gmra.mxu3 %vm5869_vm5, %v6002_v16  ;;  %v6796_v16 = vpack.c.bf16 %v14474_v13, %v14474_v13 }
 0xa42   : > { %6359 = vmatpush.msrb.mxu0 %v6138_v34  ;;  %v6003_v34 = vmul.f32 %v14474_v13, %v14370_v31 }
 0xa44   : > { %6360 = vmatpush.msrb.mxu0 %v14472_v58  ;;  %v14549_v61 = vpop.f32.mrf.mxu3  ;;  %v6667_v58 = vpack.c.bf16 %v14370_v31, %v14370_v31  ;;  %v14572_v31 = vld [vmem:[#allocation7 + $0x28] sm:$0xff] }
 0xa46   : > { %6361 = vmatpush.msrb.mxu0 %v14461_v45  ;;  %v5953_v29 = vpop.f32.mrf.mxu1 }
 0xa48   : > { %6362 = vmatpush.msrb.mxu0 %v14446_v59  ;;  %v6693_v59 = vsel %vm5903_vm4, %v6667_v58, 0  ;;  %v6798_v58 = vsel %vm5903_vm4, %v6796_v16, 0 }
 0xa49   : > { %8908 = vmatmul.msk.f32.gmra.mxu3 %vm5869_vm5, %v6003_v34  ;;  %8910 = vmatmul.msk.bf16.gmra.mxu0 %vm5869_vm5, %v14553_v5  ;;  %v6278_v34 = vpack.c.bf16 %v14538_v25, %v14529_v15  ;;  %v14725_v25 = vld [vmem:[#allocation15 + $0x28] sm:$0xf] }
 0xa4a   : > { %6363 = vmatpush.msrb.mxu0 %v14432_v20  ;;  %v14570_v20 = vld [vmem:[#allocation7 + $0x20] sm:$0xff]  ;;  %8999 = vmatpush.msk.msrb.mxu3 %vm5903_vm4, %v14725_v25 }
 0xa4c   : > { %6364 = vmatpush.msrb.mxu0 %v14421_v48  ;;  %v14566_v45 = vpop.f32.mrf.mxu3  ;;  %v14577_v48 = vpack.c.bf16 %v14572_v31, %v14570_v20 }
 0xa4e   : > { %6365 = vmatpush.msrb.mxu0 %v14408_v18  ;;  %v5956_v60 = vpop.f32.mrf.mxu1 }
 0xa4f   : > { %v6279_v32 = vpack.c.bf16 %v5956_v60, %v5953_v29 }
 0xa50   : > { %6697 = vmatpush.bf16.msra.mxu0 %v6693_v59  ;;  %v6277_v59 = vpack.c.bf16 %v14510_v39, %v14503_v17  ;;  %v9135_v39 = vld [vmem:[#allocation19 + $0x10] sm:$0x30] }
 0xa54   : > { %6698 = vmatpush.bf16.msra.mxu0 %v14350_v22  ;;  %v6171_v2 = vpop.f32.mrf.mxu3 }
 0xa56   : > { %v5958_v53 = vpop.f32.mrf.mxu1 }
 0xa58   : > { %6699 = vmatpush.bf16.msra.mxu0 %v14334_v35 }
 0xa59   : > { %8911 = vmatmul.msk.bf16.gmra.mxu0 %vm5869_vm5, %v14577_v48 }
 0xa5c   : > { %6700 = vmatpush.bf16.msra.mxu0 %v14316_v63  ;;  %v6174_v18 = vpop.f32.mrf.mxu3 }
 0xa5e   : > { %v5961_v22 = vpop.f32.mrf.mxu1 }
 0xa5f   : > { %v6280_v46 = vpack.c.bf16 %v5961_v22, %v5958_v53  ;;  %v9139_v22 = vld [vmem:[#allocation25 + $0x18] sm:$0xff] }
 0xa60   : > { %6701 = vmatpush.bf16.msra.mxu0 %v14300_v19  ;;  %v14596_v19 = vld [vmem:[#allocation7 + $0x48] sm:$0x3f] }
 0xa61   : > { %v14600_v14 = vpack.c.bf16 %v14596_v19, %v14594_v3 }
 0xa64   : > { %6702 = vmatpush.bf16.msra.mxu0 %v14286_v24  ;;  %v6177_v35 = vpop.f32.mrf.mxu3 }
 0xa66   : > { %v5963_v43 = vpop.f32.mrf.mxu1 }
 0xa69   : > { %8912 = vmatmul.msk.bf16.gmra.mxu0 %vm5869_vm5, %v14590_v42 }
 0xa6c   : > { %v6180_v63 = vpop.f32.mrf.mxu3 }
 0xa6e   : > { %v5966_v36 = vpop.f32.mrf.mxu1 }
 0xa6f   : > { %v6281_v50 = vpack.c.bf16 %v5966_v36, %v5963_v43  ;;  %v9137_v43 = vld [vmem:[#allocation25 + $0x8] sm:$0xff] }
 0xa74   : > { %v6183_v24 = vpop.f32.mrf.mxu3 }
 0xa76   : > { %v5968_v44 = vpop.f32.mrf.mxu1 }
 0xa77   : > { %v6282_v56 = vpack.c.bf16 %v5968_v44, %v5968_v44 }
 0xa79   : > { %v6284_v27 = vsel %vm5903_vm4, %v6282_v56, 0  ;;  %8913 = vmatmul.msk.bf16.gmra.mxu0 %vm5869_vm5, %v14600_v14 }
 0xa7a   : > { %6288 = vmatpush.bf16.msra.mxu2 %v6284_v27 }
 0xa7c   : > { %v14605_v54 = vpop.f32.mrf.mxu3 }
 0xa7e   : > { %6289 = vmatpush.bf16.msra.mxu2 %v6281_v50 }
 0xa82   : > { %6290 = vmatpush.bf16.msra.mxu2 %v6280_v46 }
 0xa84   : > { %v14607_v7 = vpop.f32.mrf.mxu3 }
 0xa86   : > { %6291 = vmatpush.bf16.msra.mxu2 %v6279_v32 }
 0xa89   : > { %8919 = vmatmul.msk.f32.vlgmr.msrb.gmra.mxu0 %vm5869_vm5, %v14517_v41 }
 0xa8a   : > { %6292 = vmatpush.bf16.msra.mxu2 %v6278_v34  ;;  %6802 = vmatpush.bf16.msrb.mxu0 %v6798_v58 }
 0xa8c   : > { %v6192_v29 = vpop.f32.mrf.mxu3 }
 0xa8e   : > { %6293 = vmatpush.bf16.msra.mxu2 %v6277_v59  ;;  %6803 = vmatpush.bf16.msrb.mxu0 %v6795_v12  ;;  %v9134_v12 = vld [vmem:[#allocation19 + $0x8] sm:$0xff] }
 0xa91   : > { %8914 = vmatmul.msk.bf16.vlgmr.msra.gmra.mxu2 %vm5869_vm5, %v14527_v40  ;;  %8920 = vmatmul.msk.f32.gmra.mxu0 %vm5869_vm5, %v14519_v55 }
 0xa92   : > { %6402 = vmatpush.msrb.mxu2 %v6183_v24  ;;  %6804 = vmatpush.bf16.msrb.mxu0 %v6794_v52  ;;  %v9133_v52 = vld [vmem:[#allocation19] sm:$0xff] }
 0xa94   : > { %6403 = vmatpush.msrb.mxu2 %v6180_v63  ;;  %v6195_v13 = vpop.f32.mrf.mxu3  ;;  %v9136_v63 = vld [vmem:[#allocation25] sm:$0xff] }
 0xa96   : > { %6404 = vmatpush.msrb.mxu2 %v6177_v35  ;;  %6805 = vmatpush.bf16.msrb.mxu0 %v6793_v6 }
 0xa98   : > { %6405 = vmatpush.msrb.mxu2 %v6174_v18 }
 0xa99   : > { %8921 = vmatmul.msk.f32.gmra.mxu0 %vm5869_vm5, %v14544_v10 }
 0xa9a   : > { %6406 = vmatpush.msrb.mxu2 %v6171_v2  ;;  %6806 = vmatpush.bf16.msrb.mxu0 %v6792_v38 }
 0xa9c   : > { %6407 = vmatpush.msrb.mxu2 %v14566_v45  ;;  %v6198_v51 = vpop.f32.mrf.mxu3  ;;  %v6666_v45 = vld [vmem:[#allocation25 + $0x28] sm:$0xf] }
 0xa9e   : > { %6408 = vmatpush.msrb.mxu2 %v14549_v61  ;;  %6807 = vmatpush.bf16.msrb.mxu0 %v6791_v4 }
 0xaa0   : > { %6409 = vmatpush.msrb.mxu2 %v14536_v1 }
 0xaa1   : > { %8915 = vmatmul.msk.bf16.gmra.mxu2 %vm5869_vm5, %v14553_v5  ;;  %8922 = vmatmul.msk.f32.gmra.mxu0 %vm5869_vm5, %v14546_v62 }
 0xaa2   : > { %6410 = vmatpush.msrb.mxu2 %v14523_v57 }
 0xaa4   : > { %6411 = vmatpush.msrb.mxu2 %v14508_v33  ;;  %v6201_v28 = vpop.f32.mrf.mxu3  ;;  %v8959_v33 = vld [vmem:[#allocation19 + $0x10] sm:$0xf] }
 0xaa6   : > { %6412 = vmatpush.msrb.mxu2 %v14501_v49 }
 0xaa9   : > { %8923 = vmatmul.msk.f32.gmra.mxu0 %vm5869_vm5, %v14570_v20 }
 0xaac   : > { %v6204_v8 = vpop.f32.mrf.mxu3 }
 0xab1   : > { %8916 = vmatmul.msk.bf16.gmra.mxu2 %vm5869_vm5, %v14577_v48  ;;  %8924 = vmatmul.msk.f32.gmra.mxu0 %vm5869_vm5, %v14572_v31  ;;  %v9140_v48 = vld [vmem:[#allocation25 + $0x20] sm:$0xff] }
 0xab4   : > { %v6207_v21 = vpop.f32.mrf.mxu3 }
 0xab6   : > { %v14655_v37 = vpop.f32.mrf.mxu0 }
 0xab7   : > { %v6491_v16 = vmul.f32 %v14655_v37, %v14655_v37 }
 0xab9   : > { %8925 = vmatmul.msk.f32.gmra.mxu0 %vm5869_vm5, %v14584_v30 }
 0xabc   : > { %v6210_v4 = vpop.f32.mrf.mxu3 }
 0xabe   : > { %v14659_v38 = vpop.f32.mrf.mxu0 }
 0xac1   : > { %8917 = vmatmul.msk.bf16.gmra.mxu2 %vm5869_vm5, %v14590_v42  ;;  %8926 = vmatmul.msk.f32.gmra.mxu0 %vm5869_vm5, %v14586_v47 }
 0xac4   : > { %v6213_v11 = vpop.f32.mrf.mxu3 }
 0xac6   : > { %v14665_v9 = vpop.f32.mrf.mxu0 }
 0xac9   : > { %8927 = vmatmul.msk.f32.gmra.mxu0 %vm5869_vm5, %v14594_v3 }
 0xacc   : > { %v6216_v6 = vpop.f32.mrf.mxu3 }
 0xacd   : > { %6449 = vmatpush.msrb.mxu1 %v6216_v6 }
 0xace   : > { %v14669_v23 = vpop.f32.mrf.mxu0 }
 0xacf   : > { %6450 = vmatpush.msrb.mxu1 %v6213_v11  ;;  %v6492_v11 = vmul.f32 %v14659_v38, %v14659_v38 }
 0xad1   : > { %8918 = vmatmul.msk.bf16.gmra.mxu2 %vm5869_vm5, %v14600_v14  ;;  %6451 = vmatpush.msrb.mxu1 %v6210_v4 }
 0xad2   : > { %8928 = vmatmul.msk.f32.gmra.mxu0 %vm5869_vm5, %v14596_v19 }
 0xad3   : > { %6452 = vmatpush.msrb.mxu1 %v6207_v21 }
 0xad5   : > { %6453 = vmatpush.msrb.mxu1 %v6204_v8 }
 0xad6   : > { %v14675_v0 = vpop.f32.mrf.mxu0 }
 0xad7   : > { %6454 = vmatpush.msrb.mxu1 %v6201_v28 }
 0xad9   : > { %6455 = vmatpush.msrb.mxu1 %v6198_v51 }
 0xada   : > { %8961 = vmatmul.msk.bf16.vlgmr.msra.gmra.mxu0 %vm5869_vm5, %v9133_v52 }
 0xadb   : > { %6456 = vmatpush.msrb.mxu1 %v6195_v13 }
 0xadd   : > { %6457 = vmatpush.msrb.mxu1 %v6192_v29 }
 0xade   : > { %v14678_v26 = vpop.f32.mrf.mxu0 }
 0xadf   : > { %6458 = vmatpush.msrb.mxu1 %v14607_v7 }
 0xae1   : > { %8929 = vmatmul.msk.f32.vlgmr.msrb.gmra.mxu2 %vm5869_vm5, %v14517_v41  ;;  %6459 = vmatpush.msrb.mxu1 %v14605_v54 }
 0xae2   : > { %8939 = vmatmul.msk.f32.vlgmr.msrb.gmra.mxu1 %vm5869_vm5, %v14517_v41  ;;  %v8960_v41 = vor.u32 %v9135_v39, %v8959_v33 }
 0xae6   : > { %v14686_v49 = vpop.f32.mrf.mxu0 }
 0xae9   : > { %8930 = vmatmul.msk.f32.gmra.mxu2 %vm5869_vm5, %v14519_v55 }
 0xaea   : > { %8962 = vmatmul.msk.bf16.gmra.mxu0 %vm5869_vm5, %v9134_v12  ;;  %8940 = vmatmul.msk.f32.gmra.mxu1 %vm5869_vm5, %v14519_v55 }
 0xaee   : > { %v14693_v17 = vpop.f32.mrf.mxu0 }
 0xaf1   : > { %8931 = vmatmul.msk.f32.gmra.mxu2 %vm5869_vm5, %v14544_v10 }
 0xaf2   : > { %8941 = vmatmul.msk.f32.gmra.mxu1 %vm5869_vm5, %v14544_v10 }
 0xaf6   : > { %v14699_v57 = vpop.f32.mrf.mxu0 }
 0xaf9   : > { %8932 = vmatmul.msk.f32.gmra.mxu2 %vm5869_vm5, %v14546_v62 }
 0xafa   : > { %8963 = vmatmul.msk.bf16.gmra.mxu0 %vm5869_vm5, %v8960_v41  ;;  %8942 = vmatmul.msk.f32.gmra.mxu1 %vm5869_vm5, %v14546_v62 }
 0xafe   : > { %v14706_v55 = vpop.f32.mrf.mxu0 }
 0xb01   : > { %8933 = vmatmul.msk.f32.gmra.mxu2 %vm5869_vm5, %v14570_v20 }
 0xb02   : > { %8943 = vmatmul.msk.f32.gmra.mxu1 %vm5869_vm5, %v14570_v20  ;;  %v6743_v20 = vunpack.c.l.b16 %v6666_v45 }
 0xb06   : > { %v14712_v40 = vpop.f32.mrf.mxu0 }
 0xb07   : > { %v6521_v59 = vsub.f32 %v14712_v40, %v6491_v16 }
 0xb09   : > { %8934 = vmatmul.msk.f32.gmra.mxu2 %vm5869_vm5, %v14572_v31 }
 0xb0a   : > { %8987 = vmatmul.msk.bf16.vlgmr.msrb.gmra.mxu0 %vm5869_vm5, %v9133_v52  ;;  %8944 = vmatmul.msk.f32.gmra.mxu1 %vm5869_vm5, %v14572_v31  ;;  %v6749_v31 = vpack.c.b16 %v6743_v20, %v6743_v20 }
 0xb0c   : > { %v6765_v2 = vsel %vm5903_vm4, %v6749_v31, 0 }
 0xb0d   : > { %6769 = vmatpush.bf16.msra.mxu2 %v6765_v2 }
 0xb0e   : > { %v14719_v15 = vpop.f32.mrf.mxu0 }
 0xb0f   : > { %v6522_v33 = vsub.f32 %v14719_v15, %v6492_v11 }
 0xb11   : > { %8935 = vmatmul.msk.f32.gmra.mxu2 %vm5869_vm5, %v14584_v30 }
 0xb12   : > { %8945 = vmatmul.msk.f32.gmra.mxu1 %vm5869_vm5, %v14584_v30  ;;  %6770 = vmatpush.bf16.msra.mxu2 %v9140_v48 }
 0xb14   : > { %v6295_v1 = vpop.f32.mrf.mxu2 }
 0xb15   : > { %v6501_v34 = vmul.f32 %v6295_v1, %v6295_v1  ;;  %v6511_v13 = vmul.f32 %v6295_v1, %v14655_v37 }
 0xb16   : > { %v14729_v10 = vpop.f32.mrf.mxu0  ;;  %6771 = vmatpush.bf16.msra.mxu2 %v9139_v22 }
 0xb19   : > { %8936 = vmatmul.msk.f32.gmra.mxu2 %vm5869_vm5, %v14586_v47 }
 0xb1a   : > { %8988 = vmatmul.msk.bf16.gmra.mxu0 %vm5869_vm5, %v9134_v12  ;;  %8946 = vmatmul.msk.f32.gmra.mxu1 %vm5869_vm5, %v14586_v47  ;;  %v9138_v47 = vld [vmem:[#allocation25 + $0x10] sm:$0xff] }
 0xb1b   : > { %6772 = vmatpush.bf16.msra.mxu2 %v9138_v47 }
 0xb1c   : > { %v14736_v62 = vpop.f32.mrf.mxu2 }
 0xb1d   : > { %v6502_v6 = vmul.f32 %v14736_v62, %v14736_v62  ;;  %v6512_v1 = vmul.f32 %v14736_v62, %v14659_v38 }
 0xb1e   : > { %v14738_v61 = vpop.f32.mrf.mxu0 }
 0xb1f   : > { %6773 = vmatpush.bf16.msra.mxu2 %v9137_v43 }
 0xb21   : > { %8937 = vmatmul.msk.f32.gmra.mxu2 %vm5869_vm5, %v14594_v3 }
 0xb22   : > { %8947 = vmatmul.msk.f32.gmra.mxu1 %vm5869_vm5, %v14594_v3 }
 0xb23   : > { %6774 = vmatpush.bf16.msra.mxu2 %v9136_v63 }
 0xb24   : > { %v14744_v5 = vpop.f32.mrf.mxu2 }
 0xb25   : > { %v6503_v15 = vmul.f32 %v14744_v5, %v14744_v5  ;;  %v6513_v38 = vmul.f32 %v14744_v5, %v14665_v9 }
 0xb26   : > { %v14746_v60 = vpop.f32.mrf.mxu0 }
 0xb27   : > { %6838 = vmatpush.bf16.msrb.mxu2 %v6765_v2 }
 0xb29   : > { %8938 = vmatmul.msk.f32.gmra.mxu2 %vm5869_vm5, %v14596_v19 }
 0xb2a   : > { %8989 = vmatmul.msk.bf16.gmra.mxu0 %vm5869_vm5, %v8960_v41  ;;  %8948 = vmatmul.msk.f32.gmra.mxu1 %vm5869_vm5, %v14596_v19  ;;  %v14768_v19 = vld [vmem:[#allocation15 + $0x20] sm:$0xff] }
 0xb2b   : > { %v6876_v24 = vpack.c.bf16 %v14725_v25, %v14768_v19  ;;  %7035 = vmatpush.msrb.mxu3 %v14768_v19  ;;  %6839 = vmatpush.bf16.msrb.mxu2 %v9140_v48 }
 0xb2c   : > { %v14754_v53 = vpop.f32.mrf.mxu2 }
 0xb2e   : > { %v14756_v18 = vpop.f32.mrf.mxu0 }
 0xb2f   : > { %6840 = vmatpush.bf16.msrb.mxu2 %v9139_v22 }
 0xb33   : > { %6841 = vmatpush.bf16.msrb.mxu2 %v9138_v47  ;;  %v6493_v47 = vmul.f32 %v14665_v9, %v14665_v9 }
 0xb34   : > { %v14758_v30 = vpop.f32.mrf.mxu2 }
 0xb36   : > { %v14760_v35 = vpop.f32.mrf.mxu0 }
 0xb37   : > { %6842 = vmatpush.bf16.msrb.mxu2 %v9137_v43 }
 0xb3b   : > { %6843 = vmatpush.bf16.msrb.mxu2 %v9136_v63  ;;  %v6523_v63 = vsub.f32 %v14729_v10, %v6493_v47  ;;  %v6504_v10 = vmul.f32 %v14754_v53, %v14754_v53 }
 0xb3c   : > { %v14762_v42 = vpop.f32.mrf.mxu2 }
 0xb3e   : > { %v14764_v36 = vpop.f32.mrf.mxu0 }
 0xb44   : > { %v14766_v3 = vpop.f32.mrf.mxu2 }
 0xb46   : > { %v14773_v44 = vpop.f32.mrf.mxu0 }
 0xb4c   : > { %v14775_v14 = vpop.f32.mrf.mxu2 }
 0xb4f   : > { %v14777_v56 = vpop.f32.mrf.mxu0 }
 0xb54   : > { %v14779_v27 = vpop.f32.mrf.mxu2 }
 0xb57   : > { %v6704_v50 = vpop.f32.mrf.mxu0 }
 0xb5c   : > { %v14781_v54 = vpop.f32.mrf.mxu2 }
 0xb5f   : > { %v6706_v46 = vpop.f32.mrf.mxu0  ;;  %v6461_v32 = vpop.f32.mrf.mxu1 }
 0xb60   : > { %v6719_v7 = vpack.c.bf16 %v6706_v46, %v6704_v50  ;;  %v6541_v21 = vsub.f32 %v6461_v32, %v6511_v13  ;;  %v6494_v13 = vmul.f32 %v14669_v23, %v14669_v23 }
 0xb62   : > { %8984 = vmatmul.msk.bf16.vlgmr.msra.gmra.mxu2 %vm5869_vm5, %v6719_v7  ;;  %v6551_v52 = vmul.f32 2.0, %v6541_v21 }
 0xb64   : > { %v6414_v58 = vpop.f32.mrf.mxu2  ;;  %v6561_v45 = vadd.f32 58.5225, %v6551_v52 }
 0xb65   : > { %v6531_v29 = vsub.f32 %v6414_v58, %v6501_v34 }
 0xb67   : > { %v6571_v51 = vadd.f32 %v6531_v29, %v6521_v59  ;;  %v6709_v28 = vpop.f32.mrf.mxu0  ;;  %v6464_v8 = vpop.f32.mrf.mxu1  ;;  %v14803_v29 = vld [vmem:[#allocation15 + $0x18] sm:$0xff] }
 0xb68   : > { %v6542_v22 = vsub.f32 %v6464_v8, %v6512_v1  ;;  %7036 = vmatpush.msrb.mxu3 %v14803_v29 }
 0xb69   : > { %v6581_v4 = vadd.f32 58.5225, %v6571_v51 }
 0xb6a   : > { %v6552_v62 = vmul.f32 2.0, %v6542_v22 }
 0xb6b   : > { %9465 = vrcp.f32 %v6581_v4 }
 0xb6c   : > { %v6417_v12 = vpop.f32.mrf.mxu2  ;;  %v6562_v59 = vadd.f32 58.5225, %v6552_v62 }
 0xb6d   : > { %v6532_v39 = vsub.f32 %v6417_v12, %v6502_v6  ;;  %v6514_v12 = vmul.f32 %v14754_v53, %v14669_v23 }
 0xb6f   : > { %v6572_v41 = vadd.f32 %v6532_v39, %v6522_v33  ;;  %v6711_v40 = vpop.f32.mrf.mxu0  ;;  %v6467_v37 = vpop.f32.mrf.mxu1 }
 0xb70   : > { %v6720_v20 = vpack.c.bf16 %v6711_v40, %v6709_v28  ;;  %v6543_v16 = vsub.f32 %v6467_v37, %v6513_v38  ;;  %v6524_v28 = vsub.f32 %v14738_v61, %v6494_v13  ;;  %v6495_v61 = vmul.f32 %v14675_v0, %v14675_v0 }
 0xb71   : > { %v9466_v31 = vpop.eup %9465  ;;  %v6582_v2 = vadd.f32 58.5225, %v6572_v41 }
 0xb72   : > { %v6601_v48 = vmul.f32 %v9466_v31, %v6561_v45  ;;  %8985 = vmatmul.msk.bf16.gmra.mxu2 %vm5869_vm5, %v6720_v20  ;;  %v6553_v5 = vmul.f32 2.0, %v6543_v16  ;;  %v6505_v45 = vmul.f32 %v14758_v30, %v14758_v30  ;;  %v6525_v53 = vsub.f32 %v14746_v60, %v6495_v61 }
 0xb73   : > { %9467 = vrcp.f32 %v6582_v2 }
 0xb74   : > { %v6420_v43 = vpop.f32.mrf.mxu2  ;;  %v6563_v52 = vadd.f32 58.5225, %v6553_v5  ;;  %v6612_v40 = vsel %vm6611_vm6, %v6601_v48, 0.0  ;;  %v6515_v48 = vmul.f32 %v14758_v30, %v14675_v0  ;;  %v6516_v5 = vmul.f32 %v14762_v42, %v14678_v26 }
 0xb75   : > { %v6533_v50 = vsub.f32 %v6420_v43, %v6503_v15 }
 0xb77   : > { %v6573_v46 = vadd.f32 %v6533_v50, %v6523_v63  ;;  %v6714_v32 = vpop.f32.mrf.mxu0  ;;  %v6470_v7 = vpop.f32.mrf.mxu1 }
 0xb78   : > { %v6544_v1 = vsub.f32 %v6470_v7, %v6514_v12  ;;  %v6506_v7 = vmul.f32 %v14762_v42, %v14762_v42 }
 0xb79   : > { %v9468_v34 = vpop.eup %9467  ;;  %v6583_v58 = vadd.f32 58.5225, %v6573_v46 }
 0xb7a   : > { %v6602_v9 = vmul.f32 %v9468_v34, %v6562_v59  ;;  %v6554_v47 = vmul.f32 2.0, %v6544_v1 }
 0xb7b   : > { %9469 = vrcp.f32 %v6583_v58 }
 0xb7c   : > { %v6423_v51 = vpop.f32.mrf.mxu2  ;;  %v6613_v6 = vsel %vm6611_vm6, %v6602_v9, 0.0  ;;  %v6564_v46 = vadd.f32 58.5225, %v6554_v47 }
 0xb7d   : > { %v6534_v8 = vsub.f32 %v6423_v51, %v6504_v10  ;;  %v6614_v20 = vadd.f32 %v6613_v6, %v6612_v40  ;;  %v14837_v6 = vld [vmem:[#allocation15 + $0x10] sm:$0xff] }
 0xb7e   : > { %7037 = vmatpush.msrb.mxu3 %v14837_v6 }
 0xb7f   : > { %v6574_v21 = vadd.f32 %v6534_v8, %v6524_v28  ;;  %v6716_v4 = vpop.f32.mrf.mxu0  ;;  %v6473_v11 = vpop.f32.mrf.mxu1 }
 0xb80   : > { %v6721_v33 = vpack.c.bf16 %v6716_v4, %v6714_v32  ;;  %v6545_v50 = vsub.f32 %v6473_v11, %v6515_v48  ;;  %v6496_v32 = vmul.f32 %v14678_v26, %v14678_v26  ;;  %v6507_v11 = vmul.f32 %v14766_v3, %v14766_v3 }
 0xb81   : > { %v9470_v39 = vpop.eup %9469  ;;  %v6584_v41 = vadd.f32 58.5225, %v6574_v21 }
 0xb82   : > { %v6603_v37 = vmul.f32 %v9470_v39, %v6563_v52  ;;  %8986 = vmatmul.msk.bf16.gmra.mxu2 %vm5869_vm5, %v6721_v33  ;;  %v6555_v16 = vmul.f32 2.0, %v6545_v50  ;;  %v6526_v0 = vsub.f32 %v14756_v18, %v6496_v32  ;;  %v6497_v18 = vmul.f32 %v14686_v49, %v14686_v49 }
 0xb83   : > { %9471 = vrcp.f32 %v6584_v41  ;;  %v6517_v41 = vmul.f32 %v14766_v3, %v14686_v49 }
 0xb84   : > { %v6615_v31 = vsel %vm6611_vm6, %v6603_v37, 0.0  ;;  %v6426_v23 = vpop.f32.mrf.mxu2  ;;  %v6565_v9 = vadd.f32 58.5225, %v6555_v16  ;;  %v6527_v42 = vsub.f32 %v14760_v35, %v6497_v18 }
 0xb85   : > { %v6616_v2 = vadd.f32 %v6615_v31, %v6614_v20  ;;  %v6535_v22 = vsub.f32 %v6426_v23, %v6505_v45 }
 0xb87   : > { %v6575_v15 = vadd.f32 %v6535_v22, %v6525_v53  ;;  %v6809_v43 = vpop.f32.mrf.mxu0  ;;  %v6476_v63 = vpop.f32.mrf.mxu1  ;;  %v6498_v53 = vmul.f32 %v14693_v17, %v14693_v17 }
 0xb88   : > { %v6546_v4 = vsub.f32 %v6476_v63, %v6516_v5  ;;  %v6518_v63 = vmul.f32 %v14775_v14, %v14693_v17 }
 0xb89   : > { %v9472_v38 = vpop.eup %9471  ;;  %v6585_v62 = vadd.f32 58.5225, %v6575_v15  ;;  %v6528_v49 = vsub.f32 %v14764_v36, %v6498_v53  ;;  %v6509_v36 = vmul.f32 %v14779_v27, %v14779_v27 }
 0xb8a   : > { %v6604_v60 = vmul.f32 %v9472_v38, %v6564_v46  ;;  %v6556_v40 = vmul.f32 2.0, %v6546_v4  ;;  %v6510_v4 = vmul.f32 %v14781_v54, %v14781_v54 }
 0xb8b   : > { %9473 = vrcp.f32 %v6585_v62 }
 0xb8c   : > { %v6429_v34 = vpop.f32.mrf.mxu2  ;;  %v6617_v10 = vsel %vm6611_vm6, %v6604_v60, 0.0  ;;  %v6566_v23 = vadd.f32 58.5225, %v6556_v40  ;;  %v6499_v60 = vmul.f32 %v14699_v57, %v14699_v57 }
 0xb8d   : > { %v6536_v30 = vsub.f32 %v6429_v34, %v6506_v7  ;;  %v6618_v52 = vadd.f32 %v6617_v10, %v6616_v2  ;;  %v6508_v2 = vmul.f32 %v14775_v14, %v14775_v14 }
 0xb8e   : > { %v6529_v14 = vsub.f32 %v14773_v44, %v6499_v60 }
 0xb8f   : > { %v6576_v58 = vadd.f32 %v6536_v30, %v6526_v0  ;;  %v6811_v59 = vpop.f32.mrf.mxu0  ;;  %v6479_v13 = vpop.f32.mrf.mxu1 }
 0xb90   : > { %v6824_v51 = vpack.c.bf16 %v6811_v59, %v6809_v43  ;;  %v6547_v61 = vsub.f32 %v6479_v13, %v6517_v41  ;;  %v6519_v59 = vmul.f32 %v14779_v27, %v14699_v57 }
 0xb91   : > { %v9474_v28 = vpop.eup %9473  ;;  %v6586_v8 = vadd.f32 58.5225, %v6576_v58 }
 0xb92   : > { %v6605_v21 = vmul.f32 %v9474_v28, %v6565_v9  ;;  %8990 = vmatmul.msk.bf16.vlgmr.msrb.gmra.mxu2 %vm5869_vm5, %v6824_v51  ;;  %v6557_v22 = vmul.f32 2.0, %v6547_v61 }
 0xb93   : > { %9475 = vrcp.f32 %v6586_v8 }
 0xb94   : > { %v6432_v12 = vpop.f32.mrf.mxu2  ;;  %v6619_v26 = vsel %vm6611_vm6, %v6605_v21, 0.0  ;;  %v6567_v43 = vadd.f32 58.5225, %v6557_v22  ;;  %v6500_v21 = vmul.f32 %v14706_v55, %v14706_v55  ;;  %v6866_v22 = vld [vmem:[#allocation15 + $0x8] sm:$0xff] }
 0xb95   : > { %v6537_v33 = vsub.f32 %v6432_v12, %v6507_v11  ;;  %v6620_v39 = vadd.f32 %v6619_v26, %v6618_v52  ;;  %v6520_v12 = vmul.f32 %v14781_v54, %v14706_v55  ;;  %7038 = vmatpush.msrb.mxu3 %v6866_v22 }
 0xb96   : > { %v6530_v52 = vsub.f32 %v14777_v56, %v6500_v21 }
 0xb97   : > { %v6577_v37 = vadd.f32 %v6537_v33, %v6527_v42  ;;  %v6814_v1 = vpop.f32.mrf.mxu0  ;;  %v6482_v31 = vpop.f32.mrf.mxu1 }
 0xb98   : > { %v6548_v32 = vsub.f32 %v6482_v31, %v6518_v63 }
 0xb99   : > { %v9476_v45 = vpop.eup %9475  ;;  %v6587_v20 = vadd.f32 58.5225, %v6577_v37 }
 0xb9a   : > { %v6606_v35 = vmul.f32 %v9476_v45, %v6566_v23  ;;  %v6558_v13 = vmul.f32 2.0, %v6548_v32 }
 0xb9b   : > { %9477 = vrcp.f32 %v6587_v20 }
 0xb9c   : > { %v6435_v48 = vpop.f32.mrf.mxu2  ;;  %v6621_v38 = vsel %vm6611_vm6, %v6606_v35, 0.0  ;;  %v6568_v8 = vadd.f32 58.5225, %v6558_v13  ;;  %v6905_v35 = vsel %vm5118_vm2, %v6876_v24, 0 }
 0xb9d   : > { %v6538_v3 = vsub.f32 %v6435_v48, %v6508_v2  ;;  %v6622_v34 = vadd.f32 %v6621_v38, %v6620_v39  ;;  %v6875_v48 = vpack.c.bf16 %v14803_v29, %v14837_v6  ;;  %6912 = vmatpush.bf16.msra.mxu1 %v6905_v35 }
 0xb9f   : > { %v6578_v47 = vadd.f32 %v6538_v3, %v6528_v49  ;;  %v6816_v15 = vpop.f32.mrf.mxu0  ;;  %v6485_v16 = vpop.f32.mrf.mxu1  ;;  %v6865_v49 = vld [vmem:[#allocation15] sm:$0xff] }
 0xba0   : > { %v6825_v50 = vpack.c.bf16 %v6816_v15, %v6814_v1  ;;  %v6549_v5 = vsub.f32 %v6485_v16, %v6519_v59  ;;  %7039 = vmatpush.msrb.mxu3 %v6865_v49  ;;  %v6874_v3 = vpack.c.bf16 %v6866_v22, %v6865_v49 }
 0xba1   : > { %v9478_v62 = vpop.eup %9477  ;;  %v6588_v46 = vadd.f32 58.5225, %v6578_v47  ;;  %6913 = vmatpush.bf16.msra.mxu1 %v6875_v48 }
 0xba2   : > { %8991 = vmatmul.msk.bf16.gmra.mxu2 %vm5869_vm5, %v6825_v50  ;;  %v6607_v7 = vmul.f32 %v9478_v62, %v6567_v43  ;;  %v6559_v44 = vmul.f32 2.0, %v6549_v5 }
 0xba3   : > { %9479 = vrcp.f32 %v6588_v46 }
 0xba4   : > { %v6438_v0 = vpop.f32.mrf.mxu2  ;;  %v6623_v17 = vsel %vm6611_vm6, %v6607_v7, 0.0  ;;  %v6569_v33 = vadd.f32 58.5225, %v6559_v44 }
 0xba5   : > { %v6539_v30 = vsub.f32 %v6438_v0, %v6509_v36  ;;  %v6624_v58 = vadd.f32 %v6623_v17, %v6622_v34  ;;  %6914 = vmatpush.bf16.msra.mxu1 %v6874_v3  ;;  %v14942_v3 = vld [vmem:[#allocation9] sm:$0xff] }
 0xba7   : > { %v6579_v10 = vadd.f32 %v6539_v30, %v6529_v14  ;;  %v6819_v9 = vpop.f32.mrf.mxu0  ;;  %v6488_v57 = vpop.f32.mrf.mxu1 }
 0xba8   : > { %v6550_v39 = vsub.f32 %v6488_v57, %v6520_v12 }
 0xba9   : > { %v9480_v51 = vpop.eup %9479  ;;  %v6589_v28 = vadd.f32 58.5225, %v6579_v10 }
 0xbaa   : > { %v6608_v11 = vmul.f32 %v9480_v51, %v6568_v8  ;;  %v6560_v56 = vmul.f32 2.0, %v6550_v39 }
 0xbab   : > { %9481 = vrcp.f32 %v6589_v28 }
 0xbac   : > { %v6441_v18 = vpop.f32.mrf.mxu2  ;;  %v6625_v40 = vsel %vm6611_vm6, %v6608_v11, 0.0  ;;  %v6570_v23 = vadd.f32 58.5225, %v6560_v56 }
 0xbad   : > { %v6540_v27 = vsub.f32 %v6441_v18, %v6510_v4  ;;  %v6626_v45 = vadd.f32 %v6625_v40, %v6624_v58 }
 0xbaf   : > { %v6580_v26 = vadd.f32 %v6540_v27, %v6530_v52  ;;  %v6821_v42 = vpop.f32.mrf.mxu0 }
 0xbb0   : > { %v6826_v41 = vpack.c.bf16 %v6821_v42, %v6819_v9 }
 0xbb1   : > { %v9482_v37 = vpop.eup %9481  ;;  %v6590_v1 = vadd.f32 58.5225, %v6580_v26 }
 0xbb2   : > { %8992 = vmatmul.msk.bf16.gmra.mxu2 %vm5869_vm5, %v6826_v41  ;;  %v6609_v61 = vmul.f32 %v9482_v37, %v6569_v33 }
 0xbb3   : > { %9483 = vrcp.f32 %v6590_v1 }
 0xbb4   : > { %v6627_v20 = vsel %vm6611_vm6, %v6609_v61, 0.0 }
 0xbb5   : > { %v6628_v31 = vadd.f32 %v6627_v20, %v6626_v45 }
 0xbb9   : > { %v9484_v55 = vpop.eup %9483 }
 0xbba   : > { %v6610_v54 = vmul.f32 %v9484_v55, %v6570_v23 }
 0xbbc   : > { %v6630_v53 = vsel %vm6629_vm7, %v6610_v54, 0.0  ;;  %vm8117_vm7 = vcmask 7168  }
 0xbbd   : > { %v6631_v2 = vadd.f32 %v6630_v53, %v6628_v31 }
 0xbbf   : > { %6632 = vadd.xlane.f32.xlu0 %v6631_v2 }
 0xbe5   : > { %v6776_v47 = vpop.f32.mrf.mxu2 }
 0xbe6   : > { %v6946_v15 = vmul.f32 %v6776_v47, %v6776_v47 }
 0xbe8   : > { %9000 = vmatmul.msk.f32.vlgmr.msrb.gmra.mxu3 %vm6885_vm8, %v6946_v15 }
 0xbed   : > { %v6778_v43 = vpop.f32.mrf.mxu2 }
 0xbee   : > { %v14878_v25 = vpack.c.bf16 %v6778_v43, %v6776_v47  ;;  %v6947_v19 = vmul.f32 %v6778_v43, %v6778_v43 }
 0xbf0   : > { %8993 = vmatmul.msk.bf16.vlgmr.msra.gmra.mxu1 %vm6885_vm8, %v14878_v25  ;;  %9001 = vmatmul.msk.f32.gmra.mxu3 %vm6885_vm8, %v6947_v19 }
 0xbf5   : > { %v6781_v24 = vpop.f32.mrf.mxu2 }
 0xbf6   : > { %v6948_v29 = vmul.f32 %v6781_v24, %v6781_v24 }
 0xbf8   : > { %9002 = vmatmul.msk.f32.gmra.mxu3 %vm6885_vm8, %v6948_v29 }
 0xbfd   : > { %v6783_v6 = vpop.f32.mrf.mxu2 }
 0xbfe   : > { %v14884_v63 = vpack.c.bf16 %v6783_v6, %v6781_v24  ;;  %v6949_v50 = vmul.f32 %v6783_v6, %v6783_v6 }
 0xc00   : > { %8994 = vmatmul.msk.bf16.gmra.mxu1 %vm6885_vm8, %v14884_v63  ;;  %9003 = vmatmul.msk.f32.gmra.mxu3 %vm6885_vm8, %v6949_v50 }
 0xc05   : > { %v14889_v38 = vpop.f32.mrf.mxu2 }
 0xc06   : > { %v6950_v62 = vmul.f32 %v14889_v38, %v14889_v38 }
 0xc08   : > { %9004 = vmatmul.msk.f32.gmra.mxu3 %vm6885_vm8, %v6950_v62 }
 0xc0d   : > { %v14894_v46 = vpop.f32.mrf.mxu2 }
 0xc0e   : > { %v6877_v32 = vsel %vm5903_vm4, %v14894_v46, 0.0  ;;  %v6951_v7 = vmul.f32 %v14894_v46, %v14894_v46 }
 0xc0f   : > { %v6881_v60 = vpack.c.bf16 %v6877_v32, %v14889_v38  ;;  %v14952_v32 = vld [vmem:[#allocation9 + $0x10] sm:$0xff] }
 0xc10   : > { %v6964_v36 = vsel %vm5903_vm4, %v6951_v7, 0.0  ;;  %v14954_v7 = vld [vmem:[#allocation9 + $0x18] sm:$0xff] }
 0xc11   : > { %8995 = vmatmul.msk.bf16.gmra.mxu1 %vm6885_vm8, %v6881_v60  ;;  %9005 = vmatmul.msk.f32.gmra.mxu3 %vm6885_vm8, %v6964_v36  ;;  %v6872_v36 = vpack.c.bf16 %v14954_v7, %v14952_v32 }
 0xc15   : > { %v6845_v16 = vpop.f32.mrf.mxu2 }
 0xc16   : > { %v6952_v34 = vmul.f32 %v6845_v16, %v6845_v16  ;;  %v6958_v26 = vmul.f32 %v6845_v16, %v6776_v47  ;;  %v14944_v47 = vld [vmem:[#allocation9 + $0x8] sm:$0xff] }
 0xc17   : > { %v6871_v19 = vpack.c.bf16 %v14944_v47, %v14942_v3 }
 0xc19   : > { %9006 = vmatmul.msk.f32.gmra.mxu3 %vm6885_vm8, %v6952_v34  ;;  %v6864_v34 = vld [vmem:[#allocation9 + $0x20] sm:$0x3] }
 0xc1d   : > { %v6847_v0 = vpop.f32.mrf.mxu2 }
 0xc1e   : > { %v14905_v17 = vpack.c.bf16 %v6847_v0, %v6845_v16  ;;  %v6953_v14 = vmul.f32 %v6847_v0, %v6847_v0  ;;  %v6959_v42 = vmul.f32 %v6847_v0, %v6778_v43 }
 0xc21   : > { %8996 = vmatmul.msk.bf16.gmra.mxu1 %vm6885_vm8, %v14905_v17  ;;  %9007 = vmatmul.msk.f32.gmra.mxu3 %vm6885_vm8, %v6953_v14  ;;  %v6873_v14 = vpack.c.bf16 %v6864_v34, %v6864_v34 }
 0xc25   : > { %v6850_v30 = vpop.f32.mrf.mxu2 }
 0xc26   : > { %v6954_v58 = vmul.f32 %v6850_v30, %v6850_v30  ;;  %v6960_v33 = vmul.f32 %v6850_v30, %v6781_v24 }
 0xc29   : > { %9008 = vmatmul.msk.f32.gmra.mxu3 %vm6885_vm8, %v6954_v58 }
 0xc2d   : > { %v6852_v59 = vpop.f32.mrf.mxu2 }
 0xc2e   : > { %v14911_v13 = vpack.c.bf16 %v6852_v59, %v6850_v30  ;;  %v6955_v10 = vmul.f32 %v6852_v59, %v6852_v59  ;;  %v6961_v39 = vmul.f32 %v6852_v59, %v6783_v6  ;;  %v7365_v6 = vpack.c.bf16 %v14894_v46, %v14889_v38 }
 0xc30   : > { %v7381_v62 = vsel %vm5118_vm2, %v7365_v6, 0 }
 0xc31   : > { %8997 = vmatmul.msk.bf16.gmra.mxu1 %vm6885_vm8, %v14911_v13  ;;  %9009 = vmatmul.msk.f32.gmra.mxu3 %vm6885_vm8, %v6955_v10 }
 0xc32   : > { %v6633_v9 = vpop.xlane.xlu0 %6632 }
 0xc33   : > { %v6634_v5 = vrot.slane %v6633_v9, 4 }
 0xc35   : > { %v6635_v51 = vadd.f32 %v6634_v5, %v6633_v9  ;;  %v14916_v28 = vpop.f32.mrf.mxu2 }
 0xc36   : > { %v6956_v8 = vmul.f32 %v14916_v28, %v14916_v28  ;;  %v6962_v41 = vmul.f32 %v14916_v28, %v14889_v38 }
 0xc37   : > { %v6636_v21 = vrot.slane %v6635_v51, 2 }
 0xc39   : > { %v6637_v4 = vadd.f32 %v6636_v21, %v6635_v51  ;;  %9010 = vmatmul.msk.f32.gmra.mxu3 %vm6885_vm8, %v6956_v8 }
 0xc3b   : > { %v6638_v44 = vrot.slane %v6637_v4, 1 }
 0xc3d   : > { %v14921_v18 = vpop.f32.mrf.mxu2  ;;  %v6639_v11 = vadd.f32 %v6638_v44, %v6637_v4  ;;  %v9141_v4 = vld [vmem:[#allocation21] sm:$0xff] }
 0xc3e   : > { %v6878_v52 = vsel %vm5903_vm4, %v14921_v18, 0.0  ;;  %v6957_v57 = vmul.f32 %v14921_v18, %v14921_v18  ;;  %v6963_v37 = vmul.f32 %v14921_v18, %v14894_v46  ;;  %v7447_v44 = vpack.c.bf16 %v14921_v18, %v14916_v28 }
 0xc3f   : > { %9157 = vpush %v6639_v11  ;;  %v6884_v27 = vpack.c.bf16 %v6878_v52, %v14916_v28  ;;  %v7358_v52 = vld [vmem:[#allocation21 + $0x8] sm:$0x7] }
 0xc40   : > { %v6965_v12 = vsel %vm5903_vm4, %v6957_v57, 0.0  ;;  %v6966_v61 = vsel %vm5903_vm4, %v6963_v37, 0.0  ;;  %v7449_v11 = vsel %vm5118_vm2, %v7447_v44, 0  ;;  %v7371_v57 = vunpack.c.l.b16 %v7358_v52 }
 0xc41   : > { %8998 = vmatmul.msk.bf16.gmra.mxu1 %vm6885_vm8, %v6884_v27  ;;  %9011 = vmatmul.msk.f32.gmra.mxu3 %vm6885_vm8, %v6965_v12 }
 0xc42   : > { %v7373_v28 = vpack.c.b16 %v7371_v57, %v7371_v57 }
 0xc49   : > { %9012 = vmatmul.msk.f32.gmra.mxu3 %vm6885_vm8, %v6958_v26 }
 0xc51   : > { %9013 = vmatmul.msk.f32.gmra.mxu3 %vm6885_vm8, %v6959_v42 }
 0xc59   : > { %9014 = vmatmul.msk.f32.gmra.mxu3 %vm6885_vm8, %v6960_v33 }
 0xc61   : > { %9015 = vmatmul.msk.f32.gmra.mxu3 %vm6885_vm8, %v6961_v39 }
 0xc69   : > { %9016 = vmatmul.msk.f32.gmra.mxu3 %vm6885_vm8, %v6962_v41  ;;  %v9055_v41 = vld [vmem:[#allocation27 + $0x10] sm:$0xf] }
 0xc6b   : > { %v7041_v40 = vpop.f32.mrf.mxu3 }
 0xc6d   : > { %v6916_v1 = vpop.f32.mrf.mxu1 }
 0xc70   : > { %s9158_s2 = spop %9157 }
 0xc71   : > { %9017 = vmatmul.msk.f32.gmra.mxu3 %vm6885_vm8, %v6966_v61 }
 0xc73   : > { %v7044_v45 = vpop.f32.mrf.mxu3 }
 0xc75   : > { %v6918_v56 = vpop.f32.mrf.mxu1 }
 0xc76   : > { %v7095_v43 = vpack.c.bf16 %v6918_v56, %v6916_v1  ;;  %v9143_v56 = vld [vmem:[#allocation27 + $0x8] sm:$0xff] }
 0xc7b   : > { %v7047_v20 = vpop.f32.mrf.mxu3 }
 0xc7d   : > { %v6921_v31 = vpop.f32.mrf.mxu1 }
 0xc83   : > { %v7050_v23 = vpop.f32.mrf.mxu3 }
 0xc85   : > { %v6923_v55 = vpop.f32.mrf.mxu1 }
 0xc86   : > { %v7096_v48 = vpack.c.bf16 %v6923_v55, %v6921_v31 }
 0xc8b   : > { %v7053_v54 = vpop.f32.mrf.mxu3 }
 0xc8e   : > { %v6926_v53 = vpop.f32.mrf.mxu1 }
 0xc94   : > { %v7056_v2 = vpop.f32.mrf.mxu3 }
 0xc96   : > { %v6928_v35 = vpop.f32.mrf.mxu1 }
 0xc97   : > { %v7097_v22 = vpack.c.bf16 %v6928_v35, %v6926_v53 }
 0xc99   : > { %7112 = vmatpush.bf16.msra.mxu0 %v7097_v22 }
 0xc9c   : > { %v7059_v49 = vpop.f32.mrf.mxu3 }
 0xc9d   : > { %7113 = vmatpush.bf16.msra.mxu0 %v7096_v48 }
 0xc9e   : > { %v6931_v15 = vpop.f32.mrf.mxu1 }
 0xca1   : > { %7114 = vmatpush.bf16.msra.mxu0 %v7095_v43 }
 0xca4   : > { %v7062_v24 = vpop.f32.mrf.mxu3  ;;  %9018 = vmatmul.msk.bf16.vlgmr.msra.gmra.mxu0 %vm1217_vm0, %v6871_v19 }
 0xca5   : > { %7181 = vmatpush.msrb.mxu0 %v7056_v2 }
 0xca6   : > { %v6933_v29 = vpop.f32.mrf.mxu1 }
 0xca7   : > { %7182 = vmatpush.msrb.mxu0 %v7053_v54 }
 0xca9   : > { %7183 = vmatpush.msrb.mxu0 %v7050_v23  ;;  %v9142_v23 = vld [vmem:[#allocation27] sm:$0xff] }
 0xcab   : > { %7184 = vmatpush.msrb.mxu0 %v7047_v20 }
 0xcac   : > { %v7065_v50 = vpop.f32.mrf.mxu3 }
 0xcad   : > { %7185 = vmatpush.msrb.mxu0 %v7044_v45 }
 0xcae   : > { %v6936_v60 = vpop.f32.mrf.mxu1 }
 0xcaf   : > { %7186 = vmatpush.msrb.mxu0 %v7041_v40  ;;  %v9144_v40 = vld [vmem:[#allocation27 + $0x10] sm:$0x30] }
 0xcb0   : > { %v9056_v1 = vor.u32 %v9144_v40, %v9055_v41 }
 0xcb1   : > { %7388 = vmatpush.bf16.msra.mxu0 %v7381_v62 }
 0xcb2   : > { %v7427_v45 = vsel %vm5118_vm2, %v9056_v1, 0 }
 0xcb4   : > { %v7068_v16 = vpop.f32.mrf.mxu3  ;;  %9019 = vmatmul.msk.bf16.gmra.mxu0 %vm1217_vm0, %v6872_v36 }
 0xcb5   : > { %7389 = vmatpush.bf16.msra.mxu0 %v14884_v63  ;;  %v7130_v63 = vpack.c.bf16 %v6933_v29, %v6931_v15 }
 0xcb6   : > { %v6938_v38 = vpop.f32.mrf.mxu1 }
 0xcb7   : > { %v7131_v10 = vpack.c.bf16 %v6938_v38, %v6936_v60 }
 0xcb9   : > { %7390 = vmatpush.bf16.msra.mxu0 %v14878_v25 }
 0xcbc   : > { %v7071_v46 = vpop.f32.mrf.mxu3 }
 0xcbe   : > { %v6941_v0 = vpop.f32.mrf.mxu1 }
 0xcc4   : > { %v7074_v30 = vpop.f32.mrf.mxu3  ;;  %9020 = vmatmul.msk.bf16.gmra.mxu0 %vm1217_vm0, %v6873_v14 }
 0xcc6   : > { %v6943_v58 = vpop.f32.mrf.mxu1 }
 0xcc7   : > { %v7132_v59 = vpack.c.bf16 %v6943_v58, %v6941_v0 }
 0xcc9   : > { %7138 = vmatpush.bf16.msra.mxu2 %v7132_v59 }
 0xccc   : > { %v7077_v9 = vpop.f32.mrf.mxu3 }
 0xccd   : > { %7139 = vmatpush.bf16.msra.mxu2 %v7131_v10 }
 0xcd1   : > { %7140 = vmatpush.bf16.msra.mxu2 %v7130_v63 }
 0xcd4   : > { %v7080_v5 = vpop.f32.mrf.mxu3  ;;  %9021 = vmatmul.msk.bf16.vlgmr.msra.gmra.mxu2 %vm1217_vm0, %v6871_v19  ;;  %9024 = vmatmul.msk.f32.vlgmr.msrb.gmra.mxu0 %vm1217_vm0, %v14942_v3 }
 0xcd5   : > { %7213 = vmatpush.msrb.mxu2 %v7074_v30  ;;  %7482 = vmatpush.bf16.msrb.mxu0 %v7427_v45 }
 0xcd7   : > { %7214 = vmatpush.msrb.mxu2 %v7071_v46 }
 0xcd9   : > { %7215 = vmatpush.msrb.mxu2 %v7068_v16  ;;  %7483 = vmatpush.bf16.msrb.mxu0 %v9143_v56 }
 0xcdb   : > { %7216 = vmatpush.msrb.mxu2 %v7065_v50 }
 0xcdc   : > { %v7083_v25 = vpop.f32.mrf.mxu3  ;;  %9025 = vmatmul.msk.f32.gmra.mxu0 %vm1217_vm0, %v14944_v47 }
 0xcdd   : > { %7217 = vmatpush.msrb.mxu2 %v7062_v24  ;;  %7484 = vmatpush.bf16.msrb.mxu0 %v9142_v23 }
 0xcdf   : > { %7218 = vmatpush.msrb.mxu2 %v7059_v49 }
 0xce1   : > { %7434 = vmatpush.bf16.msra.mxu2 %v7427_v45 }
 0xce4   : > { %v7086_v51 = vpop.f32.mrf.mxu3  ;;  %9022 = vmatmul.msk.bf16.gmra.mxu2 %vm1217_vm0, %v6872_v36  ;;  %9026 = vmatmul.msk.f32.gmra.mxu0 %vm1217_vm0, %v14952_v32 }
 0xce5   : > { %7435 = vmatpush.bf16.msra.mxu2 %v9143_v56 }
 0xce9   : > { %7436 = vmatpush.bf16.msra.mxu2 %v9142_v23 }
 0xcec   : > { %v7089_v8 = vpop.f32.mrf.mxu3  ;;  %9027 = vmatmul.msk.f32.gmra.mxu0 %vm1217_vm0, %v14954_v7 }
 0xcf4   : > { %v7092_v21 = vpop.f32.mrf.mxu3  ;;  %9023 = vmatmul.msk.bf16.gmra.mxu2 %vm1217_vm0, %v6873_v14  ;;  %9028 = vmatmul.msk.f32.gmra.mxu0 %vm1217_vm0, %v6864_v34 }
 0xcf5   : > { %7245 = vmatpush.msrb.mxu1 %v7092_v21 }
 0xcf7   : > { %7246 = vmatpush.msrb.mxu1 %v7089_v8 }
 0xcf9   : > { %7247 = vmatpush.msrb.mxu1 %v7086_v51 }
 0xcfb   : > { %7248 = vmatpush.msrb.mxu1 %v7083_v25 }
 0xcfc   : > { %9043 = vmatmul.msk.bf16.vlgmr.msra.gmra.mxu0 %vm6885_vm8, %v9141_v4 }
 0xcfd   : > { %7249 = vmatpush.msrb.mxu1 %v7080_v5 }
 0xcff   : > { %7250 = vmatpush.msrb.mxu1 %v7077_v9 }
 0xd00   : > { %9034 = vmatmul.msk.f32.vlgmr.msrb.gmra.mxu1 %vm1217_vm0, %v14942_v3 }
 0xd01   : > { %7456 = vmatpush.bf16.msra.mxu1 %v7449_v11 }
 0xd04   : > { %9029 = vmatmul.msk.f32.vlgmr.msrb.gmra.mxu2 %vm1217_vm0, %v14942_v3 }
 0xd05   : > { %7457 = vmatpush.bf16.msra.mxu1 %v14911_v13 }
 0xd08   : > { %9035 = vmatmul.msk.f32.gmra.mxu1 %vm1217_vm0, %v14944_v47 }
 0xd09   : > { %7458 = vmatpush.bf16.msra.mxu1 %v14905_v17 }
 0xd0c   : > { %9030 = vmatmul.msk.f32.gmra.mxu2 %vm1217_vm0, %v14944_v47  ;;  %9044 = vmatmul.msk.bf16.gmra.mxu0 %vm6885_vm8, %v7373_v28 }
 0xd10   : > { %9036 = vmatmul.msk.f32.gmra.mxu1 %vm1217_vm0, %v14952_v32 }
 0xd14   : > { %9031 = vmatmul.msk.f32.gmra.mxu2 %vm1217_vm0, %v14952_v32 }
 0xd18   : > { %9037 = vmatmul.msk.f32.gmra.mxu1 %vm1217_vm0, %v14954_v7 }
 0xd1c   : > { %9032 = vmatmul.msk.f32.gmra.mxu2 %vm1217_vm0, %v14954_v7 }
 0xd20   : > { %9038 = vmatmul.msk.f32.gmra.mxu1 %vm1217_vm0, %v6864_v34 }
 0xd21   : > { %v7116_v17 = vpop.f32.mrf.mxu0 }
 0xd22   : > { %v7267_v42 = vmul.f32 %v7116_v17, %v7116_v17 }
 0xd24   : > { %9033 = vmatmul.msk.f32.gmra.mxu2 %vm1217_vm0, %v6864_v34  ;;  %vm7910_vm0 = vcmask 1044480  }
 0xd28   : > { %9059 = vmatmul.msk.bf16.vlgmr.msra.gmra.mxu1 %vm6885_vm8, %v9141_v4 }
 0xd29   : > { %v7118_v13 = vpop.f32.mrf.mxu0 }
 0xd2a   : > { %v7268_v38 = vmul.f32 %v7118_v13, %v7118_v13 }
 0xd31   : > { %v15000_v18 = vpop.f32.mrf.mxu0 }
 0xd32   : > { %v7269_v31 = vmul.f32 %v15000_v18, %v15000_v18 }
 0xd38   : > { %9060 = vmatmul.msk.bf16.gmra.mxu1 %vm6885_vm8, %v7373_v28 }
 0xd39   : > { %v15003_v27 = vpop.f32.mrf.mxu0 }
 0xd3a   : > { %v7270_v41 = vmul.f32 %v15003_v27, %v15003_v27 }
 0xd41   : > { %v15005_v12 = vpop.f32.mrf.mxu0 }
 0xd49   : > { %v7128_v26 = vpop.f32.mrf.mxu0 }
 0xd51   : > { %v7188_v33 = vpop.f32.mrf.mxu0 }
 0xd52   : > { %v7282_v39 = vsub.f32 %v7188_v33, %v7267_v42 }
 0xd57   : > { %v7142_v37 = vpop.f32.mrf.mxu2 }
 0xd58   : > { %v7272_v19 = vmul.f32 %v7142_v37, %v7142_v37  ;;  %v7277_v50 = vmul.f32 %v7142_v37, %v7116_v17 }
 0xd59   : > { %v7191_v61 = vpop.f32.mrf.mxu0 }
 0xd5a   : > { %v7283_v0 = vsub.f32 %v7191_v61, %v7268_v38 }
 0xd5f   : > { %v7144_v20 = vpop.f32.mrf.mxu2 }
 0xd60   : > { %v7273_v36 = vmul.f32 %v7144_v20, %v7144_v20  ;;  %v7278_v58 = vmul.f32 %v7144_v20, %v7118_v13  ;;  %v7499_v20 = vld [vmem:[#allocation16 + $0x10] sm:$0x3f] }
 0xd61   : > { %v7194_v55 = vpop.f32.mrf.mxu0  ;;  %9066 = vmatpush.msk.msra.mxu3 %vm5118_vm2, %v7499_v20 }
 0xd62   : > { %v7284_v54 = vsub.f32 %v7194_v55, %v7269_v31  ;;  %v7498_v31 = vld [vmem:[#allocation16 + $0x8] sm:$0xff] }
 0xd63   : > { %7602 = vmatpush.msra.mxu3 %v7498_v31 }
 0xd67   : > { %v7147_v53 = vpop.f32.mrf.mxu2 }
 0xd68   : > { %v7274_v51 = vmul.f32 %v7147_v53, %v7147_v53  ;;  %v7279_v52 = vmul.f32 %v7147_v53, %v15000_v18 }
 0xd69   : > { %v15010_v2 = vpop.f32.mrf.mxu0 }
 0xd6a   : > { %v7285_v61 = vsub.f32 %v15010_v2, %v7270_v41 }
 0xd6f   : > { %v15012_v35 = vpop.f32.mrf.mxu2 }
 0xd70   : > { %v7275_v42 = vmul.f32 %v15012_v35, %v15012_v35 }
 0xd71   : > { %v15014_v22 = vpop.f32.mrf.mxu0 }
 0xd77   : > { %v15016_v48 = vpop.f32.mrf.mxu2 }
 0xd79   : > { %v7392_v49 = vpop.f32.mrf.mxu0 }
 0xd7d   : > { %v7252_v3 = vpop.f32.mrf.mxu1 }
 0xd7e   : > { %v7292_v7 = vsub.f32 %v7252_v3, %v7277_v50  ;;  %v7276_v3 = vmul.f32 %v15016_v48, %v15016_v48  ;;  %v7281_v50 = vmul.f32 %v15016_v48, %v15005_v12 }
 0xd7f   : > { %v7154_v47 = vpop.f32.mrf.mxu2 }
 0xd80   : > { %v7297_v46 = vmul.f32 2.0, %v7292_v7 }
 0xd81   : > { %v7394_v15 = vpop.f32.mrf.mxu0 }
 0xd82   : > { %v7401_v43 = vpack.c.bf16 %v7394_v15, %v7392_v49  ;;  %v7302_v9 = vadd.f32 58.5225, %v7297_v46 }
 0xd84   : > { %9057 = vmatmul.msk.bf16.vlgmr.msra.gmra.mxu2 %vm6885_vm8, %v7401_v43  ;;  %v7271_v43 = vmul.f32 %v15005_v12, %v15005_v12 }
 0xd85   : > { %v7255_v24 = vpop.f32.mrf.mxu1 }
 0xd86   : > { %v7293_v63 = vsub.f32 %v7255_v24, %v7278_v58 }
 0xd87   : > { %v7220_v29 = vpop.f32.mrf.mxu2 }
 0xd88   : > { %v7287_v6 = vsub.f32 %v7220_v29, %v7272_v19  ;;  %v7298_v4 = vmul.f32 2.0, %v7293_v63  ;;  %v7286_v29 = vsub.f32 %v15014_v22, %v7271_v43  ;;  %v7497_v63 = vld [vmem:[#allocation16] sm:$0xff] }
 0xd89   : > { %v7397_v62 = vpop.f32.mrf.mxu0  ;;  %7603 = vmatpush.msra.mxu3 %v7497_v63 }
 0xd8a   : > { %v7307_v32 = vadd.f32 %v7287_v6, %v7282_v39  ;;  %v7402_v30 = vpack.c.bf16 %v7397_v62, %v7397_v62  ;;  %v7303_v28 = vadd.f32 58.5225, %v7298_v4 }
 0xd8c   : > { %v7312_v60 = vadd.f32 58.5225, %v7307_v32 }
 0xd8d   : > { %v7258_v16 = vpop.f32.mrf.mxu1 }
 0xd8e   : > { %9485 = vrcp.f32 %v7312_v60  ;;  %v7294_v17 = vsub.f32 %v7258_v16, %v7279_v52 }
 0xd8f   : > { %v7223_v34 = vpop.f32.mrf.mxu2 }
 0xd90   : > { %v7288_v14 = vsub.f32 %v7223_v34, %v7273_v36  ;;  %v7299_v40 = vmul.f32 2.0, %v7294_v17 }
 0xd91   : > { %v7399_v59 = vpop.f32.mrf.mxu0 }
 0xd92   : > { %v7308_v10 = vadd.f32 %v7288_v14, %v7283_v0  ;;  %v7304_v55 = vadd.f32 58.5225, %v7299_v40 }
 0xd94   : > { %v9486_v5 = vpop.eup %9485  ;;  %v7313_v25 = vadd.f32 58.5225, %v7308_v10  ;;  %9058 = vmatmul.msk.bf16.gmra.mxu2 %vm6885_vm8, %v7402_v30 }
 0xd95   : > { %v7261_v8 = vpop.f32.mrf.mxu1  ;;  %v7322_v21 = vmul.f32 %v9486_v5, %v7302_v9  ;;  %v7502_v5 = vpack.c.bf16 %v7499_v20, %v7499_v20 }
 0xd96   : > { %9487 = vrcp.f32 %v7313_v25 }
 0xd97   : > { %v7226_v44 = vpop.f32.mrf.mxu2  ;;  %v7328_v1 = vsel %vm7327_vm9, %v7322_v21, 0.0  ;;  %v7520_v25 = vsel %vm7518_vm11, %v7502_v5, 0 }
 0xd98   : > { %v7289_v11 = vsub.f32 %v7226_v44, %v7274_v51  ;;  %v7501_v51 = vpack.c.bf16 %v7498_v31, %v7497_v63  ;;  %7528 = vmatpush.bf16.msrb.mxu2 %v7520_v25 }
 0xd9a   : > { %v7309_v57 = vadd.f32 %v7289_v11, %v7284_v54  ;;  %v7280_v54 = vmul.f32 %v15012_v35, %v15003_v27 }
 0xd9c   : > { %v9488_v13 = vpop.eup %9487  ;;  %v7314_v26 = vadd.f32 58.5225, %v7309_v57  ;;  %v7295_v47 = vsub.f32 %v7261_v8, %v7280_v54  ;;  %7529 = vmatpush.bf16.msrb.mxu2 %v7501_v51 }
 0xd9d   : > { %v7264_v33 = vpop.f32.mrf.mxu1  ;;  %v7323_v39 = vmul.f32 %v9488_v13, %v7303_v28 }
 0xd9e   : > { %9489 = vrcp.f32 %v7314_v26  ;;  %v7300_v35 = vmul.f32 2.0, %v7295_v47  ;;  %v7296_v32 = vsub.f32 %v7264_v33, %v7281_v50 }
 0xd9f   : > { %v7229_v37 = vpop.f32.mrf.mxu2  ;;  %v7329_v18 = vsel %vm7327_vm9, %v7323_v39, 0.0 }
 0xda0   : > { %v7290_v45 = vsub.f32 %v7229_v37, %v7275_v42  ;;  %v7330_v56 = vadd.f32 %v7329_v18, %v7328_v1  ;;  %v7305_v36 = vadd.f32 58.5225, %v7300_v35  ;;  %v7301_v46 = vmul.f32 2.0, %v7296_v32  ;;  %v7495_v32 = vld [vmem:[#allocation10] sm:$0xff] }
 0xda2   : > { %v7310_v23 = vadd.f32 %v7290_v45, %v7285_v61  ;;  %v7306_v0 = vadd.f32 58.5225, %v7301_v46 }
 0xda4   : > { %v9490_v53 = vpop.eup %9489  ;;  %v7315_v49 = vadd.f32 58.5225, %v7310_v23 }
 0xda5   : > { %v7460_v15 = vpop.f32.mrf.mxu1  ;;  %v7324_v2 = vmul.f32 %v9490_v53, %v7304_v55 }
 0xda6   : > { %9491 = vrcp.f32 %v7315_v49 }
 0xda7   : > { %v7232_v19 = vpop.f32.mrf.mxu2  ;;  %v7331_v24 = vsel %vm7327_vm9, %v7324_v2, 0.0 }
 0xda8   : > { %v7291_v6 = vsub.f32 %v7232_v19, %v7276_v3  ;;  %v7332_v27 = vadd.f32 %v7331_v24, %v7330_v56 }
 0xdaa   : > { %v7311_v62 = vadd.f32 %v7291_v6, %v7286_v29 }
 0xdac   : > { %v9492_v7 = vpop.eup %9491  ;;  %v7316_v60 = vadd.f32 58.5225, %v7311_v62 }
 0xdad   : > { %v7462_v16 = vpop.f32.mrf.mxu1  ;;  %v7325_v34 = vmul.f32 %v9492_v7, %v7305_v36  ;;  %v7496_v7 = vld [vmem:[#allocation10 + $0x8] sm:$0xf] }
 0xdae   : > { %9493 = vrcp.f32 %v7316_v60  ;;  %v7469_v38 = vpack.c.bf16 %v7462_v16, %v7460_v15 }
 0xdaf   : > { %v7333_v22 = vsel %vm7327_vm9, %v7325_v34, 0.0  ;;  %vm8121_vm9 = vcmask 23552  }
 0xdb0   : > { %9061 = vmatmul.msk.bf16.vlgmr.msrb.gmra.mxu0 %vm6885_vm8, %v7469_v38  ;;  %v7334_v12 = vadd.f32 %v7333_v22, %v7332_v27  ;;  %v7500_v38 = vpack.c.bf16 %v7496_v7, %v7495_v32 }
 0xdb4   : > { %v9494_v14 = vpop.eup %9493 }
 0xdb5   : > { %v7326_v30 = vmul.f32 %v9494_v14, %v7306_v0  ;;  %v7465_v58 = vpop.f32.mrf.mxu1 }
 0xdb6   : > { %v7470_v10 = vpack.c.bf16 %v7465_v58, %v7465_v58 }
 0xdb7   : > { %v7336_v48 = vsel %vm7335_vm10, %v7326_v30, 0.0  ;;  %vm8123_vm10 = vcmask 31744  }
 0xdb8   : > { %v7337_v59 = vadd.f32 %v7336_v48, %v7334_v12 }
 0xdba   : > { %7338 = vadd.xlane.f32.xlu1 %v7337_v59 }
 0xdbd   : > { %v7467_v9 = vpop.f32.mrf.mxu1 }
 0xdbe   : > { %v9145_v9 = vld [vmem:[#allocation22] sm:$0x30] }
 0xdc0   : > { %9062 = vmatmul.msk.bf16.gmra.mxu0 %vm6885_vm8, %v7470_v10  ;;  %v9086_v10 = vld [vmem:[#allocation22] sm:$0xf]  ;;  %vm8119_vm8 = vcmask 15360  }
 0xdc1   : > { %v9087_v5 = vor.u32 %v9145_v9, %v9086_v10 }
 0xe07   : > { %v7438_v8 = vpop.f32.mrf.mxu2 }
 0xe08   : > { %v7546_v21 = vmul.f32 %v7438_v8, %v7438_v8 }
 0xe0a   : > { %9067 = vmatmul.msk.f32.vlgmr.msra.gmra.mxu3 %vm7508_vm12, %v7546_v21 }
 0xe0f   : > { %v7440_v4 = vpop.f32.mrf.mxu2 }
 0xe10   : > { %v15044_v44 = vpack.c.bf16 %v7440_v4, %v7438_v8  ;;  %v7547_v11 = vmul.f32 %v7440_v4, %v7440_v4 }
 0xe12   : > { %9063 = vmatmul.msk.bf16.vlgmr.msrb.gmra.mxu2 %vm7508_vm12, %v15044_v44  ;;  %9068 = vmatmul.msk.f32.gmra.mxu3 %vm7508_vm12, %v7547_v11 }
 0xe17   : > { %v7443_v52 = vpop.f32.mrf.mxu2 }
 0xe18   : > { %v7548_v57 = vmul.f32 %v7443_v52, %v7443_v52  ;;  %v7503_v13 = vsel %vm5118_vm2, %v7443_v52, 0.0  ;;  %v7801_v46 = vpack.c.bf16 %v7443_v52, %v7443_v52 }
 0xe1a   : > { %v7555_v28 = vsel %vm5118_vm2, %v7548_v57, 0.0  ;;  %v7811_v34 = vsel %vm7518_vm11, %v7801_v46, 0  ;;  %v7896_v46 = vld [vmem:[%s16176_s25 + $0x8] sm:$0x7] }
 0xe1b   : > { %9069 = vmatmul.msk.f32.gmra.mxu3 %vm7508_vm12, %v7555_v28 }
 0xe1f   : > { %v7445_v17 = vpop.f32.mrf.mxu2 }
 0xe2d   : > { %v15052_v26 = vpop.f32.mrf.mxu0  ;;  %v7339_v42 = vpop.xlane.xlu1 %7338 }
 0xe2e   : > { %v7506_v33 = vpack.c.bf16 %v15052_v26, %v7503_v13  ;;  %v7549_v39 = vmul.f32 %v15052_v26, %v15052_v26  ;;  %v7340_v41 = vrot.slane %v7339_v42, 4  ;;  %v7552_v3 = vmul.f32 %v15052_v26, %v7438_v8  ;;  %v7800_v8 = vld [vmem:[#allocation28 + $0x8] sm:$0x7] }
 0xe30   : > { %v7341_v40 = vadd.f32 %v7340_v41, %v7339_v42  ;;  %9064 = vmatmul.msk.bf16.gmra.mxu2 %vm7508_vm12, %v7506_v33  ;;  %9070 = vmatmul.msk.f32.gmra.mxu3 %vm7508_vm12, %v7549_v39 }
 0xe32   : > { %v7342_v37 = vrot.slane %v7341_v40, 2 }
 0xe34   : > { %v7343_v1 = vadd.f32 %v7342_v37, %v7341_v40 }
 0xe35   : > { %v15059_v18 = vpop.f32.mrf.mxu0 }
 0xe36   : > { %v7550_v61 = vmul.f32 %v15059_v18, %v15059_v18  ;;  %v7344_v45 = vrot.slane %v7343_v1, 1  ;;  %v7857_v56 = vpack.c.bf16 %v15059_v18, %v15052_v26  ;;  %v7553_v47 = vmul.f32 %v15059_v18, %v7440_v4 }
 0xe37   : > { %v7833_v4 = vunpack.c.l.b16 %v7800_v8 }
 0xe38   : > { %9071 = vmatmul.msk.f32.gmra.mxu3 %vm7508_vm12, %v7550_v61  ;;  %v7345_v20 = vadd.f32 %v7344_v45, %v7343_v1 }
 0xe3a   : > { %9159 = vpush %v7345_v20 }
 0xe3d   : > { %v15066_v31 = vpop.f32.mrf.mxu0 }
 0xe3e   : > { %v7504_v23 = vsel %vm5118_vm2, %v15066_v31, 0.0  ;;  %v7551_v55 = vmul.f32 %v15066_v31, %v15066_v31  ;;  %v7554_v15 = vmul.f32 %v15066_v31, %v7443_v52  ;;  %v7858_v25 = vpack.c.bf16 %v15066_v31, %v15066_v31  ;;  %v9146_v52 = vld [vmem:[#allocation28] sm:$0xff] }
 0xe3f   : > { %v7507_v54 = vpack.c.bf16 %v7504_v23, %v15059_v18 }
 0xe40   : > { %v7556_v53 = vsel %vm5118_vm2, %v7551_v55, 0.0  ;;  %v7557_v2 = vsel %vm5118_vm2, %v7554_v15, 0.0  ;;  %v7860_v51 = vsel %vm7518_vm11, %v7858_v25, 0 }
 0xe41   : > { %9065 = vmatmul.msk.bf16.gmra.mxu2 %vm7508_vm12, %v7507_v54  ;;  %9072 = vmatmul.msk.f32.gmra.mxu3 %vm7508_vm12, %v7556_v53 }
 0xe45   : > { %v7493_v49 = vpop.f32.mrf.mxu0 }
 0xe49   : > { %9073 = vmatmul.msk.f32.gmra.mxu3 %vm7508_vm12, %v7552_v3 }
 0xe51   : > { %9074 = vmatmul.msk.f32.gmra.mxu3 %vm7508_vm12, %v7553_v47 }
 0xe59   : > { %9075 = vmatmul.msk.f32.gmra.mxu3 %vm7508_vm12, %v7557_v2 }
 0xe6b   : > { %s9160_s0 = spop %9159 }
 0xe8d   : > { %v7605_v43 = vpop.f32.mrf.mxu3 }
 0xe95   : > { %v7531_v19 = vpop.f32.mrf.mxu2  ;;  %v7608_v24 = vpop.f32.mrf.mxu3 }
 0xe9d   : > { %v7533_v6 = vpop.f32.mrf.mxu2 }
 0xe9e   : > { %v7611_v29 = vpop.f32.mrf.mxu3  ;;  %v7632_v60 = vpack.c.bf16 %v7533_v6, %v7531_v19 }
 0xeb3   : > { %v7536_v27 = vpop.f32.mrf.mxu2  ;;  %v7614_v35 = vpop.f32.mrf.mxu3 }
 0xeb4   : > { %v7633_v50 = vpack.c.bf16 %v7536_v27, %v7536_v27 }
 0xeb6   : > { %v7639_v62 = vsel %vm5903_vm4, %v7633_v50, 0 }
 0xeb7   : > { %7647 = vmatpush.bf16.msrb.mxu1 %v7639_v62 }
 0xebb   : > { %7648 = vmatpush.bf16.msrb.mxu1 %v7632_v60  ;;  %v7538_v36 = vpop.f32.mrf.mxu2  ;;  %v7617_v16 = vpop.f32.mrf.mxu3 }
 0xebe   : > { %9076 = vmatmul.msk.bf16.vlgmr.msrb.gmra.mxu1 %vm7634_vm13, %v7500_v38 }
 0xebf   : > { %7693 = vmatpush.msra.mxu1 %v7611_v29 }
 0xec1   : > { %7694 = vmatpush.msra.mxu1 %v7608_v24 }
 0xec3   : > { %7695 = vmatpush.msra.mxu1 %v7605_v43 }
 0xec4   : > { %v7541_v0 = vpop.f32.mrf.mxu2  ;;  %v7620_v22 = vpop.f32.mrf.mxu3 }
 0xec5   : > { %7819 = vmatpush.bf16.msrb.mxu1 %v7811_v34  ;;  %v7655_v48 = vpack.c.bf16 %v7541_v0, %v7538_v36  ;;  %v7895_v34 = vld [vmem:[%s16176_s25] sm:$0xff] }
 0xec6   : > { %v7898_v0 = vpack.c.bf16 %v7896_v46, %v7895_v34 }
 0xec9   : > { %7820 = vmatpush.bf16.msrb.mxu1 %v15044_v44  ;;  %v7835_v44 = vpack.c.b16 %v7833_v4, %v7833_v4 }
 0xecb   : > { %v7841_v11 = vsel %vm7518_vm11, %v7835_v44, 0 }
 0xecc   : > { %v7543_v14 = vpop.f32.mrf.mxu2  ;;  %v7623_v30 = vpop.f32.mrf.mxu3 }
 0xecd   : > { %v7656_v58 = vpack.c.bf16 %v7543_v14, %v7543_v14 }
 0xece   : > { %9078 = vmatmul.msk.f32.vlgmr.msra.gmra.mxu1 %vm7634_vm13, %v7495_v32 }
 0xecf   : > { %v7658_v12 = vsel %vm5903_vm4, %v7656_v58, 0  ;;  %7886 = vmatpush.bf16.msra.mxu1 %v7841_v11 }
 0xed0   : > { %7666 = vmatpush.bf16.msra.mxu0 %v7658_v12 }
 0xed3   : > { %7887 = vmatpush.bf16.msra.mxu1 %v9146_v52 }
 0xed4   : > { %v7626_v59 = vpop.f32.mrf.mxu3  ;;  %7667 = vmatpush.bf16.msra.mxu0 %v7655_v48 }
 0xed6   : > { %9079 = vmatmul.msk.f32.gmra.mxu1 %vm7634_vm13, %v7496_v7 }
 0xed7   : > { %9077 = vmatmul.msk.bf16.vlgmr.msra.gmra.mxu0 %vm7634_vm13, %v7500_v38 }
 0xed8   : > { %7716 = vmatpush.msrb.mxu0 %v7620_v22  ;;  %v10342_v22 = vmov 65535  }
 0xed9   : > { %v7911_v14 = vsel %vm7910_vm0, 4294967295, %v10342_v22 }
 0xeda   : > { %7717 = vmatpush.msrb.mxu0 %v7617_v16 }
 0xedc   : > { %7718 = vmatpush.msrb.mxu0 %v7614_v35  ;;  %v7629_v63 = vpop.f32.mrf.mxu3 }
 0xedd   : > { %9147 = vmatpush.msra.mxu2 %v7629_v63 }
 0xede   : > { %7739 = vmatpush.msra.mxu0 %v7629_v63  ;;  %9088 = vmatmul.msk.bf16.vlgmr.msrb.gmra.mxu1 %vm7508_vm12, %v9087_v5 }
 0xedf   : > { %9148 = vmatpush.msra.mxu2 %v7626_v59 }
 0xee0   : > { %7740 = vmatpush.msra.mxu0 %v7626_v59 }
 0xee1   : > { %9149 = vmatpush.msra.mxu2 %v7623_v30 }
 0xee2   : > { %7741 = vmatpush.msra.mxu0 %v7623_v30  ;;  %9083 = vmatmul.msk.f32.vlgmr.msra.gmra.mxu2 %vm7634_vm13, %v7496_v7  ;;  %v7912_v30 = vsel %vm5118_vm2, %v7911_v14, 0  ;;  %vm8001_vm2 = vcmask 130048  }
 0xee3   : > { %7868 = vmatpush.bf16.msrb.mxu2 %v7860_v51  ;;  %v7914_v58 = vand.u32 %v7912_v30, %v7898_v0 }
 0xee7   : > { %7869 = vmatpush.bf16.msrb.mxu2 %v7857_v56  ;;  %9080 = vmatmul.msk.f32.vlgmr.msrb.gmra.mxu0 %vm7634_vm13, %v7495_v32 }
 0xee8   : > { %7849 = vmatpush.bf16.msrb.mxu0 %v7841_v11 }
 0xeea   : > { %9094 = vmatmul.msk.bf16.vlgmr.msrb.gmra.mxu2 %vm7508_vm12, %v9087_v5 }
 0xeeb   : > { %9098 = vmatpush.msk.msra.mxu2 %vm7518_vm11, %v7896_v46 }
 0xeec   : > { %7850 = vmatpush.bf16.msrb.mxu0 %v9146_v52 }
 0xeed   : > { %7980 = vmatpush.msra.mxu2 %v7895_v34 }
 0xeef   : > { %9081 = vmatmul.msk.f32.gmra.mxu0 %vm7634_vm13, %v7496_v7 }
 0xef7   : > { %9082 = vmatmul.msk.f32.vlgmr.msra.gmra.mxu0 %vm7634_vm13, %v7495_v32 }
 0xef8   : > { %7923 = vmatpush.bf16.msra.mxu0 %v7914_v58 }
 0xf3b   : > { %v7650_v21 = vpop.f32.mrf.mxu1 }
 0xf3c   : > { %v7749_v1 = vmul.f32 %v7650_v21, %v7650_v21 }
 0xf43   : > { %v7652_v57 = vpop.f32.mrf.mxu1 }
 0xf44   : > { %v7750_v56 = vmul.f32 %v7652_v57, %v7652_v57 }
 0xf4b   : > { %v7697_v28 = vpop.f32.mrf.mxu1 }
 0xf4c   : > { %v7755_v45 = vsub.f32 %v7697_v28, %v7749_v1 }
 0xf53   : > { %v7700_v13 = vpop.f32.mrf.mxu1 }
 0xf54   : > { %v7669_v17 = vpop.f32.mrf.mxu0  ;;  %v7756_v23 = vsub.f32 %v7700_v13, %v7750_v56 }
 0xf55   : > { %v7751_v33 = vmul.f32 %v7669_v17, %v7669_v17  ;;  %v7753_v2 = vmul.f32 %v7669_v17, %v7650_v21 }
 0xf5b   : > { %v7822_v42 = vpop.f32.mrf.mxu1 }
 0xf5c   : > { %v7671_v26 = vpop.f32.mrf.mxu0 }
 0xf5d   : > { %v7752_v61 = vmul.f32 %v7671_v26, %v7671_v26  ;;  %v7754_v53 = vmul.f32 %v7671_v26, %v7652_v57 }
 0xf63   : > { %v7824_v40 = vpop.f32.mrf.mxu1 }
 0xf64   : > { %v7720_v39 = vpop.f32.mrf.mxu0  ;;  %v7827_v37 = vpack.c.bf16 %v7824_v40, %v7822_v42 }
 0xf65   : > { %v7746_v41 = vpop.f32.mrf.mxu2  ;;  %v7757_v18 = vsub.f32 %v7720_v39, %v7751_v33 }
 0xf66   : > { %9093 = vmatmul.msk.bf16.vlgmr.msrb.gmra.mxu0 %vm7508_vm12, %v7827_v37  ;;  %v7760_v47 = vsub.f32 %v7746_v41, %v7754_v53 }
 0xf67   : > { %v7765_v20 = vadd.f32 %v7757_v18, %v7755_v45 }
 0xf68   : > { %v7762_v43 = vmul.f32 2.0, %v7760_v47 }
 0xf69   : > { %v7767_v3 = vadd.f32 58.5225, %v7765_v20 }
 0xf6a   : > { %v7764_v35 = vadd.f32 58.5225, %v7762_v43 }
 0xf6c   : > { %v7723_v31 = vpop.f32.mrf.mxu0 }
 0xf6d   : > { %v7758_v55 = vsub.f32 %v7723_v31, %v7752_v61  ;;  %v7871_v54 = vpop.f32.mrf.mxu2  ;;  %v7894_v61 = vld [vmem:[%s16177_s24] sm:$0x1] }
 0xf6e   : > { %v7897_v56 = vpack.c.bf16 %v7894_v61, %v7894_v61 }
 0xf6f   : > { %v7766_v49 = vadd.f32 %v7758_v55, %v7756_v23 }
 0xf71   : > { %v7768_v15 = vadd.f32 58.5225, %v7766_v49 }
 0xf73   : > { %9495 = vrcp.f32 %v7768_v15 }
 0xf74   : > { %9497 = vrcp.f32 %v7767_v3  ;;  %v7743_v19 = vpop.f32.mrf.mxu0 }
 0xf75   : > { %v7759_v24 = vsub.f32 %v7743_v19, %v7753_v2  ;;  %v7873_v29 = vpop.f32.mrf.mxu2 }
 0xf76   : > { %v7876_v6 = vpack.c.bf16 %v7873_v29, %v7871_v54 }
 0xf77   : > { %v7761_v27 = vmul.f32 2.0, %v7759_v24 }
 0xf78   : > { %9095 = vmatmul.msk.bf16.vlgmr.msra.gmra.mxu1 %vm7508_vm12, %v7876_v6 }
 0xf79   : > { %v9496_v50 = vpop.eup %9495  ;;  %v7763_v62 = vadd.f32 58.5225, %v7761_v27 }
 0xf7a   : > { %v9498_v32 = vpop.eup %9497  ;;  %v7772_v7 = vmul.f32 %v9496_v50, %v7764_v35 }
 0xf7b   : > { %v7771_v60 = vmul.f32 %v9498_v32, %v7763_v62 }
 0xf7c   : > { %v7776_v36 = vsel %vm7775_vm14, %v7772_v7, 0.0 }
 0xf7d   : > { %v7774_v16 = vsel %vm7773_vm15, %v7771_v60, 0.0 }
 0xf7e   : > { %v7777_v38 = vadd.f32 %v7776_v36, %v7774_v16 }
 0xf80   : > { %7778 = vadd.xlane.f32.xlu1 %v7777_v38 }
 0xfe3   : > { %v7852_v12 = vpop.f32.mrf.mxu0 }
 0xfe4   : > { %v7935_v48 = vmul.f32 %v7852_v12, %v7852_v12 }
 0xfe6   : > { %9099 = vmatmul.msk.f32.vlgmr.msra.gmra.mxu2 %vm7903_vm1, %v7935_v48  ;;  %v10344_v48 = vmov 6084.0  }
 0xfeb   : > { %v7854_v59 = vpop.f32.mrf.mxu0 }
 0xfec   : > { %v7899_v10 = vsel %vm7518_vm11, %v7854_v59, 0.0  ;;  %v7936_v9 = vmul.f32 %v7854_v59, %v7854_v59 }
 0xfed   : > { %v7901_v63 = vpack.c.bf16 %v7899_v10, %v7852_v12  ;;  %v10346_v10 = vmov 144.0  }
 0xfee   : > { %v7941_v5 = vsel %vm7518_vm11, %v7936_v9, 0.0 }
 0xfef   : > { %9096 = vmatmul.msk.bf16.vlgmr.msra.gmra.mxu0 %vm7903_vm1, %v7901_v63  ;;  %9100 = vmatmul.msk.f32.gmra.mxu2 %vm7903_vm1, %v7941_v5 }
 0xff3   : > { %v7779_v25 = vpop.xlane.xlu1 %7778 }
 0xff4   : > { %v7780_v51 = vrot.slane %v7779_v25, 4 }
 0xff5   : > { %v7889_v8 = vpop.f32.mrf.mxu1 }
 0xff6   : > { %v7781_v21 = vadd.f32 %v7780_v51, %v7779_v25  ;;  %v7937_v4 = vmul.f32 %v7889_v8, %v7889_v8  ;;  %v7939_v33 = vmul.f32 %v7889_v8, %v7852_v12  ;;  %v10343_v12 = vmov 27556.0  }
 0xff8   : > { %v7782_v44 = vrot.slane %v7781_v21, 2  ;;  %9101 = vmatmul.msk.f32.gmra.mxu2 %vm7903_vm1, %v7937_v4 }
 0xffa   : > { %v7783_v11 = vadd.f32 %v7782_v44, %v7781_v21 }
 0xffc   : > { %v7784_v52 = vrot.slane %v7783_v11, 1 }
 0xffd   : > { %v7891_v57 = vpop.f32.mrf.mxu1 }
 0xffe   : > { %v7900_v28 = vsel %vm7518_vm11, %v7891_v57, 0.0  ;;  %v7938_v17 = vmul.f32 %v7891_v57, %v7891_v57  ;;  %v7785_v13 = vadd.f32 %v7784_v52, %v7783_v11  ;;  %v7940_v39 = vmul.f32 %v7891_v57, %v7854_v59 }
 0xfff   : > { %v7902_v26 = vpack.c.bf16 %v7900_v28, %v7889_v8  ;;  %v10345_v59 = vmov 1156.0  }
0x1000   : > { %9161 = vpush %v7785_v13  ;;  %v7942_v42 = vsel %vm7518_vm11, %v7938_v17, 0.0  ;;  %v7943_v41 = vsel %vm7518_vm11, %v7940_v39, 0.0  ;;  %vm8125_vm11 = vcmask 32768  }
0x1001   : > { %9097 = vmatmul.msk.bf16.gmra.mxu0 %vm7903_vm1, %v7902_v26  ;;  %9102 = vmatmul.msk.f32.gmra.mxu2 %vm7903_vm1, %v7942_v42 }
0x1009   : > { %9103 = vmatmul.msk.f32.gmra.mxu2 %vm7903_vm1, %v7939_v33 }
0x1011   : > { %9104 = vmatmul.msk.f32.gmra.mxu2 %vm7903_vm1, %v7943_v41 }
0x1031   : > { %s9162_s13 = spop %9161 }
0x1069   : > { %v7982_v40 = vpop.f32.mrf.mxu2 }
0x106c   : > { %v7925_v37 = vpop.f32.mrf.mxu0 }
0x1072   : > { %v7985_v1 = vpop.f32.mrf.mxu2 }
0x1074   : > { %v7927_v18 = vpop.f32.mrf.mxu0 }
0x1075   : > { %v8000_v45 = vpack.c.bf16 %v7927_v18, %v7925_v37 }
0x1077   : > { %8012 = vmatpush.bf16.msrb.mxu3 %v8000_v45 }
0x107a   : > { %9105 = vmatmul.msk.bf16.vlgmr.msrb.gmra.mxu3 %vm8001_vm2, %v7897_v56 }
0x107b   : > { %8049 = vmatpush.msra.mxu3 %v7985_v1  ;;  %v7988_v20 = vpop.f32.mrf.mxu2  ;;  %v7347_v1 = vstv %s9160_s0 }
0x107d   : > { %8050 = vmatpush.msra.mxu3 %v7982_v40  ;;  %v6641_v40 = vstv %s9158_s2 }
0x107e   : > { %v7930_v31 = vpop.f32.mrf.mxu0 }
0x1084   : > { %v7991_v23 = vpop.f32.mrf.mxu2 }
0x1086   : > { %v7932_v55 = vpop.f32.mrf.mxu0 }
0x1087   : > { %v8018_v54 = vpack.c.bf16 %v7932_v55, %v7930_v31 }
0x1089   : > { %8026 = vmatpush.bf16.msrb.mxu1 %v8018_v54 }
0x108a   : > { %9107 = vmatmul.msk.f32.vlgmr.msra.gmra.mxu3 %vm8001_vm2, %v7894_v61 }
0x108c   : > { %v7994_v53 = vpop.f32.mrf.mxu2  ;;  %9106 = vmatmul.msk.bf16.vlgmr.msrb.gmra.mxu1 %vm8001_vm2, %v7897_v56  ;;  %v7787_v56 = vstv %s9162_s13 }
0x108d   : > { %8069 = vmatpush.msra.mxu1 %v7991_v23 }
0x108f   : > { %8070 = vmatpush.msra.mxu1 %v7988_v20 }
0x1094   : > { %v7997_v49 = vpop.f32.mrf.mxu2 }
0x1095   : > { %8089 = vmatpush.msrb.mxu3 %v7997_v49 }
0x1097   : > { %8090 = vmatpush.msrb.mxu3 %v7994_v53 }
0x1098   : > { %9109 = vmatmul.msk.f32.vlgmr.msrb.gmra.mxu3 %vm8001_vm2, %v7894_v61 }
0x109c   : > { %9108 = vmatmul.msk.f32.vlgmr.msra.gmra.mxu1 %vm8001_vm2, %v7894_v61  ;;  %v5133_v61 = vstv %s9156_s6 }
0x10fd   : > { %v8014_v3 = vpop.f32.mrf.mxu3 }
0x10fe   : > { %v8095_v43 = vmul.f32 %v8014_v3, %v8014_v3 }
0x1105   : > { %v8016_v47 = vpop.f32.mrf.mxu3 }
0x1109   : > { %v8028_v15 = vpop.f32.mrf.mxu1 }
0x110a   : > { %v8096_v19 = vmul.f32 %v8028_v15, %v8028_v15  ;;  %v8097_v62 = vmul.f32 %v8028_v15, %v8014_v3 }
0x110c   : > { %v8109_v29 = vadd.f32 %v8096_v19, %v8095_v43  ;;  %v8107_v16 = vmul.f32 2.0, %v8097_v62 }
0x110d   : > { %v8052_v24 = vpop.f32.mrf.mxu3 }
0x110e   : > { %v8110_v27 = vadd.f32 6.5025, %v8109_v29  ;;  %v8098_v35 = vsub.f32 %v8052_v24, %v8095_v43  ;;  %v8108_v34 = vadd.f32 6.5025, %v8107_v16 }
0x1110   : > { %9499 = vrcp.f32 %v8110_v27 }
0x1111   : > { %v8030_v2 = vpop.f32.mrf.mxu1 }
0x1116   : > { %v9500_v46 = vpop.eup %9499 }
0x1117   : > { %v8112_v30 = vmul.f32 %v9500_v46, %v8108_v34 }
0x1119   : > { %v8072_v6 = vpop.f32.mrf.mxu1 }
0x111a   : > { %v8099_v50 = vsub.f32 %v8072_v6, %v8096_v19 }
0x111b   : > { %v8092_v32 = vpop.f32.mrf.mxu3 }
0x111c   : > { %v8103_v7 = vadd.f32 %v8099_v50, %v8098_v35  ;;  %v8100_v60 = vsub.f32 %v8092_v32, %v8097_v62 }
0x111e   : > { %v8104_v36 = vadd.f32 58.5225, %v8103_v7  ;;  %v8101_v38 = vmul.f32 2.0, %v8100_v60 }
0x1120   : > { %9501 = vrcp.f32 %v8104_v36  ;;  %v8102_v0 = vadd.f32 58.5225, %v8101_v38 }
0x1121   : > { %9503 = vrcp.f32 %v10343_v12 }
0x1122   : > { %9505 = vrcp.f32 %v10344_v48 }
0x1123   : > { %9507 = vrcp.f32 %v10345_v59 }
0x1124   : > { %9509 = vrcp.f32 %v10346_v10 }
0x1126   : > { %v9502_v22 = vpop.eup %9501 }
0x1127   : > { %v8106_v14 = vmul.f32 %v9502_v22, %v8102_v0  ;;  %v9504_v9 = vpop.eup %9503 }
0x1128   : > { %v9506_v63 = vpop.eup %9505  ;;  %v5135_v21 = vmul.f32 27556.0, %v9504_v9  ;;  %vm5139_vm5 = vweird.f32 %v9504_v9 }
0x1129   : > { %v8113_v58 = vmul.f32 %v8112_v30, %v8106_v14  ;;  %v9508_v5 = vpop.eup %9507  ;;  %v6643_v51 = vmul.f32 6084.0, %v9506_v63  ;;  %vm6647_vm3 = vweird.f32 %v9506_v63 }
0x112a   : > { %v9510_v25 = vpop.eup %9509  ;;  %v7349_v8 = vmul.f32 1156.0, %v9508_v5  ;;  %v5136_v52 = vsub.f32 1.0, %v5135_v21  ;;  %vm7353_vm4 = vweird.f32 %v9508_v5 }
0x112b   : > { %9163 = vpush %v8113_v58  ;;  %v7789_v4 = vmul.f32 144.0, %v9510_v25  ;;  %v6644_v44 = vsub.f32 1.0, %v6643_v51  ;;  %vm7793_vm6 = vweird.f32 %v9510_v25 }
0x112c   : > { %v7350_v11 = vsub.f32 1.0, %v7349_v8  ;;  %v5137_v13 = vmul.f32 %v9504_v9, %v5136_v52 }
0x112d   : > { %v7790_v57 = vsub.f32 1.0, %v7789_v4  ;;  %v6645_v28 = vmul.f32 %v9506_v63, %v6644_v44 }
0x112e   : > { %v7351_v17 = vmul.f32 %v9508_v5, %v7350_v11  ;;  %v5138_v39 = vadd.f32 %v9504_v9, %v5137_v13 }
0x112f   : > { %v7791_v26 = vmul.f32 %v9510_v25, %v7790_v57  ;;  %v6646_v42 = vadd.f32 %v9506_v63, %v6645_v28 }
0x1130   : > { %v7352_v33 = vadd.f32 %v9508_v5, %v7351_v17  ;;  %v5140_v45 = vsel %vm5139_vm5, %v9504_v9, %v5138_v39 }
0x1131   : > { %v7792_v41 = vadd.f32 %v9510_v25, %v7791_v26  ;;  %v6648_v37 = vsel %vm6647_vm3, %v9506_v63, %v6646_v42  ;;  %v5141_v55 = vmul.f32 %v5140_v45, %v5133_v61 }
0x1132   : > { %v7354_v18 = vsel %vm7353_vm4, %v9508_v5, %v7352_v33  ;;  %v6649_v31 = vmul.f32 %v6648_v37, %v6641_v40 }
0x1133   : > { %v7794_v20 = vsel %vm7793_vm6, %v9510_v25, %v7792_v41  ;;  %v7355_v23 = vmul.f32 %v7354_v18, %v7347_v1 }
0x1134   : > { %v7795_v54 = vmul.f32 %v7794_v20, %v7787_v56  ;;  %v8118_v53 = vsel %vm8117_vm7, %v5141_v55, %v6649_v31 }
0x1135   : > { %v8120_v49 = vsel %vm8119_vm8, %v8118_v53, %v7355_v23 }
0x1136   : > { %v8122_v47 = vsel %vm8121_vm9, %v8120_v49, %v7795_v54 }
0x115c   : > { %s9164_s12 = spop %9163 }
0x115d   : > { %v8116_v3 = vstv %s9164_s12 }
0x115e   : > { %v8124_v15 = vsel %vm8123_vm10, %v8122_v47, %v8116_v3 }
0x115f   : > { %8126 = vst.msk [vmem:[%s953_s8] sm:$0x1] %vm8125_vm11, %v8124_v15 }
0x1160 PF: > { %p41_p3 = scmp.ge.s32.totalorder %s10619_s28, 4   ;;  %s16179_s1 = smov %s10310_s22 }
0x1161   : > { %s16180_s22 = smov %s10314_s23  ;;  %s16181_s23 = smov %s10631_s30 }
0x1162   : > { %s16182_s24 = smov %s10619_s28  ;;  %43 = sbr.rel (!%p41_p3) target bundleno = 30 (0x1e), region = 217 }
0x1167   :  { %8144 = vsyncpa [#allocation3], 1 }
0x1168   :  { %8146 = vsyncpa [#allocation3 + $0x1], 1 }
0x1169   :  { %8147 = vsyncpa [#allocation5], 1 }
0x116a   :  { %8149 = vsyncpa [#allocation5 + $0x1], 1 }
0x116b   :  { %8150 = vsyncpa [#allocation8], 1 }
0x116c   :  { %8151 = vsyncpa [#allocation11], 1 }
0x116d   :  { %8152 = vsyncpa [#allocation14], 1 }
0x116e   :  { %8153 = vsyncpa [#allocation17], 1 }
0x116f   :  { %8154 = vsyncpa [#allocation20], 1 }
0x1170   :  { %8155 = vsyncpa [#allocation23], 1 }
0x1171   :  { %8156 = vsyncpa [#allocation26], 1 }
0x1172   :  { %8157 = vsyncpa [#allocation29], 1 }

</bundles_post_ra>
